<compile_context>
chip_gen: v7x
topology: tpu7x:2x2x1
jax: 0.10.0
libtpu: 0.0.40
codegen_flags: <defaults>
</compile_context>

<pallas_src>
import functools

import jax
import jax.numpy as jnp
from jax import lax
from jax.experimental import pallas as pl
from jax.experimental.pallas import tpu as pltpu


NUM_KP = 21
PATCH = 32


def _leaky(x):
    return jnp.where(x > 0, x, 0.01 * x)


def _relu(x):
    return jnp.maximum(x, 0.0)


# ----------------------------------------------------------------------------
# The fused kernel: one grid step == one batch element.
# ----------------------------------------------------------------------------
def _handdgp_kernel(
    # per-batch inputs
    patches_ref, kmat_ref,
    # shared weights
    jt_ref,
    bw_ref, bb_ref,
    d3lw_ref, d3lb_ref,
    d2lw_ref, d2lb_ref,
    wl1w_ref, wl1b_ref,
    wl2wt_ref, wl2b_ref,
    k1wt_ref, k1b_ref, k2wt_ref, k2b_ref, k3wt_ref, k3b_ref,
    g1w_ref, g1b_ref, g2w_ref, g2b_ref,
    h1w_ref, h1b_ref, h2w_ref, h2b_ref, h3w_ref, h3b_ref,
    # outputs
    kpt_ref, verts_ref, logits_ref, wts_ref, transl_ref,
    vcs_ref, kcs_ref, v2d_ref, k2d_ref,
    *, hand_scale, image_size, Hf, Wf, num_verts):
    f32 = jnp.float32
    bf16 = jnp.bfloat16
    S = Hf * Wf
    V = num_verts
    eps = 1e-6
    inv_img = 1.0 / image_size

    # ---- backbone patch-embedding stand-in (bf16 MXU, f32 accumulate) ----
    x = patches_ref[0]                                        # (S, 3*P*P) bf16
    feat = jnp.dot(x, bw_ref[...], preferred_element_type=f32) + bb_ref[...]
    feat = _relu(feat)                                        # (S, num_ch) f32, stays in VMEM
    feat_b = feat.astype(bf16)

    # ---- decoder3d_latent head (1x1 conv + ReLU) + spatial mean-pool ----
    lat3 = _relu(jnp.dot(feat_b, d3lw_ref[...], preferred_element_type=f32)
                 + d3lb_ref[...])                             # (S, L3)
    pooled = jnp.mean(lat3, axis=0, keepdims=True)            # (1, L3)

    # ---- decoder2d_latent head (1x1 conv), spatial on sublanes ----
    lat2d = (jnp.dot(feat_b, d2lw_ref[...], preferred_element_type=f32)
             + d2lb_ref[...])                                 # (S, 21)

    # ---- decoderw_latent head: conv1x1 -> folded BN -> LeakyReLU -> conv1x1.
    #      Second conv is done with a rhs-transposed dot so the result already
    #      has channels on sublanes (no in-kernel transpose needed later). ----
    wl = _leaky(jnp.dot(feat_b, wl1w_ref[...], preferred_element_type=f32)
                + wl1b_ref[...])                              # (S, Wmid)
    latw_T = lax.dot_general(wl2wt_ref[...], wl.astype(bf16),
                             (((1,), (1,)), ((), ())),
                             preferred_element_type=f32) + wl2b_ref[...]   # (C, S)

    # ---- decoder2d keypoint MLP, computed transposed (keypoints on lanes) ----
    a1 = _relu(jnp.dot(k1wt_ref[...], lat2d.astype(bf16),
                       preferred_element_type=f32) + k1b_ref[...])   # (64, 21)
    a2 = _relu(jnp.dot(k2wt_ref[...], a1.astype(bf16),
                       preferred_element_type=f32) + k2b_ref[...])   # (32, 21)
    kT = (jnp.dot(k3wt_ref[...], a2.astype(bf16),
                  preferred_element_type=f32) + k3b_ref[...])        # (2, 21): x row, y row
    kpt_ref[0] = kT

    # ---- grid_sample(bilinear, align_corners=True, grid pre-clamped to [-1,1])
    #      as a one-hot interpolation matrix (cells on sublanes, kpts on lanes) ----
    gx = jnp.clip((kT[0:1, :] - 0.5) * 2.0, -1.0, 1.0)
    gy = jnp.clip((kT[1:2, :] - 0.5) * 2.0, -1.0, 1.0)
    ix = (gx + 1.0) * 0.5 * (Wf - 1)
    iy = (gy + 1.0) * 0.5 * (Hf - 1)
    x0f = jnp.floor(ix)
    y0f = jnp.floor(iy)
    fxr = ix - x0f
    fyr = iy - y0f
    x0 = x0f.astype(jnp.int32)
    y0 = y0f.astype(jnp.int32)
    cell = lax.broadcasted_iota(jnp.int32, (S, NUM_KP), 0)
    wb = jnp.zeros((S, NUM_KP), f32)
    for dy in (0, 1):
        for dx in (0, 1):
            xi = x0 + dx
            yi = y0 + dy
            wgt = (fxr if dx else (1.0 - fxr)) * (fyr if dy else (1.0 - fyr))
            valid = ((xi >= 0) & (xi <= Wf - 1) &
                     (yi >= 0) & (yi <= Hf - 1)).astype(f32)
            flat = yi * Wf + xi
            wb = wb + (cell == flat).astype(f32) * (wgt * valid)
    samples_T = jnp.dot(latw_T, wb, preferred_element_type=f32)      # (C, 21) channel-major

    # ---- decoderw MLP + sigmoid.  Layer 1 contracts the flattened (C*21)
    #      features channel-block by channel-block (weight pre-reshaped to
    #      (C, 21, 64) in the wrapper) so no in-kernel flatten is needed. ----
    C = samples_T.shape[0]
    h = None
    for c in range(C):
        term = jnp.dot(samples_T[c:c + 1, :].astype(bf16), h1w_ref[c],
                       preferred_element_type=f32)
        h = term if h is None else h + term
    h = _leaky(h + h1b_ref[...])                              # (1, 64)
    h = _leaky(jnp.dot(h.astype(bf16), h2w_ref[...],
                       preferred_element_type=f32) + h2b_ref[...])   # (1, 32)
    logits = (jnp.dot(h.astype(bf16), h3w_ref[...],
                      preferred_element_type=f32) + h3b_ref[...])    # (1, 21)
    wts = 1.0 / (1.0 + jnp.exp(-logits))
    logits_ref[0] = logits
    wts_ref[0] = wts

    # ---- decoder3d stand-in MLP (flat output is axis-major: x..x, y..y, z..z) ----
    d3_in = jnp.concatenate([kT[0:1, :], kT[1:2, :], pooled], axis=1)   # (1, 42 + L3)
    gh = _relu(jnp.dot(d3_in.astype(bf16), g1w_ref[...],
                       preferred_element_type=f32) + g1b_ref[...])      # (1, 128)
    vflat = (jnp.dot(gh.astype(bf16), g2w_ref[...],
                     preferred_element_type=f32) + g2b_ref[...])        # (1, 3V)
    vT = jnp.concatenate([vflat[:, 0:V], vflat[:, V:2 * V], vflat[:, 2 * V:3 * V]],
                         axis=0)                                        # (3, V), verts on lanes
    verts_ref[0] = vT
    vsT = vT * hand_scale

    # ---- keypoint regression (kept f32 for accuracy) ----
    jt = jt_ref[...]                                          # (V, 21) f32
    k3t = jnp.dot(vsT, jt, preferred_element_type=f32)        # (3, 21)
    jrow = jnp.sum(jt, axis=0, keepdims=True)                 # (1, 21) j_reg row sums

    # ---- DGP translation: weighted-DLT normal equations, closed-form 3x3 solve.
    # TODO(synk): original dgp() source not provided; weighted-DLT reconstruction.
    kb = kmat_ref[0]                                          # (3, 3)
    fx = kb[0:1, 0:1]
    fy = kb[1:2, 1:2]
    cx = kb[0:1, 2:3]
    cy = kb[1:2, 2:3]
    u = kT[0:1, :] * image_size
    v = kT[1:2, :] * image_size
    X = k3t[0:1, :]
    Y = k3t[1:2, :]
    Z = k3t[2:3, :]
    w = wts
    au = cx - u
    av = cy - v
    bu = (u - cx) * Z - fx * X
    bv = (v - cy) * Z - fy * Y
    rows = jnp.concatenate(
        [w * fx * fx,                # AtA[0,0]
         w * fx * au,                # AtA[0,2]
         w * fy * fy,                # AtA[1,1]
         w * fy * av,                # AtA[1,2]
         w * (au * au + av * av),    # AtA[2,2]
         w * fx * bu,                # Atb[0]
         w * fy * bv,                # Atb[1]
         w * (au * bu + av * bv)],   # Atb[2]
        axis=0)                      # (8, 21) -> single lane reduction
    s = jnp.sum(rows, axis=1, keepdims=True)                  # (8, 1)

    # Rescale the whole system to O(1) before the cofactor solve (solution-
    # invariant, better f32 conditioning since AtA entries span ~fx^2).
    sc = 1.0 / (fx * fy)
    a_ = (s[0:1, 0:1] + eps) * sc
    e_ = s[1:2, 0:1] * sc
    b_ = (s[2:3, 0:1] + eps) * sc
    f_ = s[3:4, 0:1] * sc
    c_ = (s[4:5, 0:1] + eps) * sc
    r0 = s[5:6, 0:1] * sc
    r1 = s[6:7, 0:1] * sc
    r2 = s[7:8, 0:1] * sc

    C00 = b_ * c_ - f_ * f_
    C01 = f_ * e_
    C02 = -b_ * e_
    C11 = a_ * c_ - e_ * e_
    C12 = -a_ * f_
    C22 = a_ * b_
    det = a_ * C00 + e_ * C02
    inv_det = 1.0 / det
    t0 = (C00 * r0 + C01 * r1 + C02 * r2) * inv_det
    t1 = (C01 * r0 + C11 * r1 + C12 * r2) * inv_det
    t2 = (C02 * r0 + C12 * r1 + C22 * r2) * inv_det
    transl_ref[0] = jnp.concatenate([t0, t1, t2], axis=1)     # (1, 3)
    t_col = jnp.concatenate([t0, t1, t2], axis=0)             # (3, 1)

    # ---- camera space.  kcs = k3t + rowsum(j_reg) * t (exact, no 2nd K=778 dot) ----
    vcs = vsT + t_col                                         # (3, V)
    kcs = k3t + jrow * t_col                                  # (3, 21)
    vcs_ref[0] = vcs
    kcs_ref[0] = kcs

    # ---- perspective projections: K=3 contraction as VPU FMAs, EUP reciprocal ----
    def project(p):
        px = p[0:1, :]
        py = p[1:2, :]
        pz = p[2:3, :]
        q0 = kb[0:1, 0:1] * px + kb[0:1, 1:2] * py + kb[0:1, 2:3] * pz
        q1 = kb[1:2, 0:1] * px + kb[1:2, 1:2] * py + kb[1:2, 2:3] * pz
        q2 = kb[2:3, 0:1] * px + kb[2:3, 1:2] * py + kb[2:3, 2:3] * pz
        inv_q2 = pl.reciprocal(q2, approx=True)
        return jnp.concatenate([q0 * inv_q2, q1 * inv_q2], axis=0) * inv_img

    v2d_ref[0] = project(vcs)
    k2d_ref[0] = project(kcs)


# ----------------------------------------------------------------------------
# Parameters (stand-ins for backbone / SpiralNet decoder / j_reg).
# ----------------------------------------------------------------------------
def _dense(key, fan_in, fan_out, scale=0.05, dtype=jnp.float32):
    kw, kb = jax.random.split(key)
    w = (jax.random.normal(kw, (fan_in, fan_out), jnp.float32) * scale).astype(dtype)
    b = jax.random.normal(kb, (fan_out,), jnp.float32) * scale
    return w, b


def init_params(key, *, input_size=64, num_ch=128, latent_size=64,
                num_kp=21, num_verts=778, w_mid=32, weights_dim=16):
    Hf = Wf = input_size // PATCH
    keys = jax.random.split(key, 16)
    bf16 = jnp.bfloat16
    params = {}
    # TODO(synk): stand-in for the timm resnet50 `features_only` backbone.
    params["backbone_w"], params["backbone_b"] = _dense(keys[0], 3 * PATCH * PATCH,
                                                        num_ch, dtype=bf16)
    params["d3lat_w"], params["d3lat_b"] = _dense(keys[1], num_ch, latent_size, dtype=bf16)
    params["d2lat_w"], params["d2lat_b"] = _dense(keys[2], num_ch, num_kp, dtype=bf16)
    params["decoder2d"] = [
        _dense(keys[3], Hf * Wf, input_size, dtype=bf16),
        _dense(keys[4], input_size, input_size // 2, dtype=bf16),
        _dense(keys[5], input_size // 2, 2, dtype=bf16),
    ]
    # TODO(synk): stand-in for the SpiralNet Decoder3D (spiral conv mesh decoder);
    # its flat output is interpreted axis-major ([x_0..x_V, y_0..y_V, z_0..z_V]).
    params["decoder3d"] = [
        _dense(keys[6], 2 * num_kp + latent_size, 128, dtype=bf16),
        _dense(keys[7], 128, num_verts * 3, dtype=bf16),
    ]
    # decoderw_latent: conv1x1 -> BatchNorm2d(eval, identity init, folded) -> LeakyReLU -> conv1x1
    w1, b1 = _dense(keys[8], num_ch, w_mid)
    bn_scale = 1.0 / jnp.sqrt(1.0 + 1e-5)
    params["wlat1_w"] = (w1 * bn_scale).astype(bf16)
    params["wlat1_b"] = b1 * bn_scale
    params["wlat2_w"], params["wlat2_b"] = _dense(keys[9], w_mid, weights_dim, dtype=bf16)
    params["decoderw"] = [
        _dense(keys[10], weights_dim * num_kp, 64, dtype=bf16),
        _dense(keys[11], 64, 32, dtype=bf16),
        _dense(keys[12], 32, num_kp, dtype=bf16),
    ]
    # TODO(synk): j_reg.npy / mano_to_mpii not available; deterministic synthetic
    # joint regressor with rows summing to 1 (kept f32 for the K=778 contraction).
    jr = jax.random.uniform(keys[13], (num_kp, num_verts), jnp.float32)
    params["j_reg"] = jr / jnp.sum(jr, axis=1, keepdims=True)
    return params


# ----------------------------------------------------------------------------
# Wrapper: normalization + patchify (layout plumbing), one pallas_call, tiny
# output transposes.
# ----------------------------------------------------------------------------
def handdgp_forward(params, x, intrinsics, hand_scale=0.2):
    B = x.shape[0]
    image_size = x.shape[-1]
    Hf = image_size // PATCH
    Wf = image_size // PATCH
    S = Hf * Wf
    num_kp = NUM_KP

    # normaliser (torchvision Normalize, ImageNet stats), NCHW
    mean = jnp.array([0.485, 0.456, 0.406], jnp.float32).reshape(1, 3, 1, 1)
    std = jnp.array([0.229, 0.224, 0.225], jnp.float32).reshape(1, 3, 1, 1)
    xn = (x - mean) / std

    # patchify for the backbone stand-in; pre-cast to bf16 (halves the HBM read)
    patches = xn.reshape(B, 3, Hf, PATCH, Wf, PATCH)
    patches = jnp.transpose(patches, (0, 2, 4, 1, 3, 5)).reshape(B, S, 3 * PATCH * PATCH)
    patches = patches.astype(jnp.bfloat16)

    Kmat = intrinsics[:, :3, :3].astype(jnp.float32)
    j_regT = params["j_reg"].T                                  # (V, 21) f32
    V = j_regT.shape[0]

    (k1w, k1b), (k2w, k2b), (k3w, k3b) = params["decoder2d"]
    (g1w, g1b), (g2w, g2b) = params["decoder3d"]
    (h1w, h1b), (h2w, h2b), (h3w, h3b) = params["decoderw"]
    Cw = params["wlat2_b"].shape[0]

    # tiny layout plumbing done on *weights* (not per-forward activations)
    wl2wt = params["wlat2_w"].T                                 # (C, Wmid) bf16
    wl2b = params["wlat2_b"].reshape(-1, 1)                     # (C, 1)
    k1wt, k2wt, k3wt = k1w.T, k2w.T, k3w.T                      # keypoints-on-lanes MLP
    h1w_r = h1w.reshape(Cw, num_kp, h1w.shape[1])               # (C, 21, 64)

    kernel = functools.partial(
        _handdgp_kernel,
        # TODO(synk): hand_scale is treated as a static Python float (the
        # original also accepts a tensor).
        hand_scale=float(hand_scale), image_size=float(image_size),
        Hf=Hf, Wf=Wf, num_verts=V)

    def batch_spec(shape):
        nd = len(shape)
        return pl.BlockSpec((1,) + tuple(shape[1:]),
                            lambda b: (b,) + (0,) * (nd - 1))

    def const_spec(shape):
        nd = len(shape)
        return pl.BlockSpec(tuple(shape), lambda b: (0,) * nd)

    inputs = [
        patches, Kmat, j_regT,
        params["backbone_w"], params["backbone_b"].reshape(1, -1),
        params["d3lat_w"], params["d3lat_b"].reshape(1, -1),
        params["d2lat_w"], params["d2lat_b"].reshape(1, -1),
        params["wlat1_w"], params["wlat1_b"].reshape(1, -1),
        wl2wt, wl2b,
        k1wt, k1b.reshape(-1, 1), k2wt, k2b.reshape(-1, 1), k3wt, k3b.reshape(-1, 1),
        g1w, g1b.reshape(1, -1), g2w, g2b.reshape(1, -1),
        h1w_r, h1b.reshape(1, -1), h2w, h2b.reshape(1, -1), h3w, h3b.reshape(1, -1),
    ]
    in_specs = ([batch_spec(patches.shape), batch_spec(Kmat.shape)]
                + [const_spec(a.shape) for a in inputs[2:]])

    out_shape = (
        jax.ShapeDtypeStruct((B, 2, num_kp), jnp.float32),   # keypoints2D^T
        jax.ShapeDtypeStruct((B, 3, V), jnp.float32),        # mesh_vertices3D^T
        jax.ShapeDtypeStruct((B, 1, num_kp), jnp.float32),   # weight_logits
        jax.ShapeDtypeStruct((B, 1, num_kp), jnp.float32),   # weights
        jax.ShapeDtypeStruct((B, 1, 3), jnp.float32),        # translation
        jax.ShapeDtypeStruct((B, 3, V), jnp.float32),        # mesh_vertices3D_cs^T
        jax.ShapeDtypeStruct((B, 3, num_kp), jnp.float32),   # keypoints3D_cs^T
        jax.ShapeDtypeStruct((B, 2, V), jnp.float32),        # verts2d_from_3d^T / image_size
        jax.ShapeDtypeStruct((B, 2, num_kp), jnp.float32),   # kpts2d_from_3d^T / image_size
    )
    out_specs = tuple(batch_spec(s.shape) for s in out_shape)

    # NOTE: at these shapes (<4 MiB resident) the default scoped-VMEM limit is
    # ample on every TPU generation; tile M / set vmem_limit_bytes before
    # scaling input_size or batch.
    outs = pl.pallas_call(
        kernel,
        out_shape=out_shape,
        grid=(B,),
        in_specs=in_specs,
        out_specs=out_specs,
        compiler_params=pltpu.CompilerParams(
            dimension_semantics=("parallel",)),   # v7x: shard batch across both TCs
    )(*inputs)

    (kptT, vertsT, logits, wts, transl, vcsT, kcsT, v2dT, k2dT) = outs

    return {
        "keypoints2D": jnp.transpose(kptT, (0, 2, 1)),
        "mesh_vertices3D": jnp.transpose(vertsT, (0, 2, 1)),
        "mesh_vertices2D_from_3D": jnp.transpose(v2dT, (0, 2, 1)),
        "keypoints2D_from_3D": jnp.transpose(k2dT, (0, 2, 1)),
        "translation": transl.reshape(B, 3),
        "mesh_vertices3D_cs": jnp.transpose(vcsT, (0, 2, 1)),
        "keypoints3D_cs": jnp.transpose(kcsT, (0, 2, 1)),
        "weights": wts.reshape(B, num_kp),
        "weight_logits": logits.reshape(B, num_kp),
    }


if __name__ == "__main__":
    key = jax.random.PRNGKey(0)
    kx, kp = jax.random.split(key)

    B, input_size = 2, 64
    x = jax.random.uniform(kx, (B, 3, input_size, input_size), jnp.float32)
    fx = fy = 100.0
    cx = cy = input_size / 2.0
    K = jnp.array([[fx, 0.0, cx], [0.0, fy, cy], [0.0, 0.0, 1.0]], jnp.float32)
    intrinsics = jnp.broadcast_to(K[None], (B, 3, 3))

    params = init_params(kp, input_size=input_size)

    fwd = jax.jit(handdgp_forward)
    out = fwd(params, x, intrinsics)
    out = jax.block_until_ready(out)

    assert out["keypoints2D"].shape == (B, 21, 2)
    assert out["mesh_vertices3D"].shape == (B, 778, 3)
    assert out["mesh_vertices2D_from_3D"].shape == (B, 778, 2)
    assert out["keypoints2D_from_3D"].shape == (B, 21, 2)
    assert out["mesh_vertices3D_cs"].shape == (B, 778, 3)
    assert out["keypoints3D_cs"].shape == (B, 21, 3)
    assert out["translation"].shape == (B, 3)
    assert out["weights"].shape == (B, 21)
    assert out["weight_logits"].shape == (B, 21)
    print("KERNEL_OK")
</pallas_src>

<mosaic_0001>
module attributes {stable_mosaic.version = 11 : i64} {
  func.func @_handdgp_kernel(%arg0: i32, %arg1: memref<1x4x3072xbf16, #tpu.memory_space<vmem>>, %arg2: memref<1x3x3xf32, #tpu.memory_space<vmem>>, %arg3: memref<778x21xf32, #tpu.memory_space<vmem>>, %arg4: memref<3072x128xbf16, #tpu.memory_space<vmem>>, %arg5: memref<1x128xf32, #tpu.memory_space<vmem>>, %arg6: memref<128x64xbf16, #tpu.memory_space<vmem>>, %arg7: memref<1x64xf32, #tpu.memory_space<vmem>>, %arg8: memref<128x21xbf16, #tpu.memory_space<vmem>>, %arg9: memref<1x21xf32, #tpu.memory_space<vmem>>, %arg10: memref<128x32xbf16, #tpu.memory_space<vmem>>, %arg11: memref<1x32xf32, #tpu.memory_space<vmem>>, %arg12: memref<16x32xbf16, #tpu.memory_space<vmem>>, %arg13: memref<16x1xf32, #tpu.memory_space<vmem>>, %arg14: memref<64x4xbf16, #tpu.memory_space<vmem>>, %arg15: memref<64x1xf32, #tpu.memory_space<vmem>>, %arg16: memref<32x64xbf16, #tpu.memory_space<vmem>>, %arg17: memref<32x1xf32, #tpu.memory_space<vmem>>, %arg18: memref<2x32xbf16, #tpu.memory_space<vmem>>, %arg19: memref<2x1xf32, #tpu.memory_space<vmem>>, %arg20: memref<106x128xbf16, #tpu.memory_space<vmem>>, %arg21: memref<1x128xf32, #tpu.memory_space<vmem>>, %arg22: memref<128x2334xbf16, #tpu.memory_space<vmem>>, %arg23: memref<1x2334xf32, #tpu.memory_space<vmem>>, %arg24: memref<16x21x64xbf16, #tpu.memory_space<vmem>>, %arg25: memref<1x64xf32, #tpu.memory_space<vmem>>, %arg26: memref<64x32xbf16, #tpu.memory_space<vmem>>, %arg27: memref<1x32xf32, #tpu.memory_space<vmem>>, %arg28: memref<32x21xbf16, #tpu.memory_space<vmem>>, %arg29: memref<1x21xf32, #tpu.memory_space<vmem>>, %arg30: memref<1x2x21xf32, #tpu.memory_space<vmem>>, %arg31: memref<1x3x778xf32, #tpu.memory_space<vmem>>, %arg32: memref<1x1x21xf32, #tpu.memory_space<vmem>>, %arg33: memref<1x1x21xf32, #tpu.memory_space<vmem>>, %arg34: memref<1x1x3xf32, #tpu.memory_space<vmem>>, %arg35: memref<1x3x778xf32, #tpu.memory_space<vmem>>, %arg36: memref<1x3x21xf32, #tpu.memory_space<vmem>>, %arg37: memref<1x2x778xf32, #tpu.memory_space<vmem>>, %arg38: memref<1x2x21xf32, #tpu.memory_space<vmem>>) attributes {dimension_semantics = [#tpu.dimension_semantics<parallel>], iteration_bounds = array<i64: 2>, scalar_prefetch = 0 : i64, scratch_operands = 0 : i64, tpu.core_type = #tpu.core_type<tc>, window_params = [{transform_indices = @transform_0, window_bounds = array<i64: 1, 4, 3072>}, {transform_indices = @transform_1, window_bounds = array<i64: 1, 3, 3>}, {pipeline_mode = #tpu.pipeline_mode<synchronous>, transform_indices = @transform_2, window_bounds = array<i64: 778, 21>}, {pipeline_mode = #tpu.pipeline_mode<synchronous>, transform_indices = @transform_3, window_bounds = array<i64: 3072, 128>}, {pipeline_mode = #tpu.pipeline_mode<synchronous>, transform_indices = @transform_4, window_bounds = array<i64: 1, 128>}, {pipeline_mode = #tpu.pipeline_mode<synchronous>, transform_indices = @transform_5, window_bounds = array<i64: 128, 64>}, {pipeline_mode = #tpu.pipeline_mode<synchronous>, transform_indices = @transform_6, window_bounds = array<i64: 1, 64>}, {pipeline_mode = #tpu.pipeline_mode<synchronous>, transform_indices = @transform_7, window_bounds = array<i64: 128, 21>}, {pipeline_mode = #tpu.pipeline_mode<synchronous>, transform_indices = @transform_8, window_bounds = array<i64: 1, 21>}, {pipeline_mode = #tpu.pipeline_mode<synchronous>, transform_indices = @transform_9, window_bounds = array<i64: 128, 32>}, {pipeline_mode = #tpu.pipeline_mode<synchronous>, transform_indices = @transform_10, window_bounds = array<i64: 1, 32>}, {pipeline_mode = #tpu.pipeline_mode<synchronous>, transform_indices = @transform_11, window_bounds = array<i64: 16, 32>}, {pipeline_mode = #tpu.pipeline_mode<synchronous>, transform_indices = @transform_12, window_bounds = array<i64: 16, 1>}, {pipeline_mode = #tpu.pipeline_mode<synchronous>, transform_indices = @transform_13, window_bounds = array<i64: 64, 4>}, {pipeline_mode = #tpu.pipeline_mode<synchronous>, transform_indices = @transform_14, window_bounds = array<i64: 64, 1>}, {pipeline_mode = #tpu.pipeline_mode<synchronous>, transform_indices = @transform_15, window_bounds = array<i64: 32, 64>}, {pipeline_mode = #tpu.pipeline_mode<synchronous>, transform_indices = @transform_16, window_bounds = array<i64: 32, 1>}, {pipeline_mode = #tpu.pipeline_mode<synchronous>, transform_indices = @transform_17, window_bounds = array<i64: 2, 32>}, {pipeline_mode = #tpu.pipeline_mode<synchronous>, transform_indices = @transform_18, window_bounds = array<i64: 2, 1>}, {pipeline_mode = #tpu.pipeline_mode<synchronous>, transform_indices = @transform_19, window_bounds = array<i64: 106, 128>}, {pipeline_mode = #tpu.pipeline_mode<synchronous>, transform_indices = @transform_20, window_bounds = array<i64: 1, 128>}, {pipeline_mode = #tpu.pipeline_mode<synchronous>, transform_indices = @transform_21, window_bounds = array<i64: 128, 2334>}, {pipeline_mode = #tpu.pipeline_mode<synchronous>, transform_indices = @transform_22, window_bounds = array<i64: 1, 2334>}, {pipeline_mode = #tpu.pipeline_mode<synchronous>, transform_indices = @transform_23, window_bounds = array<i64: 16, 21, 64>}, {pipeline_mode = #tpu.pipeline_mode<synchronous>, transform_indices = @transform_24, window_bounds = array<i64: 1, 64>}, {pipeline_mode = #tpu.pipeline_mode<synchronous>, transform_indices = @transform_25, window_bounds = array<i64: 64, 32>}, {pipeline_mode = #tpu.pipeline_mode<synchronous>, transform_indices = @transform_26, window_bounds = array<i64: 1, 32>}, {pipeline_mode = #tpu.pipeline_mode<synchronous>, transform_indices = @transform_27, window_bounds = array<i64: 32, 21>}, {pipeline_mode = #tpu.pipeline_mode<synchronous>, transform_indices = @transform_28, window_bounds = array<i64: 1, 21>}, {transform_indices = @transform_29, window_bounds = array<i64: 1, 2, 21>}, {transform_indices = @transform_30, window_bounds = array<i64: 1, 3, 778>}, {transform_indices = @transform_31, window_bounds = array<i64: 1, 1, 21>}, {transform_indices = @transform_32, window_bounds = array<i64: 1, 1, 21>}, {transform_indices = @transform_33, window_bounds = array<i64: 1, 1, 3>}, {transform_indices = @transform_34, window_bounds = array<i64: 1, 3, 778>}, {transform_indices = @transform_35, window_bounds = array<i64: 1, 3, 21>}, {transform_indices = @transform_36, window_bounds = array<i64: 1, 2, 778>}, {transform_indices = @transform_37, window_bounds = array<i64: 1, 2, 21>}]} {
    %c0 = arith.constant 0 : index
    %c0_0 = arith.constant 0 : index
    %c0_1 = arith.constant 0 : index
    %0 = vector.load %arg1[%c0, %c0_0, %c0_1] : memref<1x4x3072xbf16, #tpu.memory_space<vmem>>, vector<1x4x3072xbf16>
    %1 = vector.shape_cast %0 : vector<1x4x3072xbf16> to vector<4x3072xbf16>
    %c0_2 = arith.constant 0 : index
    %c0_3 = arith.constant 0 : index
    %2 = vector.load %arg4[%c0_2, %c0_3] : memref<3072x128xbf16, #tpu.memory_space<vmem>>, vector<3072x128xbf16>
    %cst = arith.constant dense<0.000000e+00> : vector<4x128xf32>
    %3 = tpu.matmul %1, %2, %cst {dimension_numbers = #tpu.dot_dimension_numbers<[1], [0], [0], [1], [0, 0, 1, 1], [], []>} : vector<4x3072xbf16>, vector<3072x128xbf16>, vector<4x128xf32> -> vector<4x128xf32>
    %c0_4 = arith.constant 0 : index
    %c0_5 = arith.constant 0 : index
    %4 = vector.load %arg5[%c0_4, %c0_5] : memref<1x128xf32, #tpu.memory_space<vmem>>, vector<1x128xf32>
    %5 = vector.broadcast %4 : vector<1x128xf32> to vector<4x128xf32>
    %6 = arith.addf %3, %5 : vector<4x128xf32>
    %cst_6 = arith.constant 0.000000e+00 : f32
    %7 = vector.broadcast %cst_6 : f32 to vector<4x128xf32>
    %8 = arith.maximumf %6, %7 : vector<4x128xf32>
    %9 = arith.truncf %8 : vector<4x128xf32> to vector<4x128xbf16>
    %c0_7 = arith.constant 0 : index
    %c0_8 = arith.constant 0 : index
    %10 = vector.load %arg6[%c0_7, %c0_8] : memref<128x64xbf16, #tpu.memory_space<vmem>>, vector<128x64xbf16>
    %cst_9 = arith.constant dense<0.000000e+00> : vector<4x64xf32>
    %11 = tpu.matmul %9, %10, %cst_9 {dimension_numbers = #tpu.dot_dimension_numbers<[1], [0], [0], [1], [0, 0, 1, 1], [], []>} : vector<4x128xbf16>, vector<128x64xbf16>, vector<4x64xf32> -> vector<4x64xf32>
    %c0_10 = arith.constant 0 : index
    %c0_11 = arith.constant 0 : index
    %12 = vector.load %arg7[%c0_10, %c0_11] : memref<1x64xf32, #tpu.memory_space<vmem>>, vector<1x64xf32>
    %13 = vector.broadcast %12 : vector<1x64xf32> to vector<4x64xf32>
    %14 = arith.addf %11, %13 : vector<4x64xf32>
    %cst_12 = arith.constant 0.000000e+00 : f32
    %15 = vector.broadcast %cst_12 : f32 to vector<4x64xf32>
    %16 = arith.maximumf %14, %15 : vector<4x64xf32>
    %cst_13 = arith.constant dense<0.000000e+00> : vector<64xf32>
    %17 = vector.multi_reduction <add>, %16, %cst_13 [0] : vector<4x64xf32> to vector<64xf32>
    %18 = vector.shape_cast %17 : vector<64xf32> to vector<1x64xf32>
    %cst_14 = arith.constant 4.000000e+00 : f32
    %19 = vector.broadcast %cst_14 : f32 to vector<1x64xf32>
    %20 = arith.divf %18, %19 : vector<1x64xf32>
    %c0_15 = arith.constant 0 : index
    %c0_16 = arith.constant 0 : index
    %21 = vector.load %arg8[%c0_15, %c0_16] : memref<128x21xbf16, #tpu.memory_space<vmem>>, vector<128x21xbf16>
    %cst_17 = arith.constant dense<0.000000e+00> : vector<4x21xf32>
    %22 = tpu.matmul %9, %21, %cst_17 {dimension_numbers = #tpu.dot_dimension_numbers<[1], [0], [0], [1], [0, 0, 1, 1], [], []>} : vector<4x128xbf16>, vector<128x21xbf16>, vector<4x21xf32> -> vector<4x21xf32>
    %c0_18 = arith.constant 0 : index
    %c0_19 = arith.constant 0 : index
    %23 = vector.load %arg9[%c0_18, %c0_19] : memref<1x21xf32, #tpu.memory_space<vmem>>, vector<1x21xf32>
    %24 = vector.broadcast %23 : vector<1x21xf32> to vector<4x21xf32>
    %25 = arith.addf %22, %24 : vector<4x21xf32>
    %c0_20 = arith.constant 0 : index
    %c0_21 = arith.constant 0 : index
    %26 = vector.load %arg10[%c0_20, %c0_21] : memref<128x32xbf16, #tpu.memory_space<vmem>>, vector<128x32xbf16>
    %cst_22 = arith.constant dense<0.000000e+00> : vector<4x32xf32>
    %27 = tpu.matmul %9, %26, %cst_22 {dimension_numbers = #tpu.dot_dimension_numbers<[1], [0], [0], [1], [0, 0, 1, 1], [], []>} : vector<4x128xbf16>, vector<128x32xbf16>, vector<4x32xf32> -> vector<4x32xf32>
    %c0_23 = arith.constant 0 : index
    %c0_24 = arith.constant 0 : index
    %28 = vector.load %arg11[%c0_23, %c0_24] : memref<1x32xf32, #tpu.memory_space<vmem>>, vector<1x32xf32>
    %29 = vector.broadcast %28 : vector<1x32xf32> to vector<4x32xf32>
    %30 = arith.addf %27, %29 : vector<4x32xf32>
    %cst_25 = arith.constant 0.000000e+00 : f32
    %31 = vector.broadcast %cst_25 : f32 to vector<4x32xf32>
    %32 = arith.cmpf ogt, %30, %31 : vector<4x32xf32>
    %cst_26 = arith.constant 0.00999999977 : f32
    %33 = vector.broadcast %cst_26 : f32 to vector<4x32xf32>
    %34 = arith.mulf %33, %30 : vector<4x32xf32>
    %35 = arith.select %32, %30, %34 : vector<4x32xi1>, vector<4x32xf32>
    %c0_27 = arith.constant 0 : index
    %c0_28 = arith.constant 0 : index
    %36 = vector.load %arg12[%c0_27, %c0_28] : memref<16x32xbf16, #tpu.memory_space<vmem>>, vector<16x32xbf16>
    %37 = arith.truncf %35 : vector<4x32xf32> to vector<4x32xbf16>
    %cst_29 = arith.constant dense<0.000000e+00> : vector<16x4xf32>
    %38 = tpu.matmul %36, %37, %cst_29 {dimension_numbers = #tpu.dot_dimension_numbers<[1], [1], [0], [0], [0, 0, 1, 0], [], []>} : vector<16x32xbf16>, vector<4x32xbf16>, vector<16x4xf32> -> vector<16x4xf32>
    %c0_30 = arith.constant 0 : index
    %c0_31 = arith.constant 0 : index
    %39 = vector.load %arg13[%c0_30, %c0_31] : memref<16x1xf32, #tpu.memory_space<vmem>>, vector<16x1xf32>
    %40 = vector.broadcast %39 : vector<16x1xf32> to vector<16x4xf32>
    %41 = arith.addf %38, %40 : vector<16x4xf32>
    %c0_32 = arith.constant 0 : index
    %c0_33 = arith.constant 0 : index
    %42 = vector.load %arg14[%c0_32, %c0_33] : memref<64x4xbf16, #tpu.memory_space<vmem>>, vector<64x4xbf16>
    %43 = arith.truncf %25 : vector<4x21xf32> to vector<4x21xbf16>
    %cst_34 = arith.constant dense<0.000000e+00> : vector<64x21xf32>
    %44 = tpu.matmul %42, %43, %cst_34 {dimension_numbers = #tpu.dot_dimension_numbers<[1], [0], [0], [1], [0, 0, 1, 1], [], []>} : vector<64x4xbf16>, vector<4x21xbf16>, vector<64x21xf32> -> vector<64x21xf32>
    %c0_35 = arith.constant 0 : index
    %c0_36 = arith.constant 0 : index
    %45 = vector.load %arg15[%c0_35, %c0_36] : memref<64x1xf32, #tpu.memory_space<vmem>>, vector<64x1xf32>
    %46 = vector.broadcast %45 : vector<64x1xf32> to vector<64x21xf32>
    %47 = arith.addf %44, %46 : vector<64x21xf32>
    %cst_37 = arith.constant 0.000000e+00 : f32
    %48 = vector.broadcast %cst_37 : f32 to vector<64x21xf32>
    %49 = arith.maximumf %47, %48 : vector<64x21xf32>
    %c0_38 = arith.constant 0 : index
    %c0_39 = arith.constant 0 : index
    %50 = vector.load %arg16[%c0_38, %c0_39] : memref<32x64xbf16, #tpu.memory_space<vmem>>, vector<32x64xbf16>
    %51 = arith.truncf %49 : vector<64x21xf32> to vector<64x21xbf16>
    %cst_40 = arith.constant dense<0.000000e+00> : vector<32x21xf32>
    %52 = tpu.matmul %50, %51, %cst_40 {dimension_numbers = #tpu.dot_dimension_numbers<[1], [0], [0], [1], [0, 0, 1, 1], [], []>} : vector<32x64xbf16>, vector<64x21xbf16>, vector<32x21xf32> -> vector<32x21xf32>
    %c0_41 = arith.constant 0 : index
    %c0_42 = arith.constant 0 : index
    %53 = vector.load %arg17[%c0_41, %c0_42] : memref<32x1xf32, #tpu.memory_space<vmem>>, vector<32x1xf32>
    %54 = vector.broadcast %53 : vector<32x1xf32> to vector<32x21xf32>
    %55 = arith.addf %52, %54 : vector<32x21xf32>
    %cst_43 = arith.constant 0.000000e+00 : f32
    %56 = vector.broadcast %cst_43 : f32 to vector<32x21xf32>
    %57 = arith.maximumf %55, %56 : vector<32x21xf32>
    %c0_44 = arith.constant 0 : index
    %c0_45 = arith.constant 0 : index
    %58 = vector.load %arg18[%c0_44, %c0_45] : memref<2x32xbf16, #tpu.memory_space<vmem>>, vector<2x32xbf16>
    %59 = arith.truncf %57 : vector<32x21xf32> to vector<32x21xbf16>
    %cst_46 = arith.constant dense<0.000000e+00> : vector<2x21xf32>
    %60 = tpu.matmul %58, %59, %cst_46 {dimension_numbers = #tpu.dot_dimension_numbers<[1], [0], [0], [1], [0, 0, 1, 1], [], []>} : vector<2x32xbf16>, vector<32x21xbf16>, vector<2x21xf32> -> vector<2x21xf32>
    %c0_47 = arith.constant 0 : index
    %c0_48 = arith.constant 0 : index
    %61 = vector.load %arg19[%c0_47, %c0_48] : memref<2x1xf32, #tpu.memory_space<vmem>>, vector<2x1xf32>
    %62 = vector.broadcast %61 : vector<2x1xf32> to vector<2x21xf32>
    %63 = arith.addf %60, %62 : vector<2x21xf32>
    %c0_49 = arith.constant 0 : index
    %c0_50 = arith.constant 0 : index
    %c0_51 = arith.constant 0 : index
    %64 = vector.load %arg30[%c0_49, %c0_50, %c0_51] : memref<1x2x21xf32, #tpu.memory_space<vmem>>, vector<1x2x21xf32>
    %65 = vector.shape_cast %64 : vector<1x2x21xf32> to vector<2x21xf32>
    %66 = vector.shape_cast %63 : vector<2x21xf32> to vector<1x2x21xf32>
    tpu.vector_store %arg30[%c0_49, %c0_50, %c0_51], %66 {strides = array<i32>} : memref<1x2x21xf32, #tpu.memory_space<vmem>>, vector<1x2x21xf32>,
    %67 = vector.extract_strided_slice %63 {offsets = [0, 0], sizes = [1, 21], strides = [1, 1]} : vector<2x21xf32> to vector<1x21xf32>
    %cst_52 = arith.constant 5.000000e-01 : f32
    %68 = vector.broadcast %cst_52 : f32 to vector<1x21xf32>
    %69 = arith.subf %67, %68 : vector<1x21xf32>
    %cst_53 = arith.constant 2.000000e+00 : f32
    %70 = vector.broadcast %cst_53 : f32 to vector<1x21xf32>
    %71 = arith.mulf %69, %70 : vector<1x21xf32>
    %cst_54 = arith.constant -1.000000e+00 : f32
    %cst_55 = arith.constant 1.000000e+00 : f32
    %72 = vector.broadcast %cst_54 : f32 to vector<1x21xf32>
    %73 = arith.maximumf %72, %71 : vector<1x21xf32>
    %74 = vector.broadcast %cst_55 : f32 to vector<1x21xf32>
    %75 = arith.minimumf %74, %73 : vector<1x21xf32>
    %76 = vector.extract_strided_slice %63 {offsets = [1, 0], sizes = [1, 21], strides = [1, 1]} : vector<2x21xf32> to vector<1x21xf32>
    %cst_56 = arith.constant 5.000000e-01 : f32
    %77 = vector.broadcast %cst_56 : f32 to vector<1x21xf32>
    %78 = arith.subf %76, %77 : vector<1x21xf32>
    %cst_57 = arith.constant 2.000000e+00 : f32
    %79 = vector.broadcast %cst_57 : f32 to vector<1x21xf32>
    %80 = arith.mulf %78, %79 : vector<1x21xf32>
    %cst_58 = arith.constant -1.000000e+00 : f32
    %cst_59 = arith.constant 1.000000e+00 : f32
    %81 = vector.broadcast %cst_58 : f32 to vector<1x21xf32>
    %82 = arith.maximumf %81, %80 : vector<1x21xf32>
    %83 = vector.broadcast %cst_59 : f32 to vector<1x21xf32>
    %84 = arith.minimumf %83, %82 : vector<1x21xf32>
    %cst_60 = arith.constant 1.000000e+00 : f32
    %85 = vector.broadcast %cst_60 : f32 to vector<1x21xf32>
    %86 = arith.addf %75, %85 : vector<1x21xf32>
    %cst_61 = arith.constant 5.000000e-01 : f32
    %87 = vector.broadcast %cst_61 : f32 to vector<1x21xf32>
    %88 = arith.mulf %86, %87 : vector<1x21xf32>
    %cst_62 = arith.constant 1.000000e+00 : f32
    %89 = vector.broadcast %cst_62 : f32 to vector<1x21xf32>
    %90 = arith.mulf %88, %89 : vector<1x21xf32>
    %cst_63 = arith.constant 1.000000e+00 : f32
    %91 = vector.broadcast %cst_63 : f32 to vector<1x21xf32>
    %92 = arith.addf %84, %91 : vector<1x21xf32>
    %cst_64 = arith.constant 5.000000e-01 : f32
    %93 = vector.broadcast %cst_64 : f32 to vector<1x21xf32>
    %94 = arith.mulf %92, %93 : vector<1x21xf32>
    %cst_65 = arith.constant 1.000000e+00 : f32
    %95 = vector.broadcast %cst_65 : f32 to vector<1x21xf32>
    %96 = arith.mulf %94, %95 : vector<1x21xf32>
    %97 = math.floor %90 : vector<1x21xf32>
    %98 = math.floor %96 : vector<1x21xf32>
    %99 = arith.subf %90, %97 : vector<1x21xf32>
    %100 = arith.subf %96, %98 : vector<1x21xf32>
    %101 = arith.fptosi %97 : vector<1x21xf32> to vector<1x21xi32>
    %102 = arith.fptosi %98 : vector<1x21xf32> to vector<1x21xi32>
    %103 = tpu.iota {dimensions = array<i32: 0>} : vector<4x21xi32>
    %cst_66 = arith.constant 0.000000e+00 : f32
    %104 = vector.broadcast %cst_66 : f32 to vector<4x21xf32>
    %c0_i32 = arith.constant 0 : i32
    %105 = vector.broadcast %c0_i32 : i32 to vector<1x21xi32>
    %106 = arith.addi %101, %105 : vector<1x21xi32>
    %c0_i32_67 = arith.constant 0 : i32
    %107 = vector.broadcast %c0_i32_67 : i32 to vector<1x21xi32>
    %108 = arith.addi %102, %107 : vector<1x21xi32>
    %cst_68 = arith.constant 1.000000e+00 : f32
    %109 = vector.broadcast %cst_68 : f32 to vector<1x21xf32>
    %110 = arith.subf %109, %99 : vector<1x21xf32>
    %cst_69 = arith.constant 1.000000e+00 : f32
    %111 = vector.broadcast %cst_69 : f32 to vector<1x21xf32>
    %112 = arith.subf %111, %100 : vector<1x21xf32>
    %113 = arith.mulf %110, %112 : vector<1x21xf32>
    %c0_i32_70 = arith.constant 0 : i32
    %114 = vector.broadcast %c0_i32_70 : i32 to vector<1x21xi32>
    %115 = arith.cmpi sge, %106, %114 : vector<1x21xi32>
    %c1_i32 = arith.constant 1 : i32
    %116 = vector.broadcast %c1_i32 : i32 to vector<1x21xi32>
    %117 = arith.cmpi sle, %106, %116 : vector<1x21xi32>
    %118 = arith.andi %115, %117 : vector<1x21xi1>
    %c0_i32_71 = arith.constant 0 : i32
    %119 = vector.broadcast %c0_i32_71 : i32 to vector<1x21xi32>
    %120 = arith.cmpi sge, %108, %119 : vector<1x21xi32>
    %121 = arith.andi %118, %120 : vector<1x21xi1>
    %c1_i32_72 = arith.constant 1 : i32
    %122 = vector.broadcast %c1_i32_72 : i32 to vector<1x21xi32>
    %123 = arith.cmpi sle, %108, %122 : vector<1x21xi32>
    %124 = arith.andi %121, %123 : vector<1x21xi1>
    %125 = arith.extui %124 : vector<1x21xi1> to vector<1x21xi32>
    %126 = arith.sitofp %125 : vector<1x21xi32> to vector<1x21xf32>
    %c2_i32 = arith.constant 2 : i32
    %127 = vector.broadcast %c2_i32 : i32 to vector<1x21xi32>
    %128 = arith.muli %108, %127 : vector<1x21xi32>
    %129 = arith.addi %128, %106 : vector<1x21xi32>
    %130 = vector.broadcast %129 : vector<1x21xi32> to vector<4x21xi32>
    %131 = arith.cmpi eq, %103, %130 : vector<4x21xi32>
    %132 = arith.extui %131 : vector<4x21xi1> to vector<4x21xi32>
    %133 = arith.sitofp %132 : vector<4x21xi32> to vector<4x21xf32>
    %134 = arith.mulf %113, %126 : vector<1x21xf32>
    %135 = vector.broadcast %134 : vector<1x21xf32> to vector<4x21xf32>
    %136 = arith.mulf %133, %135 : vector<4x21xf32>
    %137 = arith.addf %104, %136 : vector<4x21xf32>
    %c1_i32_73 = arith.constant 1 : i32
    %138 = vector.broadcast %c1_i32_73 : i32 to vector<1x21xi32>
    %139 = arith.addi %101, %138 : vector<1x21xi32>
    %c0_i32_74 = arith.constant 0 : i32
    %140 = vector.broadcast %c0_i32_74 : i32 to vector<1x21xi32>
    %141 = arith.addi %102, %140 : vector<1x21xi32>
    %cst_75 = arith.constant 1.000000e+00 : f32
    %142 = vector.broadcast %cst_75 : f32 to vector<1x21xf32>
    %143 = arith.subf %142, %100 : vector<1x21xf32>
    %144 = arith.mulf %99, %143 : vector<1x21xf32>
    %c0_i32_76 = arith.constant 0 : i32
    %145 = vector.broadcast %c0_i32_76 : i32 to vector<1x21xi32>
    %146 = arith.cmpi sge, %139, %145 : vector<1x21xi32>
    %c1_i32_77 = arith.constant 1 : i32
    %147 = vector.broadcast %c1_i32_77 : i32 to vector<1x21xi32>
    %148 = arith.cmpi sle, %139, %147 : vector<1x21xi32>
    %149 = arith.andi %146, %148 : vector<1x21xi1>
    %c0_i32_78 = arith.constant 0 : i32
    %150 = vector.broadcast %c0_i32_78 : i32 to vector<1x21xi32>
    %151 = arith.cmpi sge, %141, %150 : vector<1x21xi32>
    %152 = arith.andi %149, %151 : vector<1x21xi1>
    %c1_i32_79 = arith.constant 1 : i32
    %153 = vector.broadcast %c1_i32_79 : i32 to vector<1x21xi32>
    %154 = arith.cmpi sle, %141, %153 : vector<1x21xi32>
    %155 = arith.andi %152, %154 : vector<1x21xi1>
    %156 = arith.extui %155 : vector<1x21xi1> to vector<1x21xi32>
    %157 = arith.sitofp %156 : vector<1x21xi32> to vector<1x21xf32>
    %c2_i32_80 = arith.constant 2 : i32
    %158 = vector.broadcast %c2_i32_80 : i32 to vector<1x21xi32>
    %159 = arith.muli %141, %158 : vector<1x21xi32>
    %160 = arith.addi %159, %139 : vector<1x21xi32>
    %161 = vector.broadcast %160 : vector<1x21xi32> to vector<4x21xi32>
    %162 = arith.cmpi eq, %103, %161 : vector<4x21xi32>
    %163 = arith.extui %162 : vector<4x21xi1> to vector<4x21xi32>
    %164 = arith.sitofp %163 : vector<4x21xi32> to vector<4x21xf32>
    %165 = arith.mulf %144, %157 : vector<1x21xf32>
    %166 = vector.broadcast %165 : vector<1x21xf32> to vector<4x21xf32>
    %167 = arith.mulf %164, %166 : vector<4x21xf32>
    %168 = arith.addf %137, %167 : vector<4x21xf32>
    %c0_i32_81 = arith.constant 0 : i32
    %169 = vector.broadcast %c0_i32_81 : i32 to vector<1x21xi32>
    %170 = arith.addi %101, %169 : vector<1x21xi32>
    %c1_i32_82 = arith.constant 1 : i32
    %171 = vector.broadcast %c1_i32_82 : i32 to vector<1x21xi32>
    %172 = arith.addi %102, %171 : vector<1x21xi32>
    %cst_83 = arith.constant 1.000000e+00 : f32
    %173 = vector.broadcast %cst_83 : f32 to vector<1x21xf32>
    %174 = arith.subf %173, %99 : vector<1x21xf32>
    %175 = arith.mulf %174, %100 : vector<1x21xf32>
    %c0_i32_84 = arith.constant 0 : i32
    %176 = vector.broadcast %c0_i32_84 : i32 to vector<1x21xi32>
    %177 = arith.cmpi sge, %170, %176 : vector<1x21xi32>
    %c1_i32_85 = arith.constant 1 : i32
    %178 = vector.broadcast %c1_i32_85 : i32 to vector<1x21xi32>
    %179 = arith.cmpi sle, %170, %178 : vector<1x21xi32>
    %180 = arith.andi %177, %179 : vector<1x21xi1>
    %c0_i32_86 = arith.constant 0 : i32
    %181 = vector.broadcast %c0_i32_86 : i32 to vector<1x21xi32>
    %182 = arith.cmpi sge, %172, %181 : vector<1x21xi32>
    %183 = arith.andi %180, %182 : vector<1x21xi1>
    %c1_i32_87 = arith.constant 1 : i32
    %184 = vector.broadcast %c1_i32_87 : i32 to vector<1x21xi32>
    %185 = arith.cmpi sle, %172, %184 : vector<1x21xi32>
    %186 = arith.andi %183, %185 : vector<1x21xi1>
    %187 = arith.extui %186 : vector<1x21xi1> to vector<1x21xi32>
    %188 = arith.sitofp %187 : vector<1x21xi32> to vector<1x21xf32>
    %c2_i32_88 = arith.constant 2 : i32
    %189 = vector.broadcast %c2_i32_88 : i32 to vector<1x21xi32>
    %190 = arith.muli %172, %189 : vector<1x21xi32>
    %191 = arith.addi %190, %170 : vector<1x21xi32>
    %192 = vector.broadcast %191 : vector<1x21xi32> to vector<4x21xi32>
    %193 = arith.cmpi eq, %103, %192 : vector<4x21xi32>
    %194 = arith.extui %193 : vector<4x21xi1> to vector<4x21xi32>
    %195 = arith.sitofp %194 : vector<4x21xi32> to vector<4x21xf32>
    %196 = arith.mulf %175, %188 : vector<1x21xf32>
    %197 = vector.broadcast %196 : vector<1x21xf32> to vector<4x21xf32>
    %198 = arith.mulf %195, %197 : vector<4x21xf32>
    %199 = arith.addf %168, %198 : vector<4x21xf32>
    %c1_i32_89 = arith.constant 1 : i32
    %200 = vector.broadcast %c1_i32_89 : i32 to vector<1x21xi32>
    %201 = arith.addi %101, %200 : vector<1x21xi32>
    %c1_i32_90 = arith.constant 1 : i32
    %202 = vector.broadcast %c1_i32_90 : i32 to vector<1x21xi32>
    %203 = arith.addi %102, %202 : vector<1x21xi32>
    %204 = arith.mulf %99, %100 : vector<1x21xf32>
    %c0_i32_91 = arith.constant 0 : i32
    %205 = vector.broadcast %c0_i32_91 : i32 to vector<1x21xi32>
    %206 = arith.cmpi sge, %201, %205 : vector<1x21xi32>
    %c1_i32_92 = arith.constant 1 : i32
    %207 = vector.broadcast %c1_i32_92 : i32 to vector<1x21xi32>
    %208 = arith.cmpi sle, %201, %207 : vector<1x21xi32>
    %209 = arith.andi %206, %208 : vector<1x21xi1>
    %c0_i32_93 = arith.constant 0 : i32
    %210 = vector.broadcast %c0_i32_93 : i32 to vector<1x21xi32>
    %211 = arith.cmpi sge, %203, %210 : vector<1x21xi32>
    %212 = arith.andi %209, %211 : vector<1x21xi1>
    %c1_i32_94 = arith.constant 1 : i32
    %213 = vector.broadcast %c1_i32_94 : i32 to vector<1x21xi32>
    %214 = arith.cmpi sle, %203, %213 : vector<1x21xi32>
    %215 = arith.andi %212, %214 : vector<1x21xi1>
    %216 = arith.extui %215 : vector<1x21xi1> to vector<1x21xi32>
    %217 = arith.sitofp %216 : vector<1x21xi32> to vector<1x21xf32>
    %c2_i32_95 = arith.constant 2 : i32
    %218 = vector.broadcast %c2_i32_95 : i32 to vector<1x21xi32>
    %219 = arith.muli %203, %218 : vector<1x21xi32>
    %220 = arith.addi %219, %201 : vector<1x21xi32>
    %221 = vector.broadcast %220 : vector<1x21xi32> to vector<4x21xi32>
    %222 = arith.cmpi eq, %103, %221 : vector<4x21xi32>
    %223 = arith.extui %222 : vector<4x21xi1> to vector<4x21xi32>
    %224 = arith.sitofp %223 : vector<4x21xi32> to vector<4x21xf32>
    %225 = arith.mulf %204, %217 : vector<1x21xf32>
    %226 = vector.broadcast %225 : vector<1x21xf32> to vector<4x21xf32>
    %227 = arith.mulf %224, %226 : vector<4x21xf32>
    %228 = arith.addf %199, %227 : vector<4x21xf32>
    %cst_96 = arith.constant dense<0.000000e+00> : vector<16x21xf32>
    %229 = tpu.matmul %41, %228, %cst_96 {dimension_numbers = #tpu.dot_dimension_numbers<[1], [0], [0], [1], [0, 0, 1, 1], [], []>} : vector<16x4xf32>, vector<4x21xf32>, vector<16x21xf32> -> vector<16x21xf32>
    %230 = vector.extract_strided_slice %229 {offsets = [0, 0], sizes = [1, 21], strides = [1, 1]} : vector<16x21xf32> to vector<1x21xf32>
    %231 = arith.truncf %230 : vector<1x21xf32> to vector<1x21xbf16>
    %c0_97 = arith.constant 0 : index
    %c0_98 = arith.constant 0 : index
    %c0_99 = arith.constant 0 : index
    %232 = vector.load %arg24[%c0_97, %c0_98, %c0_99] : memref<16x21x64xbf16, #tpu.memory_space<vmem>>, vector<1x21x64xbf16>
    %233 = vector.shape_cast %232 : vector<1x21x64xbf16> to vector<21x64xbf16>
    %cst_100 = arith.constant dense<0.000000e+00> : vector<1x64xf32>
    %234 = tpu.matmul %231, %233, %cst_100 {dimension_numbers = #tpu.dot_dimension_numbers<[1], [0], [0], [1], [0, 0, 1, 1], [], []>} : vector<1x21xbf16>, vector<21x64xbf16>, vector<1x64xf32> -> vector<1x64xf32>
    %235 = vector.extract_strided_slice %229 {offsets = [1, 0], sizes = [1, 21], strides = [1, 1]} : vector<16x21xf32> to vector<1x21xf32>
    %236 = arith.truncf %235 : vector<1x21xf32> to vector<1x21xbf16>
    %c1 = arith.constant 1 : index
    %c0_101 = arith.constant 0 : index
    %c0_102 = arith.constant 0 : index
    %237 = vector.load %arg24[%c1, %c0_101, %c0_102] : memref<16x21x64xbf16, #tpu.memory_space<vmem>>, vector<1x21x64xbf16>
    %238 = vector.shape_cast %237 : vector<1x21x64xbf16> to vector<21x64xbf16>
    %cst_103 = arith.constant dense<0.000000e+00> : vector<1x64xf32>
    %239 = tpu.matmul %236, %238, %cst_103 {dimension_numbers = #tpu.dot_dimension_numbers<[1], [0], [0], [1], [0, 0, 1, 1], [], []>} : vector<1x21xbf16>, vector<21x64xbf16>, vector<1x64xf32> -> vector<1x64xf32>
    %240 = arith.addf %234, %239 : vector<1x64xf32>
    %241 = vector.extract_strided_slice %229 {offsets = [2, 0], sizes = [1, 21], strides = [1, 1]} : vector<16x21xf32> to vector<1x21xf32>
    %242 = arith.truncf %241 : vector<1x21xf32> to vector<1x21xbf16>
    %c2 = arith.constant 2 : index
    %c0_104 = arith.constant 0 : index
    %c0_105 = arith.constant 0 : index
    %243 = vector.load %arg24[%c2, %c0_104, %c0_105] : memref<16x21x64xbf16, #tpu.memory_space<vmem>>, vector<1x21x64xbf16>
    %244 = vector.shape_cast %243 : vector<1x21x64xbf16> to vector<21x64xbf16>
    %cst_106 = arith.constant dense<0.000000e+00> : vector<1x64xf32>
    %245 = tpu.matmul %242, %244, %cst_106 {dimension_numbers = #tpu.dot_dimension_numbers<[1], [0], [0], [1], [0, 0, 1, 1], [], []>} : vector<1x21xbf16>, vector<21x64xbf16>, vector<1x64xf32> -> vector<1x64xf32>
    %246 = arith.addf %240, %245 : vector<1x64xf32>
    %247 = vector.extract_strided_slice %229 {offsets = [3, 0], sizes = [1, 21], strides = [1, 1]} : vector<16x21xf32> to vector<1x21xf32>
    %248 = arith.truncf %247 : vector<1x21xf32> to vector<1x21xbf16>
    %c3 = arith.constant 3 : index
    %c0_107 = arith.constant 0 : index
    %c0_108 = arith.constant 0 : index
    %249 = vector.load %arg24[%c3, %c0_107, %c0_108] : memref<16x21x64xbf16, #tpu.memory_space<vmem>>, vector<1x21x64xbf16>
    %250 = vector.shape_cast %249 : vector<1x21x64xbf16> to vector<21x64xbf16>
    %cst_109 = arith.constant dense<0.000000e+00> : vector<1x64xf32>
    %251 = tpu.matmul %248, %250, %cst_109 {dimension_numbers = #tpu.dot_dimension_numbers<[1], [0], [0], [1], [0, 0, 1, 1], [], []>} : vector<1x21xbf16>, vector<21x64xbf16>, vector<1x64xf32> -> vector<1x64xf32>
    %252 = arith.addf %246, %251 : vector<1x64xf32>
    %253 = vector.extract_strided_slice %229 {offsets = [4, 0], sizes = [1, 21], strides = [1, 1]} : vector<16x21xf32> to vector<1x21xf32>
    %254 = arith.truncf %253 : vector<1x21xf32> to vector<1x21xbf16>
    %c4 = arith.constant 4 : index
    %c0_110 = arith.constant 0 : index
    %c0_111 = arith.constant 0 : index
    %255 = vector.load %arg24[%c4, %c0_110, %c0_111] : memref<16x21x64xbf16, #tpu.memory_space<vmem>>, vector<1x21x64xbf16>
    %256 = vector.shape_cast %255 : vector<1x21x64xbf16> to vector<21x64xbf16>
    %cst_112 = arith.constant dense<0.000000e+00> : vector<1x64xf32>
    %257 = tpu.matmul %254, %256, %cst_112 {dimension_numbers = #tpu.dot_dimension_numbers<[1], [0], [0], [1], [0, 0, 1, 1], [], []>} : vector<1x21xbf16>, vector<21x64xbf16>, vector<1x64xf32> -> vector<1x64xf32>
    %258 = arith.addf %252, %257 : vector<1x64xf32>
    %259 = vector.extract_strided_slice %229 {offsets = [5, 0], sizes = [1, 21], strides = [1, 1]} : vector<16x21xf32> to vector<1x21xf32>
    %260 = arith.truncf %259 : vector<1x21xf32> to vector<1x21xbf16>
    %c5 = arith.constant 5 : index
    %c0_113 = arith.constant 0 : index
    %c0_114 = arith.constant 0 : index
    %261 = vector.load %arg24[%c5, %c0_113, %c0_114] : memref<16x21x64xbf16, #tpu.memory_space<vmem>>, vector<1x21x64xbf16>
    %262 = vector.shape_cast %261 : vector<1x21x64xbf16> to vector<21x64xbf16>
    %cst_115 = arith.constant dense<0.000000e+00> : vector<1x64xf32>
    %263 = tpu.matmul %260, %262, %cst_115 {dimension_numbers = #tpu.dot_dimension_numbers<[1], [0], [0], [1], [0, 0, 1, 1], [], []>} : vector<1x21xbf16>, vector<21x64xbf16>, vector<1x64xf32> -> vector<1x64xf32>
    %264 = arith.addf %258, %263 : vector<1x64xf32>
    %265 = vector.extract_strided_slice %229 {offsets = [6, 0], sizes = [1, 21], strides = [1, 1]} : vector<16x21xf32> to vector<1x21xf32>
    %266 = arith.truncf %265 : vector<1x21xf32> to vector<1x21xbf16>
    %c6 = arith.constant 6 : index
    %c0_116 = arith.constant 0 : index
    %c0_117 = arith.constant 0 : index
    %267 = vector.load %arg24[%c6, %c0_116, %c0_117] : memref<16x21x64xbf16, #tpu.memory_space<vmem>>, vector<1x21x64xbf16>
    %268 = vector.shape_cast %267 : vector<1x21x64xbf16> to vector<21x64xbf16>
    %cst_118 = arith.constant dense<0.000000e+00> : vector<1x64xf32>
    %269 = tpu.matmul %266, %268, %cst_118 {dimension_numbers = #tpu.dot_dimension_numbers<[1], [0], [0], [1], [0, 0, 1, 1], [], []>} : vector<1x21xbf16>, vector<21x64xbf16>, vector<1x64xf32> -> vector<1x64xf32>
    %270 = arith.addf %264, %269 : vector<1x64xf32>
    %271 = vector.extract_strided_slice %229 {offsets = [7, 0], sizes = [1, 21], strides = [1, 1]} : vector<16x21xf32> to vector<1x21xf32>
    %272 = arith.truncf %271 : vector<1x21xf32> to vector<1x21xbf16>
    %c7 = arith.constant 7 : index
    %c0_119 = arith.constant 0 : index
    %c0_120 = arith.constant 0 : index
    %273 = vector.load %arg24[%c7, %c0_119, %c0_120] : memref<16x21x64xbf16, #tpu.memory_space<vmem>>, vector<1x21x64xbf16>
    %274 = vector.shape_cast %273 : vector<1x21x64xbf16> to vector<21x64xbf16>
    %cst_121 = arith.constant dense<0.000000e+00> : vector<1x64xf32>
    %275 = tpu.matmul %272, %274, %cst_121 {dimension_numbers = #tpu.dot_dimension_numbers<[1], [0], [0], [1], [0, 0, 1, 1], [], []>} : vector<1x21xbf16>, vector<21x64xbf16>, vector<1x64xf32> -> vector<1x64xf32>
    %276 = arith.addf %270, %275 : vector<1x64xf32>
    %277 = vector.extract_strided_slice %229 {offsets = [8, 0], sizes = [1, 21], strides = [1, 1]} : vector<16x21xf32> to vector<1x21xf32>
    %278 = arith.truncf %277 : vector<1x21xf32> to vector<1x21xbf16>
    %c8 = arith.constant 8 : index
    %c0_122 = arith.constant 0 : index
    %c0_123 = arith.constant 0 : index
    %279 = vector.load %arg24[%c8, %c0_122, %c0_123] : memref<16x21x64xbf16, #tpu.memory_space<vmem>>, vector<1x21x64xbf16>
    %280 = vector.shape_cast %279 : vector<1x21x64xbf16> to vector<21x64xbf16>
    %cst_124 = arith.constant dense<0.000000e+00> : vector<1x64xf32>
    %281 = tpu.matmul %278, %280, %cst_124 {dimension_numbers = #tpu.dot_dimension_numbers<[1], [0], [0], [1], [0, 0, 1, 1], [], []>} : vector<1x21xbf16>, vector<21x64xbf16>, vector<1x64xf32> -> vector<1x64xf32>
    %282 = arith.addf %276, %281 : vector<1x64xf32>
    %283 = vector.extract_strided_slice %229 {offsets = [9, 0], sizes = [1, 21], strides = [1, 1]} : vector<16x21xf32> to vector<1x21xf32>
    %284 = arith.truncf %283 : vector<1x21xf32> to vector<1x21xbf16>
    %c9 = arith.constant 9 : index
    %c0_125 = arith.constant 0 : index
    %c0_126 = arith.constant 0 : index
    %285 = vector.load %arg24[%c9, %c0_125, %c0_126] : memref<16x21x64xbf16, #tpu.memory_space<vmem>>, vector<1x21x64xbf16>
    %286 = vector.shape_cast %285 : vector<1x21x64xbf16> to vector<21x64xbf16>
    %cst_127 = arith.constant dense<0.000000e+00> : vector<1x64xf32>
    %287 = tpu.matmul %284, %286, %cst_127 {dimension_numbers = #tpu.dot_dimension_numbers<[1], [0], [0], [1], [0, 0, 1, 1], [], []>} : vector<1x21xbf16>, vector<21x64xbf16>, vector<1x64xf32> -> vector<1x64xf32>
    %288 = arith.addf %282, %287 : vector<1x64xf32>
    %289 = vector.extract_strided_slice %229 {offsets = [10, 0], sizes = [1, 21], strides = [1, 1]} : vector<16x21xf32> to vector<1x21xf32>
    %290 = arith.truncf %289 : vector<1x21xf32> to vector<1x21xbf16>
    %c10 = arith.constant 10 : index
    %c0_128 = arith.constant 0 : index
    %c0_129 = arith.constant 0 : index
    %291 = vector.load %arg24[%c10, %c0_128, %c0_129] : memref<16x21x64xbf16, #tpu.memory_space<vmem>>, vector<1x21x64xbf16>
    %292 = vector.shape_cast %291 : vector<1x21x64xbf16> to vector<21x64xbf16>
    %cst_130 = arith.constant dense<0.000000e+00> : vector<1x64xf32>
    %293 = tpu.matmul %290, %292, %cst_130 {dimension_numbers = #tpu.dot_dimension_numbers<[1], [0], [0], [1], [0, 0, 1, 1], [], []>} : vector<1x21xbf16>, vector<21x64xbf16>, vector<1x64xf32> -> vector<1x64xf32>
    %294 = arith.addf %288, %293 : vector<1x64xf32>
    %295 = vector.extract_strided_slice %229 {offsets = [11, 0], sizes = [1, 21], strides = [1, 1]} : vector<16x21xf32> to vector<1x21xf32>
    %296 = arith.truncf %295 : vector<1x21xf32> to vector<1x21xbf16>
    %c11 = arith.constant 11 : index
    %c0_131 = arith.constant 0 : index
    %c0_132 = arith.constant 0 : index
    %297 = vector.load %arg24[%c11, %c0_131, %c0_132] : memref<16x21x64xbf16, #tpu.memory_space<vmem>>, vector<1x21x64xbf16>
    %298 = vector.shape_cast %297 : vector<1x21x64xbf16> to vector<21x64xbf16>
    %cst_133 = arith.constant dense<0.000000e+00> : vector<1x64xf32>
    %299 = tpu.matmul %296, %298, %cst_133 {dimension_numbers = #tpu.dot_dimension_numbers<[1], [0], [0], [1], [0, 0, 1, 1], [], []>} : vector<1x21xbf16>, vector<21x64xbf16>, vector<1x64xf32> -> vector<1x64xf32>
    %300 = arith.addf %294, %299 : vector<1x64xf32>
    %301 = vector.extract_strided_slice %229 {offsets = [12, 0], sizes = [1, 21], strides = [1, 1]} : vector<16x21xf32> to vector<1x21xf32>
    %302 = arith.truncf %301 : vector<1x21xf32> to vector<1x21xbf16>
    %c12 = arith.constant 12 : index
    %c0_134 = arith.constant 0 : index
    %c0_135 = arith.constant 0 : index
    %303 = vector.load %arg24[%c12, %c0_134, %c0_135] : memref<16x21x64xbf16, #tpu.memory_space<vmem>>, vector<1x21x64xbf16>
    %304 = vector.shape_cast %303 : vector<1x21x64xbf16> to vector<21x64xbf16>
    %cst_136 = arith.constant dense<0.000000e+00> : vector<1x64xf32>
    %305 = tpu.matmul %302, %304, %cst_136 {dimension_numbers = #tpu.dot_dimension_numbers<[1], [0], [0], [1], [0, 0, 1, 1], [], []>} : vector<1x21xbf16>, vector<21x64xbf16>, vector<1x64xf32> -> vector<1x64xf32>
    %306 = arith.addf %300, %305 : vector<1x64xf32>
    %307 = vector.extract_strided_slice %229 {offsets = [13, 0], sizes = [1, 21], strides = [1, 1]} : vector<16x21xf32> to vector<1x21xf32>
    %308 = arith.truncf %307 : vector<1x21xf32> to vector<1x21xbf16>
    %c13 = arith.constant 13 : index
    %c0_137 = arith.constant 0 : index
    %c0_138 = arith.constant 0 : index
    %309 = vector.load %arg24[%c13, %c0_137, %c0_138] : memref<16x21x64xbf16, #tpu.memory_space<vmem>>, vector<1x21x64xbf16>
    %310 = vector.shape_cast %309 : vector<1x21x64xbf16> to vector<21x64xbf16>
    %cst_139 = arith.constant dense<0.000000e+00> : vector<1x64xf32>
    %311 = tpu.matmul %308, %310, %cst_139 {dimension_numbers = #tpu.dot_dimension_numbers<[1], [0], [0], [1], [0, 0, 1, 1], [], []>} : vector<1x21xbf16>, vector<21x64xbf16>, vector<1x64xf32> -> vector<1x64xf32>
    %312 = arith.addf %306, %311 : vector<1x64xf32>
    %313 = vector.extract_strided_slice %229 {offsets = [14, 0], sizes = [1, 21], strides = [1, 1]} : vector<16x21xf32> to vector<1x21xf32>
    %314 = arith.truncf %313 : vector<1x21xf32> to vector<1x21xbf16>
    %c14 = arith.constant 14 : index
    %c0_140 = arith.constant 0 : index
    %c0_141 = arith.constant 0 : index
    %315 = vector.load %arg24[%c14, %c0_140, %c0_141] : memref<16x21x64xbf16, #tpu.memory_space<vmem>>, vector<1x21x64xbf16>
    %316 = vector.shape_cast %315 : vector<1x21x64xbf16> to vector<21x64xbf16>
    %cst_142 = arith.constant dense<0.000000e+00> : vector<1x64xf32>
    %317 = tpu.matmul %314, %316, %cst_142 {dimension_numbers = #tpu.dot_dimension_numbers<[1], [0], [0], [1], [0, 0, 1, 1], [], []>} : vector<1x21xbf16>, vector<21x64xbf16>, vector<1x64xf32> -> vector<1x64xf32>
    %318 = arith.addf %312, %317 : vector<1x64xf32>
    %319 = vector.extract_strided_slice %229 {offsets = [15, 0], sizes = [1, 21], strides = [1, 1]} : vector<16x21xf32> to vector<1x21xf32>
    %320 = arith.truncf %319 : vector<1x21xf32> to vector<1x21xbf16>
    %c15 = arith.constant 15 : index
    %c0_143 = arith.constant 0 : index
    %c0_144 = arith.constant 0 : index
    %321 = vector.load %arg24[%c15, %c0_143, %c0_144] : memref<16x21x64xbf16, #tpu.memory_space<vmem>>, vector<1x21x64xbf16>
    %322 = vector.shape_cast %321 : vector<1x21x64xbf16> to vector<21x64xbf16>
    %cst_145 = arith.constant dense<0.000000e+00> : vector<1x64xf32>
    %323 = tpu.matmul %320, %322, %cst_145 {dimension_numbers = #tpu.dot_dimension_numbers<[1], [0], [0], [1], [0, 0, 1, 1], [], []>} : vector<1x21xbf16>, vector<21x64xbf16>, vector<1x64xf32> -> vector<1x64xf32>
    %324 = arith.addf %318, %323 : vector<1x64xf32>
    %c0_146 = arith.constant 0 : index
    %c0_147 = arith.constant 0 : index
    %325 = vector.load %arg25[%c0_146, %c0_147] : memref<1x64xf32, #tpu.memory_space<vmem>>, vector<1x64xf32>
    %326 = arith.addf %324, %325 : vector<1x64xf32>
    %cst_148 = arith.constant 0.000000e+00 : f32
    %327 = vector.broadcast %cst_148 : f32 to vector<1x64xf32>
    %328 = arith.cmpf ogt, %326, %327 : vector<1x64xf32>
    %cst_149 = arith.constant 0.00999999977 : f32
    %329 = vector.broadcast %cst_149 : f32 to vector<1x64xf32>
    %330 = arith.mulf %329, %326 : vector<1x64xf32>
    %331 = arith.select %328, %326, %330 : vector<1x64xi1>, vector<1x64xf32>
    %332 = arith.truncf %331 : vector<1x64xf32> to vector<1x64xbf16>
    %c0_150 = arith.constant 0 : index
    %c0_151 = arith.constant 0 : index
    %333 = vector.load %arg26[%c0_150, %c0_151] : memref<64x32xbf16, #tpu.memory_space<vmem>>, vector<64x32xbf16>
    %cst_152 = arith.constant dense<0.000000e+00> : vector<1x32xf32>
    %334 = tpu.matmul %332, %333, %cst_152 {dimension_numbers = #tpu.dot_dimension_numbers<[1], [0], [0], [1], [0, 0, 1, 1], [], []>} : vector<1x64xbf16>, vector<64x32xbf16>, vector<1x32xf32> -> vector<1x32xf32>
    %c0_153 = arith.constant 0 : index
    %c0_154 = arith.constant 0 : index
    %335 = vector.load %arg27[%c0_153, %c0_154] : memref<1x32xf32, #tpu.memory_space<vmem>>, vector<1x32xf32>
    %336 = arith.addf %334, %335 : vector<1x32xf32>
    %cst_155 = arith.constant 0.000000e+00 : f32
    %337 = vector.broadcast %cst_155 : f32 to vector<1x32xf32>
    %338 = arith.cmpf ogt, %336, %337 : vector<1x32xf32>
    %cst_156 = arith.constant 0.00999999977 : f32
    %339 = vector.broadcast %cst_156 : f32 to vector<1x32xf32>
    %340 = arith.mulf %339, %336 : vector<1x32xf32>
    %341 = arith.select %338, %336, %340 : vector<1x32xi1>, vector<1x32xf32>
    %342 = arith.truncf %341 : vector<1x32xf32> to vector<1x32xbf16>
    %c0_157 = arith.constant 0 : index
    %c0_158 = arith.constant 0 : index
    %343 = vector.load %arg28[%c0_157, %c0_158] : memref<32x21xbf16, #tpu.memory_space<vmem>>, vector<32x21xbf16>
    %cst_159 = arith.constant dense<0.000000e+00> : vector<1x21xf32>
    %344 = tpu.matmul %342, %343, %cst_159 {dimension_numbers = #tpu.dot_dimension_numbers<[1], [0], [0], [1], [0, 0, 1, 1], [], []>} : vector<1x32xbf16>, vector<32x21xbf16>, vector<1x21xf32> -> vector<1x21xf32>
    %c0_160 = arith.constant 0 : index
    %c0_161 = arith.constant 0 : index
    %345 = vector.load %arg29[%c0_160, %c0_161] : memref<1x21xf32, #tpu.memory_space<vmem>>, vector<1x21xf32>
    %346 = arith.addf %344, %345 : vector<1x21xf32>
    %cst_162 = arith.constant 0.000000e+00 : f32
    %347 = vector.broadcast %cst_162 : f32 to vector<1x21xf32>
    %348 = arith.subf %347, %346 : vector<1x21xf32>
    %349 = math.exp %348 : vector<1x21xf32>
    %cst_163 = arith.constant 1.000000e+00 : f32
    %350 = vector.broadcast %cst_163 : f32 to vector<1x21xf32>
    %351 = arith.addf %350, %349 : vector<1x21xf32>
    %cst_164 = arith.constant 1.000000e+00 : f32
    %352 = vector.broadcast %cst_164 : f32 to vector<1x21xf32>
    %353 = arith.divf %352, %351 : vector<1x21xf32>
    %c0_165 = arith.constant 0 : index
    %c0_166 = arith.constant 0 : index
    %c0_167 = arith.constant 0 : index
    %354 = vector.load %arg32[%c0_165, %c0_166, %c0_167] : memref<1x1x21xf32, #tpu.memory_space<vmem>>, vector<1x1x21xf32>
    %355 = vector.shape_cast %354 : vector<1x1x21xf32> to vector<1x21xf32>
    %356 = vector.shape_cast %346 : vector<1x21xf32> to vector<1x1x21xf32>
    tpu.vector_store %arg32[%c0_165, %c0_166, %c0_167], %356 {strides = array<i32>} : memref<1x1x21xf32, #tpu.memory_space<vmem>>, vector<1x1x21xf32>,
    %c0_168 = arith.constant 0 : index
    %c0_169 = arith.constant 0 : index
    %c0_170 = arith.constant 0 : index
    %357 = vector.load %arg33[%c0_168, %c0_169, %c0_170] : memref<1x1x21xf32, #tpu.memory_space<vmem>>, vector<1x1x21xf32>
    %358 = vector.shape_cast %357 : vector<1x1x21xf32> to vector<1x21xf32>
    %359 = vector.shape_cast %353 : vector<1x21xf32> to vector<1x1x21xf32>
    tpu.vector_store %arg33[%c0_168, %c0_169, %c0_170], %359 {strides = array<i32>} : memref<1x1x21xf32, #tpu.memory_space<vmem>>, vector<1x1x21xf32>,
    %360 = vector.extract_strided_slice %63 {offsets = [0, 0], sizes = [1, 21], strides = [1, 1]} : vector<2x21xf32> to vector<1x21xf32>
    %361 = vector.extract_strided_slice %63 {offsets = [1, 0], sizes = [1, 21], strides = [1, 1]} : vector<2x21xf32> to vector<1x21xf32>
    %362 = tpu.concatenate %360, %361, %20 in 1 : vector<1x21xf32>, vector<1x21xf32>, vector<1x64xf32> -> vector<1x106xf32>
    %363 = arith.truncf %362 : vector<1x106xf32> to vector<1x106xbf16>
    %c0_171 = arith.constant 0 : index
    %c0_172 = arith.constant 0 : index
    %364 = vector.load %arg20[%c0_171, %c0_172] : memref<106x128xbf16, #tpu.memory_space<vmem>>, vector<106x128xbf16>
    %cst_173 = arith.constant dense<0.000000e+00> : vector<1x128xf32>
    %365 = tpu.matmul %363, %364, %cst_173 {dimension_numbers = #tpu.dot_dimension_numbers<[1], [0], [0], [1], [0, 0, 1, 1], [], []>} : vector<1x106xbf16>, vector<106x128xbf16>, vector<1x128xf32> -> vector<1x128xf32>
    %c0_174 = arith.constant 0 : index
    %c0_175 = arith.constant 0 : index
    %366 = vector.load %arg21[%c0_174, %c0_175] : memref<1x128xf32, #tpu.memory_space<vmem>>, vector<1x128xf32>
    %367 = arith.addf %365, %366 : vector<1x128xf32>
    %cst_176 = arith.constant 0.000000e+00 : f32
    %368 = vector.broadcast %cst_176 : f32 to vector<1x128xf32>
    %369 = arith.maximumf %367, %368 : vector<1x128xf32>
    %370 = arith.truncf %369 : vector<1x128xf32> to vector<1x128xbf16>
    %c0_177 = arith.constant 0 : index
    %c0_178 = arith.constant 0 : index
    %371 = vector.load %arg22[%c0_177, %c0_178] : memref<128x2334xbf16, #tpu.memory_space<vmem>>, vector<128x2334xbf16>
    %cst_179 = arith.constant dense<0.000000e+00> : vector<1x2334xf32>
    %372 = tpu.matmul %370, %371, %cst_179 {dimension_numbers = #tpu.dot_dimension_numbers<[1], [0], [0], [1], [0, 0, 1, 1], [], []>} : vector<1x128xbf16>, vector<128x2334xbf16>, vector<1x2334xf32> -> vector<1x2334xf32>
    %c0_180 = arith.constant 0 : index
    %c0_181 = arith.constant 0 : index
    %373 = vector.load %arg23[%c0_180, %c0_181] : memref<1x2334xf32, #tpu.memory_space<vmem>>, vector<1x2334xf32>
    %374 = arith.addf %372, %373 : vector<1x2334xf32>
    %375 = vector.extract_strided_slice %374 {offsets = [0, 0], sizes = [1, 778], strides = [1, 1]} : vector<1x2334xf32> to vector<1x778xf32>
    %376 = vector.extract_strided_slice %374 {offsets = [0, 778], sizes = [1, 778], strides = [1, 1]} : vector<1x2334xf32> to vector<1x778xf32>
    %377 = vector.extract_strided_slice %374 {offsets = [0, 1556], sizes = [1, 778], strides = [1, 1]} : vector<1x2334xf32> to vector<1x778xf32>
    %378 = tpu.concatenate %375, %376, %377 in 0 : vector<1x778xf32>, vector<1x778xf32>, vector<1x778xf32> -> vector<3x778xf32>
    %c0_182 = arith.constant 0 : index
    %c0_183 = arith.constant 0 : index
    %c0_184 = arith.constant 0 : index
    %379 = vector.load %arg31[%c0_182, %c0_183, %c0_184] : memref<1x3x778xf32, #tpu.memory_space<vmem>>, vector<1x3x778xf32>
    %380 = vector.shape_cast %379 : vector<1x3x778xf32> to vector<3x778xf32>
    %381 = vector.shape_cast %378 : vector<3x778xf32> to vector<1x3x778xf32>
    tpu.vector_store %arg31[%c0_182, %c0_183, %c0_184], %381 {strides = array<i32>} : memref<1x3x778xf32, #tpu.memory_space<vmem>>, vector<1x3x778xf32>,
    %cst_185 = arith.constant 2.000000e-01 : f32
    %382 = vector.broadcast %cst_185 : f32 to vector<3x778xf32>
    %383 = arith.mulf %378, %382 : vector<3x778xf32>
    %c0_186 = arith.constant 0 : index
    %c0_187 = arith.constant 0 : index
    %384 = vector.load %arg3[%c0_186, %c0_187] : memref<778x21xf32, #tpu.memory_space<vmem>>, vector<778x21xf32>
    %cst_188 = arith.constant dense<0.000000e+00> : vector<3x21xf32>
    %385 = tpu.matmul %383, %384, %cst_188 {dimension_numbers = #tpu.dot_dimension_numbers<[1], [0], [0], [1], [0, 0, 1, 1], [], []>} : vector<3x778xf32>, vector<778x21xf32>, vector<3x21xf32> -> vector<3x21xf32>
    %cst_189 = arith.constant dense<0.000000e+00> : vector<21xf32>
    %386 = vector.multi_reduction <add>, %384, %cst_189 [0] : vector<778x21xf32> to vector<21xf32>
    %387 = vector.shape_cast %386 : vector<21xf32> to vector<1x21xf32>
    %c0_190 = arith.constant 0 : index
    %c0_191 = arith.constant 0 : index
    %c0_192 = arith.constant 0 : index
    %388 = vector.load %arg2[%c0_190, %c0_191, %c0_192] : memref<1x3x3xf32, #tpu.memory_space<vmem>>, vector<1x3x3xf32>
    %389 = vector.shape_cast %388 : vector<1x3x3xf32> to vector<3x3xf32>
    %390 = vector.extract_strided_slice %389 {offsets = [0, 0], sizes = [1, 1], strides = [1, 1]} : vector<3x3xf32> to vector<1x1xf32>
    %391 = vector.extract_strided_slice %389 {offsets = [1, 1], sizes = [1, 1], strides = [1, 1]} : vector<3x3xf32> to vector<1x1xf32>
    %392 = vector.extract_strided_slice %389 {offsets = [0, 2], sizes = [1, 1], strides = [1, 1]} : vector<3x3xf32> to vector<1x1xf32>
    %393 = vector.extract_strided_slice %389 {offsets = [1, 2], sizes = [1, 1], strides = [1, 1]} : vector<3x3xf32> to vector<1x1xf32>
    %394 = vector.extract_strided_slice %63 {offsets = [0, 0], sizes = [1, 21], strides = [1, 1]} : vector<2x21xf32> to vector<1x21xf32>
    %cst_193 = arith.constant 6.400000e+01 : f32
    %395 = vector.broadcast %cst_193 : f32 to vector<1x21xf32>
    %396 = arith.mulf %394, %395 : vector<1x21xf32>
    %397 = vector.extract_strided_slice %63 {offsets = [1, 0], sizes = [1, 21], strides = [1, 1]} : vector<2x21xf32> to vector<1x21xf32>
    %cst_194 = arith.constant 6.400000e+01 : f32
    %398 = vector.broadcast %cst_194 : f32 to vector<1x21xf32>
    %399 = arith.mulf %397, %398 : vector<1x21xf32>
    %400 = vector.extract_strided_slice %385 {offsets = [0, 0], sizes = [1, 21], strides = [1, 1]} : vector<3x21xf32> to vector<1x21xf32>
    %401 = vector.extract_strided_slice %385 {offsets = [1, 0], sizes = [1, 21], strides = [1, 1]} : vector<3x21xf32> to vector<1x21xf32>
    %402 = vector.extract_strided_slice %385 {offsets = [2, 0], sizes = [1, 21], strides = [1, 1]} : vector<3x21xf32> to vector<1x21xf32>
    %403 = vector.broadcast %392 : vector<1x1xf32> to vector<1x21xf32>
    %404 = arith.subf %403, %396 : vector<1x21xf32>
    %405 = vector.broadcast %393 : vector<1x1xf32> to vector<1x21xf32>
    %406 = arith.subf %405, %399 : vector<1x21xf32>
    %407 = vector.broadcast %392 : vector<1x1xf32> to vector<1x21xf32>
    %408 = arith.subf %396, %407 : vector<1x21xf32>
    %409 = arith.mulf %408, %402 : vector<1x21xf32>
    %410 = vector.broadcast %390 : vector<1x1xf32> to vector<1x21xf32>
    %411 = arith.mulf %410, %400 : vector<1x21xf32>
    %412 = arith.subf %409, %411 : vector<1x21xf32>
    %413 = vector.broadcast %393 : vector<1x1xf32> to vector<1x21xf32>
    %414 = arith.subf %399, %413 : vector<1x21xf32>
    %415 = arith.mulf %414, %402 : vector<1x21xf32>
    %416 = vector.broadcast %391 : vector<1x1xf32> to vector<1x21xf32>
    %417 = arith.mulf %416, %401 : vector<1x21xf32>
    %418 = arith.subf %415, %417 : vector<1x21xf32>
    %419 = vector.broadcast %390 : vector<1x1xf32> to vector<1x21xf32>
    %420 = arith.mulf %353, %419 : vector<1x21xf32>
    %421 = vector.broadcast %390 : vector<1x1xf32> to vector<1x21xf32>
    %422 = arith.mulf %420, %421 : vector<1x21xf32>
    %423 = vector.broadcast %390 : vector<1x1xf32> to vector<1x21xf32>
    %424 = arith.mulf %353, %423 : vector<1x21xf32>
    %425 = arith.mulf %424, %404 : vector<1x21xf32>
    %426 = vector.broadcast %391 : vector<1x1xf32> to vector<1x21xf32>
    %427 = arith.mulf %353, %426 : vector<1x21xf32>
    %428 = vector.broadcast %391 : vector<1x1xf32> to vector<1x21xf32>
    %429 = arith.mulf %427, %428 : vector<1x21xf32>
    %430 = vector.broadcast %391 : vector<1x1xf32> to vector<1x21xf32>
    %431 = arith.mulf %353, %430 : vector<1x21xf32>
    %432 = arith.mulf %431, %406 : vector<1x21xf32>
    %433 = arith.mulf %404, %404 : vector<1x21xf32>
    %434 = arith.mulf %406, %406 : vector<1x21xf32>
    %435 = arith.addf %433, %434 : vector<1x21xf32>
    %436 = arith.mulf %353, %435 : vector<1x21xf32>
    %437 = vector.broadcast %390 : vector<1x1xf32> to vector<1x21xf32>
    %438 = arith.mulf %353, %437 : vector<1x21xf32>
    %439 = arith.mulf %438, %412 : vector<1x21xf32>
    %440 = vector.broadcast %391 : vector<1x1xf32> to vector<1x21xf32>
    %441 = arith.mulf %353, %440 : vector<1x21xf32>
    %442 = arith.mulf %441, %418 : vector<1x21xf32>
    %443 = arith.mulf %404, %412 : vector<1x21xf32>
    %444 = arith.mulf %406, %418 : vector<1x21xf32>
    %445 = arith.addf %443, %444 : vector<1x21xf32>
    %446 = arith.mulf %353, %445 : vector<1x21xf32>
    %447 = tpu.concatenate %422, %425, %429, %432, %436, %439, %442, %446 in 0 : vector<1x21xf32>, vector<1x21xf32>, vector<1x21xf32>, vector<1x21xf32>, vector<1x21xf32>, vector<1x21xf32>, vector<1x21xf32>, vector<1x21xf32> -> vector<8x21xf32>
    %cst_195 = arith.constant dense<0.000000e+00> : vector<8xf32>
    %448 = vector.multi_reduction <add>, %447, %cst_195 [1] : vector<8x21xf32> to vector<8xf32>
    %449 = vector.shape_cast %448 : vector<8xf32> to vector<8x1xf32>
    %450 = arith.mulf %390, %391 : vector<1x1xf32>
    %cst_196 = arith.constant 1.000000e+00 : f32
    %451 = vector.broadcast %cst_196 : f32 to vector<1x1xf32>
    %452 = arith.divf %451, %450 : vector<1x1xf32>
    %453 = vector.extract_strided_slice %449 {offsets = [0, 0], sizes = [1, 1], strides = [1, 1]} : vector<8x1xf32> to vector<1x1xf32>
    %cst_197 = arith.constant 9.99999997E-7 : f32
    %454 = vector.broadcast %cst_197 : f32 to vector<1x1xf32>
    %455 = arith.addf %453, %454 : vector<1x1xf32>
    %456 = arith.mulf %455, %452 : vector<1x1xf32>
    %457 = vector.extract_strided_slice %449 {offsets = [1, 0], sizes = [1, 1], strides = [1, 1]} : vector<8x1xf32> to vector<1x1xf32>
    %458 = arith.mulf %457, %452 : vector<1x1xf32>
    %459 = vector.extract_strided_slice %449 {offsets = [2, 0], sizes = [1, 1], strides = [1, 1]} : vector<8x1xf32> to vector<1x1xf32>
    %cst_198 = arith.constant 9.99999997E-7 : f32
    %460 = vector.broadcast %cst_198 : f32 to vector<1x1xf32>
    %461 = arith.addf %459, %460 : vector<1x1xf32>
    %462 = arith.mulf %461, %452 : vector<1x1xf32>
    %463 = vector.extract_strided_slice %449 {offsets = [3, 0], sizes = [1, 1], strides = [1, 1]} : vector<8x1xf32> to vector<1x1xf32>
    %464 = arith.mulf %463, %452 : vector<1x1xf32>
    %465 = vector.extract_strided_slice %449 {offsets = [4, 0], sizes = [1, 1], strides = [1, 1]} : vector<8x1xf32> to vector<1x1xf32>
    %cst_199 = arith.constant 9.99999997E-7 : f32
    %466 = vector.broadcast %cst_199 : f32 to vector<1x1xf32>
    %467 = arith.addf %465, %466 : vector<1x1xf32>
    %468 = arith.mulf %467, %452 : vector<1x1xf32>
    %469 = vector.extract_strided_slice %449 {offsets = [5, 0], sizes = [1, 1], strides = [1, 1]} : vector<8x1xf32> to vector<1x1xf32>
    %470 = arith.mulf %469, %452 : vector<1x1xf32>
    %471 = vector.extract_strided_slice %449 {offsets = [6, 0], sizes = [1, 1], strides = [1, 1]} : vector<8x1xf32> to vector<1x1xf32>
    %472 = arith.mulf %471, %452 : vector<1x1xf32>
    %473 = vector.extract_strided_slice %449 {offsets = [7, 0], sizes = [1, 1], strides = [1, 1]} : vector<8x1xf32> to vector<1x1xf32>
    %474 = arith.mulf %473, %452 : vector<1x1xf32>
    %475 = arith.mulf %462, %468 : vector<1x1xf32>
    %476 = arith.mulf %464, %464 : vector<1x1xf32>
    %477 = arith.subf %475, %476 : vector<1x1xf32>
    %478 = arith.mulf %464, %458 : vector<1x1xf32>
    %cst_200 = arith.constant 0.000000e+00 : f32
    %479 = vector.broadcast %cst_200 : f32 to vector<1x1xf32>
    %480 = arith.subf %479, %462 : vector<1x1xf32>
    %481 = arith.mulf %480, %458 : vector<1x1xf32>
    %482 = arith.mulf %456, %468 : vector<1x1xf32>
    %483 = arith.mulf %458, %458 : vector<1x1xf32>
    %484 = arith.subf %482, %483 : vector<1x1xf32>
    %cst_201 = arith.constant 0.000000e+00 : f32
    %485 = vector.broadcast %cst_201 : f32 to vector<1x1xf32>
    %486 = arith.subf %485, %456 : vector<1x1xf32>
    %487 = arith.mulf %486, %464 : vector<1x1xf32>
    %488 = arith.mulf %456, %462 : vector<1x1xf32>
    %489 = arith.mulf %456, %477 : vector<1x1xf32>
    %490 = arith.mulf %458, %481 : vector<1x1xf32>
    %491 = arith.addf %489, %490 : vector<1x1xf32>
    %cst_202 = arith.constant 1.000000e+00 : f32
    %492 = vector.broadcast %cst_202 : f32 to vector<1x1xf32>
    %493 = arith.divf %492, %491 : vector<1x1xf32>
    %494 = arith.mulf %477, %470 : vector<1x1xf32>
    %495 = arith.mulf %478, %472 : vector<1x1xf32>
    %496 = arith.addf %494, %495 : vector<1x1xf32>
    %497 = arith.mulf %481, %474 : vector<1x1xf32>
    %498 = arith.addf %496, %497 : vector<1x1xf32>
    %499 = arith.mulf %498, %493 : vector<1x1xf32>
    %500 = arith.mulf %478, %470 : vector<1x1xf32>
    %501 = arith.mulf %484, %472 : vector<1x1xf32>
    %502 = arith.addf %500, %501 : vector<1x1xf32>
    %503 = arith.mulf %487, %474 : vector<1x1xf32>
    %504 = arith.addf %502, %503 : vector<1x1xf32>
    %505 = arith.mulf %504, %493 : vector<1x1xf32>
    %506 = arith.mulf %481, %470 : vector<1x1xf32>
    %507 = arith.mulf %487, %472 : vector<1x1xf32>
    %508 = arith.addf %506, %507 : vector<1x1xf32>
    %509 = arith.mulf %488, %474 : vector<1x1xf32>
    %510 = arith.addf %508, %509 : vector<1x1xf32>
    %511 = arith.mulf %510, %493 : vector<1x1xf32>
    %512 = tpu.concatenate %499, %505, %511 in 1 : vector<1x1xf32>, vector<1x1xf32>, vector<1x1xf32> -> vector<1x3xf32>
    %c0_203 = arith.constant 0 : index
    %c0_204 = arith.constant 0 : index
    %c0_205 = arith.constant 0 : index
    %513 = vector.load %arg34[%c0_203, %c0_204, %c0_205] : memref<1x1x3xf32, #tpu.memory_space<vmem>>, vector<1x1x3xf32>
    %514 = vector.shape_cast %513 : vector<1x1x3xf32> to vector<1x3xf32>
    %515 = vector.shape_cast %512 : vector<1x3xf32> to vector<1x1x3xf32>
    tpu.vector_store %arg34[%c0_203, %c0_204, %c0_205], %515 {strides = array<i32>} : memref<1x1x3xf32, #tpu.memory_space<vmem>>, vector<1x1x3xf32>,
    %516 = tpu.concatenate %499, %505, %511 in 0 : vector<1x1xf32>, vector<1x1xf32>, vector<1x1xf32> -> vector<3x1xf32>
    %517 = vector.broadcast %516 : vector<3x1xf32> to vector<3x778xf32>
    %518 = arith.addf %383, %517 : vector<3x778xf32>
    %519 = vector.broadcast %387 : vector<1x21xf32> to vector<3x21xf32>
    %520 = vector.broadcast %516 : vector<3x1xf32> to vector<3x21xf32>
    %521 = arith.mulf %519, %520 : vector<3x21xf32>
    %522 = arith.addf %385, %521 : vector<3x21xf32>
    %c0_206 = arith.constant 0 : index
    %c0_207 = arith.constant 0 : index
    %c0_208 = arith.constant 0 : index
    %523 = vector.load %arg35[%c0_206, %c0_207, %c0_208] : memref<1x3x778xf32, #tpu.memory_space<vmem>>, vector<1x3x778xf32>
    %524 = vector.shape_cast %523 : vector<1x3x778xf32> to vector<3x778xf32>
    %525 = vector.shape_cast %518 : vector<3x778xf32> to vector<1x3x778xf32>
    tpu.vector_store %arg35[%c0_206, %c0_207, %c0_208], %525 {strides = array<i32>} : memref<1x3x778xf32, #tpu.memory_space<vmem>>, vector<1x3x778xf32>,
    %c0_209 = arith.constant 0 : index
    %c0_210 = arith.constant 0 : index
    %c0_211 = arith.constant 0 : index
    %526 = vector.load %arg36[%c0_209, %c0_210, %c0_211] : memref<1x3x21xf32, #tpu.memory_space<vmem>>, vector<1x3x21xf32>
    %527 = vector.shape_cast %526 : vector<1x3x21xf32> to vector<3x21xf32>
    %528 = vector.shape_cast %522 : vector<3x21xf32> to vector<1x3x21xf32>
    tpu.vector_store %arg36[%c0_209, %c0_210, %c0_211], %528 {strides = array<i32>} : memref<1x3x21xf32, #tpu.memory_space<vmem>>, vector<1x3x21xf32>,
    %529 = vector.extract_strided_slice %518 {offsets = [0, 0], sizes = [1, 778], strides = [1, 1]} : vector<3x778xf32> to vector<1x778xf32>
    %530 = vector.extract_strided_slice %518 {offsets = [1, 0], sizes = [1, 778], strides = [1, 1]} : vector<3x778xf32> to vector<1x778xf32>
    %531 = vector.extract_strided_slice %518 {offsets = [2, 0], sizes = [1, 778], strides = [1, 1]} : vector<3x778xf32> to vector<1x778xf32>
    %532 = vector.extract_strided_slice %389 {offsets = [0, 0], sizes = [1, 1], strides = [1, 1]} : vector<3x3xf32> to vector<1x1xf32>
    %533 = vector.broadcast %532 : vector<1x1xf32> to vector<1x778xf32>
    %534 = arith.mulf %533, %529 : vector<1x778xf32>
    %535 = vector.extract_strided_slice %389 {offsets = [0, 1], sizes = [1, 1], strides = [1, 1]} : vector<3x3xf32> to vector<1x1xf32>
    %536 = vector.broadcast %535 : vector<1x1xf32> to vector<1x778xf32>
    %537 = arith.mulf %536, %530 : vector<1x778xf32>
    %538 = arith.addf %534, %537 : vector<1x778xf32>
    %539 = vector.extract_strided_slice %389 {offsets = [0, 2], sizes = [1, 1], strides = [1, 1]} : vector<3x3xf32> to vector<1x1xf32>
    %540 = vector.broadcast %539 : vector<1x1xf32> to vector<1x778xf32>
    %541 = arith.mulf %540, %531 : vector<1x778xf32>
    %542 = arith.addf %538, %541 : vector<1x778xf32>
    %543 = vector.extract_strided_slice %389 {offsets = [1, 0], sizes = [1, 1], strides = [1, 1]} : vector<3x3xf32> to vector<1x1xf32>
    %544 = vector.broadcast %543 : vector<1x1xf32> to vector<1x778xf32>
    %545 = arith.mulf %544, %529 : vector<1x778xf32>
    %546 = vector.extract_strided_slice %389 {offsets = [1, 1], sizes = [1, 1], strides = [1, 1]} : vector<3x3xf32> to vector<1x1xf32>
    %547 = vector.broadcast %546 : vector<1x1xf32> to vector<1x778xf32>
    %548 = arith.mulf %547, %530 : vector<1x778xf32>
    %549 = arith.addf %545, %548 : vector<1x778xf32>
    %550 = vector.extract_strided_slice %389 {offsets = [1, 2], sizes = [1, 1], strides = [1, 1]} : vector<3x3xf32> to vector<1x1xf32>
    %551 = vector.broadcast %550 : vector<1x1xf32> to vector<1x778xf32>
    %552 = arith.mulf %551, %531 : vector<1x778xf32>
    %553 = arith.addf %549, %552 : vector<1x778xf32>
    %554 = vector.extract_strided_slice %389 {offsets = [2, 0], sizes = [1, 1], strides = [1, 1]} : vector<3x3xf32> to vector<1x1xf32>
    %555 = vector.broadcast %554 : vector<1x1xf32> to vector<1x778xf32>
    %556 = arith.mulf %555, %529 : vector<1x778xf32>
    %557 = vector.extract_strided_slice %389 {offsets = [2, 1], sizes = [1, 1], strides = [1, 1]} : vector<3x3xf32> to vector<1x1xf32>
    %558 = vector.broadcast %557 : vector<1x1xf32> to vector<1x778xf32>
    %559 = arith.mulf %558, %530 : vector<1x778xf32>
    %560 = arith.addf %556, %559 : vector<1x778xf32>
    %561 = vector.extract_strided_slice %389 {offsets = [2, 2], sizes = [1, 1], strides = [1, 1]} : vector<3x3xf32> to vector<1x1xf32>
    %562 = vector.broadcast %561 : vector<1x1xf32> to vector<1x778xf32>
    %563 = arith.mulf %562, %531 : vector<1x778xf32>
    %564 = arith.addf %560, %563 : vector<1x778xf32>
    %565 = tpu.reciprocal %564 {approx = true} : vector<1x778xf32> -> vector<1x778xf32>
    %566 = arith.mulf %542, %565 : vector<1x778xf32>
    %567 = arith.mulf %553, %565 : vector<1x778xf32>
    %568 = tpu.concatenate %566, %567 in 0 : vector<1x778xf32>, vector<1x778xf32> -> vector<2x778xf32>
    %cst_212 = arith.constant 1.562500e-02 : f32
    %569 = vector.broadcast %cst_212 : f32 to vector<2x778xf32>
    %570 = arith.mulf %568, %569 : vector<2x778xf32>
    %c0_213 = arith.constant 0 : index
    %c0_214 = arith.constant 0 : index
    %c0_215 = arith.constant 0 : index
    %571 = vector.load %arg37[%c0_213, %c0_214, %c0_215] : memref<1x2x778xf32, #tpu.memory_space<vmem>>, vector<1x2x778xf32>
    %572 = vector.shape_cast %571 : vector<1x2x778xf32> to vector<2x778xf32>
    %573 = vector.shape_cast %570 : vector<2x778xf32> to vector<1x2x778xf32>
    tpu.vector_store %arg37[%c0_213, %c0_214, %c0_215], %573 {strides = array<i32>} : memref<1x2x778xf32, #tpu.memory_space<vmem>>, vector<1x2x778xf32>,
    %574 = vector.extract_strided_slice %522 {offsets = [0, 0], sizes = [1, 21], strides = [1, 1]} : vector<3x21xf32> to vector<1x21xf32>
    %575 = vector.extract_strided_slice %522 {offsets = [1, 0], sizes = [1, 21], strides = [1, 1]} : vector<3x21xf32> to vector<1x21xf32>
    %576 = vector.extract_strided_slice %522 {offsets = [2, 0], sizes = [1, 21], strides = [1, 1]} : vector<3x21xf32> to vector<1x21xf32>
    %577 = vector.extract_strided_slice %389 {offsets = [0, 0], sizes = [1, 1], strides = [1, 1]} : vector<3x3xf32> to vector<1x1xf32>
    %578 = vector.broadcast %577 : vector<1x1xf32> to vector<1x21xf32>
    %579 = arith.mulf %578, %574 : vector<1x21xf32>
    %580 = vector.extract_strided_slice %389 {offsets = [0, 1], sizes = [1, 1], strides = [1, 1]} : vector<3x3xf32> to vector<1x1xf32>
    %581 = vector.broadcast %580 : vector<1x1xf32> to vector<1x21xf32>
    %582 = arith.mulf %581, %575 : vector<1x21xf32>
    %583 = arith.addf %579, %582 : vector<1x21xf32>
    %584 = vector.extract_strided_slice %389 {offsets = [0, 2], sizes = [1, 1], strides = [1, 1]} : vector<3x3xf32> to vector<1x1xf32>
    %585 = vector.broadcast %584 : vector<1x1xf32> to vector<1x21xf32>
    %586 = arith.mulf %585, %576 : vector<1x21xf32>
    %587 = arith.addf %583, %586 : vector<1x21xf32>
    %588 = vector.extract_strided_slice %389 {offsets = [1, 0], sizes = [1, 1], strides = [1, 1]} : vector<3x3xf32> to vector<1x1xf32>
    %589 = vector.broadcast %588 : vector<1x1xf32> to vector<1x21xf32>
    %590 = arith.mulf %589, %574 : vector<1x21xf32>
    %591 = vector.extract_strided_slice %389 {offsets = [1, 1], sizes = [1, 1], strides = [1, 1]} : vector<3x3xf32> to vector<1x1xf32>
    %592 = vector.broadcast %591 : vector<1x1xf32> to vector<1x21xf32>
    %593 = arith.mulf %592, %575 : vector<1x21xf32>
    %594 = arith.addf %590, %593 : vector<1x21xf32>
    %595 = vector.extract_strided_slice %389 {offsets = [1, 2], sizes = [1, 1], strides = [1, 1]} : vector<3x3xf32> to vector<1x1xf32>
    %596 = vector.broadcast %595 : vector<1x1xf32> to vector<1x21xf32>
    %597 = arith.mulf %596, %576 : vector<1x21xf32>
    %598 = arith.addf %594, %597 : vector<1x21xf32>
    %599 = vector.extract_strided_slice %389 {offsets = [2, 0], sizes = [1, 1], strides = [1, 1]} : vector<3x3xf32> to vector<1x1xf32>
    %600 = vector.broadcast %599 : vector<1x1xf32> to vector<1x21xf32>
    %601 = arith.mulf %600, %574 : vector<1x21xf32>
    %602 = vector.extract_strided_slice %389 {offsets = [2, 1], sizes = [1, 1], strides = [1, 1]} : vector<3x3xf32> to vector<1x1xf32>
    %603 = vector.broadcast %602 : vector<1x1xf32> to vector<1x21xf32>
    %604 = arith.mulf %603, %575 : vector<1x21xf32>
    %605 = arith.addf %601, %604 : vector<1x21xf32>
    %606 = vector.extract_strided_slice %389 {offsets = [2, 2], sizes = [1, 1], strides = [1, 1]} : vector<3x3xf32> to vector<1x1xf32>
    %607 = vector.broadcast %606 : vector<1x1xf32> to vector<1x21xf32>
    %608 = arith.mulf %607, %576 : vector<1x21xf32>
    %609 = arith.addf %605, %608 : vector<1x21xf32>
    %610 = tpu.reciprocal %609 {approx = true} : vector<1x21xf32> -> vector<1x21xf32>
    %611 = arith.mulf %587, %610 : vector<1x21xf32>
    %612 = arith.mulf %598, %610 : vector<1x21xf32>
    %613 = tpu.concatenate %611, %612 in 0 : vector<1x21xf32>, vector<1x21xf32> -> vector<2x21xf32>
    %cst_216 = arith.constant 1.562500e-02 : f32
    %614 = vector.broadcast %cst_216 : f32 to vector<2x21xf32>
    %615 = arith.mulf %613, %614 : vector<2x21xf32>
    %c0_217 = arith.constant 0 : index
    %c0_218 = arith.constant 0 : index
    %c0_219 = arith.constant 0 : index
    %616 = vector.load %arg38[%c0_217, %c0_218, %c0_219] : memref<1x2x21xf32, #tpu.memory_space<vmem>>, vector<1x2x21xf32>
    %617 = vector.shape_cast %616 : vector<1x2x21xf32> to vector<2x21xf32>
    %618 = vector.shape_cast %615 : vector<2x21xf32> to vector<1x2x21xf32>
    tpu.vector_store %arg38[%c0_217, %c0_218, %c0_219], %618 {strides = array<i32>} : memref<1x2x21xf32, #tpu.memory_space<vmem>>, vector<1x2x21xf32>,
    return
  }
  func.func @transform_0(%arg0: i32) -> (i32, i32, i32) {
    %c0_i32 = arith.constant 0 : i32
    %c0_i32_0 = arith.constant 0 : i32
    %c0_i32_1 = arith.constant 0 : i32
    return %arg0, %c0_i32, %c0_i32_0 : i32, i32, i32
  }
  func.func @transform_1(%arg0: i32) -> (i32, i32, i32) {
    %c0_i32 = arith.constant 0 : i32
    %c0_i32_0 = arith.constant 0 : i32
    %c0_i32_1 = arith.constant 0 : i32
    return %arg0, %c0_i32, %c0_i32_0 : i32, i32, i32
  }
  func.func @transform_2(%arg0: i32) -> (i32, i32) {
    %c0_i32 = arith.constant 0 : i32
    %c0_i32_0 = arith.constant 0 : i32
    %c0_i32_1 = arith.constant 0 : i32
    return %c0_i32, %c0_i32_0 : i32, i32
  }
  func.func @transform_3(%arg0: i32) -> (i32, i32) {
    %c0_i32 = arith.constant 0 : i32
    %c0_i32_0 = arith.constant 0 : i32
    %c0_i32_1 = arith.constant 0 : i32
    return %c0_i32, %c0_i32_0 : i32, i32
  }
  func.func @transform_4(%arg0: i32) -> (i32, i32) {
    %c0_i32 = arith.constant 0 : i32
    %c0_i32_0 = arith.constant 0 : i32
    %c0_i32_1 = arith.constant 0 : i32
    return %c0_i32, %c0_i32_0 : i32, i32
  }
  func.func @transform_5(%arg0: i32) -> (i32, i32) {
    %c0_i32 = arith.constant 0 : i32
    %c0_i32_0 = arith.constant 0 : i32
    %c0_i32_1 = arith.constant 0 : i32
    return %c0_i32, %c0_i32_0 : i32, i32
  }
  func.func @transform_6(%arg0: i32) -> (i32, i32) {
    %c0_i32 = arith.constant 0 : i32
    %c0_i32_0 = arith.constant 0 : i32
    %c0_i32_1 = arith.constant 0 : i32
    return %c0_i32, %c0_i32_0 : i32, i32
  }
  func.func @transform_7(%arg0: i32) -> (i32, i32) {
    %c0_i32 = arith.constant 0 : i32
    %c0_i32_0 = arith.constant 0 : i32
    %c0_i32_1 = arith.constant 0 : i32
    return %c0_i32, %c0_i32_0 : i32, i32
  }
  func.func @transform_8(%arg0: i32) -> (i32, i32) {
    %c0_i32 = arith.constant 0 : i32
    %c0_i32_0 = arith.constant 0 : i32
    %c0_i32_1 = arith.constant 0 : i32
    return %c0_i32, %c0_i32_0 : i32, i32
  }
  func.func @transform_9(%arg0: i32) -> (i32, i32) {
    %c0_i32 = arith.constant 0 : i32
    %c0_i32_0 = arith.constant 0 : i32
    %c0_i32_1 = arith.constant 0 : i32
    return %c0_i32, %c0_i32_0 : i32, i32
  }
  func.func @transform_10(%arg0: i32) -> (i32, i32) {
    %c0_i32 = arith.constant 0 : i32
    %c0_i32_0 = arith.constant 0 : i32
    %c0_i32_1 = arith.constant 0 : i32
    return %c0_i32, %c0_i32_0 : i32, i32
  }
  func.func @transform_11(%arg0: i32) -> (i32, i32) {
    %c0_i32 = arith.constant 0 : i32
    %c0_i32_0 = arith.constant 0 : i32
    %c0_i32_1 = arith.constant 0 : i32
    return %c0_i32, %c0_i32_0 : i32, i32
  }
  func.func @transform_12(%arg0: i32) -> (i32, i32) {
    %c0_i32 = arith.constant 0 : i32
    %c0_i32_0 = arith.constant 0 : i32
    %c0_i32_1 = arith.constant 0 : i32
    return %c0_i32, %c0_i32_0 : i32, i32
  }
  func.func @transform_13(%arg0: i32) -> (i32, i32) {
    %c0_i32 = arith.constant 0 : i32
    %c0_i32_0 = arith.constant 0 : i32
    %c0_i32_1 = arith.constant 0 : i32
    return %c0_i32, %c0_i32_0 : i32, i32
  }
  func.func @transform_14(%arg0: i32) -> (i32, i32) {
    %c0_i32 = arith.constant 0 : i32
    %c0_i32_0 = arith.constant 0 : i32
    %c0_i32_1 = arith.constant 0 : i32
    return %c0_i32, %c0_i32_0 : i32, i32
  }
  func.func @transform_15(%arg0: i32) -> (i32, i32) {
    %c0_i32 = arith.constant 0 : i32
    %c0_i32_0 = arith.constant 0 : i32
    %c0_i32_1 = arith.constant 0 : i32
    return %c0_i32, %c0_i32_0 : i32, i32
  }
  func.func @transform_16(%arg0: i32) -> (i32, i32) {
    %c0_i32 = arith.constant 0 : i32
    %c0_i32_0 = arith.constant 0 : i32
    %c0_i32_1 = arith.constant 0 : i32
    return %c0_i32, %c0_i32_0 : i32, i32
  }
  func.func @transform_17(%arg0: i32) -> (i32, i32) {
    %c0_i32 = arith.constant 0 : i32
    %c0_i32_0 = arith.constant 0 : i32
    %c0_i32_1 = arith.constant 0 : i32
    return %c0_i32, %c0_i32_0 : i32, i32
  }
  func.func @transform_18(%arg0: i32) -> (i32, i32) {
    %c0_i32 = arith.constant 0 : i32
    %c0_i32_0 = arith.constant 0 : i32
    %c0_i32_1 = arith.constant 0 : i32
    return %c0_i32, %c0_i32_0 : i32, i32
  }
  func.func @transform_19(%arg0: i32) -> (i32, i32) {
    %c0_i32 = arith.constant 0 : i32
    %c0_i32_0 = arith.constant 0 : i32
    %c0_i32_1 = arith.constant 0 : i32
    return %c0_i32, %c0_i32_0 : i32, i32
  }
  func.func @transform_20(%arg0: i32) -> (i32, i32) {
    %c0_i32 = arith.constant 0 : i32
    %c0_i32_0 = arith.constant 0 : i32
    %c0_i32_1 = arith.constant 0 : i32
    return %c0_i32, %c0_i32_0 : i32, i32
  }
  func.func @transform_21(%arg0: i32) -> (i32, i32) {
    %c0_i32 = arith.constant 0 : i32
    %c0_i32_0 = arith.constant 0 : i32
    %c0_i32_1 = arith.constant 0 : i32
    return %c0_i32, %c0_i32_0 : i32, i32
  }
  func.func @transform_22(%arg0: i32) -> (i32, i32) {
    %c0_i32 = arith.constant 0 : i32
    %c0_i32_0 = arith.constant 0 : i32
    %c0_i32_1 = arith.constant 0 : i32
    return %c0_i32, %c0_i32_0 : i32, i32
  }
  func.func @transform_23(%arg0: i32) -> (i32, i32, i32) {
    %c0_i32 = arith.constant 0 : i32
    %c0_i32_0 = arith.constant 0 : i32
    %c0_i32_1 = arith.constant 0 : i32
    %c0_i32_2 = arith.constant 0 : i32
    return %c0_i32, %c0_i32_0, %c0_i32_1 : i32, i32, i32
  }
  func.func @transform_24(%arg0: i32) -> (i32, i32) {
    %c0_i32 = arith.constant 0 : i32
    %c0_i32_0 = arith.constant 0 : i32
    %c0_i32_1 = arith.constant 0 : i32
    return %c0_i32, %c0_i32_0 : i32, i32
  }
  func.func @transform_25(%arg0: i32) -> (i32, i32) {
    %c0_i32 = arith.constant 0 : i32
    %c0_i32_0 = arith.constant 0 : i32
    %c0_i32_1 = arith.constant 0 : i32
    return %c0_i32, %c0_i32_0 : i32, i32
  }
  func.func @transform_26(%arg0: i32) -> (i32, i32) {
    %c0_i32 = arith.constant 0 : i32
    %c0_i32_0 = arith.constant 0 : i32
    %c0_i32_1 = arith.constant 0 : i32
    return %c0_i32, %c0_i32_0 : i32, i32
  }
  func.func @transform_27(%arg0: i32) -> (i32, i32) {
    %c0_i32 = arith.constant 0 : i32
    %c0_i32_0 = arith.constant 0 : i32
    %c0_i32_1 = arith.constant 0 : i32
    return %c0_i32, %c0_i32_0 : i32, i32
  }
  func.func @transform_28(%arg0: i32) -> (i32, i32) {
    %c0_i32 = arith.constant 0 : i32
    %c0_i32_0 = arith.constant 0 : i32
    %c0_i32_1 = arith.constant 0 : i32
    return %c0_i32, %c0_i32_0 : i32, i32
  }
  func.func @transform_29(%arg0: i32) -> (i32, i32, i32) {
    %c0_i32 = arith.constant 0 : i32
    %c0_i32_0 = arith.constant 0 : i32
    %c0_i32_1 = arith.constant 0 : i32
    return %arg0, %c0_i32, %c0_i32_0 : i32, i32, i32
  }
  func.func @transform_30(%arg0: i32) -> (i32, i32, i32) {
    %c0_i32 = arith.constant 0 : i32
    %c0_i32_0 = arith.constant 0 : i32
    %c0_i32_1 = arith.constant 0 : i32
    return %arg0, %c0_i32, %c0_i32_0 : i32, i32, i32
  }
  func.func @transform_31(%arg0: i32) -> (i32, i32, i32) {
    %c0_i32 = arith.constant 0 : i32
    %c0_i32_0 = arith.constant 0 : i32
    %c0_i32_1 = arith.constant 0 : i32
    return %arg0, %c0_i32, %c0_i32_0 : i32, i32, i32
  }
  func.func @transform_32(%arg0: i32) -> (i32, i32, i32) {
    %c0_i32 = arith.constant 0 : i32
    %c0_i32_0 = arith.constant 0 : i32
    %c0_i32_1 = arith.constant 0 : i32
    return %arg0, %c0_i32, %c0_i32_0 : i32, i32, i32
  }
  func.func @transform_33(%arg0: i32) -> (i32, i32, i32) {
    %c0_i32 = arith.constant 0 : i32
    %c0_i32_0 = arith.constant 0 : i32
    %c0_i32_1 = arith.constant 0 : i32
    return %arg0, %c0_i32, %c0_i32_0 : i32, i32, i32
  }
  func.func @transform_34(%arg0: i32) -> (i32, i32, i32) {
    %c0_i32 = arith.constant 0 : i32
    %c0_i32_0 = arith.constant 0 : i32
    %c0_i32_1 = arith.constant 0 : i32
    return %arg0, %c0_i32, %c0_i32_0 : i32, i32, i32
  }
  func.func @transform_35(%arg0: i32) -> (i32, i32, i32) {
    %c0_i32 = arith.constant 0 : i32
    %c0_i32_0 = arith.constant 0 : i32
    %c0_i32_1 = arith.constant 0 : i32
    return %arg0, %c0_i32, %c0_i32_0 : i32, i32, i32
  }
  func.func @transform_36(%arg0: i32) -> (i32, i32, i32) {
    %c0_i32 = arith.constant 0 : i32
    %c0_i32_0 = arith.constant 0 : i32
    %c0_i32_1 = arith.constant 0 : i32
    return %arg0, %c0_i32, %c0_i32_0 : i32, i32, i32
  }
  func.func @transform_37(%arg0: i32) -> (i32, i32, i32) {
    %c0_i32 = arith.constant 0 : i32
    %c0_i32_0 = arith.constant 0 : i32
    %c0_i32_1 = arith.constant 0 : i32
    return %arg0, %c0_i32, %c0_i32_0 : i32, i32, i32
  }
}

</mosaic_0001>

<bundles_post_ra>
// kernel: handdgp_forward.1
= control target key start
LH: loop header
LB: loop body
LE: loop exit
PB: predicated region body
PF: predicated region fallthrough
CT: control target
= control target key end

     0   :  { %s11053_s6 = smov 1   ;;  %s11054_s10 = smov 2   ;;  %s13262_s0 = inlined_call_operand.smem [shape: u32[38], index: -1, kind: input, shape index: {}] }
   0x1   :  { %s11120_s5 = sld [smem:[%s13262_s0]]   ;;  %s11055_s14 = smov 3  }
   0x2   :  { %s11125_s9 = sld [smem:[%s13262_s0 + %s11053_s6]]   ;;  %s11056_s18 = smov 4  }
   0x3   :  { %s11130_s13 = sld [smem:[%s13262_s0 + %s11054_s10]]   ;;  %s11057_s22 = smov 5  }
   0x4   :  { %s11135_s17 = sld [smem:[%s13262_s0 + %s11055_s14]]   ;;  %s11058_s26 = smov 6  }
   0x5   :  { %s11140_s21 = sld [smem:[%s13262_s0 + %s11056_s18]]   ;;  %s11059_s30 = smov 7  }
   0x6   :  { %s11145_s25 = sld [smem:[%s13262_s0 + %s11057_s22]]   ;;  %s11060_s4 = smov 8  }
   0x7   :  { %13311 = sst [smem:[#allocation16_spill]] %s11120_s5  ;;  %s11061_s10 = smov 9  }
   0x8   :  { %13312 = sst [smem:[#allocation17_spill]] %s11125_s9  ;;  %s11062_s15 = smov 10  }
   0x9   :  { %13313 = sst [smem:[#allocation18_spill]] %s11130_s13  ;;  %s11063_s20 = smov 11  }
   0xa   :  { %13314 = sst [smem:[#allocation19_spill]] %s11135_s17  ;;  %s11065_s1 = smov 13  }
   0xb   :  { %13315 = sst [smem:[#allocation20_spill]] %s11140_s21  ;;  %s11066_s7 = smov 14  }
   0xc   :  { %13316 = sst [smem:[#allocation21_spill]] %s11145_s25  ;;  %s11068_s22 = smov 16  }
   0xd   :  { %s11150_s29 = sld [smem:[%s13262_s0 + %s11058_s26]]   ;;  %s11064_s26 = smov 12  }
   0xe   :  { %s11155_s3 = sld [smem:[%s13262_s0 + %s11059_s30]]   ;;  %s11069_s28 = smov 17  }
   0xf   :  { %s11160_s8 = sld [smem:[%s13262_s0 + %s11060_s4]]  }
  0x10   :  { %s11165_s14 = sld [smem:[%s13262_s0 + %s11061_s10]]  }
  0x11   :  { %s11170_s19 = sld [smem:[%s13262_s0 + %s11062_s15]]   ;;  %s11067_s15 = smov 15  }
  0x12   :  { %s11175_s24 = sld [smem:[%s13262_s0 + %s11063_s20]]  }
  0x13   :  { %s11180_s30 = sld [smem:[%s13262_s0 + %s11064_s26]]  }
  0x14   :  { %13317 = sst [smem:[#allocation22_spill]] %s11155_s3 }
  0x15   :  { %13318 = sst [smem:[#allocation23_spill]] %s11160_s8 }
  0x16   :  { %13319 = sst [smem:[#allocation24_spill]] %s11165_s14 }
  0x17   :  { %13320 = sst [smem:[#allocation25_spill]] %s11170_s19 }
  0x18   :  { %13321 = sst [smem:[#allocation26_spill]] %s11175_s24 }
  0x19   :  { %s11185_s6 = sld [smem:[%s13262_s0 + %s11065_s1]]  }
  0x1a   :  { %s11190_s12 = sld [smem:[%s13262_s0 + %s11066_s7]]   ;;  %s11070_s7 = smov 18  }
  0x1b   :  { %s11195_s20 = sld [smem:[%s13262_s0 + %s11067_s15]]   ;;  %s11071_s15 = smov 19  }
  0x1c   :  { %s11200_s27 = sld [smem:[%s13262_s0 + %s11068_s22]]   ;;  %s11072_s22 = smov 20  }
  0x1d   :  { %s11205_s4 = sld [smem:[%s13262_s0 + %s11069_s28]]   ;;  %s11073_s28 = smov 21  }
  0x1e   :  { %s11210_s9 = sld [smem:[%s13262_s0 + %s11070_s7]]   ;;  %s11074_s7 = smov 22  }
  0x1f   :  { %13322 = sst [smem:[#allocation27_spill]] %s11185_s6 }
  0x20   :  { %13323 = sst [smem:[#allocation28_spill]] %s11190_s12 }
  0x21   :  { %13324 = sst [smem:[#allocation29_spill]] %s11195_s20 }
  0x22   :  { %13325 = sst [smem:[#allocation30_spill]] %s11200_s27 }
  0x23   :  { %13326 = sst [smem:[#allocation31_spill]] %s11205_s4 }
  0x24   :  { %13327 = sst [smem:[#allocation32_spill]] %s11210_s9 }
  0x25   :  { %s11215_s13 = sld [smem:[%s13262_s0 + %s11071_s15]]   ;;  %s11075_s15 = smov 23  }
  0x26   :  { %s11220_s20 = sld [smem:[%s13262_s0 + %s11072_s22]]   ;;  %s11076_s22 = smov 24  }
  0x27   :  { %s11225_s4 = sld [smem:[%s13262_s0 + %s11073_s28]]   ;;  %s11077_s28 = smov 25  }
  0x28   :  { %s11230_s6 = sld [smem:[%s13262_s0 + %s11074_s7]]   ;;  %s11078_s7 = smov 26  }
  0x2b   :  { %13328 = sst [smem:[#allocation33_spill]] %s11215_s13 }
  0x2c   :  { %13329 = sst [smem:[#allocation34_spill]] %s11220_s20 }
  0x2d   :  { %13330 = sst [smem:[#allocation35_spill]] %s11225_s4 }
  0x2e   :  { %13331 = sst [smem:[#allocation36_spill]] %s11230_s6 }
  0x2f   :  { %s11235_s13 = sld [smem:[%s13262_s0 + %s11075_s15]]   ;;  %s11079_s15 = smov 27  }
  0x30   :  { %s11240_s20 = sld [smem:[%s13262_s0 + %s11076_s22]]   ;;  %s11080_s22 = smov 28  }
  0x31   :  { %s11245_s4 = sld [smem:[%s13262_s0 + %s11077_s28]]   ;;  %s11081_s28 = smov 29  }
  0x32   :  { %s11250_s6 = sld [smem:[%s13262_s0 + %s11078_s7]]   ;;  %s11082_s7 = smov 30  }
  0x35   :  { %13332 = sst [smem:[#allocation37_spill]] %s11235_s13 }
  0x36   :  { %13333 = sst [smem:[#allocation38_spill]] %s11240_s20 }
  0x37   :  { %13334 = sst [smem:[#allocation39_spill]] %s11245_s4 }
  0x38   :  { %13335 = sst [smem:[#allocation40_spill]] %s11250_s6 }
  0x39   :  { %s11255_s13 = sld [smem:[%s13262_s0 + %s11079_s15]]   ;;  %s11083_s15 = smov 31  }
  0x3a   :  { %s11260_s20 = sld [smem:[%s13262_s0 + %s11080_s22]]   ;;  %s11084_s22 = smov 32  }
  0x3b   :  { %s11265_s4 = sld [smem:[%s13262_s0 + %s11081_s28]]   ;;  %s11085_s28 = smov 33  }
  0x3c   :  { %s11270_s6 = sld [smem:[%s13262_s0 + %s11082_s7]]   ;;  %s11086_s7 = smov 34  }
  0x3f   :  { %13336 = sst [smem:[#allocation41_spill]] %s11255_s13 }
  0x40   :  { %13337 = sst [smem:[#allocation42_spill]] %s11260_s20 }
  0x41   :  { %13338 = sst [smem:[#allocation43_spill]] %s11265_s4 }
  0x42   :  { %13339 = sst [smem:[#allocation44_spill]] %s11270_s6 }
  0x43   :  { %s11275_s13 = sld [smem:[%s13262_s0 + %s11083_s15]]   ;;  %s11087_s15 = smov 35  }
  0x44   :  { %s11280_s20 = sld [smem:[%s13262_s0 + %s11084_s22]]   ;;  %s11088_s22 = smov 36  }
  0x45   :  { %s11285_s4 = sld [smem:[%s13262_s0 + %s11085_s28]]   ;;  %s11089_s28 = smov 37  }
  0x46   :  { %s11290_s6 = sld [smem:[%s13262_s0 + %s11086_s7]]  }
  0x49   :  { %13340 = sst [smem:[#allocation45_spill]] %s11275_s13 }
  0x4a   :  { %13341 = sst [smem:[#allocation46_spill]] %s11280_s20 }
  0x4b   :  { %13342 = sst [smem:[#allocation47_spill]] %s11285_s4 }
  0x4c   :  { %s11295_s13 = sld [smem:[%s13262_s0 + %s11087_s15]]  }
  0x4d   :  { %s11300_s20 = sld [smem:[%s13262_s0 + %s11088_s22]]  }
  0x4e   :  { %s11305_s4 = sld [smem:[%s13262_s0 + %s11089_s28]]  }
  0x4f   :  { %81 = vsyncpa [#allocation3], 0 }
  0x50   :  { %83 = vsyncpa [#allocation3 + $0x1], 0 }
  0x51   :  { %84 = vsyncpa [#allocation5], 0 }
  0x52   :  { %86 = vsyncpa [#allocation5 + $0x1], 0 }
  0x53   :  { %87 = vsyncpa [#allocation8], 0 }
  0x54   :  { %89 = vsyncpa [#allocation8 + $0x1], 0 }
  0x55   :  { %90 = vsyncpa [#allocation11], 0 }
  0x56   :  { %92 = vsyncpa [#allocation11 + $0x1], 0  ;;  %s11307_s7 = smov 0   ;;  %s11309_s10 = smov 0  }
  0x57   :  { %s11311_s11 = smov 0   ;;  %s11313_s15 = smov 0  }
  0x58 LB: > { %s13343_s27 = sld [smem:[#allocation30_spill]]  ;;  %s13344_s25 = sld [smem:[#allocation21_spill]]  ;;  %s11043_s10 = sphi %s11309_s10, %s13406_s10   ;;  %s11039_s7 = sphi %s11307_s7, %s13405_s7   ;;  %s11051_s15 = sphi %s11313_s15, %s13408_s15   ;;  %s11047_s11 = sphi %s11311_s11, %s13407_s11  }
  0x59   : > { %s13345_s17 = sld [smem:[#allocation19_spill]]  ;;  %s13346_s14 = sld [smem:[#allocation24_spill]] }
  0x5a   : > { %s13347_s12 = sld [smem:[#allocation28_spill]]  ;;  %s13348_s3 = sld [smem:[#allocation22_spill]] }
  0x5b   : > { %s11328_s0 = sadd.s32 4294967295, %s11051_s15   ;;  %s13276_s16 = sadd.s32 4294967294, %s11051_s15  }
  0x5c   : > { %s11332_s18 = sadd.s32 1, %s11051_s15   ;;  %s724_s22 = sadd.s32 1, %s11047_s11 }
  0x5d   : > { %s721_s23 = ssub.s32 %s11051_s15, %s11332_s18  ;;  %p734_p0 = scmp.ne.s32.totalorder %s11047_s11, %s11043_s10 }
  0x5e   : > { %p722_p1 = scmp.eq.s32.totalorder %s721_s23, 0  ;;  %p735_p2 = scmp.eq.s32.totalorder %s11328_s0, 1 }
  0x5f   : > { %p740_p3 = scmp.ne.s32.totalorder %s11043_s10, %s11039_s7  ;;  %p741_p4 = scmp.eq.s32.totalorder %s13276_s16, 1 }
  0x60   : > { %s11345_s26 = scalar_select %p722_p1, %s11047_s11, %s724_s22  }
  0x61   : > { %p11347_p5 = por %p735_p2, %p734_p0  ;;  %p11351_p6 = por %p741_p4, %p740_p3 }
  0x62   : > { %p8770_p7 = scmp.ge.s32.totalorder %s11051_s15, 1  ;;  %p1063_p8 = scmp.lt.s32.totalorder %s11051_s15, 3 }
  0x64   : > { %p1064_p9 = pnand %p8770_p7, %p1063_p8 }
  0x66   : > { %1067 = sbr.rel (%p1064_p9) target bundleno = 3599 (0xe0f), region = 136 }
  0x6d   : > { %v10314_v0 = vld [vmem:[%s13345_s17 + $0x40] sm:$0xff]   ;;  %v10318_v4 = vld [vmem:[%s13345_s17 + $0x48] sm:$0xff]   ;;  %v10322_v8 = vld [vmem:[%s13345_s17 + $0x50] sm:$0xff]   ;;  %p1195_p10 = scmp.lt.s32.totalorder %s11328_s0, 1  ;;  %s13351_s5 = sld [smem:[#allocation16_spill]]  ;;  %v1626_v28 = vlaneseq  ;;  %vm11092_vm0 = vmmov 0  }
  0x6e   : > { %v10315_v1 = vld [vmem:[%s13345_s17 + $0xc0] sm:$0xff]   ;;  %9299 = vmatprep.subr.bf16.mxu0 %v10314_v0  ;;  %v10319_v5 = vld [vmem:[%s13345_s17 + $0xc8] sm:$0xff]   ;;  %v10323_v9 = vld [vmem:[%s13345_s17 + $0xd0] sm:$0xff]   ;;  %v11090_v36 = vmov 1983009808   ;;  %s13353_s21 = sld [smem:[#allocation20_spill]] }
  0x6f   : > { %v10316_v2 = vld [vmem:[%s13345_s17] sm:$0xff]   ;;  %9321 = vmatprep.subr.bf16.mxu1 %v10315_v1  ;;  %v10320_v6 = vld [vmem:[%s13345_s17 + $0x8] sm:$0xff]   ;;  %v10324_v10 = vld [vmem:[%s13345_s17 + $0x10] sm:$0xff]   ;;  %s11381_s2 = scalar_select %p1195_p10, %s11328_s0, 1  ;;  %v11397_v33 = vshrl.u32 %v1626_v28, 7  ;;  %v1624_v37 = vunpack.c.l.s4 %v11090_v36  ;;  %vm3494_vm1 = vcmask 519168  }
  0x70   : > { %v10317_v3 = vld [vmem:[%s13345_s17 + $0x80] sm:$0xff]   ;;  %9300 = vmatpush3.bf16.msra.mxu0 %v10316_v2  ;;  %v10321_v7 = vld [vmem:[%s13345_s17 + $0x88] sm:$0xff]   ;;  %v10325_v11 = vld [vmem:[%s13345_s17 + $0x90] sm:$0xff]   ;;  %s13354_s9 = sld [smem:[#allocation32_spill]]  ;;  %s13355_s19 = sld [smem:[#allocation25_spill]]  ;;  %vm3749_vm3 = vcmask 261120  }
  0x71   : > { %9322 = vmatpush3.bf16.msra.mxu1 %v10317_v3  ;;  %9301 = vmatprep.subr.bf16.mxu0 %v10318_v4  ;;  %v10326_v12 = vld [vmem:[%s13345_s17 + $0x58] sm:$0xff]   ;;  %v10330_v16 = vld [vmem:[%s13345_s17 + $0x60] sm:$0xff]   ;;  %v10334_v20 = vld [vmem:[%s13345_s17 + $0x68] sm:$0xff]   ;;  %s10186_s22 = smul.u32 48, %s11381_s2  ;;  %v1625_v39 = vunpack.c.0.s8 %v1624_v37  ;;  %s13356_s8 = sld [smem:[#allocation23_spill]]  ;;  %vm3887_vm4 = vcmask 1041408  }
  0x72   : > { %9323 = vmatprep.subr.bf16.mxu1 %v10319_v5  ;;  %v10327_v13 = vld [vmem:[%s13345_s17 + $0xd8] sm:$0xff]   ;;  %v10331_v17 = vld [vmem:[%s13345_s17 + $0xe0] sm:$0xff]   ;;  %v10335_v21 = vld [vmem:[%s13345_s17 + $0xe8] sm:$0xff]   ;;  %s13357_s24 = sld [smem:[#allocation26_spill]]  ;;  %vm3874_vm5 = vcmask 31744   ;;  %vm4006_vm6 = vcmask 523264  }
  0x73   : > { %v10328_v14 = vld [vmem:[%s13345_s17 + $0x18] sm:$0xff]   ;;  %v10332_v18 = vld [vmem:[%s13345_s17 + $0x20] sm:$0xff]   ;;  %v10336_v22 = vld [vmem:[%s13345_s17 + $0x28] sm:$0xff]   ;;  %s11393_s23 = scalar_lea.vmem %s13351_s5, %s10186_s22  ;;  %v11403_v41 = vsub.s32 %v1625_v39, %v11397_v33  ;;  %s11094_s22 = smov 42   ;;  %vm4118_vm7 = vcmask 164864  }
  0x74   : > { %9302 = vmatpush3.bf16.msra.mxu0 %v10320_v6  ;;  %v10329_v15 = vld [vmem:[%s13345_s17 + $0x98] sm:$0xff]   ;;  %v10333_v19 = vld [vmem:[%s13345_s17 + $0xa0] sm:$0xff]   ;;  %v10337_v23 = vld [vmem:[%s13345_s17 + $0xa8] sm:$0xff]   ;;  %s13360_s16 = sld [smem:[#allocation31_spill]]  ;;  %s11689_s5 = sand.u32 1, %s11043_s10  }
  0x75   : > { %9324 = vmatpush3.bf16.msra.mxu1 %v10321_v7  ;;  %9303 = vmatprep.subr.bf16.mxu0 %v10322_v8  ;;  %v10338_v24 = vld [vmem:[%s13345_s17 + $0x70] sm:$0xff]   ;;  %v10342_v29 = vld [vmem:[%s13345_s17 + $0x78] sm:$0xff]   ;;  %v1219_v34 = vld [vmem:[%s11393_s23] sm:$0xff]  ;;  %13352 = vst [vmem:[#allocation48_spill] sm:$0xff] %v11403_v41 }
  0x76   : > { %9325 = vmatprep.subr.bf16.mxu1 %v10323_v9  ;;  %v10339_v25 = vld [vmem:[%s13345_s17 + $0xf0] sm:$0xff]   ;;  %v10343_v30 = vld [vmem:[%s13345_s17 + $0xf8] sm:$0xff]   ;;  %v10347_v35 = vld [vmem:[%s13345_s17 + $0x140] sm:$0xff]   ;;  %v1622_v40 = vcombine.high %v1219_v34, %v1219_v34  ;;  %v1629_v42 = vrot.slane %v1219_v34, %v11403_v41 }
  0x77   : > { %v10340_v26 = vld [vmem:[%s13345_s17 + $0x30] sm:$0xff]   ;;  %v10344_v31 = vld [vmem:[%s13345_s17 + $0x38] sm:$0xff]   ;;  %v10348_v38 = vld [vmem:[%s13345_s17 + $0x1c0] sm:$0xff]  }
  0x78   : > { %9304 = vmatpush3.bf16.msra.mxu0 %v10324_v10  ;;  %v10341_v27 = vld [vmem:[%s13345_s17 + $0xb0] sm:$0xff]   ;;  %v10345_v32 = vld [vmem:[%s13345_s17 + $0xb8] sm:$0xff]   ;;  %v1636_v43 = vrot.slane %v1622_v40, %v11403_v41  ;;  %v10349_v44 = vld [vmem:[%s13345_s17 + $0x100] sm:$0xff]   ;;  %v1637_v46 = vcombine.high %v1629_v42, %v1629_v42 }
  0x79   : > { %9326 = vmatpush3.bf16.msra.mxu1 %v10325_v11  ;;  %9305 = vmatprep.subr.bf16.mxu0 %v10326_v12  ;;  %v10350_v45 = vld [vmem:[%s13345_s17 + $0x180] sm:$0xff]   ;;  %v10351_v48 = vld [vmem:[%s13345_s17 + $0x148] sm:$0xff]   ;;  %v10355_v52 = vld [vmem:[%s13345_s17 + $0x150] sm:$0xff]  }
  0x7a   : > { %9327 = vmatprep.subr.bf16.mxu1 %v10327_v13  ;;  %v1638_v47 = vcombine.high %v1636_v43, %v1636_v43  ;;  %v10352_v49 = vld [vmem:[%s13345_s17 + $0x1c8] sm:$0xff]   ;;  %2932 = vmatprep.mubr.bf16.mxu0 %v1637_v46  ;;  %v10356_v53 = vld [vmem:[%s13345_s17 + $0x1d0] sm:$0xff]   ;;  %v10359_v56 = vld [vmem:[%s13345_s17 + $0x158] sm:$0xff]  }
  0x7b   : > { %v10353_v50 = vld [vmem:[%s13345_s17 + $0x108] sm:$0xff]   ;;  %v10357_v54 = vld [vmem:[%s13345_s17 + $0x110] sm:$0xff]   ;;  %v10360_v57 = vld [vmem:[%s13345_s17 + $0x1d8] sm:$0xff]  }
  0x7c   : > { %9306 = vmatpush3.bf16.msra.mxu0 %v10328_v14  ;;  %2972 = vmatprep.mubr.bf16.mxu1 %v1638_v47  ;;  %v10354_v51 = vld [vmem:[%s13345_s17 + $0x188] sm:$0xff]   ;;  %v10358_v55 = vld [vmem:[%s13345_s17 + $0x190] sm:$0xff]   ;;  %v10361_v58 = vld [vmem:[%s13345_s17 + $0x118] sm:$0xff]  }
  0x7d   : > { %9328 = vmatpush3.bf16.msra.mxu1 %v10329_v15  ;;  %9307 = vmatprep.subr.bf16.mxu0 %v10330_v16  ;;  %v10362_v59 = vld [vmem:[%s13345_s17 + $0x198] sm:$0xff]   ;;  %v10363_v60 = vld [vmem:[%s13345_s17 + $0x160] sm:$0xff]   ;;  %v10367_v0 = vld [vmem:[%s13345_s17 + $0x168] sm:$0xff]  }
  0x7e   : > { %9329 = vmatprep.subr.bf16.mxu1 %v10331_v17  ;;  %v10364_v61 = vld [vmem:[%s13345_s17 + $0x1e0] sm:$0xff]   ;;  %v10368_v1 = vld [vmem:[%s13345_s17 + $0x1e8] sm:$0xff]   ;;  %v10371_v4 = vld [vmem:[%s13345_s17 + $0x170] sm:$0xff]  }
  0x7f   : > { %v10365_v62 = vld [vmem:[%s13345_s17 + $0x120] sm:$0xff]   ;;  %v10369_v2 = vld [vmem:[%s13345_s17 + $0x128] sm:$0xff]   ;;  %v10372_v5 = vld [vmem:[%s13345_s17 + $0x1f0] sm:$0xff]  }
  0x80   : > { %9308 = vmatpush3.bf16.msra.mxu0 %v10332_v18  ;;  %v10366_v63 = vld [vmem:[%s13345_s17 + $0x1a0] sm:$0xff]   ;;  %v10370_v3 = vld [vmem:[%s13345_s17 + $0x1a8] sm:$0xff]   ;;  %v10373_v6 = vld [vmem:[%s13345_s17 + $0x130] sm:$0xff]  }
  0x81   : > { %9330 = vmatpush3.bf16.msra.mxu1 %v10333_v19  ;;  %9309 = vmatprep.subr.bf16.mxu0 %v10334_v20  ;;  %v10374_v7 = vld [vmem:[%s13345_s17 + $0x1b0] sm:$0xff]   ;;  %v1220_v8 = vld [vmem:[%s11393_s23 + $0x8] sm:$0xff]  ;;  %v10375_v9 = vld [vmem:[%s13345_s17 + $0x178] sm:$0xff]  }
  0x82   : > { %9331 = vmatprep.subr.bf16.mxu1 %v10335_v21  ;;  %v1646_v10 = vrot.slane %v1220_v8, %v11403_v41  ;;  %v1639_v11 = vcombine.high %v1220_v8, %v1220_v8  ;;  %v10376_v12 = vld [vmem:[%s13345_s17 + $0x1f8] sm:$0xff]   ;;  %v10380_v18 = vld [vmem:[%s13345_s17 + $0x240] sm:$0xff]   ;;  %v10390_v28 = vld [vmem:[%s13345_s17 + $0x210] sm:$0xff]  }
  0x83   : > { %v10377_v13 = vld [vmem:[%s13345_s17 + $0x138] sm:$0xff]   ;;  %v10381_v19 = vld [vmem:[%s13345_s17 + $0x2c0] sm:$0xff]   ;;  %v10400_v39 = vld [vmem:[%s13345_s17 + $0x268] sm:$0xff]  }
  0x84   : > { %9310 = vmatpush3.bf16.msra.mxu0 %v10336_v22  ;;  %v1654_v14 = vcombine.high %v1646_v10, %v1646_v10  ;;  %v1653_v15 = vrot.slane %v1639_v11, %v11403_v41  ;;  %v10378_v16 = vld [vmem:[%s13345_s17 + $0x1b8] sm:$0xff]   ;;  %v10382_v20 = vld [vmem:[%s13345_s17 + $0x200] sm:$0xff]   ;;  %v10384_v22 = vld [vmem:[%s13345_s17 + $0x248] sm:$0xff]  }
  0x85   : > { %9332 = vmatpush3.bf16.msra.mxu1 %v10337_v23  ;;  %9311 = vmatprep.subr.bf16.mxu0 %v10338_v24  ;;  %v10383_v21 = vld [vmem:[%s13345_s17 + $0x280] sm:$0xff]   ;;  %v10385_v23 = vld [vmem:[%s13345_s17 + $0x2c8] sm:$0xff]   ;;  %v10395_v34 = vld [vmem:[%s13345_s17 + $0x298] sm:$0xff]  }
  0x86   : > { %9333 = vmatprep.subr.bf16.mxu1 %v10339_v25  ;;  %v1655_v17 = vcombine.high %v1653_v15, %v1653_v15  ;;  %v10386_v24 = vld [vmem:[%s13345_s17 + $0x208] sm:$0xff]   ;;  %v10397_v36 = vld [vmem:[%s13345_s17 + $0x2e0] sm:$0xff]   ;;  %v10406_v46 = vld [vmem:[%s13345_s17 + $0x230] sm:$0xff]  }
  0x87   : > { %v10387_v25 = vld [vmem:[%s13345_s17 + $0x288] sm:$0xff]   ;;  %v10398_v37 = vld [vmem:[%s13345_s17 + $0x220] sm:$0xff]   ;;  %v10407_v47 = vld [vmem:[%s13345_s17 + $0x2b0] sm:$0xff]  }
  0x88   : > { %9312 = vmatpush3.bf16.msra.mxu0 %v10340_v26  ;;  %v10388_v26 = vld [vmem:[%s13345_s17 + $0x250] sm:$0xff]   ;;  %v10401_v40 = vld [vmem:[%s13345_s17 + $0x2e8] sm:$0xff]   ;;  %v10427_v8 = vld [vmem:[%s13345_s17 + $0x318] sm:$0xff]  }
  0x89   : > { %9334 = vmatpush3.bf16.msra.mxu1 %v10341_v27  ;;  %9313 = vmatprep.subr.bf16.mxu0 %v10342_v29  ;;  %v10389_v27 = vld [vmem:[%s13345_s17 + $0x2d0] sm:$0xff]   ;;  %v10430_v11 = vld [vmem:[%s13345_s17 + $0x3e0] sm:$0xff]  }
  0x8a   : > { %9335 = vmatprep.subr.bf16.mxu1 %v10343_v30  ;;  %v10391_v29 = vld [vmem:[%s13345_s17 + $0x290] sm:$0xff]   ;;  %v10392_v30 = vld [vmem:[%s13345_s17 + $0x258] sm:$0xff]  }
  0x8c   : > { %9314 = vmatpush3.bf16.msra.mxu0 %v10344_v31  ;;  %v10393_v31 = vld [vmem:[%s13345_s17 + $0x2d8] sm:$0xff]  }
  0x8d   : > { %9336 = vmatpush3.bf16.msra.mxu1 %v10345_v32  ;;  %9343 = vmatprep.subr.bf16.mxu0 %v10347_v35  ;;  %v10394_v32 = vld [vmem:[%s13345_s17 + $0x218] sm:$0xff]   ;;  %v10396_v35 = vld [vmem:[%s13345_s17 + $0x260] sm:$0xff]  }
  0x8e   : > { %9365 = vmatprep.subr.bf16.mxu1 %v10348_v38  ;;  %v10399_v38 = vld [vmem:[%s13345_s17 + $0x2a0] sm:$0xff]  }
  0x8f   : > { %2933 = vmatmul.mubr.bf16.vlgmr.msra.gmra.mrb[0].mxu0 %v1629_v42  ;;  %v10402_v42 = vld [vmem:[%s13345_s17 + $0x228] sm:$0xff]  }
  0x90   : > { %2973 = vmatmul.mubr.bf16.vlgmr.msra.gmra.mrb[0].mxu1 %v1636_v43  ;;  %9344 = vmatpush3.bf16.msra.mxu0 %v10349_v44  ;;  %v10403_v43 = vld [vmem:[%s13345_s17 + $0x2a8] sm:$0xff]   ;;  %v10404_v44 = vld [vmem:[%s13345_s17 + $0x270] sm:$0xff]  }
  0x91   : > { %9366 = vmatpush3.bf16.msra.mxu1 %v10350_v45  ;;  %9345 = vmatprep.subr.bf16.mxu0 %v10351_v48  ;;  %v10405_v45 = vld [vmem:[%s13345_s17 + $0x2f0] sm:$0xff]  }
  0x92   : > { %9367 = vmatprep.subr.bf16.mxu1 %v10352_v49  ;;  %3012 = vmatprep.mubr.bf16.mxu0 %v1654_v14  ;;  %v1221_v48 = vld [vmem:[%s11393_s23 + $0x10] sm:$0xff]  ;;  %v10408_v49 = vld [vmem:[%s13345_s17 + $0x278] sm:$0xff]   ;;  %v10433_v14 = vld [vmem:[%s13345_s17 + $0x368] sm:$0xff]  }
  0x93   : > { %3052 = vmatprep.mubr.bf16.mxu1 %v1655_v17  ;;  %v10436_v17 = vld [vmem:[%s13345_s17 + $0x3a8] sm:$0xff]  }
  0x94   : > { %9346 = vmatpush3.bf16.msra.mxu0 %v10353_v50  ;;  %v1663_v50 = vrot.slane %v1221_v48, %v11403_v41 }
  0x95   : > { %9368 = vmatpush3.bf16.msra.mxu1 %v10354_v51  ;;  %9347 = vmatprep.subr.bf16.mxu0 %v10355_v52  ;;  %v1656_v51 = vcombine.high %v1221_v48, %v1221_v48  ;;  %v10409_v52 = vld [vmem:[%s13345_s17 + $0x2f8] sm:$0xff]  }
  0x96   : > { %9369 = vmatprep.subr.bf16.mxu1 %v10356_v53  ;;  %v10410_v53 = vld [vmem:[%s13345_s17 + $0x238] sm:$0xff]  }
  0x97   : > { %v10460_v48 = vld [vmem:[%s13345_s17 + $0x418] sm:$0xff]  }
  0x98   : > { %9348 = vmatpush3.bf16.msra.mxu0 %v10357_v54  ;;  %v1671_v54 = vcombine.high %v1663_v50, %v1663_v50 }
  0x99   : > { %9370 = vmatpush3.bf16.msra.mxu1 %v10358_v55  ;;  %9349 = vmatprep.subr.bf16.mxu0 %v10359_v56  ;;  %v1670_v55 = vrot.slane %v1656_v51, %v11403_v41  ;;  %v10411_v56 = vld [vmem:[%s13345_s17 + $0x2b8] sm:$0xff]   ;;  %v10463_v51 = vld [vmem:[%s13345_s17 + $0x4e0] sm:$0xff]  }
  0x9a   : > { %9371 = vmatprep.subr.bf16.mxu1 %v10360_v57 }
  0x9b   : > { %v1672_v57 = vcombine.high %v1670_v55, %v1670_v55 }
  0x9c   : > { %9350 = vmatpush3.bf16.msra.mxu0 %v10361_v58  ;;  %v10413_v58 = vld [vmem:[%s13345_s17 + $0x340] sm:$0xff]  }
  0x9d   : > { %9372 = vmatpush3.bf16.msra.mxu1 %v10362_v59  ;;  %9351 = vmatprep.subr.bf16.mxu0 %v10363_v60  ;;  %v10414_v59 = vld [vmem:[%s13345_s17 + $0x3c0] sm:$0xff]  }
  0x9e   : > { %9373 = vmatprep.subr.bf16.mxu1 %v10364_v61  ;;  %v10415_v60 = vld [vmem:[%s13345_s17 + $0x300] sm:$0xff]  }
  0x9f   : > { %v10416_v61 = vld [vmem:[%s13345_s17 + $0x380] sm:$0xff]  }
  0xa0   : > { %9352 = vmatpush3.bf16.msra.mxu0 %v10365_v62  ;;  %v10417_v62 = vld [vmem:[%s13345_s17 + $0x348] sm:$0xff]  }
  0xa1   : > { %9374 = vmatpush3.bf16.msra.mxu1 %v10366_v63  ;;  %9353 = vmatprep.subr.bf16.mxu0 %v10367_v0  ;;  %v10418_v63 = vld [vmem:[%s13345_s17 + $0x3c8] sm:$0xff]  }
  0xa2   : > { %9375 = vmatprep.subr.bf16.mxu1 %v10368_v1  ;;  %v10419_v0 = vld [vmem:[%s13345_s17 + $0x308] sm:$0xff]  }
  0xa3   : > { %v10420_v1 = vld [vmem:[%s13345_s17 + $0x388] sm:$0xff]  }
  0xa4   : > { %9354 = vmatpush3.bf16.msra.mxu0 %v10369_v2  ;;  %v10421_v2 = vld [vmem:[%s13345_s17 + $0x350] sm:$0xff]  }
  0xa5   : > { %9376 = vmatpush3.bf16.msra.mxu1 %v10370_v3  ;;  %9355 = vmatprep.subr.bf16.mxu0 %v10371_v4  ;;  %v10422_v3 = vld [vmem:[%s13345_s17 + $0x3d0] sm:$0xff]  }
  0xa6   : > { %9377 = vmatprep.subr.bf16.mxu1 %v10372_v5  ;;  %v10423_v4 = vld [vmem:[%s13345_s17 + $0x310] sm:$0xff]  }
  0xa7   : > { %v10424_v5 = vld [vmem:[%s13345_s17 + $0x390] sm:$0xff]  }
  0xa8   : > { %9356 = vmatpush3.bf16.msra.mxu0 %v10373_v6  ;;  %v10425_v6 = vld [vmem:[%s13345_s17 + $0x358] sm:$0xff]  }
  0xa9   : > { %9378 = vmatpush3.bf16.msra.mxu1 %v10374_v7  ;;  %9357 = vmatprep.subr.bf16.mxu0 %v10375_v9  ;;  %v10426_v7 = vld [vmem:[%s13345_s17 + $0x3d8] sm:$0xff]  }
  0xaa   : > { %9379 = vmatprep.subr.bf16.mxu1 %v10376_v12  ;;  %v10428_v9 = vld [vmem:[%s13345_s17 + $0x398] sm:$0xff]   ;;  %v10431_v12 = vld [vmem:[%s13345_s17 + $0x320] sm:$0xff]  }
  0xac   : > { %9358 = vmatpush3.bf16.msra.mxu0 %v10377_v13  ;;  %v10432_v13 = vld [vmem:[%s13345_s17 + $0x3a0] sm:$0xff]  }
  0xad   : > { %9380 = vmatpush3.bf16.msra.mxu1 %v10378_v16  ;;  %9387 = vmatprep.subr.bf16.mxu0 %v10380_v18  ;;  %v10435_v16 = vld [vmem:[%s13345_s17 + $0x328] sm:$0xff]   ;;  %v10437_v18 = vld [vmem:[%s13345_s17 + $0x370] sm:$0xff]  }
  0xae   : > { %9409 = vmatprep.subr.bf16.mxu1 %v10381_v19  ;;  %v10438_v19 = vld [vmem:[%s13345_s17 + $0x3f0] sm:$0xff]  }
  0xaf   : > { %3013 = vmatmul.mubr.bf16.vlgmr.msra.gmra.mrb[4].mxu0 %v1646_v10  ;;  %v10429_v10 = vld [vmem:[%s13345_s17 + $0x360] sm:$0xff]  }
  0xb0   : > { %3053 = vmatmul.mubr.bf16.vlgmr.msra.gmra.mrb[4].mxu1 %v1653_v15  ;;  %9388 = vmatpush3.bf16.msra.mxu0 %v10382_v20  ;;  %v10434_v15 = vld [vmem:[%s13345_s17 + $0x3e8] sm:$0xff]   ;;  %v10439_v20 = vld [vmem:[%s13345_s17 + $0x330] sm:$0xff]  }
  0xb1   : > { %9410 = vmatpush3.bf16.msra.mxu1 %v10383_v21  ;;  %9389 = vmatprep.subr.bf16.mxu0 %v10384_v22  ;;  %v10440_v21 = vld [vmem:[%s13345_s17 + $0x3b0] sm:$0xff]   ;;  %v10441_v22 = vld [vmem:[%s13345_s17 + $0x378] sm:$0xff]  }
  0xb2   : > { %9411 = vmatprep.subr.bf16.mxu1 %v10385_v23  ;;  %3092 = vmatprep.mubr.bf16.mxu0 %v1671_v54  ;;  %v1222_v23 = vld [vmem:[%s11393_s23 + $0x18] sm:$0xff]  ;;  %v10466_v54 = vld [vmem:[%s13345_s17 + $0x468] sm:$0xff]  }
  0xb3   : > { %3132 = vmatprep.mubr.bf16.mxu1 %v1672_v57  ;;  %v10469_v57 = vld [vmem:[%s13345_s17 + $0x4a8] sm:$0xff]  }
  0xb4   : > { %9390 = vmatpush3.bf16.msra.mxu0 %v10386_v24  ;;  %v10442_v24 = vld [vmem:[%s13345_s17 + $0x3f8] sm:$0xff]  }
  0xb5   : > { %9412 = vmatpush3.bf16.msra.mxu1 %v10387_v25  ;;  %9391 = vmatprep.subr.bf16.mxu0 %v10388_v26  ;;  %v1680_v25 = vrot.slane %v1222_v23, %v11403_v41  ;;  %v1673_v26 = vcombine.high %v1222_v23, %v1222_v23  ;;  %v10494_v23 = vld [vmem:[%s13345_s17 + $0x598] sm:$0xff]  }
  0xb6   : > { %9413 = vmatprep.subr.bf16.mxu1 %v10389_v27  ;;  %v10443_v27 = vld [vmem:[%s13345_s17 + $0x338] sm:$0xff]  }
  0xb8   : > { %9392 = vmatpush3.bf16.msra.mxu0 %v10390_v28  ;;  %v10444_v28 = vld [vmem:[%s13345_s17 + $0x3b8] sm:$0xff]  }
  0xb9   : > { %9414 = vmatpush3.bf16.msra.mxu1 %v10391_v29  ;;  %9393 = vmatprep.subr.bf16.mxu0 %v10392_v30  ;;  %v1688_v29 = vcombine.high %v1680_v25, %v1680_v25  ;;  %v1687_v30 = vrot.slane %v1673_v26, %v11403_v41  ;;  %v10497_v26 = vld [vmem:[%s13345_s17 + $0x520] sm:$0xff]  }
  0xba   : > { %9415 = vmatprep.subr.bf16.mxu1 %v10393_v31  ;;  %v10446_v31 = vld [vmem:[%s13345_s17 + $0x440] sm:$0xff]  }
  0xbc   : > { %9394 = vmatpush3.bf16.msra.mxu0 %v10394_v32  ;;  %v1689_v32 = vcombine.high %v1687_v30, %v1687_v30 }
  0xbd   : > { %9416 = vmatpush3.bf16.msra.mxu1 %v10395_v34  ;;  %9395 = vmatprep.subr.bf16.mxu0 %v10396_v35  ;;  %v10447_v34 = vld [vmem:[%s13345_s17 + $0x4c0] sm:$0xff]  }
  0xbe   : > { %9417 = vmatprep.subr.bf16.mxu1 %v10397_v36  ;;  %v10448_v35 = vld [vmem:[%s13345_s17 + $0x400] sm:$0xff]  }
  0xbf   : > { %v10449_v36 = vld [vmem:[%s13345_s17 + $0x480] sm:$0xff]  }
  0xc0   : > { %9396 = vmatpush3.bf16.msra.mxu0 %v10398_v37  ;;  %v10450_v37 = vld [vmem:[%s13345_s17 + $0x448] sm:$0xff]  }
  0xc1   : > { %9418 = vmatpush3.bf16.msra.mxu1 %v10399_v38  ;;  %9397 = vmatprep.subr.bf16.mxu0 %v10400_v39  ;;  %v10451_v38 = vld [vmem:[%s13345_s17 + $0x4c8] sm:$0xff]  }
  0xc2   : > { %9419 = vmatprep.subr.bf16.mxu1 %v10401_v40  ;;  %v10452_v39 = vld [vmem:[%s13345_s17 + $0x408] sm:$0xff]  }
  0xc3   : > { %v10453_v40 = vld [vmem:[%s13345_s17 + $0x488] sm:$0xff]  }
  0xc4   : > { %9398 = vmatpush3.bf16.msra.mxu0 %v10402_v42  ;;  %v10454_v42 = vld [vmem:[%s13345_s17 + $0x450] sm:$0xff]  }
  0xc5   : > { %9420 = vmatpush3.bf16.msra.mxu1 %v10403_v43  ;;  %9399 = vmatprep.subr.bf16.mxu0 %v10404_v44  ;;  %v10455_v43 = vld [vmem:[%s13345_s17 + $0x4d0] sm:$0xff]  }
  0xc6   : > { %9421 = vmatprep.subr.bf16.mxu1 %v10405_v45  ;;  %v10456_v44 = vld [vmem:[%s13345_s17 + $0x410] sm:$0xff]  }
  0xc7   : > { %v10457_v45 = vld [vmem:[%s13345_s17 + $0x490] sm:$0xff]  }
  0xc8   : > { %9400 = vmatpush3.bf16.msra.mxu0 %v10406_v46  ;;  %v10458_v46 = vld [vmem:[%s13345_s17 + $0x458] sm:$0xff]  }
  0xc9   : > { %9422 = vmatpush3.bf16.msra.mxu1 %v10407_v47  ;;  %9401 = vmatprep.subr.bf16.mxu0 %v10408_v49  ;;  %v10459_v47 = vld [vmem:[%s13345_s17 + $0x4d8] sm:$0xff]  }
  0xca   : > { %9423 = vmatprep.subr.bf16.mxu1 %v10409_v52  ;;  %v10461_v49 = vld [vmem:[%s13345_s17 + $0x498] sm:$0xff]   ;;  %v10464_v52 = vld [vmem:[%s13345_s17 + $0x420] sm:$0xff]  }
  0xcc   : > { %9402 = vmatpush3.bf16.msra.mxu0 %v10410_v53  ;;  %v10465_v53 = vld [vmem:[%s13345_s17 + $0x4a0] sm:$0xff]  }
  0xcd   : > { %9424 = vmatpush3.bf16.msra.mxu1 %v10411_v56  ;;  %9431 = vmatprep.subr.bf16.mxu0 %v10413_v58  ;;  %v10468_v56 = vld [vmem:[%s13345_s17 + $0x428] sm:$0xff]   ;;  %v10470_v58 = vld [vmem:[%s13345_s17 + $0x470] sm:$0xff]  }
  0xce   : > { %9453 = vmatprep.subr.bf16.mxu1 %v10414_v59  ;;  %v10471_v59 = vld [vmem:[%s13345_s17 + $0x4f0] sm:$0xff]  }
  0xcf   : > { %3093 = vmatmul.mubr.bf16.vlgmr.msra.gmra.mrb[8].mxu0 %v1663_v50  ;;  %v10462_v50 = vld [vmem:[%s13345_s17 + $0x460] sm:$0xff]  }
  0xd0   : > { %3133 = vmatmul.mubr.bf16.vlgmr.msra.gmra.mrb[8].mxu1 %v1670_v55  ;;  %9432 = vmatpush3.bf16.msra.mxu0 %v10415_v60  ;;  %v10467_v55 = vld [vmem:[%s13345_s17 + $0x4e8] sm:$0xff]   ;;  %v10472_v60 = vld [vmem:[%s13345_s17 + $0x430] sm:$0xff]  }
  0xd1   : > { %9454 = vmatpush3.bf16.msra.mxu1 %v10416_v61  ;;  %9433 = vmatprep.subr.bf16.mxu0 %v10417_v62  ;;  %v10473_v61 = vld [vmem:[%s13345_s17 + $0x4b0] sm:$0xff]   ;;  %v10474_v62 = vld [vmem:[%s13345_s17 + $0x478] sm:$0xff]  }
  0xd2   : > { %9455 = vmatprep.subr.bf16.mxu1 %v10418_v63  ;;  %3172 = vmatprep.mubr.bf16.mxu0 %v1688_v29  ;;  %v1223_v63 = vld [vmem:[%s11393_s23 + $0x20] sm:$0xff]  ;;  %v10500_v29 = vld [vmem:[%s13345_s17 + $0x5e8] sm:$0xff]  }
  0xd3   : > { %3212 = vmatprep.mubr.bf16.mxu1 %v1689_v32  ;;  %v10503_v32 = vld [vmem:[%s13345_s17 + $0x570] sm:$0xff]  }
  0xd4   : > { %9434 = vmatpush3.bf16.msra.mxu0 %v10419_v0  ;;  %v10475_v0 = vld [vmem:[%s13345_s17 + $0x4f8] sm:$0xff]  }
  0xd5   : > { %9456 = vmatpush3.bf16.msra.mxu1 %v10420_v1  ;;  %9435 = vmatprep.subr.bf16.mxu0 %v10421_v2  ;;  %v1697_v1 = vrot.slane %v1223_v63, %v11403_v41  ;;  %v1690_v2 = vcombine.high %v1223_v63, %v1223_v63  ;;  %v13292_v63 = vmov 0.0  }
  0xd6   : > { %9457 = vmatprep.subr.bf16.mxu1 %v10422_v3  ;;  %v10476_v3 = vld [vmem:[%s13345_s17 + $0x438] sm:$0xff]  }
  0xd8   : > { %9436 = vmatpush3.bf16.msra.mxu0 %v10423_v4  ;;  %v10477_v4 = vld [vmem:[%s13345_s17 + $0x4b8] sm:$0xff]  }
  0xd9   : > { %9458 = vmatpush3.bf16.msra.mxu1 %v10424_v5  ;;  %9437 = vmatprep.subr.bf16.mxu0 %v10425_v6  ;;  %v1705_v5 = vcombine.high %v1697_v1, %v1697_v1  ;;  %v1704_v6 = vrot.slane %v1690_v2, %v11403_v41  ;;  %v10516_v2 = vld [vmem:[%s13344_s25 + $0x10] sm:$0xff]  }
  0xda   : > { %9459 = vmatprep.subr.bf16.mxu1 %v10426_v7  ;;  %v10479_v7 = vld [vmem:[%s13345_s17 + $0x540] sm:$0xff]  }
  0xdc   : > { %9438 = vmatpush3.bf16.msra.mxu0 %v10427_v8  ;;  %v1706_v8 = vcombine.high %v1704_v6, %v1704_v6 }
  0xdd   : > { %9460 = vmatpush3.bf16.msra.mxu1 %v10428_v9  ;;  %9439 = vmatprep.subr.bf16.mxu0 %v10429_v10  ;;  %v10480_v9 = vld [vmem:[%s13345_s17 + $0x5c0] sm:$0xff]  }
  0xde   : > { %9461 = vmatprep.subr.bf16.mxu1 %v10430_v11  ;;  %v10481_v10 = vld [vmem:[%s13345_s17 + $0x500] sm:$0xff]  }
  0xdf   : > { %v10482_v11 = vld [vmem:[%s13345_s17 + $0x580] sm:$0xff]  }
  0xe0   : > { %9440 = vmatpush3.bf16.msra.mxu0 %v10431_v12  ;;  %v10483_v12 = vld [vmem:[%s13345_s17 + $0x548] sm:$0xff]  }
  0xe1   : > { %9462 = vmatpush3.bf16.msra.mxu1 %v10432_v13  ;;  %9441 = vmatprep.subr.bf16.mxu0 %v10433_v14  ;;  %v10484_v13 = vld [vmem:[%s13345_s17 + $0x5c8] sm:$0xff]  }
  0xe2   : > { %9463 = vmatprep.subr.bf16.mxu1 %v10434_v15  ;;  %v10485_v14 = vld [vmem:[%s13345_s17 + $0x508] sm:$0xff]  }
  0xe3   : > { %v10486_v15 = vld [vmem:[%s13345_s17 + $0x588] sm:$0xff]  }
  0xe4   : > { %9442 = vmatpush3.bf16.msra.mxu0 %v10435_v16  ;;  %v10487_v16 = vld [vmem:[%s13345_s17 + $0x550] sm:$0xff]  }
  0xe5   : > { %9464 = vmatpush3.bf16.msra.mxu1 %v10436_v17  ;;  %9443 = vmatprep.subr.bf16.mxu0 %v10437_v18  ;;  %v10488_v17 = vld [vmem:[%s13345_s17 + $0x5d0] sm:$0xff]  }
  0xe6   : > { %9465 = vmatprep.subr.bf16.mxu1 %v10438_v19  ;;  %v10489_v18 = vld [vmem:[%s13345_s17 + $0x510] sm:$0xff]  }
  0xe7   : > { %v10490_v19 = vld [vmem:[%s13345_s17 + $0x590] sm:$0xff]  }
  0xe8   : > { %9444 = vmatpush3.bf16.msra.mxu0 %v10439_v20  ;;  %v10491_v20 = vld [vmem:[%s13345_s17 + $0x558] sm:$0xff]  }
  0xe9   : > { %9466 = vmatpush3.bf16.msra.mxu1 %v10440_v21  ;;  %9445 = vmatprep.subr.bf16.mxu0 %v10441_v22  ;;  %v10492_v21 = vld [vmem:[%s13345_s17 + $0x5d8] sm:$0xff]  }
  0xea   : > { %9467 = vmatprep.subr.bf16.mxu1 %v10442_v24  ;;  %v10493_v22 = vld [vmem:[%s13345_s17 + $0x518] sm:$0xff]   ;;  %v10495_v24 = vld [vmem:[%s13345_s17 + $0x560] sm:$0xff]  }
  0xec   : > { %9446 = vmatpush3.bf16.msra.mxu0 %v10443_v27  ;;  %v10498_v27 = vld [vmem:[%s13345_s17 + $0x5a0] sm:$0xff]  }
  0xed   : > { %9468 = vmatpush3.bf16.msra.mxu1 %v10444_v28  ;;  %9475 = vmatprep.subr.bf16.mxu0 %v10446_v31  ;;  %v10499_v28 = vld [vmem:[%s13345_s17 + $0x568] sm:$0xff]  }
  0xee   : > { %9497 = vmatprep.subr.bf16.mxu1 %v10447_v34  ;;  %v10502_v31 = vld [vmem:[%s13345_s17 + $0x5a8] sm:$0xff]   ;;  %v10504_v34 = vld [vmem:[%s13345_s17 + $0x5f0] sm:$0xff]  }
  0xef   : > { %3173 = vmatmul.mubr.bf16.vlgmr.msra.gmra.mrb[12].mxu0 %v1680_v25  ;;  %v10496_v25 = vld [vmem:[%s13345_s17 + $0x5e0] sm:$0xff]  }
  0xf0   : > { %3213 = vmatmul.mubr.bf16.vlgmr.msra.gmra.mrb[12].mxu1 %v1687_v30  ;;  %9476 = vmatpush3.bf16.msra.mxu0 %v10448_v35  ;;  %v10501_v30 = vld [vmem:[%s13345_s17 + $0x528] sm:$0xff]   ;;  %v10505_v35 = vld [vmem:[%s13345_s17 + $0x530] sm:$0xff]  }
  0xf1   : > { %9498 = vmatpush3.bf16.msra.mxu1 %v10449_v36  ;;  %9477 = vmatprep.subr.bf16.mxu0 %v10450_v37  ;;  %v10506_v36 = vld [vmem:[%s13345_s17 + $0x5b0] sm:$0xff]   ;;  %v10507_v37 = vld [vmem:[%s13345_s17 + $0x578] sm:$0xff]  }
  0xf2   : > { %9499 = vmatprep.subr.bf16.mxu1 %v10451_v38  ;;  %3252 = vmatprep.mubr.bf16.mxu0 %v1705_v5  ;;  %v1224_v38 = vld [vmem:[%s11393_s23 + $0x28] sm:$0xff]  ;;  %v10519_v5 = vld [vmem:[%s13348_s3 + $0x18] sm:$0xff]   ;;  %s13358_s23 = sld [smem:[#allocation27_spill]] }
  0xf3   : > { %3292 = vmatprep.mubr.bf16.mxu1 %v1706_v8  ;;  %v10522_v8 = vld [vmem:[%s13344_s25 + $0x28] sm:$0xff]  }
  0xf4   : > { %9478 = vmatpush3.bf16.msra.mxu0 %v10452_v39  ;;  %v10508_v39 = vld [vmem:[%s13345_s17 + $0x5f8] sm:$0xff]  }
  0xf5   : > { %9500 = vmatpush3.bf16.msra.mxu1 %v10453_v40  ;;  %9479 = vmatprep.subr.bf16.mxu0 %v10454_v42  ;;  %v1714_v40 = vrot.slane %v1224_v38, %v11403_v41  ;;  %v1707_v42 = vcombine.high %v1224_v38, %v1224_v38 }
  0xf6   : > { %9501 = vmatprep.subr.bf16.mxu1 %v10455_v43  ;;  %v10509_v43 = vld [vmem:[%s13345_s17 + $0x538] sm:$0xff]  }
  0xf8   : > { %9480 = vmatpush3.bf16.msra.mxu0 %v10456_v44  ;;  %v10510_v44 = vld [vmem:[%s13345_s17 + $0x5b8] sm:$0xff]  }
  0xf9   : > { %9502 = vmatpush3.bf16.msra.mxu1 %v10457_v45  ;;  %9481 = vmatprep.subr.bf16.mxu0 %v10458_v46  ;;  %v1722_v45 = vcombine.high %v1714_v40, %v1714_v40  ;;  %v1721_v46 = vrot.slane %v1707_v42, %v11403_v41  ;;  %v3807_v42 = vld [vmem:[%s13347_s12 + $0x8] sm:$0xff] }
  0xfa   : > { %9503 = vmatprep.subr.bf16.mxu1 %v10459_v47 }
  0xfb   : > { %v1723_v47 = vcombine.high %v1721_v46, %v1721_v46 }
  0xfc   : > { %9482 = vmatpush3.bf16.msra.mxu0 %v10460_v48  ;;  %v8778_v48 = vld [vmem:[%s13353_s21] ss:$0 sm:$0xff] }
  0xfd   : > { %9504 = vmatpush3.bf16.msra.mxu1 %v10461_v49  ;;  %9483 = vmatprep.subr.bf16.mxu0 %v10462_v50 }
  0xfe   : > { %9505 = vmatprep.subr.bf16.mxu1 %v10463_v51 }
 0x100   : > { %9484 = vmatpush3.bf16.msra.mxu0 %v10464_v52 }
 0x101   : > { %9506 = vmatpush3.bf16.msra.mxu1 %v10465_v53  ;;  %9485 = vmatprep.subr.bf16.mxu0 %v10466_v54 }
 0x102   : > { %9507 = vmatprep.subr.bf16.mxu1 %v10467_v55 }
 0x104   : > { %9486 = vmatpush3.bf16.msra.mxu0 %v10468_v56 }
 0x105   : > { %9508 = vmatpush3.bf16.msra.mxu1 %v10469_v57  ;;  %9487 = vmatprep.subr.bf16.mxu0 %v10470_v58 }
 0x106   : > { %9509 = vmatprep.subr.bf16.mxu1 %v10471_v59 }
 0x108   : > { %9488 = vmatpush3.bf16.msra.mxu0 %v10472_v60 }
 0x109   : > { %9510 = vmatpush3.bf16.msra.mxu1 %v10473_v61  ;;  %9489 = vmatprep.subr.bf16.mxu0 %v10474_v62  ;;  %v10512_v61 = vld [vmem:[%s13344_s25] sm:$0xff]  }
 0x10a   : > { %9511 = vmatprep.subr.bf16.mxu1 %v10475_v0  ;;  %v10513_v62 = vld [vmem:[%s13348_s3] sm:$0xff]   ;;  %v10514_v0 = vld [vmem:[%s13344_s25 + $0x8] sm:$0xff]  }
 0x10c   : > { %9490 = vmatpush3.bf16.msra.mxu0 %v10476_v3  ;;  %v10517_v3 = vld [vmem:[%s13348_s3 + $0x10] sm:$0xff]  }
 0x10d   : > { %9512 = vmatpush3.bf16.msra.mxu1 %v10477_v4  ;;  %9519 = vmatprep.subr.bf16.mxu0 %v10479_v7  ;;  %v10518_v4 = vld [vmem:[%s13344_s25 + $0x18] sm:$0xff]   ;;  %v10521_v7 = vld [vmem:[%s13348_s3 + $0x20] sm:$0xff]  }
 0x10e   : > { %9541 = vmatprep.subr.bf16.mxu1 %v10480_v9  ;;  %v10523_v9 = vld [vmem:[%s13348_s3 + $0x28] sm:$0xff]  }
 0x10f   : > { %3253 = vmatmul.mubr.bf16.vlgmr.msra.gmra.mrb[16].mxu0 %v1697_v1  ;;  %v10515_v1 = vld [vmem:[%s13348_s3 + $0x8] sm:$0xff]  }
 0x110   : > { %3293 = vmatmul.mubr.bf16.vlgmr.msra.gmra.mrb[16].mxu1 %v1704_v6  ;;  %9520 = vmatpush3.bf16.msra.mxu0 %v10481_v10  ;;  %v10520_v6 = vld [vmem:[%s13344_s25 + $0x20] sm:$0xff]  }
 0x111   : > { %9542 = vmatpush3.bf16.msra.mxu1 %v10482_v11  ;;  %9521 = vmatprep.subr.bf16.mxu0 %v10483_v12 }
 0x112   : > { %9543 = vmatprep.subr.bf16.mxu1 %v10484_v13  ;;  %3332 = vmatprep.mubr.bf16.mxu0 %v1722_v45  ;;  %v3972_v45 = vld [vmem:[%s13343_s27] sm:$0xff] }
 0x113   : > { %3372 = vmatprep.mubr.bf16.mxu1 %v1723_v47 }
 0x114   : > { %9522 = vmatpush3.bf16.msra.mxu0 %v10485_v14 }
 0x115   : > { %9544 = vmatpush3.bf16.msra.mxu1 %v10486_v15  ;;  %9523 = vmatprep.subr.bf16.mxu0 %v10487_v16 }
 0x116   : > { %9545 = vmatprep.subr.bf16.mxu1 %v10488_v17 }
 0x118   : > { %9524 = vmatpush3.bf16.msra.mxu0 %v10489_v18  ;;  %v10524_v18 = vld [vmem:[%s13344_s25 + $0x30] sm:$0xff]  }
 0x119   : > { %9546 = vmatpush3.bf16.msra.mxu1 %v10490_v19  ;;  %9525 = vmatprep.subr.bf16.mxu0 %v10491_v20 }
 0x11a   : > { %9547 = vmatprep.subr.bf16.mxu1 %v10492_v21  ;;  %v10525_v21 = vld [vmem:[%s13348_s3 + $0x30] sm:$0xff]  }
 0x11c   : > { %9526 = vmatpush3.bf16.msra.mxu0 %v10493_v22 }
 0x11d   : > { %9548 = vmatpush3.bf16.msra.mxu1 %v10494_v23  ;;  %9527 = vmatprep.subr.bf16.mxu0 %v10495_v24  ;;  %v10526_v24 = vld [vmem:[%s13344_s25 + $0x38] sm:$0xff]  }
 0x11e   : > { %9549 = vmatprep.subr.bf16.mxu1 %v10496_v25  ;;  %v10527_v25 = vld [vmem:[%s13348_s3 + $0x38] sm:$0xff]   ;;  %s13361_s3 = sld [smem:[#allocation37_spill]] }
 0x120   : > { %9528 = vmatpush3.bf16.msra.mxu0 %v10497_v26 }
 0x121   : > { %9550 = vmatpush3.bf16.msra.mxu1 %v10498_v27  ;;  %9529 = vmatprep.subr.bf16.mxu0 %v10499_v28 }
 0x122   : > { %9551 = vmatprep.subr.bf16.mxu1 %v10500_v29 }
 0x124   : > { %9530 = vmatpush3.bf16.msra.mxu0 %v10501_v30 }
 0x125   : > { %9552 = vmatpush3.bf16.msra.mxu1 %v10502_v31  ;;  %9531 = vmatprep.subr.bf16.mxu0 %v10503_v32 }
 0x126   : > { %9553 = vmatprep.subr.bf16.mxu1 %v10504_v34 }
 0x128   : > { %9532 = vmatpush3.bf16.msra.mxu0 %v10505_v35 }
 0x129   : > { %9554 = vmatpush3.bf16.msra.mxu1 %v10506_v36  ;;  %9533 = vmatprep.subr.bf16.mxu0 %v10507_v37 }
 0x12a   : > { %9555 = vmatprep.subr.bf16.mxu1 %v10508_v39  ;;  %v3806_v39 = vld [vmem:[%s13347_s12] sm:$0xff] }
 0x12c   : > { %9534 = vmatpush3.bf16.msra.mxu0 %v10509_v43  ;;  %v3810_v43 = vld [vmem:[%s13347_s12 + $0x20] sm:$0xff] }
 0x12d   : > { %9556 = vmatpush3.bf16.msra.mxu1 %v10510_v44  ;;  %9790 = vmatprep.subr.bf16.mxu0 %v13292_v63  ;;  %v3812_v44 = vld [vmem:[%s13347_s12 + $0x30] sm:$0xff] }
 0x12e   : > { %9810 = vmatprep.subr.bf16.mxu1 %v13292_v63 }
 0x12f   : > { %3333 = vmatmul.mubr.bf16.vlgmr.msra.gmra.mrb[20].mxu0 %v1714_v40  ;;  %v13293_v40 = vmov 0  }
 0x130   : > { %3373 = vmatmul.mubr.bf16.vlgmr.msra.gmra.mrb[20].mxu1 %v1721_v46  ;;  %9791 = vmatpush3.bf16.msra.mxu0 %v10512_v61  ;;  %v3974_v46 = vld [vmem:[%s13343_s27 + $0x10] sm:$0xff] }
 0x131   : > { %9811 = vmatpush3.bf16.msra.mxu1 %v10513_v62  ;;  %9792 = vmatprep.subr.bf16.mxu0 %v13292_v63 }
 0x132   : > { %9812 = vmatprep.subr.bf16.mxu1 %v13292_v63  ;;  %9806 = vmatprep.mubr.msk.bf16.mxu0 %vm11092_vm0, %v13292_v63 }
 0x133   : > { %9826 = vmatprep.mubr.msk.bf16.mxu1 %vm11092_vm0, %v13292_v63  ;;  %10308 = vset.pattern.permute.xlu0 %v13293_v40 }
 0x134   : > { %9793 = vmatpush3.bf16.msra.mxu0 %v10514_v0  ;;  %10309 = vset.pattern.permute.xlu1 %v13293_v40 }
 0x135   : > { %9813 = vmatpush3.bf16.msra.mxu1 %v10515_v1  ;;  %9794 = vmatprep.subr.bf16.mxu0 %v13292_v63 }
 0x136   : > { %9814 = vmatprep.subr.bf16.mxu1 %v13292_v63  ;;  %3816 = vperm.xlu0 %10308, %v3806_v39   ;;  %v3732_v39 = vld [vmem:[%s11180_s30] sm:$0xff] }
 0x138   : > { %9795 = vmatpush3.bf16.msra.mxu0 %v10516_v2 }
 0x139   : > { %9815 = vmatpush3.bf16.msra.mxu1 %v10517_v3  ;;  %9796 = vmatprep.subr.bf16.mxu0 %v13292_v63 }
 0x13a   : > { %9816 = vmatprep.subr.bf16.mxu1 %v13292_v63  ;;  %3821 = vperm.xlu0 %10308, %v3807_v42   ;;  %v8971_v42 = vld [vmem:[%s11150_s29] ss:$0 sm:$0xff] }
 0x13c   : > { %9797 = vmatpush3.bf16.msra.mxu0 %v10518_v4 }
 0x13d   : > { %9817 = vmatpush3.bf16.msra.mxu1 %v10519_v5  ;;  %9798 = vmatprep.subr.bf16.mxu0 %v13292_v63 }
 0x13e   : > { %9818 = vmatprep.subr.bf16.mxu1 %v13292_v63  ;;  %3836 = vperm.xlu0 %10308, %v3810_v43  }
 0x140   : > { %9799 = vmatpush3.bf16.msra.mxu0 %v10520_v6 }
 0x141   : > { %9819 = vmatpush3.bf16.msra.mxu1 %v10521_v7  ;;  %9800 = vmatprep.subr.bf16.mxu0 %v13292_v63 }
 0x142   : > { %9820 = vmatprep.subr.bf16.mxu1 %v13292_v63  ;;  %3846 = vperm.xlu0 %10308, %v3812_v44  }
 0x144   : > { %9801 = vmatpush3.bf16.msra.mxu0 %v10522_v8 }
 0x145   : > { %9821 = vmatpush3.bf16.msra.mxu1 %v10523_v9  ;;  %9802 = vmatprep.subr.bf16.mxu0 %v13292_v63 }
 0x146   : > { %9822 = vmatprep.subr.bf16.mxu1 %v13292_v63  ;;  %3978 = vperm.xlu0 %10308, %v3972_v45  }
 0x148   : > { %9803 = vmatpush3.bf16.msra.mxu0 %v10524_v18 }
 0x149   : > { %9823 = vmatpush3.bf16.msra.mxu1 %v10525_v21  ;;  %9804 = vmatprep.subr.bf16.mxu0 %v13292_v63 }
 0x14a   : > { %9824 = vmatprep.subr.bf16.mxu1 %v13292_v63  ;;  %3988 = vperm.xlu0 %10308, %v3974_v46  }
 0x14c   : > { %9805 = vmatpush3.bf16.msra.mxu0 %v10526_v24  ;;  %v10529_v24 = vld [vmem:[%s13346_s14 + $0x8] sm:$0xff]  }
 0x14d   : > { %9825 = vmatpush3.bf16.msra.mxu1 %v10527_v25  ;;  %9830 = vmatprep.subr.bf16.mxu0 %v13292_v63  ;;  %v10530_v25 = vld [vmem:[%s13346_s14 + $0x10] sm:$0xff]  }
 0x14e   : > { %9850 = vmatprep.subr.bf16.mxu1 %v13292_v63 }
 0x162   : > { %v9315_v49 = vpop.f32.mrb[0].mxu0 }
 0x163   : > { %v9337_v50 = vpop.f32.mrb[0].mxu1  ;;  %v9316_v51 = vpop.f32.mrb[1].mxu0 }
 0x164   : > { %v9338_v52 = vpop.f32.mrb[1].mxu1  ;;  %v9317_v53 = vadd.f32 %v9316_v51, %v9315_v49  ;;  %v9318_v55 = vpop.f32.mrb[2].mxu0 }
 0x165   : > { %v9339_v54 = vadd.f32 %v9338_v52, %v9337_v50  ;;  %v9340_v56 = vpop.f32.mrb[2].mxu1  ;;  %v9319_v57 = vpop.f32.mrb[3].mxu0 }
 0x166   : > { %v9341_v58 = vpop.f32.mrb[3].mxu1  ;;  %v2935_v59 = vadd.f32 %v9317_v53, %v8778_v48  ;;  %v4069_v57 = vld [vmem:[%s13354_s9] sm:$0x3]  ;;  %s11095_s9 = smov 21  }
 0x167   : > { %4072 = vperm.xlu0 %10308, %v4069_v57  }
 0x168   : > { %v2975_v60 = vadd.f32 %v9339_v54, %v2935_v59 }
 0x182   : > { %v9359_v10 = vpop.f32.mrb[4].mxu0 }
 0x183   : > { %v9381_v11 = vpop.f32.mrb[4].mxu1  ;;  %v9360_v12 = vpop.f32.mrb[5].mxu0 }
 0x184   : > { %v9382_v13 = vpop.f32.mrb[5].mxu1  ;;  %v9361_v14 = vadd.f32 %v9360_v12, %v9359_v10  ;;  %v9362_v16 = vpop.f32.mrb[6].mxu0 }
 0x185   : > { %v9383_v15 = vadd.f32 %v9382_v13, %v9381_v11  ;;  %v9384_v17 = vpop.f32.mrb[6].mxu1  ;;  %v9363_v19 = vpop.f32.mrb[7].mxu0 }
 0x186   : > { %v9385_v20 = vpop.f32.mrb[7].mxu1  ;;  %v3015_v22 = vadd.f32 %v9361_v14, %v2975_v60 }
 0x188   : > { %v3055_v23 = vadd.f32 %v9383_v15, %v3015_v22  ;;  %v10528_v22 = vld [vmem:[%s13346_s14] sm:$0xff]  }
 0x1a2   : > { %v9403_v26 = vpop.f32.mrb[8].mxu0 }
 0x1a3   : > { %v9425_v27 = vpop.f32.mrb[8].mxu1  ;;  %v9404_v28 = vpop.f32.mrb[9].mxu0 }
 0x1a4   : > { %v9426_v29 = vpop.f32.mrb[9].mxu1  ;;  %v9405_v30 = vadd.f32 %v9404_v28, %v9403_v26  ;;  %v9406_v32 = vpop.f32.mrb[10].mxu0  ;;  %v10531_v26 = vld [vmem:[%s13346_s14 + $0x18] sm:$0xff]   ;;  %v10533_v28 = vld [vmem:[%s13346_s14 + $0x28] sm:$0xff]  }
 0x1a5   : > { %v9427_v31 = vadd.f32 %v9426_v29, %v9425_v27  ;;  %v9428_v34 = vpop.f32.mrb[10].mxu1  ;;  %v9407_v35 = vpop.f32.mrb[11].mxu0  ;;  %v10532_v27 = vld [vmem:[%s13346_s14 + $0x20] sm:$0xff]   ;;  %v10534_v29 = vld [vmem:[%s13346_s14 + $0x30] sm:$0xff]  }
 0x1a6   : > { %v9429_v36 = vpop.f32.mrb[11].mxu1  ;;  %v3095_v37 = vadd.f32 %v9405_v30, %v3055_v23  ;;  %v10535_v30 = vld [vmem:[%s13346_s14 + $0x38] sm:$0xff]   ;;  %v3808_v32 = vld [vmem:[%s13347_s12 + $0x10] sm:$0xff]  ;;  %v3811_v35 = vld [vmem:[%s13347_s12 + $0x28] sm:$0xff]  ;;  %s13300_s14 = sshll.u32 %s11381_s2, 2 }
 0x1a7   : > { %3826 = vperm.xlu1 %10309, %v3808_v32   ;;  %v3809_v34 = vld [vmem:[%s13347_s12 + $0x18] sm:$0xff] }
 0x1a8   : > { %v3135_v38 = vadd.f32 %v9427_v31, %v3095_v37  ;;  %v3733_v31 = vld [vmem:[%s11180_s30 + $0x8] sm:$0xff]  ;;  %v3813_v36 = vld [vmem:[%s13347_s12 + $0x38] sm:$0xff]  ;;  %s13378_s12 = sld [smem:[#allocation33_spill]] }
 0x1a9   : > { %3741 = vperm.xlu0 %10308, %v3733_v31   ;;  %v3973_v37 = vld [vmem:[%s13343_s27 + $0x8] sm:$0xff] }
 0x1ab   : > { %3831 = vperm.xlu1 %10309, %v3809_v34  }
 0x1af   : > { %3841 = vperm.xlu1 %10309, %v3811_v35  }
 0x1b3   : > { %3851 = vperm.xlu1 %10309, %v3813_v36  }
 0x1b7   : > { %3983 = vperm.xlu1 %10309, %v3973_v37  }
 0x1c2   : > { %v9447_v47 = vpop.f32.mrb[12].mxu0 }
 0x1c3   : > { %v9469_v48 = vpop.f32.mrb[12].mxu1  ;;  %v9448_v49 = vpop.f32.mrb[13].mxu0 }
 0x1c4   : > { %v9470_v50 = vpop.f32.mrb[13].mxu1  ;;  %v9449_v51 = vadd.f32 %v9448_v49, %v9447_v47  ;;  %v9450_v53 = vpop.f32.mrb[14].mxu0 }
 0x1c5   : > { %v9471_v52 = vadd.f32 %v9470_v50, %v9469_v48  ;;  %v9472_v54 = vpop.f32.mrb[14].mxu1  ;;  %v9451_v55 = vpop.f32.mrb[15].mxu0 }
 0x1c6   : > { %v9473_v56 = vpop.f32.mrb[15].mxu1  ;;  %v3175_v58 = vadd.f32 %v9449_v51, %v3135_v38  ;;  %v3975_v38 = vld [vmem:[%s13343_s27 + $0x18] sm:$0xff] }
 0x1c7   : > { %3993 = vperm.xlu1 %10309, %v3975_v38  }
 0x1c8   : > { %v3215_v59 = vadd.f32 %v9471_v52, %v3175_v58 }
 0x1cb   : > { %3736 = vperm.xlu1 %10309, %v3732_v39  }
 0x1e2   : > { %v9491_v60 = vpop.f32.mrb[16].mxu0 }
 0x1e3   : > { %v9513_v61 = vpop.f32.mrb[16].mxu1  ;;  %v9492_v62 = vpop.f32.mrb[17].mxu0 }
 0x1e4   : > { %v9514_v0 = vpop.f32.mrb[17].mxu1  ;;  %v9493_v1 = vadd.f32 %v9492_v62, %v9491_v60  ;;  %v9494_v3 = vpop.f32.mrb[18].mxu0 }
 0x1e5   : > { %v9515_v2 = vadd.f32 %v9514_v0, %v9513_v61  ;;  %v9516_v4 = vpop.f32.mrb[18].mxu1  ;;  %v9495_v5 = vpop.f32.mrb[19].mxu0  ;;  %v8989_v61 = vld [vmem:[%s13355_s19] ss:$0 sm:$0xff]  ;;  %s13393_s19 = scalar_lea.vmem [#allocation4], %s11689_s5 }
 0x1e6   : > { %v9517_v6 = vpop.f32.mrb[19].mxu1  ;;  %v3255_v7 = vadd.f32 %v9493_v1, %v3215_v59  ;;  %v8980_v0 = vld [vmem:[%s13356_s8] ss:$0 sm:$0xff]  ;;  %s13278_s8 = sshll.u32 %s11689_s5, 1  ;;  %s8384_s21 = sshll.u32 %s13393_s19, 4  ;;  %s8385_s21 = int_to_ptr.vmem [resolvable:$true] %s8384_s21 }
 0x1e8   : > { %v3295_v8 = vadd.f32 %v9515_v2, %v3255_v7 }
 0x202   : > { %v9535_v9 = vpop.f32.mrb[20].mxu0 }
 0x203   : > { %v9557_v10 = vpop.f32.mrb[20].mxu1  ;;  %v9536_v11 = vpop.f32.mrb[21].mxu0 }
 0x204   : > { %v9558_v12 = vpop.f32.mrb[21].mxu1  ;;  %v9537_v13 = vadd.f32 %v9536_v11, %v9535_v9  ;;  %v9538_v15 = vpop.f32.mrb[22].mxu0  ;;  %v10536_v11 = vld [vmem:[%s13357_s24] sm:$0xff]  }
 0x205   : > { %v9559_v14 = vadd.f32 %v9558_v12, %v9557_v10  ;;  %v9560_v16 = vpop.f32.mrb[22].mxu1  ;;  %v9539_v17 = vpop.f32.mrb[23].mxu0  ;;  %v10537_v12 = vld [vmem:[%s13358_s23] sm:$0xff]   ;;  %v10539_v15 = vld [vmem:[%s13358_s23 + $0x10] sm:$0xff]  }
 0x206   : > { %v9561_v18 = vpop.f32.mrb[23].mxu1  ;;  %v3335_v19 = vadd.f32 %v9537_v13, %v3295_v8  ;;  %v10540_v16 = vld [vmem:[%s13358_s23 + $0x18] sm:$0xff]  }
 0x208   : > { %v3375_v20 = vadd.f32 %v9559_v14, %v3335_v19  ;;  %v10538_v14 = vld [vmem:[%s13358_s23 + $0x8] sm:$0xff]   ;;  %v3817_v19 = vpop.permute.xlu0 %3816  ;;  %s10837_s23 = scalar_lea.vmem %s8385_s21, 16 }
 0x209   : > { %p10838_p11 = scmp.ne.s32.totalorder %s8385_s21, %s10837_s23 }
 0x20a   : > { %v3380_v21 = vmax.f32 %v3375_v20, 0.0 }
 0x20b   : > { %p10839_p12 = pnand %p10838_p11, %p11347_p5 }
 0x20c   : > { %v3381_v23 = vpack.c.bf16 %v3380_v21, %v3380_v21 }
 0x20d   : > { %p10840_p13 = pneg %p10839_p12 }
 0x20e   : > { %9807 = vmatmul.mubr.bf16.vlgmr.msra.gmra.mrb[24].mxu0 %v3381_v23  ;;  %9827 = vmatmul.mubr.bf16.vlgmr.msra.gmra.mrb[24].mxu1 %v3381_v23 }
 0x20f   : > { %9831 = vmatpush3.bf16.msra.mxu0 %v10528_v22  ;;  %9846 = vmatprep.mubr.msk.bf16.mxu0 %vm11092_vm0, %v13292_v63 }
 0x210   : > { %9832 = vmatprep.subr.bf16.mxu0 %v13292_v63  ;;  %9852 = vmatprep.mubr.msk.bf16.mxu1 %vm11092_vm0, %v13292_v63 }
 0x213   : > { %9833 = vmatpush3.bf16.msra.mxu0 %v10529_v24 }
 0x214   : > { %9834 = vmatprep.subr.bf16.mxu0 %v13292_v63 }
 0x217   : > { %9835 = vmatpush3.bf16.msra.mxu0 %v10530_v25  ;;  %v3822_v25 = vpop.permute.xlu0 %3821 }
 0x218   : > { %9836 = vmatprep.subr.bf16.mxu0 %v13292_v63 }
 0x21b   : > { %9837 = vmatpush3.bf16.msra.mxu0 %v10531_v26 }
 0x21c   : > { %9838 = vmatprep.subr.bf16.mxu0 %v13292_v63 }
 0x21f   : > { %9839 = vmatpush3.bf16.msra.mxu0 %v10532_v27 }
 0x220   : > { %9840 = vmatprep.subr.bf16.mxu0 %v13292_v63 }
 0x223   : > { %9841 = vmatpush3.bf16.msra.mxu0 %v10533_v28 }
 0x224   : > { %9842 = vmatprep.subr.bf16.mxu0 %v13292_v63 }
 0x226   : > { %v3827_v18 = vpop.permute.xlu1 %3826 }
 0x227   : > { %9843 = vmatpush3.bf16.msra.mxu0 %v10534_v29 }
 0x228   : > { %9844 = vmatprep.subr.bf16.mxu0 %v13292_v63 }
 0x22a   : > { %v3832_v20 = vpop.permute.xlu1 %3831 }
 0x22b   : > { %9845 = vmatpush3.bf16.msra.mxu0 %v10535_v30  ;;  %v3837_v30 = vpop.permute.xlu0 %3836 }
 0x22c   : > { %9878 = vmatprep.subr.bf16.mxu0 %v13292_v63 }
 0x22e   : > { %9847 = vmatmul.mubr.bf16.vlgmr.msra.gmra.mrb[28].mxu0 %v3381_v23  ;;  %v3842_v26 = vpop.permute.xlu1 %3841 }
 0x22f   : > { %9882 = vmatprep.mubr.msk.bf16.mxu0 %vm11092_vm0, %v13292_v63 }
 0x232   : > { %v3852_v36 = vpop.permute.xlu1 %3851 }
 0x2e1   : > { %v3487_v43 = vpop.f32.mrb[24].mxu0  ;;  %v3609_v44 = vpop.f32.mrb[24].mxu1 }
 0x2e2   : > { %v3488_v45 = vadd.f32 %v8971_v42, %v3487_v43  ;;  %v9808_v46 = vpop.f32.mrb[25].mxu0  ;;  %v9828_v47 = vpop.f32.mrb[25].mxu1  ;;  %v3610_v6 = vadd.f32 %v8980_v0, %v3609_v44 }
 0x2e3   : > { %v3490_v48 = vpop.f32.mrb[26].mxu0  ;;  %v3612_v49 = vpop.f32.mrb[26].mxu1 }
 0x2e4   : > { %v3493_v50 = vmax.f32 %v3488_v45, 0.0  ;;  %v9809_v51 = vpop.f32.mrb[27].mxu0  ;;  %v9829_v52 = vpop.f32.mrb[27].mxu1  ;;  %v3805_v9 = vpack.c.bf16 %v3610_v6, %v3610_v6 }
 0x2e5   : > { %v3847_v45 = vpop.permute.xlu0 %3846 }
 0x2e6   : > { %v3495_v53 = vsel %vm3494_vm1, %v3493_v50, 0.0  ;;  %v3889_v13 = vsel %vm3887_vm4, %v3805_v9, 0  ;;  %v3984_v50 = vpop.permute.xlu1 %3983 }
 0x2e7   : > { %v3496_v54 = vrot.slane %v3495_v53, 4 }
 0x2e9   : > { %v3497_v55 = vadd.f32 %v3496_v54, %v3495_v53 }
 0x2eb   : > { %v3498_v56 = vrot.slane %v3497_v55, 2 }
 0x2ed   : > { %v3499_v57 = vadd.f32 %v3498_v56, %v3497_v55 }
 0x2ef   : > { %v3500_v58 = vrot.slane %v3499_v57, 1 }
 0x2f1   : > { %v3501_v59 = vadd.f32 %v3500_v58, %v3499_v57 }
 0x2f3   : > { %v3503_v60 = vmul.f32 0.25, %v3501_v59 }
 0x2f5   : > { %5468 = vrot.lane.b32.xlu0 %v3503_v60, %s11094_s22  ;;  %s13359_s22 = sld [smem:[#allocation29_spill]] }
 0x2fb   : > { %v10541_v17 = vld [vmem:[%s13359_s22] sm:$0xff]  }
 0x301   : > { %v3720_v62 = vpop.f32.mrb[28].mxu0 }
 0x302   : > { %v3721_v1 = vadd.f32 %v8989_v61, %v3720_v62  ;;  %v9848_v2 = vpop.f32.mrb[29].mxu0  ;;  %v3994_v61 = vpop.permute.xlu1 %3993 }
 0x303   : > { %v3723_v3 = vpop.f32.mrb[30].mxu0 }
 0x304   : > { %vm3726_vm2 = vcmp.gt.f32.partialorder %v3721_v1, 0.0  ;;  %v3727_v4 = vmul.f32 0.01, %v3721_v1  ;;  %v9849_v5 = vpop.f32.mrb[31].mxu0  ;;  %v3979_v3 = vpop.permute.xlu0 %3978 }
 0x306   : > { %v3728_v7 = vsel %vm3726_vm2, %v3721_v1, %v3727_v4  ;;  %v3737_v0 = vpop.permute.xlu1 %3736  ;;  %v10542_v1 = vld [vmem:[%s13359_s22 + $0x8] sm:$0xff]  }
 0x307   : > { %v3731_v8 = vpack.c.bf16 %v3728_v7, %v3728_v7 }
 0x308   : > { %v3989_v4 = vpop.permute.xlu0 %3988 }
 0x309   : > { %v3754_v10 = vsel %vm3749_vm3, %v3731_v8, 0 }
 0x30a   : > { %9851 = vmatpush3.bf16.xpose.msra.mxu1 %v3754_v10 }
 0x30b   : > { %10184 = vmatprep.subr.msk.bf16.mxu1 %vm3887_vm4, %v3805_v9 }
 0x311   : > { %9853 = vmatmul.mubr.msk.bf16.vlgmr.msra.gmra.mrb[28].mxu1 %vm3749_vm3, %v10536_v11 }
 0x312   : > { %9857 = vmatpush3.bf16.msra.mxu1 %v3889_v13  ;;  %9858 = vmatprep.mubr.msk.bf16.mxu1 %vm3874_vm5, %v10537_v12 }
 0x319   : > { %9859 = vmatmul.mubr.msk.bf16.vlgmr.msra.gmra.mrb[32].mxu1 %vm3874_vm5, %v10538_v14 }
 0x31a   : > { %9862 = vmatprep.mubr.msk.bf16.mxu1 %vm3874_vm5, %v10539_v15 }
 0x321   : > { %9863 = vmatmul.mubr.msk.bf16.gmra.mrb[36].mxu1 %vm3874_vm5, %v10540_v16 }
 0x322   : > { %9874 = vmatprep.mubr.msk.bf16.mxu1 %vm4006_vm6, %v10541_v17 }
 0x3e4   : > { %v3790_v21 = vpop.f32.mrb[28].mxu1 }
 0x3e5   : > { %v9854_v22 = vpop.f32.mrb[29].mxu1  ;;  %v3791_v2 = vadd.f32 %v3790_v21, %v3737_v0  ;;  %v4073_v21 = vpop.permute.xlu0 %4072 }
 0x3e6   : > { %v11676_v23 = vpop.f32.mrb[30].mxu1 }
 0x3e7   : > { %v9855_v24 = vpop.f32.mrb[31].mxu1 }
 0x3ec   : > { %v9860_v27 = vpop.f32.mrb[32].mxu1 }
 0x3ed   : > { %v3934_v28 = vadd.f32 %v9860_v27, %v3827_v18  ;;  %v3925_v29 = vpop.f32.mrb[33].mxu1 }
 0x3ee   : > { %v3926_v31 = vadd.f32 %v3925_v29, %v3817_v19  ;;  %v9861_v32 = vpop.f32.mrb[34].mxu1  ;;  %v4066_v19 = vld [vmem:[%s13360_s16] sm:$0x1]  ;;  %s11699_s16 = scalar_lea.vmem [#allocation2], %s13278_s8  ;;  %s13375_s8 = sld [smem:[#allocation38_spill]] }
 0x3ef   : > { %v3937_v34 = vadd.f32 %v9861_v32, %v3832_v20  ;;  %v3928_v35 = vpop.f32.mrb[35].mxu1  ;;  %v3958_v38 = vmax.f32 %v3934_v28, 0.0  ;;  %v10544_v20 = vld [vmem:[%s13361_s3 + $0xc] sm:$0xff]  }
 0x3f0   : > { %v3929_v37 = vadd.f32 %v3928_v35, %v3822_v25  ;;  %v3956_v42 = vmax.f32 %v3926_v31, 0.0 }
 0x3f1   : > { %v3959_v39 = vmax.f32 %v3937_v34, 0.0 }
 0x3f2   : > { %v3957_v43 = vmax.f32 %v3929_v37, 0.0 }
 0x3f3   : > { %v3969_v44 = vpack.c.bf16 %v3959_v39, %v3958_v38 }
 0x3f4   : > { %v3968_v46 = vpack.c.bf16 %v3957_v43, %v3956_v42  ;;  %v9864_v47 = vpop.f32.mrb[36].mxu1  ;;  %v11705_v43 = vsub.s32 1, %v11397_v33 }
 0x3f5   : > { %v3950_v48 = vadd.f32 %v9864_v47, %v3847_v45  ;;  %v3941_v49 = vpop.f32.mrb[37].mxu1 }
 0x3f6   : > { %v3942_v51 = vadd.f32 %v3941_v49, %v3837_v30  ;;  %v9865_v52 = vpop.f32.mrb[38].mxu1  ;;  %9866 = vmatprep.subr.bf16.mxu1 %v3968_v46 }
 0x3f7   : > { %v3953_v53 = vadd.f32 %v9865_v52, %v3852_v36  ;;  %v3944_v54 = vpop.f32.mrb[39].mxu1  ;;  %9867 = vmatpush3.bf16.msra.mxu1 %v3968_v46  ;;  %v3962_v56 = vmax.f32 %v3950_v48, 0.0 }
 0x3f8   : > { %v3945_v55 = vadd.f32 %v3944_v54, %v3842_v26  ;;  %9868 = vmatprep.subr.bf16.mxu1 %v3969_v44  ;;  %v3960_v58 = vmax.f32 %v3942_v51, 0.0  ;;  %v10547_v54 = vld [vmem:[%s13361_s3 + $0x24] sm:$0xff]  }
 0x3f9   : > { %v3963_v57 = vmax.f32 %v3953_v53, 0.0 }
 0x3fa   : > { %v3961_v59 = vmax.f32 %v3945_v55, 0.0  ;;  %v10549_v55 = vld [vmem:[%s13361_s3 + $0x2c] ss:$0 sps:$4 sm:$0x77]  }
 0x3fb   : > { %v3971_v60 = vpack.c.bf16 %v3963_v57, %v3962_v56  ;;  %9869 = vmatpush3.bf16.msra.mxu1 %v3969_v44 }
 0x3fc   : > { %v3970_v62 = vpack.c.bf16 %v3961_v59, %v3960_v58 }
 0x3fe   : > { %9870 = vmatprep.subr.bf16.mxu1 %v3970_v62 }
 0x3ff   : > { %9871 = vmatpush3.bf16.msra.mxu1 %v3970_v62 }
 0x400   : > { %9872 = vmatprep.subr.bf16.mxu1 %v3971_v60 }
 0x403   : > { %9873 = vmatpush3.bf16.msra.mxu1 %v3971_v60 }
 0x406   : > { %9875 = vmatmul.mubr.msk.bf16.vlgmr.msra.gmra.mrb[40].mxu1 %vm4006_vm6, %v10542_v1  ;;  %v11735_v1 = vsub.s32 0, %v11397_v33 }
 0x407   : > { %9888 = vmatprep.mubr.msk.f32.mxu1 %vm3874_vm5, %v3791_v2 }
 0x4d9   : > { %v9876_v5 = vpop.f32.mrb[40].mxu1 }
 0x4da   : > { %v4056_v6 = vadd.f32 %v9876_v5, %v3989_v4  ;;  %v4047_v7 = vpop.f32.mrb[41].mxu1 }
 0x4db   : > { %v4048_v8 = vadd.f32 %v4047_v7, %v3979_v3  ;;  %v9877_v9 = vpop.f32.mrb[42].mxu1 }
 0x4dc   : > { %v4059_v10 = vadd.f32 %v9877_v9, %v3994_v61  ;;  %v4050_v11 = vpop.f32.mrb[43].mxu1  ;;  %v4064_v13 = vmax.f32 %v4056_v6, 0.0  ;;  %v10557_v9 = vld [vmem:[%s13361_s3 + $0x5c] ss:$0 sps:$4 sm:$0x77]  }
 0x4dd   : > { %v4051_v12 = vadd.f32 %v4050_v11, %v3984_v50  ;;  %v4062_v15 = vmax.f32 %v4048_v8, 0.0 }
 0x4de   : > { %v4065_v14 = vmax.f32 %v4059_v10, 0.0 }
 0x4df   : > { %v4063_v16 = vmax.f32 %v4051_v12, 0.0 }
 0x4e0   : > { %v4068_v17 = vpack.c.bf16 %v4065_v14, %v4064_v13 }
 0x4e1   : > { %v4067_v18 = vpack.c.bf16 %v4063_v16, %v4062_v15 }
 0x4e3   : > { %9879 = vmatpush3.bf16.msra.mxu0 %v4067_v18 }
 0x4e4   : > { %9880 = vmatprep.subr.bf16.mxu0 %v13292_v63 }
 0x4e7   : > { %9881 = vmatpush3.bf16.msra.mxu0 %v4068_v17 }
 0x4e8   : > { %9891 = vmatprep.subr.bf16.mxu0 %v13292_v63 }
 0x4ea   : > { %9883 = vmatmul.mubr.msk.bf16.vlgmr.msra.gmra.mrb[32].mxu0 %vm3749_vm3, %v4066_v19 }
 0x4eb   : > { %9895 = vmatprep.mubr.msk.bf16.mxu0 %vm11092_vm0, %v13292_v63  ;;  %9892 = vmatpush3.bf16.msra.mxu0 %v10544_v20 }
 0x4ec   : > { %9893 = vmatprep.subr.bf16.mxu0 %v13292_v63 }
 0x5bd   : > { %v4112_v22 = vpop.f32.mrb[32].mxu0 }
 0x5be   : > { %v11693_v24 = vadd.f32 %v4112_v22, %v4073_v21  ;;  %v9884_v25 = vpop.f32.mrb[33].mxu0 }
 0x5bf   : > { %v4115_v26 = vpop.f32.mrb[34].mxu0 }
 0x5c0   : > { %v9013_v27 = vadd.f32 -0.5, %v11693_v24  ;;  %v9885_v28 = vpop.f32.mrb[35].mxu0  ;;  %v5463_v29 = vrot.slane %v11693_v24, 1  ;;  %4119 = vst.msk [vmem:[%s11699_s16] sm:$0x3] %vm4118_vm7, %v11693_v24 }
 0x5c2   : > { %v4121_v30 = vmul.f32 2.0, %v9013_v27  ;;  %5464 = vrot.lane.b32.xlu1 %v5463_v29, %s11095_s9  ;;  %s13374_s9 = sld [smem:[#allocation39_spill]] }
 0x5c4   : > { %v9014_v31 = vclamps-f32 %v4121_v30, 1.0 }
 0x5c6   : > { %v4124_v32 = vadd.f32 1.0, %v9014_v31 }
 0x5c8   : > { %v4125_v34 = vmul.f32 0.5, %v4124_v32 }
 0x5ca   : > { %v4126_v35 = vfloor.f32 %v4125_v34 }
 0x5cc   : > { %v4127_v36 = vsub.f32 %v4125_v34, %v4126_v35  ;;  %v10188_v37 = vtrunc.f32 %v4126_v35 }
 0x5ce   : > { %v10189_v38 = vcvt.f32.s32 %v10188_v37  ;;  %v4131_v39 = vsub.f32 1.0, %v4127_v36  ;;  %v4192_v57 = vrot.slane %v4127_v36, 1 }
 0x5d0   : > { %vm4136_vm8 = vcmp.ge.s32.totalorder %v10189_v38, 0  ;;  %vm4137_vm9 = vcmp.le.s32.totalorder %v10189_v38, 1  ;;  %v4149_v42 = vmul.u32 2, %v10189_v38  ;;  %v4150_v46 = vrot.slane %v10189_v38, 7 }
 0x5d1   : > { %v4139_v44 = vsel %vm4136_vm8, 1, %v13293_v40  ;;  %v4143_v45 = vsel %vm4137_vm9, 1, %v13293_v40  ;;  %v4166_v47 = vadd.s32 1, %v10189_v38  ;;  %v4133_v48 = vrot.slane %v4131_v39, 1  ;;  %vm11709_vm10 = vmand %vm4136_vm8, %vm4137_vm9 }
 0x5d2   : > { %v4140_v49 = vrot.slane %v4139_v44, 1  ;;  %v4144_v50 = vrot.slane %v4143_v45, 1  ;;  %v4151_v52 = vadd.s32 %v4150_v46, %v4149_v42  ;;  %v4194_v12 = vmul.f32 %v4192_v57, %v4131_v39  ;;  %v10543_v44 = vld [vmem:[%s13361_s3] sm:$0xff]  }
 0x5d3   : > { %vm4168_vm11 = vcmp.ge.s32.totalorder %v4166_v47, 0  ;;  %vm4169_vm12 = vcmp.le.s32.totalorder %v4166_v47, 1  ;;  %v4175_v53 = vrot.slane %v4166_v47, 7  ;;  %v4135_v0 = vmul.f32 %v4133_v48, %v4131_v39 }
 0x5d4   : > { %vm11713_vm13 = vcmp.ne.s32.totalorder %v4140_v49, 0  ;;  %vm11717_vm14 = vcmp.ne.s32.totalorder %v4144_v50, 0  ;;  %vm11721_vm15 = vmand %vm4168_vm11, %vm4169_vm12  ;;  %v4195_v58 = vsel %vm4168_vm11, 1, %v13293_v40  ;;  %v4155_v59 = vrot.slane %v4151_v52, %v11705_v43  ;;  %v10546_v49 = vld [vmem:[%s13361_s3 + $0x14] ss:$0 sps:$4 sm:$0x77]  }
 0x5d5   : > { %vm4142_vm1 = vmand %vm11709_vm10, %vm11713_vm13  ;;  %v4176_v60 = vadd.s32 %v4175_v53, %v4149_v42  ;;  %v4196_v61 = vrot.slane %v4195_v58, 1  ;;  %v4199_v62 = vsel %vm4169_vm12, 1, %v13293_v40  ;;  %v4205_v3 = vmul.u32 2, %v4166_v47  ;;  %v3742_v42 = vpop.permute.xlu0 %3741  ;;  %v10545_v47 = vld [vmem:[%s13361_s3 + $0x8] ss:$0 sps:$4 sm:$0x77]  }
 0x5d6   : > { %vm4146_vm2 = vmand %vm4142_vm1, %vm11717_vm14  ;;  %v4200_v2 = vrot.slane %v4199_v62, 1  ;;  %v4167_v5 = vmul.f32 %v4133_v48, %v4127_v36  ;;  %vm4156_vm11 = vcmp.eq.s32.totalorder %v11397_v33, %v4155_v59  ;;  %v4221_v19 = vmul.f32 %v4192_v57, %v4127_v36  ;;  %v10548_v57 = vld [vmem:[%s13361_s3 + $0x18] sm:$0xff]   ;;  %v10550_v58 = vld [vmem:[%s13361_s3 + $0x20] ss:$0 sps:$4 sm:$0x77]  }
 0x5d7   : > { %v9015_v4 = vsel %vm4146_vm2, 1.0, %v13292_v63  ;;  %vm4171_vm8 = vmand %vm11721_vm15, %vm11713_vm13  ;;  %v4180_v6 = vrot.slane %v4176_v60, %v11705_v43  ;;  %vm11743_vm9 = vcmp.ne.s32.totalorder %v4196_v61, 0  ;;  %v4206_v10 = vadd.s32 %v4205_v3, %v4150_v46  ;;  %v10551_v62 = vld [vmem:[%s13361_s3 + $0x3c] sm:$0xff]  }
 0x5d8   : > { %v4159_v8 = vmul.f32 %v9015_v4, %v4135_v0  ;;  %vm4172_vm12 = vmand %vm4171_vm8, %vm11717_vm14  ;;  %vm11750_vm1 = vcmp.ne.s32.totalorder %v4200_v2, 0  ;;  %v4226_v13 = vadd.s32 %v4205_v3, %v4175_v53  ;;  %v9016_v17 = vsel %vm4156_vm11, 1.0, %v13292_v63  ;;  %v10553_v0 = vld [vmem:[%s13361_s3 + $0x44] ss:$0 sps:$4 sm:$0x77]   ;;  %v10552_v3 = vld [vmem:[%s13361_s3 + $0x30] sm:$0xff]  }
 0x5d9   : > { %v9017_v11 = vsel %vm4172_vm12, 1.0, %v13292_v63  ;;  %vm4198_vm13 = vmand %vm11709_vm10, %vm11743_vm9  ;;  %vm4181_vm2 = vcmp.eq.s32.totalorder %v11397_v33, %v4180_v6  ;;  %v4210_v16 = vrot.slane %v4206_v10, %v11705_v43  ;;  %v3794_v45 = vadd.f32 %v11676_v23, %v3742_v42  ;;  %v10554_v4 = vld [vmem:[%s13361_s3 + $0x38] ss:$0 sps:$4 sm:$0x77]  }
 0x5da   : > { %v4163_v14 = vrot.slane %v4159_v8, %v11735_v1  ;;  %v4184_v15 = vmul.f32 %v9017_v11, %v4167_v5  ;;  %vm4202_vm14 = vmand %vm4198_vm13, %vm11750_vm1  ;;  %v4230_v20 = vrot.slane %v4226_v13, %v11705_v43  ;;  %v9018_v26 = vsel %vm4181_vm2, 1.0, %v13292_v63  ;;  %v10555_v8 = vld [vmem:[%s13361_s3 + $0x54] sm:$0xff]   ;;  %v10556_v11 = vld [vmem:[%s13361_s3 + $0x48] sm:$0xff]  }
 0x5db   : > { %v9019_v18 = vsel %vm4202_vm14, 1.0, %v13292_v63  ;;  %vm4222_vm10 = vmand %vm11721_vm15, %vm11743_vm9  ;;  %vm4211_vm8 = vcmp.eq.s32.totalorder %v11397_v33, %v4210_v16  ;;  %vm4247_vm9 = vcmask 1043456   ;;  %vm4350_vm11 = vcmask 1042432   ;;  %v10559_v16 = vld [vmem:[%s13361_s3 + $0x6c] sm:$0xff]  }
 0x5dc   : > { %v4164_v21 = vmul.f32 %v9016_v17, %v4163_v14  ;;  %v4188_v22 = vrot.slane %v4184_v15, %v11735_v1  ;;  %v4214_v25 = vmul.f32 %v9019_v18, %v4194_v12  ;;  %vm4223_vm12 = vmand %vm4222_vm10, %vm11750_vm1  ;;  %vm4231_vm15 = vcmp.eq.s32.totalorder %v11397_v33, %v4230_v20  ;;  %v10558_v12 = vld [vmem:[%s13361_s3 + $0x50] ss:$0 sps:$4 sm:$0x77]   ;;  %v10561_v17 = vld [vmem:[%s13361_s3 + $0x74] ss:$0 sps:$4 sm:$0x77]  }
 0x5dd   : > { %v9021_v27 = vsel %vm4223_vm12, 1.0, %v13292_v63  ;;  %v9020_v31 = vsel %vm4211_vm8, 1.0, %v13292_v63  ;;  %v9022_v36 = vsel %vm4231_vm15, 1.0, %v13292_v63  ;;  %v11096_v46 = vmov 65535  }
 0x5de   : > { %v4189_v28 = vmul.f32 %v9018_v26, %v4188_v22  ;;  %v4218_v29 = vrot.slane %v4214_v25, %v11735_v1  ;;  %v4234_v30 = vmul.f32 %v9021_v27, %v4221_v19  ;;  %v4351_v23 = vsel %vm3887_vm4, 4294967295, %v11096_v46  ;;  %v10560_v19 = vld [vmem:[%s13361_s3 + $0x60] sm:$0xff]   ;;  %v10562_v20 = vld [vmem:[%s13361_s3 + $0x68] ss:$0 sps:$4 sm:$0x77]   ;;  %v10571_v46 = vld [vmem:[%s13361_s3 + $0xb4] sm:$0xff]  }
 0x5df   : > { %v11794_v48 = vsel %vm4350_vm11, %v4351_v23, 0  ;;  %v10563_v27 = vld [vmem:[%s13361_s3 + $0x84] sm:$0xff]   ;;  %v10573_v23 = vld [vmem:[%s13361_s3 + $0xbc] ss:$0 sps:$4 sm:$0x77]   ;;  %vm5472_vm13 = vcmask 343040  }
 0x5e0   : > { %v4190_v32 = vadd.f32 %v4189_v28, %v4164_v21  ;;  %v4219_v34 = vmul.f32 %v9020_v31, %v4218_v29  ;;  %v4238_v35 = vrot.slane %v4234_v30, %v11735_v1  ;;  %v4408_v50 = vand.u32 %v10545_v47, %v11794_v48  ;;  %v10565_v28 = vld [vmem:[%s13361_s3 + $0x8c] ss:$0 sps:$4 sm:$0x77]   ;;  %v10564_v30 = vld [vmem:[%s13361_s3 + $0x78] sm:$0xff]  }
 0x5e1   : > { %v4354_v51 = vand.u32 %v10546_v49, %v11794_v48  ;;  %v4530_v60 = vand.u32 %v10549_v55, %v11794_v48  ;;  %v4469_v61 = vand.u32 %v10550_v58, %v11794_v48  ;;  %v4652_v6 = vand.u32 %v10553_v0, %v11794_v48  ;;  %v10566_v31 = vld [vmem:[%s13361_s3 + $0x80] ss:$0 sps:$4 sm:$0x77]   ;;  %v10572_v49 = vld [vmem:[%s13361_s3 + $0xa8] sm:$0xff]   ;;  %v10578_v58 = vld [vmem:[%s13374_s9 + $0x18] sm:$0xff]  }
 0x5e2   : > { %v4220_v37 = vadd.f32 %v4219_v34, %v4190_v32  ;;  %v4239_v38 = vmul.f32 %v9022_v36, %v4238_v35  ;;  %v4591_v7 = vand.u32 %v10554_v4, %v11794_v48  ;;  %v4774_v14 = vand.u32 %v10557_v9, %v11794_v48  ;;  %v10567_v35 = vld [vmem:[%s13361_s3 + $0x9c] sm:$0xff]   ;;  %v10569_v36 = vld [vmem:[%s13361_s3 + $0xa4] ss:$0 sps:$4 sm:$0x77]  }
 0x5e3   : > { %9894 = vmatpush3.bf16.msra.mxu0 %v4354_v51  ;;  %v4713_v15 = vand.u32 %v10558_v12, %v11794_v48  ;;  %v4897_v22 = vand.u32 %v10561_v17, %v11794_v48  ;;  %v4835_v26 = vand.u32 %v10562_v20, %v11794_v48  ;;  %v5020_v32 = vand.u32 %v10565_v28, %v11794_v48 }
 0x5e4   : > { %v4240_v39 = vadd.f32 %v4239_v38, %v4220_v37  ;;  %9907 = vmatprep.subr.bf16.mxu0 %v13292_v63  ;;  %v4959_v34 = vand.u32 %v10566_v31, %v11794_v48  ;;  %v10568_v38 = vld [vmem:[%s13361_s3 + $0x90] sm:$0xff]   ;;  %vm5531_vm2 = vcmask 867328   ;;  %vm5459_vm14 = vcmask 163840  }
 0x5e5   : > { %vm7047_vm10 = vcmask 965632   ;;  %vm7088_vm8 = vcmask 883712   ;;  %vm7102_vm12 = vcmask 1040384   ;;  %vm7132_vm15 = vcmask 75776  }
 0x5e6   : > { %9886 = vmatprep.subr.msk.mxu1 %vm4247_vm9, %v4240_v39 }
 0x5e7   : > { %9887 = vmatpush3.msk.msra.mxu1 %vm4247_vm9, %v4240_v39  ;;  %v10570_v39 = vld [vmem:[%s13361_s3 + $0x98] ss:$0 sps:$4 sm:$0x77]  }
 0x5e8   : > { %9889 = vmatmul.mubr.msk.f32.vlgmr.msra.gmra.mrb[44].mxu1 %vm3874_vm5, %v3794_v45  ;;  %9899 = vmatprep.subr.bf16.mxu1 %v13292_v63  ;;  %vm4346_vm5 = vcmask 171008   ;;  %v5081_v45 = vand.u32 %v10570_v39, %v11794_v48 }
 0x5e9   : > { %9900 = vmatpush3.bf16.msra.mxu1 %v10543_v44  ;;  %9903 = vmatprep.mubr.msk.bf16.mxu1 %vm11092_vm0, %v13292_v63  ;;  %v5142_v44 = vand.u32 %v10569_v36, %v11794_v48 }
 0x5ea   : > { %9901 = vmatprep.subr.bf16.mxu1 %v13292_v63 }
 0x5ed   : > { %9902 = vmatpush3.bf16.msra.mxu1 %v4408_v50  ;;  %v10574_v50 = vld [vmem:[%s13361_s3 + $0xb0] ss:$0 sps:$4 sm:$0x77]   ;;  %s13376_s3 = sld [smem:[#allocation41_spill]] }
 0x5ee   : > { %9915 = vmatprep.subr.bf16.mxu1 %v13292_v63 }
 0x6bb   : > { %v11801_v52 = vpop.f32.mrb[44].mxu1 }
 0x6bc   : > { %v4317_v53 = vpop.f32.mrb[45].mxu1  ;;  %v11868_v25 = vpack.c.bf16 %v11801_v52, %v11801_v52  ;;  %v5264_v52 = vand.u32 %v10573_v23, %v11794_v48 }
 0x6bd   : > { %v11805_v56 = vpack.c.bf16 %v4317_v53, %v4317_v53  ;;  %v5203_v53 = vand.u32 %v10574_v50, %v11794_v48  ;;  %v10575_v48 = vld [vmem:[%s13374_s9] sm:$0xff]  }
 0x6be   : > { %v4882_v29 = vshrl.u32 %v11868_v25, 16  ;;  %v4945_v42 = vrot.slane %v11868_v25, 1  ;;  %v5067_v51 = vrot.slane %v11868_v25, 2  ;;  %v5189_v55 = vrot.slane %v11868_v25, 3 }
 0x6bf   : > { %9904 = vmatmul.mubr.msk.bf16.vlgmr.msra.gmra.mrb[48].mxu1 %vm4346_vm5, %v11805_v56  ;;  %v4335_v59 = vshrl.u32 %v11805_v56, 16  ;;  %v4455_v5 = vrot.slane %v11805_v56, 1  ;;  %v4577_v13 = vrot.slane %v11805_v56, 2  ;;  %v4699_v21 = vrot.slane %v11805_v56, 3  ;;  %v10576_v56 = vld [vmem:[%s13374_s9 + $0x8] sm:$0xff]  }
 0x6c0   : > { %9916 = vmatpush3.bf16.msra.mxu1 %v10547_v54  ;;  %9919 = vmatprep.mubr.msk.bf16.mxu1 %vm11092_vm0, %v13292_v63  ;;  %v5006_v37 = vrot.slane %v4882_v29, 1  ;;  %v5128_v47 = vrot.slane %v4882_v29, 2  ;;  %v5250_v54 = vrot.slane %v4882_v29, 3 }
 0x6c1   : > { %9896 = vmatmul.mubr.msk.bf16.vlgmr.msra.gmra.mrb[36].mxu0 %vm4346_vm5, %v4335_v59  ;;  %9917 = vmatprep.subr.bf16.mxu1 %v13292_v63  ;;  %v4516_v2 = vrot.slane %v4335_v59, 1  ;;  %v4638_v10 = vrot.slane %v4335_v59, 2  ;;  %v4760_v18 = vrot.slane %v4335_v59, 3 }
 0x6c2   : > { %9908 = vmatpush3.bf16.msra.mxu0 %v10548_v57  ;;  %9911 = vmatprep.mubr.msk.bf16.mxu0 %vm11092_vm0, %v13292_v63  ;;  %v10577_v57 = vld [vmem:[%s13374_s9 + $0x10] sm:$0xff]   ;;  %s13377_s9 = sld [smem:[#allocation40_spill]] }
 0x6c3   : > { %9909 = vmatprep.subr.bf16.mxu0 %v13292_v63 }
 0x6c4   : > { %9918 = vmatpush3.bf16.msra.mxu1 %v4530_v60 }
 0x6c5   : > { %9931 = vmatprep.subr.bf16.mxu1 %v13292_v63 }
 0x6c6   : > { %9910 = vmatpush3.bf16.msra.mxu0 %v4469_v61 }
 0x6c7   : > { %9920 = vmatmul.mubr.msk.bf16.vlgmr.msra.gmra.mrb[52].mxu1 %vm4346_vm5, %v4516_v2  ;;  %9923 = vmatprep.subr.bf16.mxu0 %v13292_v63 }
 0x6c8   : > { %9932 = vmatpush3.bf16.msra.mxu1 %v10551_v62  ;;  %9935 = vmatprep.mubr.msk.bf16.mxu1 %vm11092_vm0, %v13292_v63 }
 0x6c9   : > { %9912 = vmatmul.mubr.msk.bf16.vlgmr.msra.gmra.mrb[40].mxu0 %vm4346_vm5, %v4455_v5  ;;  %9933 = vmatprep.subr.bf16.mxu1 %v13292_v63 }
 0x6ca   : > { %9924 = vmatpush3.bf16.msra.mxu0 %v10552_v3  ;;  %9927 = vmatprep.mubr.msk.bf16.mxu0 %vm11092_vm0, %v13292_v63 }
 0x6cb   : > { %9925 = vmatprep.subr.bf16.mxu0 %v13292_v63 }
 0x6cc   : > { %9934 = vmatpush3.bf16.msra.mxu1 %v4652_v6 }
 0x6cd   : > { %9947 = vmatprep.subr.bf16.mxu1 %v13292_v63 }
 0x6ce   : > { %9926 = vmatpush3.bf16.msra.mxu0 %v4591_v7 }
 0x6cf   : > { %9936 = vmatmul.mubr.msk.bf16.vlgmr.msra.gmra.mrb[56].mxu1 %vm4346_vm5, %v4638_v10  ;;  %9939 = vmatprep.subr.bf16.mxu0 %v13292_v63 }
 0x6d0   : > { %9948 = vmatpush3.bf16.msra.mxu1 %v10555_v8  ;;  %9951 = vmatprep.mubr.msk.bf16.mxu1 %vm11092_vm0, %v13292_v63 }
 0x6d1   : > { %9928 = vmatmul.mubr.msk.bf16.vlgmr.msra.gmra.mrb[44].mxu0 %vm4346_vm5, %v4577_v13  ;;  %9949 = vmatprep.subr.bf16.mxu1 %v13292_v63 }
 0x6d2   : > { %9940 = vmatpush3.bf16.msra.mxu0 %v10556_v11  ;;  %9943 = vmatprep.mubr.msk.bf16.mxu0 %vm11092_vm0, %v13292_v63 }
 0x6d3   : > { %9941 = vmatprep.subr.bf16.mxu0 %v13292_v63 }
 0x6d4   : > { %9950 = vmatpush3.bf16.msra.mxu1 %v4774_v14 }
 0x6d5   : > { %9963 = vmatprep.subr.bf16.mxu1 %v13292_v63 }
 0x6d6   : > { %9942 = vmatpush3.bf16.msra.mxu0 %v4713_v15 }
 0x6d7   : > { %9952 = vmatmul.mubr.msk.bf16.vlgmr.msra.gmra.mrb[60].mxu1 %vm4346_vm5, %v4760_v18  ;;  %9955 = vmatprep.subr.bf16.mxu0 %v13292_v63 }
 0x6d8   : > { %9964 = vmatpush3.bf16.msra.mxu1 %v10559_v16  ;;  %9967 = vmatprep.mubr.msk.bf16.mxu1 %vm11092_vm0, %v13292_v63 }
 0x6d9   : > { %9944 = vmatmul.mubr.msk.bf16.vlgmr.msra.gmra.mrb[48].mxu0 %vm4346_vm5, %v4699_v21  ;;  %9965 = vmatprep.subr.bf16.mxu1 %v13292_v63 }
 0x6da   : > { %9956 = vmatpush3.bf16.msra.mxu0 %v10560_v19  ;;  %9959 = vmatprep.mubr.msk.bf16.mxu0 %vm11092_vm0, %v13292_v63 }
 0x6db   : > { %9957 = vmatprep.subr.bf16.mxu0 %v13292_v63 }
 0x6dc   : > { %9966 = vmatpush3.bf16.msra.mxu1 %v4897_v22 }
 0x6dd   : > { %9979 = vmatprep.subr.bf16.mxu1 %v13292_v63 }
 0x6de   : > { %9958 = vmatpush3.bf16.msra.mxu0 %v4835_v26 }
 0x6df   : > { %9968 = vmatmul.mubr.msk.bf16.vlgmr.msra.gmra.mrb[64].mxu1 %vm4346_vm5, %v4882_v29  ;;  %9971 = vmatprep.subr.bf16.mxu0 %v13292_v63 }
 0x6e0   : > { %9980 = vmatpush3.bf16.msra.mxu1 %v10563_v27  ;;  %9983 = vmatprep.mubr.msk.bf16.mxu1 %vm11092_vm0, %v13292_v63 }
 0x6e1   : > { %9960 = vmatmul.mubr.msk.bf16.vlgmr.msra.gmra.mrb[52].mxu0 %vm4346_vm5, %v11868_v25  ;;  %9981 = vmatprep.subr.bf16.mxu1 %v13292_v63 }
 0x6e2   : > { %9972 = vmatpush3.bf16.msra.mxu0 %v10564_v30  ;;  %9975 = vmatprep.mubr.msk.bf16.mxu0 %vm11092_vm0, %v13292_v63 }
 0x6e3   : > { %9973 = vmatprep.subr.bf16.mxu0 %v13292_v63 }
 0x6e4   : > { %9982 = vmatpush3.bf16.msra.mxu1 %v5020_v32 }
 0x6e5   : > { %9995 = vmatprep.subr.bf16.mxu1 %v13292_v63 }
 0x6e6   : > { %9974 = vmatpush3.bf16.msra.mxu0 %v4959_v34 }
 0x6e7   : > { %9984 = vmatmul.mubr.msk.bf16.vlgmr.msra.gmra.mrb[68].mxu1 %vm4346_vm5, %v5006_v37  ;;  %9987 = vmatprep.subr.bf16.mxu0 %v13292_v63 }
 0x6e8   : > { %9996 = vmatpush3.bf16.msra.mxu1 %v10567_v35  ;;  %9999 = vmatprep.mubr.msk.bf16.mxu1 %vm11092_vm0, %v13292_v63 }
 0x6e9   : > { %9976 = vmatmul.mubr.msk.bf16.vlgmr.msra.gmra.mrb[56].mxu0 %vm4346_vm5, %v4945_v42  ;;  %9997 = vmatprep.subr.bf16.mxu1 %v13292_v63 }
 0x6ea   : > { %9988 = vmatpush3.bf16.msra.mxu0 %v10568_v38  ;;  %9991 = vmatprep.mubr.msk.bf16.mxu0 %vm11092_vm0, %v13292_v63 }
 0x6eb   : > { %9989 = vmatprep.subr.bf16.mxu0 %v13292_v63 }
 0x6ec   : > { %9998 = vmatpush3.bf16.msra.mxu1 %v5142_v44 }
 0x6ed   : > { %10011 = vmatprep.subr.bf16.mxu1 %v13292_v63 }
 0x6ee   : > { %9990 = vmatpush3.bf16.msra.mxu0 %v5081_v45 }
 0x6ef   : > { %10000 = vmatmul.mubr.msk.bf16.vlgmr.msra.gmra.mrb[72].mxu1 %vm4346_vm5, %v5128_v47  ;;  %10003 = vmatprep.subr.bf16.mxu0 %v13292_v63 }
 0x6f0   : > { %10012 = vmatpush3.bf16.msra.mxu1 %v10571_v46  ;;  %10015 = vmatprep.mubr.msk.bf16.mxu1 %vm11092_vm0, %v13292_v63 }
 0x6f1   : > { %9992 = vmatmul.mubr.msk.bf16.vlgmr.msra.gmra.mrb[60].mxu0 %vm4346_vm5, %v5067_v51  ;;  %10013 = vmatprep.subr.bf16.mxu1 %v13292_v63 }
 0x6f2   : > { %10004 = vmatpush3.bf16.msra.mxu0 %v10572_v49  ;;  %10007 = vmatprep.mubr.msk.bf16.mxu0 %vm11092_vm0, %v13292_v63 }
 0x6f3   : > { %10005 = vmatprep.subr.bf16.mxu0 %v13292_v63 }
 0x6f4   : > { %10014 = vmatpush3.bf16.msra.mxu1 %v5264_v52 }
 0x6f5   : > { %10031 = vmatprep.subr.bf16.mxu1 %v13292_v63 }
 0x6f6   : > { %10006 = vmatpush3.bf16.msra.mxu0 %v5203_v53 }
 0x6f7   : > { %10016 = vmatmul.mubr.msk.bf16.vlgmr.msra.gmra.mrb[76].mxu1 %vm4346_vm5, %v5250_v54  ;;  %10019 = vmatprep.subr.bf16.mxu0 %v13292_v63 }
 0x6f8   : > { %10035 = vmatprep.mubr.msk.bf16.mxu1 %vm11092_vm0, %v13292_v63 }
 0x6f9   : > { %10008 = vmatmul.mubr.msk.bf16.vlgmr.msra.gmra.mrb[64].mxu0 %vm4346_vm5, %v5189_v55 }
 0x6fa   : > { %10027 = vmatprep.mubr.msk.bf16.mxu0 %vm11092_vm0, %v13292_v63  ;;  %10020 = vmatpush3.bf16.msra.mxu0 %v10575_v48 }
 0x6fb   : > { %10021 = vmatprep.subr.bf16.mxu0 %v13292_v63 }
 0x6fe   : > { %10022 = vmatpush3.bf16.msra.mxu0 %v10576_v56 }
 0x6ff   : > { %10023 = vmatprep.subr.bf16.mxu0 %v13292_v63 }
 0x702   : > { %10024 = vmatpush3.bf16.msra.mxu0 %v10577_v57 }
 0x703   : > { %10025 = vmatprep.subr.bf16.mxu0 %v13292_v63 }
 0x706   : > { %10026 = vmatpush3.bf16.msra.mxu0 %v10578_v58 }
 0x792   : > { %v4444_v59 = vpop.f32.mrb[48].mxu1 }
 0x793   : > { %v9905_v60 = vpop.f32.mrb[49].mxu1 }
 0x794   : > { %v4390_v61 = vpop.f32.mrb[36].mxu0  ;;  %v4447_v62 = vpop.f32.mrb[50].mxu1 }
 0x795   : > { %v4445_v0 = vadd.f32 %v4444_v59, %v4390_v61  ;;  %v9897_v2 = vpop.f32.mrb[37].mxu0  ;;  %v9906_v3 = vpop.f32.mrb[51].mxu1 }
 0x796   : > { %v4393_v4 = vpop.f32.mrb[38].mxu0 }
 0x797   : > { %v9898_v5 = vpop.f32.mrb[39].mxu0 }
 0x79a   : > { %v4566_v6 = vpop.f32.mrb[52].mxu1 }
 0x79b   : > { %v9921_v7 = vpop.f32.mrb[53].mxu1 }
 0x79c   : > { %v4505_v8 = vpop.f32.mrb[40].mxu0  ;;  %v4569_v9 = vpop.f32.mrb[54].mxu1 }
 0x79d   : > { %v4511_v10 = vadd.f32 %v4505_v8, %v4445_v0  ;;  %v9913_v11 = vpop.f32.mrb[41].mxu0  ;;  %v9922_v12 = vpop.f32.mrb[55].mxu1 }
 0x79e   : > { %v4508_v13 = vpop.f32.mrb[42].mxu0 }
 0x79f   : > { %v9914_v14 = vpop.f32.mrb[43].mxu0  ;;  %v4572_v15 = vadd.f32 %v4566_v6, %v4511_v10 }
 0x7a2   : > { %v4688_v16 = vpop.f32.mrb[56].mxu1 }
 0x7a3   : > { %v9937_v17 = vpop.f32.mrb[57].mxu1 }
 0x7a4   : > { %v4627_v18 = vpop.f32.mrb[44].mxu0  ;;  %v4691_v19 = vpop.f32.mrb[58].mxu1 }
 0x7a5   : > { %v4633_v20 = vadd.f32 %v4627_v18, %v4572_v15  ;;  %v9929_v21 = vpop.f32.mrb[45].mxu0  ;;  %v9938_v22 = vpop.f32.mrb[59].mxu1 }
 0x7a6   : > { %v4630_v25 = vpop.f32.mrb[46].mxu0 }
 0x7a7   : > { %v9930_v26 = vpop.f32.mrb[47].mxu0  ;;  %v4694_v27 = vadd.f32 %v4688_v16, %v4633_v20  ;;  %v5307_v16 = vld [vmem:[%s13375_s8] sm:$0x1]  ;;  %s13379_s8 = sld [smem:[#allocation35_spill]] }
 0x7a8   : > { %v10579_v26 = vld [vmem:[%s13376_s3] sm:$0xff]  }
 0x7a9   : > { %10032 = vmatpush3.bf16.msra.mxu1 %v10579_v26 }
 0x7aa   : > { %v4810_v28 = vpop.f32.mrb[60].mxu1  ;;  %10033 = vmatprep.subr.bf16.mxu1 %v13292_v63 }
 0x7ab   : > { %v9953_v29 = vpop.f32.mrb[61].mxu1 }
 0x7ac   : > { %v4749_v30 = vpop.f32.mrb[48].mxu0  ;;  %v4813_v31 = vpop.f32.mrb[62].mxu1 }
 0x7ad   : > { %v4755_v32 = vadd.f32 %v4749_v30, %v4694_v27  ;;  %v9945_v34 = vpop.f32.mrb[49].mxu0  ;;  %v9954_v35 = vpop.f32.mrb[63].mxu1  ;;  %v10580_v27 = vld [vmem:[%s13376_s3 + $0x8] sm:$0xff]   ;;  %s13381_s3 = sld [smem:[#allocation34_spill]] }
 0x7ae   : > { %v4752_v36 = vpop.f32.mrb[50].mxu0  ;;  %10034 = vmatpush3.bf16.msra.mxu1 %v10580_v27  ;;  %v10641_v26 = vld [vmem:[%s13379_s8 + $0x1c] ss:$76 sps:$4 sm:$0xff]  }
 0x7af   : > { %v9946_v37 = vpop.f32.mrb[51].mxu0  ;;  %v4816_v38 = vadd.f32 %v4810_v28, %v4755_v32  ;;  %10039 = vmatprep.subr.bf16.mxu1 %v13292_v63  ;;  %v5321_v28 = vld [vmem:[%s13377_s9] sm:$0x1]  ;;  %s13380_s9 = sld [smem:[#allocation42_spill]] }
 0x7b0   : > { %v10581_v37 = vld [vmem:[%s13378_s12] sm:$0xff]  }
 0x7b2   : > { %v4933_v39 = vpop.f32.mrb[64].mxu1 }
 0x7b3   : > { %v9969_v42 = vpop.f32.mrb[65].mxu1 }
 0x7b4   : > { %v4871_v44 = vpop.f32.mrb[52].mxu0  ;;  %v4936_v45 = vpop.f32.mrb[66].mxu1  ;;  %v10583_v42 = vld [vmem:[%s13378_s12 + $0x10] sm:$0xff]  }
 0x7b5   : > { %v4877_v46 = vadd.f32 %v4871_v44, %v4816_v38  ;;  %v9961_v23 = vpop.f32.mrb[53].mxu0  ;;  %v9970_v47 = vpop.f32.mrb[67].mxu1  ;;  %v10584_v44 = vld [vmem:[%s13378_s12 + $0x18] sm:$0xff]   ;;  %v10585_v45 = vld [vmem:[%s13378_s12 + $0x20] sm:$0xff]  }
 0x7b6   : > { %v4874_v49 = vpop.f32.mrb[54].mxu0  ;;  %v10586_v23 = vld [vmem:[%s13378_s12 + $0x28] sm:$0xff]   ;;  %v10587_v47 = vld [vmem:[%s13378_s12 + $0x30] sm:$0x1f]   ;;  %v5397_v27 = vld [vmem:[%s13380_s9] sm:$0x1] }
 0x7b7   : > { %v9962_v50 = vpop.f32.mrb[55].mxu0  ;;  %v4939_v51 = vadd.f32 %v4933_v39, %v4877_v46  ;;  %v10582_v39 = vld [vmem:[%s13378_s12 + $0x8] sm:$0xff]   ;;  %v5465_v46 = vpop.permute.xlu1 %5464  ;;  %s13285_s12 = scalar_lea.vmem [#allocation4], %s11689_s5  ;;  %s13284_s9 = scalar_lea.vmem [#allocation6], %s11689_s5 }
 0x7b8   : > { %v5471_v49 = vsel %vm4346_vm5, %v11693_v24, %v5465_v46  ;;  %v5469_v50 = vpop.permute.xlu0 %5468 }
 0x7ba   : > { %v5056_v52 = vpop.f32.mrb[68].mxu1 }
 0x7bb   : > { %v9985_v53 = vpop.f32.mrb[69].mxu1 }
 0x7bc   : > { %v4995_v54 = vpop.f32.mrb[56].mxu0  ;;  %v5059_v55 = vpop.f32.mrb[70].mxu1 }
 0x7bd   : > { %v5001_v48 = vadd.f32 %v4995_v54, %v4939_v51  ;;  %v9977_v56 = vpop.f32.mrb[57].mxu0  ;;  %v9986_v57 = vpop.f32.mrb[71].mxu1  ;;  %v10590_v54 = vld [vmem:[%s13379_s8 + $0x4] ss:$76 sps:$4 sm:$0xff]   ;;  %v10593_v55 = vld [vmem:[%s13379_s8 + $0xc] ss:$76 sps:$4 sm:$0xff]  }
 0x7be   : > { %v4998_v58 = vpop.f32.mrb[58].mxu0  ;;  %v10591_v56 = vld [vmem:[%s13379_s8 + $0x8] ss:$76 sps:$4 sm:$0xff]   ;;  %6610 = vmatprep.subr.bf16.mxu0 %v10590_v54 }
 0x7bf   : > { %v9978_v59 = vpop.f32.mrb[59].mxu0  ;;  %v5062_v60 = vadd.f32 %v5056_v52, %v5001_v48  ;;  %v5473_v52 = vsel %vm5472_vm13, %v5471_v49, %v5469_v50  ;;  %v10588_v48 = vld [vmem:[%s13379_s8] ss:$76 sps:$4 sm:$0xff]   ;;  %v10596_v57 = vld [vmem:[%s13379_s8 + $0x9c] ss:$76 sps:$4 sm:$0xff]   ;;  %vm7239_vm13 = vcmask 80896  }
 0x7c0   : > { %v5474_v53 = vpack.c.bf16 %v5473_v52, %v5473_v52  ;;  %v10599_v58 = vld [vmem:[%s13379_s8 + $0xa4] ss:$76 sps:$4 sm:$0xff]   ;;  %v10644_v52 = vld [vmem:[%s13379_s8 + $0xac] ss:$76 sps:$4 sm:$0xff]   ;;  %v10642_v54 = vld [vmem:[%s13379_s8 + $0xa8] ss:$76 sps:$4 sm:$0xff]  }
 0x7c1   : > { %v10594_v59 = vld [vmem:[%s13379_s8 + $0x98] ss:$76 sps:$4 sm:$0xff]   ;;  %v10636_v49 = vld [vmem:[%s13379_s8 + $0x10] ss:$76 sps:$4 sm:$0xff]  }
 0x7c2   : > { %v5178_v61 = vpop.f32.mrb[72].mxu1  ;;  %v10639_v50 = vld [vmem:[%s13379_s8 + $0x18] ss:$76 sps:$4 sm:$0xff]  }
 0x7c3   : > { %v10001_v62 = vpop.f32.mrb[73].mxu1 }
 0x7c4   : > { %v5117_v0 = vpop.f32.mrb[60].mxu0  ;;  %v5181_v2 = vpop.f32.mrb[74].mxu1  ;;  %v10605_v62 = vld [vmem:[%s13379_s8 + $0x13c] ss:$76 sps:$4 sm:$0xff]  }
 0x7c5   : > { %v5123_v3 = vadd.f32 %v5117_v0, %v5062_v60  ;;  %v9993_v4 = vpop.f32.mrb[61].mxu0  ;;  %v10002_v5 = vpop.f32.mrb[75].mxu1  ;;  %v10597_v60 = vld [vmem:[%s13379_s8 + $0xa0] ss:$76 sps:$4 sm:$0xff]   ;;  %v10600_v0 = vld [vmem:[%s13379_s8 + $0x130] ss:$76 sps:$4 sm:$0xff]  }
 0x7c6   : > { %v5120_v6 = vpop.f32.mrb[62].mxu0  ;;  %v10603_v2 = vld [vmem:[%s13379_s8 + $0x138] ss:$76 sps:$4 sm:$0xff]   ;;  %v10611_v4 = vld [vmem:[%s13379_s8 + $0x1d4] ss:$76 sps:$4 sm:$0xff]  }
 0x7c7   : > { %v9994_v7 = vpop.f32.mrb[63].mxu0  ;;  %v5184_v8 = vadd.f32 %v5178_v61, %v5123_v3  ;;  %v10602_v61 = vld [vmem:[%s13379_s8 + $0x134] ss:$76 sps:$4 sm:$0xff]   ;;  %v10608_v3 = vld [vmem:[%s13379_s8 + $0x1cc] ss:$76 sps:$4 sm:$0xff]  }
 0x7c8   : > { %v10606_v5 = vld [vmem:[%s13379_s8 + $0x1c8] ss:$76 sps:$4 sm:$0xff]   ;;  %v10609_v6 = vld [vmem:[%s13379_s8 + $0x1d0] ss:$76 sps:$4 sm:$0xff]  }
 0x7c9   : > { %v10614_v7 = vld [vmem:[%s13379_s8 + $0x264] ss:$76 sps:$4 sm:$0xff]  }
 0x7ca   : > { %v5300_v9 = vpop.f32.mrb[76].mxu1 }
 0x7cb   : > { %v10017_v10 = vpop.f32.mrb[77].mxu1 }
 0x7cc   : > { %v5239_v11 = vpop.f32.mrb[64].mxu0  ;;  %v5303_v12 = vpop.f32.mrb[78].mxu1  ;;  %v10615_v10 = vld [vmem:[%s13379_s8 + $0x268] ss:$76 sps:$4 sm:$0xff]  }
 0x7cd   : > { %v5245_v13 = vadd.f32 %v5239_v11, %v5184_v8  ;;  %v10009_v14 = vpop.f32.mrb[65].mxu0  ;;  %v10018_v15 = vpop.f32.mrb[79].mxu1  ;;  %v10617_v8 = vld [vmem:[%s13379_s8 + $0x26c] ss:$76 sps:$4 sm:$0xff]   ;;  %v10620_v11 = vld [vmem:[%s13379_s8 + $0x2fc] ss:$76 sps:$4 sm:$0xff]  }
 0x7ce   : > { %v5242_v17 = vpop.f32.mrb[66].mxu0  ;;  %v10623_v12 = vld [vmem:[%s13379_s8 + $0x304] ss:$76 sps:$4 sm:$0xff]   ;;  %v10621_v14 = vld [vmem:[%s13379_s8 + $0x300] ss:$76 sps:$4 sm:$0xff]  }
 0x7cf   : > { %v5306_v18 = vadd.f32 %v5300_v9, %v5245_v13  ;;  %v10010_v19 = vpop.f32.mrb[67].mxu0  ;;  %v10612_v9 = vld [vmem:[%s13379_s8 + $0x260] ss:$76 sps:$4 sm:$0xff]   ;;  %v10618_v13 = vld [vmem:[%s13379_s8 + $0x2f8] ss:$76 sps:$4 sm:$0xff]  }
 0x7d0   : > { %v10626_v15 = vld [vmem:[%s13379_s8 + $0x394] ss:$76 sps:$4 sm:$0xff]   ;;  %v10624_v17 = vld [vmem:[%s13379_s8 + $0x390] ss:$76 sps:$4 sm:$0xff]   ;;  %v10632_v19 = vld [vmem:[%s13379_s8 + $0x42c] ss:$76 sps:$4 sm:$0xff]  }
 0x7d1   : > { %v5308_v20 = vadd.f32 %v5307_v16, %v5306_v18  ;;  %v10629_v16 = vld [vmem:[%s13379_s8 + $0x39c] ss:$76 sps:$4 sm:$0xff]   ;;  %v10627_v18 = vld [vmem:[%s13379_s8 + $0x398] ss:$76 sps:$4 sm:$0xff]  }
 0x7d3   : > { %vm5309_vm1 = vcmp.gt.f32.partialorder %v5308_v20, 0.0  ;;  %v5310_v21 = vmul.f32 0.01, %v5308_v20 }
 0x7d5   : > { %v5311_v22 = vsel %vm5309_vm1, %v5308_v20, %v5310_v21  ;;  %v10635_v20 = vld [vmem:[%s13379_s8 + $0x434] ss:$76 sps:$4 sm:$0xff]   ;;  %vm11102_vm1 = vmmov 1  }
 0x7d6   : > { %v5312_v25 = vpack.c.bf16 %v5311_v22, %v5311_v22  ;;  %v10630_v21 = vld [vmem:[%s13379_s8 + $0x428] ss:$76 sps:$4 sm:$0xff]   ;;  %v10633_v22 = vld [vmem:[%s13379_s8 + $0x430] ss:$76 sps:$4 sm:$0xff]  }
 0x7d8   : > { %10028 = vmatmul.mubr.msk.bf16.vlgmr.msra.gmra.mrb[68].mxu0 %vm4006_vm6, %v5312_v25  ;;  %v10638_v25 = vld [vmem:[%s13379_s8 + $0x14] ss:$76 sps:$4 sm:$0xff]  }
 0x7d9   : > { %6642 = vmatprep.mubr.bf16.mxu0 %v13293_v40  ;;  %6611 = vmatpush1.bf16.msra.mxu0 %v10588_v48  ;;  %v10650_v48 = vld [vmem:[%s13379_s8 + $0x144] ss:$76 sps:$4 sm:$0xff]  }
 0x7da   : > { %6612 = vmatprep.subr.bf16.mxu0 %v10596_v57  ;;  %v10648_v57 = vld [vmem:[%s13379_s8 + $0x140] ss:$76 sps:$4 sm:$0xff]  }
 0x7dd   : > { %6613 = vmatpush1.bf16.msra.mxu0 %v10594_v59  ;;  %v10656_v59 = vld [vmem:[%s13379_s8 + $0x1dc] ss:$76 sps:$4 sm:$0xff]  }
 0x7de   : > { %6614 = vmatprep.subr.bf16.mxu0 %v10602_v61  ;;  %v10654_v61 = vld [vmem:[%s13379_s8 + $0x1d8] ss:$76 sps:$4 sm:$0xff]  }
 0x7e1   : > { %6615 = vmatpush1.bf16.msra.mxu0 %v10600_v0  ;;  %v10662_v0 = vld [vmem:[%s13379_s8 + $0x274] ss:$76 sps:$4 sm:$0xff]  }
 0x7e2   : > { %6616 = vmatprep.subr.bf16.mxu0 %v10608_v3  ;;  %v10660_v3 = vld [vmem:[%s13379_s8 + $0x270] ss:$76 sps:$4 sm:$0xff]  }
 0x7e5   : > { %6617 = vmatpush1.bf16.msra.mxu0 %v10606_v5  ;;  %v10668_v5 = vld [vmem:[%s13379_s8 + $0x30c] ss:$76 sps:$4 sm:$0xff]  }
 0x7e6   : > { %6618 = vmatprep.subr.bf16.mxu0 %v10614_v7  ;;  %v10666_v7 = vld [vmem:[%s13379_s8 + $0x308] ss:$76 sps:$4 sm:$0xff]  }
 0x7e9   : > { %6619 = vmatpush1.bf16.msra.mxu0 %v10612_v9  ;;  %v10674_v9 = vld [vmem:[%s13379_s8 + $0x3a4] ss:$76 sps:$4 sm:$0xff]  }
 0x7ea   : > { %6620 = vmatprep.subr.bf16.mxu0 %v10620_v11  ;;  %v10672_v11 = vld [vmem:[%s13379_s8 + $0x3a0] ss:$76 sps:$4 sm:$0xff]  }
 0x7ed   : > { %6621 = vmatpush1.bf16.msra.mxu0 %v10618_v13  ;;  %v10680_v13 = vld [vmem:[%s13379_s8 + $0x43c] ss:$76 sps:$4 sm:$0xff]  }
 0x7ee   : > { %6622 = vmatprep.subr.bf16.mxu0 %v10626_v15  ;;  %v10678_v15 = vld [vmem:[%s13379_s8 + $0x438] ss:$76 sps:$4 sm:$0xff]  }
 0x7f1   : > { %6623 = vmatpush1.bf16.msra.mxu0 %v10624_v17  ;;  %v10686_v17 = vld [vmem:[%s13379_s8 + $0x24] ss:$76 sps:$4 sm:$0xff]  }
 0x7f2   : > { %6624 = vmatprep.subr.bf16.mxu0 %v10632_v19  ;;  %v10684_v19 = vld [vmem:[%s13379_s8 + $0x20] ss:$76 sps:$4 sm:$0xff]  }
 0x7f5   : > { %6625 = vmatpush1.bf16.msra.mxu0 %v10630_v21  ;;  %v10692_v21 = vld [vmem:[%s13379_s8 + $0xbc] ss:$76 sps:$4 sm:$0xff]  }
 0x7f6   : > { %6692 = vmatprep.subr.bf16.mxu0 %v10638_v25  ;;  %v10690_v25 = vld [vmem:[%s13379_s8 + $0xb8] ss:$76 sps:$4 sm:$0xff]  }
 0x8ab   : > { %v5383_v29 = vpop.f32.mrb[68].mxu0 }
 0x8ac   : > { %v5384_v30 = vadd.f32 %v5383_v29, %v5321_v28  ;;  %v10029_v31 = vpop.f32.mrb[69].mxu0 }
 0x8ad   : > { %v5386_v32 = vpop.f32.mrb[70].mxu0 }
 0x8ae   : > { %vm5389_vm6 = vcmp.gt.f32.partialorder %v5384_v30, 0.0  ;;  %v5390_v34 = vmul.f32 0.01, %v5384_v30  ;;  %v10030_v35 = vpop.f32.mrb[71].mxu0 }
 0x8b0   : > { %v5391_v36 = vsel %vm5389_vm6, %v5384_v30, %v5390_v34  ;;  %vm10182_vm6 = vmpackc.low %vm3887_vm4, %vm11102_vm1 }
 0x8b1   : > { %v5392_v38 = vpack.c.bf16 %v5391_v36, %v5391_v36 }
 0x8b3   : > { %10036 = vmatmul.mubr.msk.bf16.vlgmr.msra.gmra.mrb[80].mxu1 %vm3749_vm3, %v5392_v38  ;;  %vm5535_vm3 = vcmask 1044480   ;;  %v5489_v38 = vld [vmem:[%s13381_s3] sm:$0x1]  ;;  %s13383_s3 = sld [smem:[#allocation36_spill]] }
 0x8b4   : > { %10040 = vmatpush3.bf16.msra.mxu1 %v10581_v37  ;;  %10053 = vmatprep.mubr.msk.bf16.mxu1 %vm11092_vm0, %v13292_v63  ;;  %v5537_v51 = vsel %vm5535_vm3, %v10587_v47, 0 }
 0x8b5   : > { %10041 = vmatprep.subr.bf16.mxu1 %v13292_v63 }
 0x8b8   : > { %10042 = vmatpush3.bf16.msra.mxu1 %v10582_v39 }
 0x8b9   : > { %10043 = vmatprep.subr.bf16.mxu1 %v13292_v63 }
 0x8bc   : > { %10044 = vmatpush3.bf16.msra.mxu1 %v10583_v42 }
 0x8bd   : > { %10045 = vmatprep.subr.bf16.mxu1 %v13292_v63 }
 0x8c0   : > { %10046 = vmatpush3.bf16.msra.mxu1 %v10584_v44 }
 0x8c1   : > { %10047 = vmatprep.subr.bf16.mxu1 %v13292_v63 }
 0x8c4   : > { %10048 = vmatpush3.bf16.msra.mxu1 %v10585_v45 }
 0x8c5   : > { %10049 = vmatprep.subr.bf16.mxu1 %v13292_v63 }
 0x8c8   : > { %10050 = vmatpush3.bf16.msra.mxu1 %v10586_v23 }
 0x8c9   : > { %10051 = vmatprep.subr.bf16.mxu1 %v13292_v63 }
 0x8cc   : > { %10052 = vmatpush3.bf16.msra.mxu1 %v5537_v51 }
 0x8cd   : > { %6651 = vmatprep.subr.bf16.mxu1 %v10593_v55  ;;  %v10645_v55 = vld [vmem:[%s13379_s8 + $0xb0] ss:$76 sps:$4 sm:$0xff]  }
 0x8cf   : > { %10054 = vmatmul.mubr.msk.bf16.vlgmr.msra.gmra.mrb[84].mxu1 %vm5531_vm2, %v5474_v53  ;;  %v10647_v53 = vld [vmem:[%s13379_s8 + $0xb4] ss:$76 sps:$4 sm:$0xff]   ;;  %vm7812_vm2 = vcmask 1046528  }
 0x8d0   : > { %6683 = vmatprep.mubr.bf16.mxu1 %v13293_v40  ;;  %6652 = vmatpush1.bf16.msra.mxu1 %v10591_v56  ;;  %v10653_v56 = vld [vmem:[%s13379_s8 + $0x14c] ss:$76 sps:$4 sm:$0xff]  }
 0x8d1   : > { %6653 = vmatprep.subr.bf16.mxu1 %v10599_v58  ;;  %v10651_v58 = vld [vmem:[%s13379_s8 + $0x148] ss:$76 sps:$4 sm:$0xff]  }
 0x8d4   : > { %6654 = vmatpush1.bf16.msra.mxu1 %v10597_v60  ;;  %v10659_v60 = vld [vmem:[%s13379_s8 + $0x1e4] ss:$76 sps:$4 sm:$0xff]  }
 0x8d5   : > { %6655 = vmatprep.subr.bf16.mxu1 %v10605_v62  ;;  %v10657_v62 = vld [vmem:[%s13379_s8 + $0x1e0] ss:$76 sps:$4 sm:$0xff]  }
 0x8d8   : > { %6656 = vmatpush1.bf16.msra.mxu1 %v10603_v2  ;;  %v10665_v2 = vld [vmem:[%s13379_s8 + $0x27c] ss:$76 sps:$4 sm:$0xff]  }
 0x8d9   : > { %6657 = vmatprep.subr.bf16.mxu1 %v10611_v4  ;;  %v10663_v4 = vld [vmem:[%s13379_s8 + $0x278] ss:$76 sps:$4 sm:$0xff]  }
 0x8dc   : > { %6658 = vmatpush1.bf16.msra.mxu1 %v10609_v6  ;;  %v10671_v6 = vld [vmem:[%s13379_s8 + $0x314] ss:$76 sps:$4 sm:$0xff]  }
 0x8dd   : > { %6659 = vmatprep.subr.bf16.mxu1 %v10617_v8  ;;  %v10669_v8 = vld [vmem:[%s13379_s8 + $0x310] ss:$76 sps:$4 sm:$0xff]  }
 0x8e0   : > { %6660 = vmatpush1.bf16.msra.mxu1 %v10615_v10  ;;  %v10677_v10 = vld [vmem:[%s13379_s8 + $0x3ac] ss:$76 sps:$4 sm:$0xff]  }
 0x8e1   : > { %6661 = vmatprep.subr.bf16.mxu1 %v10623_v12  ;;  %v10675_v12 = vld [vmem:[%s13379_s8 + $0x3a8] ss:$76 sps:$4 sm:$0xff]  }
 0x8e4   : > { %6662 = vmatpush1.bf16.msra.mxu1 %v10621_v14  ;;  %v10683_v14 = vld [vmem:[%s13379_s8 + $0x444] ss:$76 sps:$4 sm:$0xff]  }
 0x8e5   : > { %6663 = vmatprep.subr.bf16.mxu1 %v10629_v16  ;;  %v10681_v16 = vld [vmem:[%s13379_s8 + $0x440] ss:$76 sps:$4 sm:$0xff]  }
 0x8e8   : > { %6664 = vmatpush1.bf16.msra.mxu1 %v10627_v18  ;;  %v10689_v18 = vld [vmem:[%s13379_s8 + $0x2c] ss:$76 sps:$4 sm:$0xff]  }
 0x8e9   : > { %6665 = vmatprep.subr.bf16.mxu1 %v10635_v20  ;;  %v10687_v20 = vld [vmem:[%s13379_s8 + $0x28] ss:$76 sps:$4 sm:$0xff]  }
 0x8ec   : > { %6666 = vmatpush1.bf16.msra.mxu1 %v10633_v22  ;;  %v10695_v22 = vld [vmem:[%s13379_s8 + $0xc4] ss:$76 sps:$4 sm:$0xff]  }
 0x8ed   : > { %6733 = vmatprep.subr.bf16.mxu1 %v10641_v26  ;;  %v10693_v26 = vld [vmem:[%s13379_s8 + $0xc0] ss:$76 sps:$4 sm:$0xff]  }
 0x986   : > { %v5447_v28 = vpop.f32.mrb[80].mxu1 }
 0x987   : > { %v5448_v29 = vadd.f32 %v5447_v28, %v5397_v27  ;;  %v10037_v30 = vpop.f32.mrb[81].mxu1  ;;  %v10698_v27 = vld [vmem:[%s13379_s8 + $0x154] ss:$76 sps:$4 sm:$0xff]   ;;  %v10701_v28 = vld [vmem:[%s13379_s8 + $0x15c] ss:$76 sps:$4 sm:$0xff]  }
 0x988   : > { %v5450_v31 = vpop.f32.mrb[82].mxu1  ;;  %v10699_v30 = vld [vmem:[%s13379_s8 + $0x158] ss:$76 sps:$4 sm:$0xff]  }
 0x989   : > { %v5453_v32 = vsub.f32 0.0, %v5448_v29  ;;  %v10038_v34 = vpop.f32.mrb[83].mxu1  ;;  %5460 = vst.msk [vmem:[%s13285_s12] sm:$0x1] %vm5459_vm14, %v5448_v29  ;;  %v10696_v29 = vld [vmem:[%s13379_s8 + $0x150] ss:$76 sps:$4 sm:$0xff]  }
 0x98a   : > { %v10704_v31 = vld [vmem:[%s13379_s8 + $0x1ec] ss:$76 sps:$4 sm:$0xff]   ;;  %v10702_v34 = vld [vmem:[%s13379_s8 + $0x1e8] ss:$76 sps:$4 sm:$0xff]   ;;  %s13286_s12 = smov 118  }
 0x98b   : > { %v5454_v35 = vmul.f32 1.442695, %v5453_v32  ;;  %v10707_v32 = vld [vmem:[%s13379_s8 + $0x1f4] ss:$76 sps:$4 sm:$0xff]  }
 0x98d   : > { %10812 = vpow2.f32 %v5454_v35  ;;  %v10705_v35 = vld [vmem:[%s13379_s8 + $0x1f0] ss:$76 sps:$4 sm:$0xff]  }
 0x997   : > { %v10813_v36 = vpop.eup %10812 }
 0x998   : > { %v5456_v37 = vadd.f32 1.0, %v10813_v36  ;;  %v10710_v36 = vld [vmem:[%s13379_s8 + $0x284] ss:$76 sps:$4 sm:$0xff]  }
 0x99a   : > { %10814 = vrcp.f32 %v5456_v37  ;;  %v10713_v37 = vld [vmem:[%s13379_s8 + $0x28c] ss:$76 sps:$4 sm:$0xff]  }
 0x9a2   : > { %v5573_v39 = vpop.f32.mrb[84].mxu1 }
 0x9a3   : > { %v5574_v42 = vadd.f32 %v5573_v39, %v5489_v38  ;;  %v10055_v44 = vpop.f32.mrb[85].mxu1  ;;  %v10708_v38 = vld [vmem:[%s13379_s8 + $0x280] ss:$76 sps:$4 sm:$0xff]   ;;  %v10711_v39 = vld [vmem:[%s13379_s8 + $0x288] ss:$76 sps:$4 sm:$0xff]  }
 0x9a4   : > { %v12012_v45 = vpop.eup %10814  ;;  %v5576_v46 = vpop.f32.mrb[86].mxu1  ;;  %v10719_v44 = vld [vmem:[%s13379_s8 + $0x324] ss:$76 sps:$4 sm:$0xff]  }
 0x9a5   : > { %13382 = vst [vmem:[#allocation49_spill] sm:$0xff] %v12012_v45  ;;  %v5579_v23 = vmax.f32 %v5574_v42, 0.0  ;;  %v10056_v47 = vpop.f32.mrb[87].mxu1  ;;  %5461 = vst.msk [vmem:[%s13284_s9] sm:$0x1] %vm5459_vm14, %v12012_v45  ;;  %s13384_s9 = sld [smem:[#allocation18_spill]] }
 0x9a6   : > { %v10716_v42 = vld [vmem:[%s13379_s8 + $0x31c] ss:$76 sps:$4 sm:$0xff]   ;;  %v10714_v46 = vld [vmem:[%s13379_s8 + $0x318] ss:$76 sps:$4 sm:$0xff]   ;;  %v10722_v47 = vld [vmem:[%s13379_s8 + $0x3b4] ss:$76 sps:$4 sm:$0xff]  }
 0x9a7   : > { %v12021_v51 = vpack.c.bf16 %v5579_v23, %v5579_v23  ;;  %v10717_v23 = vld [vmem:[%s13379_s8 + $0x320] ss:$76 sps:$4 sm:$0xff]  }
 0x9a9   : > { %6643 = vmatmul.mubr.bf16.vlgmr.msra.gmra.mrb[72].mxu0 %v12021_v51  ;;  %6684 = vmatmul.mubr.bf16.vlgmr.msra.gmra.mrb[88].mxu1 %v12021_v51 }
 0x9aa   : > { %6693 = vmatpush1.bf16.msra.mxu0 %v10636_v49  ;;  %6734 = vmatpush1.bf16.msra.mxu1 %v10639_v50  ;;  %v10725_v49 = vld [vmem:[%s13379_s8 + $0x3bc] ss:$76 sps:$4 sm:$0xff]  }
 0x9ab   : > { %6694 = vmatprep.subr.bf16.mxu0 %v10644_v52  ;;  %6735 = vmatprep.subr.bf16.mxu1 %v10647_v53  ;;  %v10720_v50 = vld [vmem:[%s13379_s8 + $0x3b0] ss:$76 sps:$4 sm:$0xff]   ;;  %v10723_v52 = vld [vmem:[%s13379_s8 + $0x3b8] ss:$76 sps:$4 sm:$0xff]  }
 0x9ac   : > { %6724 = vmatprep.mubr.bf16.mxu0 %v13293_v40  ;;  %6765 = vmatprep.mubr.bf16.mxu1 %v13293_v40  ;;  %v10728_v53 = vld [vmem:[%s13379_s8 + $0x44c] ss:$76 sps:$4 sm:$0xff]  }
 0x9ae   : > { %6695 = vmatpush1.bf16.msra.mxu0 %v10642_v54  ;;  %6736 = vmatpush1.bf16.msra.mxu1 %v10645_v55  ;;  %v10731_v54 = vld [vmem:[%s13379_s8 + $0x454] ss:$76 sps:$4 sm:$0xff]  }
 0x9af   : > { %6696 = vmatprep.subr.bf16.mxu0 %v10650_v48  ;;  %6737 = vmatprep.subr.bf16.mxu1 %v10653_v56  ;;  %v10726_v55 = vld [vmem:[%s13379_s8 + $0x448] ss:$76 sps:$4 sm:$0xff]   ;;  %v10729_v48 = vld [vmem:[%s13379_s8 + $0x450] ss:$76 sps:$4 sm:$0xff]  }
 0x9b0   : > { %v10734_v56 = vld [vmem:[%s13379_s8 + $0x34] ss:$76 sps:$4 sm:$0xff]  }
 0x9b2   : > { %6697 = vmatpush1.bf16.msra.mxu0 %v10648_v57  ;;  %6738 = vmatpush1.bf16.msra.mxu1 %v10651_v58  ;;  %v10737_v57 = vld [vmem:[%s13379_s8 + $0x3c] ss:$76 sps:$4 sm:$0xff]  }
 0x9b3   : > { %6698 = vmatprep.subr.bf16.mxu0 %v10656_v59  ;;  %6739 = vmatprep.subr.bf16.mxu1 %v10659_v60  ;;  %v10732_v58 = vld [vmem:[%s13379_s8 + $0x30] ss:$76 sps:$4 sm:$0xff]   ;;  %v10735_v59 = vld [vmem:[%s13379_s8 + $0x38] ss:$76 sps:$4 sm:$0xff]  }
 0x9b4   : > { %v10740_v60 = vld [vmem:[%s13379_s8 + $0xcc] ss:$76 sps:$4 sm:$0xff]  }
 0x9b6   : > { %6699 = vmatpush1.bf16.msra.mxu0 %v10654_v61  ;;  %6740 = vmatpush1.bf16.msra.mxu1 %v10657_v62  ;;  %v10743_v61 = vld [vmem:[%s13379_s8 + $0xd4] ss:$76 sps:$4 sm:$0xff]  }
 0x9b7   : > { %6700 = vmatprep.subr.bf16.mxu0 %v10662_v0  ;;  %6741 = vmatprep.subr.bf16.mxu1 %v10665_v2  ;;  %v10738_v62 = vld [vmem:[%s13379_s8 + $0xc8] ss:$76 sps:$4 sm:$0xff]   ;;  %v10741_v0 = vld [vmem:[%s13379_s8 + $0xd0] ss:$76 sps:$4 sm:$0xff]  }
 0x9b8   : > { %v10746_v2 = vld [vmem:[%s13379_s8 + $0x164] ss:$76 sps:$4 sm:$0xff]  }
 0x9ba   : > { %6701 = vmatpush1.bf16.msra.mxu0 %v10660_v3  ;;  %6742 = vmatpush1.bf16.msra.mxu1 %v10663_v4  ;;  %v10749_v3 = vld [vmem:[%s13379_s8 + $0x16c] ss:$76 sps:$4 sm:$0xff]  }
 0x9bb   : > { %6702 = vmatprep.subr.bf16.mxu0 %v10668_v5  ;;  %6743 = vmatprep.subr.bf16.mxu1 %v10671_v6  ;;  %v10744_v4 = vld [vmem:[%s13379_s8 + $0x160] ss:$76 sps:$4 sm:$0xff]   ;;  %v10747_v5 = vld [vmem:[%s13379_s8 + $0x168] ss:$76 sps:$4 sm:$0xff]  }
 0x9bc   : > { %v10752_v6 = vld [vmem:[%s13379_s8 + $0x1fc] ss:$76 sps:$4 sm:$0xff]  }
 0x9be   : > { %6703 = vmatpush1.bf16.msra.mxu0 %v10666_v7  ;;  %6744 = vmatpush1.bf16.msra.mxu1 %v10669_v8  ;;  %v10755_v7 = vld [vmem:[%s13379_s8 + $0x204] ss:$76 sps:$4 sm:$0xff]  }
 0x9bf   : > { %6704 = vmatprep.subr.bf16.mxu0 %v10674_v9  ;;  %6745 = vmatprep.subr.bf16.mxu1 %v10677_v10  ;;  %v10750_v8 = vld [vmem:[%s13379_s8 + $0x1f8] ss:$76 sps:$4 sm:$0xff]   ;;  %v10753_v9 = vld [vmem:[%s13379_s8 + $0x200] ss:$76 sps:$4 sm:$0xff]  }
 0x9c0   : > { %v10758_v10 = vld [vmem:[%s13379_s8 + $0x294] ss:$76 sps:$4 sm:$0xff]  }
 0x9c2   : > { %6705 = vmatpush1.bf16.msra.mxu0 %v10672_v11  ;;  %6746 = vmatpush1.bf16.msra.mxu1 %v10675_v12  ;;  %v10761_v11 = vld [vmem:[%s13379_s8 + $0x29c] ss:$76 sps:$4 sm:$0xff]  }
 0x9c3   : > { %6706 = vmatprep.subr.bf16.mxu0 %v10680_v13  ;;  %6747 = vmatprep.subr.bf16.mxu1 %v10683_v14  ;;  %v10756_v12 = vld [vmem:[%s13379_s8 + $0x290] ss:$76 sps:$4 sm:$0xff]   ;;  %v10759_v13 = vld [vmem:[%s13379_s8 + $0x298] ss:$76 sps:$4 sm:$0xff]  }
 0x9c4   : > { %v10764_v14 = vld [vmem:[%s13379_s8 + $0x32c] ss:$76 sps:$4 sm:$0xff]  }
 0x9c6   : > { %6707 = vmatpush1.bf16.msra.mxu0 %v10678_v15  ;;  %6748 = vmatpush1.bf16.msra.mxu1 %v10681_v16  ;;  %v10767_v15 = vld [vmem:[%s13379_s8 + $0x334] ss:$76 sps:$4 sm:$0xff]  }
 0x9c7   : > { %6774 = vmatprep.subr.bf16.mxu0 %v10686_v17  ;;  %6815 = vmatprep.subr.bf16.mxu1 %v10689_v18  ;;  %v10762_v16 = vld [vmem:[%s13379_s8 + $0x328] ss:$76 sps:$4 sm:$0xff]   ;;  %v10765_v17 = vld [vmem:[%s13379_s8 + $0x330] ss:$76 sps:$4 sm:$0xff]  }
 0x9c8   : > { %v10770_v18 = vld [vmem:[%s13379_s8 + $0x3c4] ss:$76 sps:$4 sm:$0xff]  }
 0x9c9   : > { %6725 = vmatmul.mubr.bf16.vlgmr.msra.gmra.mrb[76].mxu0 %v12021_v51  ;;  %6766 = vmatmul.mubr.bf16.vlgmr.msra.gmra.mrb[92].mxu1 %v12021_v51 }
 0x9ca   : > { %6775 = vmatpush1.bf16.msra.mxu0 %v10684_v19  ;;  %6816 = vmatpush1.bf16.msra.mxu1 %v10687_v20  ;;  %v10773_v19 = vld [vmem:[%s13379_s8 + $0x3cc] ss:$76 sps:$4 sm:$0xff]  }
 0x9cb   : > { %6776 = vmatprep.subr.bf16.mxu0 %v10692_v21  ;;  %6817 = vmatprep.subr.bf16.mxu1 %v10695_v22  ;;  %v10768_v20 = vld [vmem:[%s13379_s8 + $0x3c0] ss:$76 sps:$4 sm:$0xff]   ;;  %v10771_v21 = vld [vmem:[%s13379_s8 + $0x3c8] ss:$76 sps:$4 sm:$0xff]  }
 0x9cc   : > { %6806 = vmatprep.mubr.bf16.mxu0 %v13293_v40  ;;  %6847 = vmatprep.mubr.bf16.mxu1 %v13293_v40  ;;  %v10776_v22 = vld [vmem:[%s13379_s8 + $0x45c] ss:$76 sps:$4 sm:$0xff]  }
 0x9ce   : > { %6777 = vmatpush1.bf16.msra.mxu0 %v10690_v25  ;;  %6818 = vmatpush1.bf16.msra.mxu1 %v10693_v26  ;;  %v10779_v25 = vld [vmem:[%s13379_s8 + $0x464] ss:$76 sps:$4 sm:$0xff]  }
 0x9cf   : > { %6778 = vmatprep.subr.bf16.mxu0 %v10698_v27  ;;  %6819 = vmatprep.subr.bf16.mxu1 %v10701_v28  ;;  %v10774_v26 = vld [vmem:[%s13379_s8 + $0x458] ss:$76 sps:$4 sm:$0xff]   ;;  %v10777_v27 = vld [vmem:[%s13379_s8 + $0x460] ss:$76 sps:$4 sm:$0xff]  }
 0x9d0   : > { %v10782_v28 = vld [vmem:[%s13379_s8 + $0x44] ss:$76 sps:$4 sm:$0xff]  }
 0x9d2   : > { %6779 = vmatpush1.bf16.msra.mxu0 %v10696_v29  ;;  %6820 = vmatpush1.bf16.msra.mxu1 %v10699_v30  ;;  %v10780_v29 = vld [vmem:[%s13379_s8 + $0x40] ss:$76 sps:$4 sm:$0xff]   ;;  %v10783_v30 = vld [vmem:[%s13379_s8 + $0x48] ss:$76 sps:$4 sm:$0xff]  }
 0x9d3   : > { %6780 = vmatprep.subr.bf16.mxu0 %v10704_v31  ;;  %6821 = vmatprep.subr.bf16.mxu1 %v10707_v32  ;;  %v10786_v31 = vld [vmem:[%s13379_s8 + $0xdc] ss:$76 sps:$4 sm:$0xff]   ;;  %v10784_v32 = vld [vmem:[%s13379_s8 + $0xd8] ss:$76 sps:$4 sm:$0xff]  }
 0x9d6   : > { %6781 = vmatpush1.bf16.msra.mxu0 %v10702_v34  ;;  %6822 = vmatpush1.bf16.msra.mxu1 %v10705_v35  ;;  %v10787_v34 = vld [vmem:[%s13379_s8 + $0xe0] ss:$76 sps:$4 sm:$0xff]  }
 0x9d7   : > { %6782 = vmatprep.subr.bf16.mxu0 %v10710_v36  ;;  %6823 = vmatprep.subr.bf16.mxu1 %v10713_v37  ;;  %v10790_v35 = vld [vmem:[%s13379_s8 + $0x174] ss:$76 sps:$4 sm:$0xff]   ;;  %v10788_v36 = vld [vmem:[%s13379_s8 + $0x170] ss:$76 sps:$4 sm:$0xff]   ;;  %v10791_v37 = vld [vmem:[%s13379_s8 + $0x178] ss:$76 sps:$4 sm:$0xff]  }
 0x9da   : > { %6783 = vmatpush1.bf16.msra.mxu0 %v10708_v38  ;;  %6824 = vmatpush1.bf16.msra.mxu1 %v10711_v39  ;;  %v10794_v38 = vld [vmem:[%s13379_s8 + $0x20c] ss:$76 sps:$4 sm:$0xff]   ;;  %v10792_v39 = vld [vmem:[%s13379_s8 + $0x208] ss:$76 sps:$4 sm:$0xff]  }
 0x9db   : > { %6784 = vmatprep.subr.bf16.mxu0 %v10716_v42  ;;  %6825 = vmatprep.subr.bf16.mxu1 %v10719_v44  ;;  %v10795_v42 = vld [vmem:[%s13379_s8 + $0x210] ss:$76 sps:$4 sm:$0xff]  }
 0x9dc   : > { %v10798_v44 = vld [vmem:[%s13379_s8 + $0x2a4] ss:$76 sps:$4 sm:$0xff]  }
 0x9de   : > { %6785 = vmatpush1.bf16.msra.mxu0 %v10714_v46  ;;  %6826 = vmatpush1.bf16.msra.mxu1 %v10717_v23  ;;  %v10796_v46 = vld [vmem:[%s13379_s8 + $0x2a0] ss:$76 sps:$4 sm:$0xff]   ;;  %v10799_v23 = vld [vmem:[%s13379_s8 + $0x2a8] ss:$76 sps:$4 sm:$0xff]  }
 0x9df   : > { %6786 = vmatprep.subr.bf16.mxu0 %v10722_v47  ;;  %6827 = vmatprep.subr.bf16.mxu1 %v10725_v49  ;;  %v10802_v47 = vld [vmem:[%s13379_s8 + $0x33c] ss:$76 sps:$4 sm:$0xff]   ;;  %v10800_v49 = vld [vmem:[%s13379_s8 + $0x338] ss:$76 sps:$4 sm:$0xff]  }
 0x9e2   : > { %6787 = vmatpush1.bf16.msra.mxu0 %v10720_v50  ;;  %6828 = vmatpush1.bf16.msra.mxu1 %v10723_v52  ;;  %v10803_v50 = vld [vmem:[%s13379_s8 + $0x340] ss:$76 sps:$4 sm:$0xff]  }
 0x9e3   : > { %6788 = vmatprep.subr.bf16.mxu0 %v10728_v53  ;;  %6829 = vmatprep.subr.bf16.mxu1 %v10731_v54  ;;  %v10806_v52 = vld [vmem:[%s13379_s8 + $0x3d4] ss:$76 sps:$4 sm:$0xff]   ;;  %v10804_v53 = vld [vmem:[%s13379_s8 + $0x3d0] ss:$76 sps:$4 sm:$0xff]   ;;  %v10807_v54 = vld [vmem:[%s13379_s8 + $0x3d8] ss:$76 sps:$4 sm:$0xff]  }
 0x9e6   : > { %6789 = vmatpush1.bf16.msra.mxu0 %v10726_v55  ;;  %6830 = vmatpush1.bf16.msra.mxu1 %v10729_v48  ;;  %v10810_v55 = vld [vmem:[%s13379_s8 + $0x46c] ss:$76 sps:$4 sm:$0xff]   ;;  %v10808_v48 = vld [vmem:[%s13379_s8 + $0x468] ss:$76 sps:$4 sm:$0xff]  }
 0x9e7   : > { %6856 = vmatprep.subr.bf16.mxu0 %v10734_v56  ;;  %6897 = vmatprep.subr.bf16.mxu1 %v10737_v57  ;;  %v10811_v56 = vld [vmem:[%s13379_s8 + $0x470] ss:$76 sps:$4 sm:$0xff]   ;;  %v6529_v57 = vsub.s32 3, %v11397_v33  ;;  %s13386_s8 = smov 108  }
 0x9e9   : > { %6807 = vmatmul.mubr.bf16.vlgmr.msra.gmra.mrb[80].mxu0 %v12021_v51  ;;  %6848 = vmatmul.mubr.bf16.vlgmr.msra.gmra.mrb[96].mxu1 %v12021_v51 }
 0x9ea   : > { %6857 = vmatpush1.bf16.msra.mxu0 %v10732_v58  ;;  %6898 = vmatpush1.bf16.msra.mxu1 %v10735_v59  ;;  %v12168_v58 = vld [vmem:[%s13383_s3] sm:$0xff] }
 0x9eb   : > { %6858 = vmatprep.subr.bf16.mxu0 %v10740_v60  ;;  %6899 = vmatprep.subr.bf16.mxu1 %v10743_v61  ;;  %v6530_v59 = vrot.slane %v12168_v58, %v6529_v57 }
 0x9ec   : > { %6888 = vmatprep.mubr.bf16.mxu0 %v13293_v40  ;;  %6929 = vmatprep.mubr.bf16.mxu1 %v13293_v40 }
 0x9ee   : > { %6859 = vmatpush1.bf16.msra.mxu0 %v10738_v62  ;;  %6900 = vmatpush1.bf16.msra.mxu1 %v10741_v0 }
 0x9ef   : > { %6860 = vmatprep.subr.bf16.mxu0 %v10746_v2  ;;  %6901 = vmatprep.subr.bf16.mxu1 %v10749_v3 }
 0x9f2   : > { %6861 = vmatpush1.bf16.msra.mxu0 %v10744_v4  ;;  %6902 = vmatpush1.bf16.msra.mxu1 %v10747_v5 }
 0x9f3   : > { %6862 = vmatprep.subr.bf16.mxu0 %v10752_v6  ;;  %6903 = vmatprep.subr.bf16.mxu1 %v10755_v7  ;;  %v11097_v6 = vmov 2   ;;  %v11098_v7 = vmov 1  }
 0x9f4   : > { %10310 = vset.pattern.permute.xlu1 %v11097_v6  ;;  %10311 = vset.pattern.permute.xlu0 %v11098_v7  ;;  %v12242_v6 = vld [vmem:[%s13384_s9 + $0xa0] sm:$0xff]  ;;  %v12245_v7 = vld [vmem:[%s13384_s9 + $0xa8] sm:$0xff] }
 0x9f6   : > { %6863 = vmatpush1.bf16.msra.mxu0 %v10750_v8  ;;  %6904 = vmatpush1.bf16.msra.mxu1 %v10753_v9  ;;  %v6533_v8 = vsub.s32 4, %v11397_v33  ;;  %v6541_v9 = vsub.s32 6, %v11397_v33 }
 0x9f7   : > { %6864 = vmatprep.subr.bf16.mxu0 %v10758_v10  ;;  %6905 = vmatprep.subr.bf16.mxu1 %v10761_v11  ;;  %v6537_v10 = vsub.s32 5, %v11397_v33  ;;  %v6545_v11 = vsub.s32 7, %v11397_v33 }
 0x9fa   : > { %6865 = vmatpush1.bf16.msra.mxu0 %v10756_v12  ;;  %6906 = vmatpush1.bf16.msra.mxu1 %v10759_v13  ;;  %v6534_v12 = vrot.slane %v12168_v58, %v6533_v8  ;;  %v6542_v13 = vrot.slane %v12168_v58, %v6541_v9 }
 0x9fb   : > { %6866 = vmatprep.subr.bf16.mxu0 %v10764_v14  ;;  %6907 = vmatprep.subr.bf16.mxu1 %v10767_v15  ;;  %v6538_v14 = vrot.slane %v12168_v58, %v6537_v10  ;;  %v6546_v15 = vrot.slane %v12168_v58, %v6545_v11 }
 0x9fe   : > { %6867 = vmatpush1.bf16.msra.mxu0 %v10762_v16  ;;  %6908 = vmatpush1.bf16.msra.mxu1 %v10765_v17 }
 0x9ff   : > { %6868 = vmatprep.subr.bf16.mxu0 %v10770_v18  ;;  %6909 = vmatprep.subr.bf16.mxu1 %v10773_v19 }
 0xa02   : > { %6869 = vmatpush1.bf16.msra.mxu0 %v10768_v20  ;;  %6910 = vmatpush1.bf16.msra.mxu1 %v10771_v21 }
 0xa03   : > { %6870 = vmatprep.subr.bf16.mxu0 %v10776_v22  ;;  %6911 = vmatprep.subr.bf16.mxu1 %v10779_v25 }
 0xa06   : > { %6871 = vmatpush1.bf16.msra.mxu0 %v10774_v26  ;;  %6912 = vmatpush1.bf16.msra.mxu1 %v10777_v27 }
 0xa07   : > { %6938 = vmatprep.subr.bf16.mxu0 %v10782_v28  ;;  %10057 = vmatprep.subr.bf16.mxu1 %v13292_v63 }
 0xa09   : > { %6889 = vmatmul.mubr.bf16.vlgmr.msra.gmra.mrb[84].mxu0 %v12021_v51  ;;  %6930 = vmatmul.mubr.bf16.vlgmr.msra.gmra.mrb[100].mxu1 %v12021_v51 }
 0xa0a   : > { %6939 = vmatpush1.bf16.msra.mxu0 %v10780_v29  ;;  %10058 = vmatpush3.bf16.msra.mxu1 %v10783_v30 }
 0xa0b   : > { %6940 = vmatprep.subr.bf16.mxu0 %v10786_v31  ;;  %10059 = vmatprep.subr.bf16.mxu1 %v13292_v63 }
 0xa0c   : > { %6970 = vmatprep.mubr.bf16.mxu0 %v13293_v40  ;;  %10073 = vmatprep.mubr.msk.bf16.mxu1 %vm11092_vm0, %v13292_v63 }
 0xa0e   : > { %6941 = vmatpush1.bf16.msra.mxu0 %v10784_v32  ;;  %10060 = vmatpush3.bf16.msra.mxu1 %v10787_v34  ;;  %v7141_v32 = vld [vmem:[%s13384_s9] sm:$0xff]  ;;  %v7142_v34 = vld [vmem:[%s13384_s9 + $0x8] sm:$0xff] }
 0xa0f   : > { %6942 = vmatprep.subr.bf16.mxu0 %v10790_v35  ;;  %10061 = vmatprep.subr.bf16.mxu1 %v13292_v63  ;;  %v7143_v35 = vld [vmem:[%s13384_s9 + $0x10] sm:$0xff] }
 0xa12   : > { %6943 = vmatpush1.bf16.msra.mxu0 %v10788_v36  ;;  %10062 = vmatpush3.bf16.msra.mxu1 %v10791_v37  ;;  %v12210_v36 = vld [vmem:[%s13383_s3 + $0x8] sm:$0xff]  ;;  %v7526_v37 = vsel %vm4346_vm5, %v7141_v32, 0.0 }
 0xa13   : > { %6944 = vmatprep.subr.bf16.mxu0 %v10794_v38  ;;  %10063 = vmatprep.subr.bf16.mxu1 %v13292_v63  ;;  %v7527_v38 = vsel %vm4346_vm5, %v7142_v34, 0.0 }
 0xa16   : > { %6945 = vmatpush1.bf16.msra.mxu0 %v10792_v39  ;;  %10064 = vmatpush3.bf16.msra.mxu1 %v10795_v42  ;;  %v7529_v39 = vsel %vm4346_vm5, %v7143_v35, 0.0  ;;  %v7144_v42 = vld [vmem:[%s13384_s9 + $0x18] sm:$0xff] }
 0xa17   : > { %6946 = vmatprep.subr.bf16.mxu0 %v10798_v44  ;;  %10065 = vmatprep.subr.bf16.mxu1 %v13292_v63  ;;  %v7528_v44 = vadd.f32 %v7527_v38, %v7526_v37  ;;  %v12261_v37 = vld [vmem:[%s13384_s9 + $0xb8] sm:$0xff] }
 0xa1a   : > { %6947 = vmatpush1.bf16.msra.mxu0 %v10796_v46  ;;  %10066 = vmatpush3.bf16.msra.mxu1 %v10799_v23  ;;  %v7531_v46 = vsel %vm4346_vm5, %v7144_v42, 0.0  ;;  %v6550_v23 = vrot.slane %v12210_v36, %v11735_v1 }
 0xa1b   : > { %6948 = vmatprep.subr.bf16.mxu0 %v10802_v47  ;;  %10067 = vmatprep.subr.bf16.mxu1 %v13292_v63  ;;  %v7145_v47 = vld [vmem:[%s13384_s9 + $0x20] sm:$0xff] }
 0xa1e   : > { %6949 = vmatpush1.bf16.msra.mxu0 %v10800_v49  ;;  %10068 = vmatpush3.bf16.msra.mxu1 %v10803_v50  ;;  %v7530_v49 = vadd.f32 %v7529_v39, %v7528_v44  ;;  %v12221_v50 = vld [vmem:[%s13384_s9 + $0x80] sm:$0xff]  ;;  %v7150_v44 = vld [vmem:[%s13384_s9 + $0x48] sm:$0xff] }
 0xa1f   : > { %6950 = vmatprep.subr.bf16.mxu0 %v10806_v52  ;;  %10069 = vmatprep.subr.bf16.mxu1 %v13292_v63  ;;  %v12224_v52 = vld [vmem:[%s13384_s9 + $0x88] sm:$0xff] }
 0xa22   : > { %6951 = vmatpush1.bf16.msra.mxu0 %v10804_v53  ;;  %10070 = vmatpush3.bf16.msra.mxu1 %v10807_v54  ;;  %v7533_v53 = vsel %vm4346_vm5, %v7145_v47, 0.0  ;;  %v10086_v54 = vpack.c.bf16 %v7142_v34, %v7141_v32  ;;  %v12258_v34 = vld [vmem:[%s13384_s9 + $0xb0] sm:$0xff] }
 0xa23   : > { %6952 = vmatprep.subr.bf16.mxu0 %v10810_v55  ;;  %10071 = vmatprep.subr.bf16.mxu1 %v13292_v63  ;;  %v7146_v55 = vld [vmem:[%s13384_s9 + $0x28] sm:$0xff] }
 0xa26   : > { %6953 = vmatpush1.bf16.msra.mxu0 %v10808_v48  ;;  %10072 = vmatpush3.bf16.msra.mxu1 %v10811_v56  ;;  %v10084_v48 = vpack.c.bf16 %v12224_v52, %v12221_v50  ;;  %v7532_v56 = vadd.f32 %v7531_v46, %v7530_v49  ;;  %v7543_v49 = vsel %vm4346_vm5, %v7150_v44, 0.0 }
 0xa28   : > { %10085 = vmatprep.subr.bf16.mxu0 %v10084_v48  ;;  %v7151_v48 = vld [vmem:[%s13384_s9 + $0x50] sm:$0xff] }
 0xa29   : > { %6971 = vmatmul.mubr.bf16.vlgmr.msra.gmra.mrb[88].mxu0 %v12021_v51  ;;  %10074 = vmatmul.mubr.bf16.vlgmr.msra.gmra.mrb[104].mxu1 %v12021_v51 }
 0xa2a   : > { %10087 = vmatpush3.bf16.msra.mxu0 %v10086_v54  ;;  %v12274_v54 = vld [vmem:[%s13384_s9 + $0xc8] sm:$0xff] }
 0xa7c   : > { %v12173_v60 = vpop.f32.mrb[72].mxu0  ;;  %v12175_v61 = vpop.f32.mrb[88].mxu1 }
 0xa7d   : > { %v12177_v62 = vpop.f32.mrb[73].mxu0  ;;  %v6687_v0 = vpop.f32.mrb[89].mxu1 }
 0xa7e   : > { %v12179_v2 = vadd.f32 %v6687_v0, %v6530_v59  ;;  %v6648_v3 = vpop.f32.mrb[74].mxu0  ;;  %v6689_v4 = vpop.f32.mrb[90].mxu1  ;;  %v12231_v59 = vld [vmem:[%s13384_s9 + $0x90] sm:$0xff]  ;;  %v12234_v0 = vld [vmem:[%s13384_s9 + $0x98] sm:$0xff] }
 0xa7f   : > { %v6649_v51 = vpop.f32.mrb[75].mxu0  ;;  %v6690_v5 = vpop.f32.mrb[91].mxu1 }
 0xa80   : > { %v7535_v51 = vsel %vm4346_vm5, %v7146_v55, 0.0  ;;  %v10088_v5 = vpack.c.bf16 %v12234_v0, %v12231_v59 }
 0xa82   : > { %10089 = vmatprep.subr.bf16.mxu0 %v10088_v5 }
 0xa9c   : > { %v6726_v16 = vpop.f32.mrb[76].mxu0  ;;  %v6767_v17 = vpop.f32.mrb[92].mxu1 }
 0xa9d   : > { %v12197_v18 = vadd.f32 %v6726_v16, %v6534_v12  ;;  %v12199_v19 = vadd.f32 %v6767_v17, %v6542_v13  ;;  %v6728_v20 = vpop.f32.mrb[77].mxu0  ;;  %v6769_v21 = vpop.f32.mrb[93].mxu1  ;;  %v7534_v16 = vadd.f32 %v7533_v53, %v7532_v56  ;;  %v12271_v53 = vld [vmem:[%s13384_s9 + $0xc0] sm:$0xff] }
 0xa9e   : > { %v12201_v22 = vadd.f32 %v6728_v20, %v6538_v14  ;;  %v6730_v25 = vpop.f32.mrb[78].mxu0  ;;  %v6771_v26 = vpop.f32.mrb[94].mxu1  ;;  %v6770_v28 = vadd.f32 %v6769_v21, %v6546_v15  ;;  %v7147_v15 = vld [vmem:[%s13384_s9 + $0x30] sm:$0xff]  ;;  %v10100_v5 = vpack.c.bf16 %v12274_v54, %v12271_v53 }
 0xa9f   : > { %v7026_v27 = vrot.slane %v12199_v19, 7  ;;  %v6731_v29 = vpop.f32.mrb[79].mxu0  ;;  %v6772_v30 = vpop.f32.mrb[95].mxu1  ;;  %v7537_v21 = vsel %vm4346_vm5, %v7147_v15, 0.0  ;;  %v10090_v25 = vpack.c.bf16 %v7144_v42, %v7143_v35  ;;  %v7149_v35 = vld [vmem:[%s13384_s9 + $0x40] sm:$0xff]  ;;  %v10094_v42 = vpack.c.bf16 %v7146_v55, %v7145_v47 }
 0xaa0   : > { %v7027_v31 = vrot.slane %v6770_v28, 7  ;;  %v7148_v29 = vld [vmem:[%s13384_s9 + $0x38] sm:$0xff]  ;;  %v7536_v30 = vadd.f32 %v7535_v51, %v7534_v16  ;;  %v7541_v39 = vsel %vm4346_vm5, %v7149_v35, 0.0  ;;  %v7545_v47 = vsel %vm4346_vm5, %v7151_v48, 0.0  ;;  %v12283_v16 = vld [vmem:[%s13384_s9 + $0xd0] sm:$0xff] }
 0xaa1   : > { %7033 = vrot.lane.b32.xlu1 %v7026_v27, %s13286_s12  ;;  %v7539_v32 = vsel %vm4346_vm5, %v7148_v29, 0.0  ;;  %10091 = vmatpush3.bf16.msra.mxu0 %v10090_v25  ;;  %v10098_v55 = vpack.c.bf16 %v7148_v29, %v7147_v15  ;;  %v10102_v15 = vpack.c.bf16 %v7150_v44, %v7149_v35 }
 0xaa2   : > { %v7538_v38 = vadd.f32 %v7537_v21, %v7536_v30  ;;  %v7155_v30 = vld [vmem:[%s13384_s9 + $0x70] sm:$0xff] }
 0xaa4   : > { %v7540_v46 = vadd.f32 %v7539_v32, %v7538_v38  ;;  %v7553_v32 = vsel %vm4346_vm5, %v7155_v30, 0.0 }
 0xaa5   : > { %7035 = vrot.lane.b32.xlu1 %v7027_v31, %s13286_s12  ;;  %v10092_v31 = vpack.c.bf16 %v12245_v7, %v12242_v6 }
 0xaa6   : > { %v7542_v56 = vadd.f32 %v7541_v39, %v7540_v46  ;;  %v7156_v39 = vld [vmem:[%s13384_s9 + $0x78] sm:$0xff]  ;;  %v7557_v46 = vsel %vm4346_vm5, %v12221_v50, 0.0  ;;  %v7561_v50 = vsel %vm4346_vm5, %v12231_v59, 0.0  ;;  %v6570_v59 = vrot.slane %v12210_v36, %v6537_v10 }
 0xaa7   : > { %10093 = vmatprep.subr.bf16.mxu0 %v10092_v31  ;;  %v7555_v35 = vsel %vm4346_vm5, %v7156_v39, 0.0 }
 0xaa8   : > { %10095 = vmatpush3.bf16.msra.mxu0 %v10094_v42  ;;  %v7544_v51 = vadd.f32 %v7543_v49, %v7542_v56  ;;  %v7559_v49 = vsel %vm4346_vm5, %v12224_v52, 0.0  ;;  %v12303_v56 = vld [vmem:[%s13384_s9 + $0xe0] sm:$0xff]  ;;  %v6574_v52 = vrot.slane %v12210_v36, %v6541_v9 }
 0xaaa   : > { %v7546_v21 = vadd.f32 %v7545_v47, %v7544_v51 }
 0xabc   : > { %v6808_v3 = vpop.f32.mrb[80].mxu0  ;;  %v12236_v4 = vpop.f32.mrb[96].mxu1 }
 0xabd   : > { %v6809_v12 = vadd.f32 %v6808_v3, %v6550_v23  ;;  %v12247_v13 = vpop.f32.mrb[81].mxu0  ;;  %v12249_v14 = vpop.f32.mrb[97].mxu1  ;;  %v10096_v23 = vpack.c.bf16 %v12261_v37, %v12258_v34  ;;  %v7152_v3 = vld [vmem:[%s13384_s9 + $0x58] sm:$0xff] }
 0xabe   : > { %v6812_v17 = vpop.f32.mrb[82].mxu0  ;;  %v6853_v20 = vpop.f32.mrb[98].mxu1  ;;  %v10106_v38 = vpack.c.bf16 %v7152_v3, %v7151_v48  ;;  %v12306_v48 = vld [vmem:[%s13384_s9 + $0xe8] sm:$0xff] }
 0xabf   : > { %v7028_v26 = vrot.slane %v6809_v12, 7  ;;  %v6813_v27 = vpop.f32.mrb[83].mxu0  ;;  %v6854_v28 = vpop.f32.mrb[99].mxu1  ;;  %10097 = vmatprep.subr.bf16.mxu0 %v10096_v23  ;;  %v7547_v12 = vsel %vm4346_vm5, %v7152_v3, 0.0  ;;  %v12286_v17 = vld [vmem:[%s13384_s9 + $0xd8] sm:$0xff]  ;;  %v7153_v20 = vld [vmem:[%s13384_s9 + $0x60] sm:$0xff] }
 0xac0   : > { %v7549_v25 = vsel %vm4346_vm5, %v7153_v20, 0.0  ;;  %10099 = vmatpush3.bf16.msra.mxu0 %v10098_v55  ;;  %v7548_v27 = vadd.f32 %v7547_v12, %v7546_v21  ;;  %v10104_v28 = vpack.c.bf16 %v12286_v17, %v12283_v16  ;;  %v10108_v55 = vpack.c.bf16 %v12306_v48, %v12303_v56  ;;  %v12318_v12 = vld [vmem:[%s13384_s9 + $0xf0] sm:$0xff]  ;;  %v12321_v21 = vld [vmem:[%s13384_s9 + $0xf8] sm:$0xff] }
 0xac1   : > { %7037 = vrot.lane.b32.xlu0 %v7028_v26, %s13286_s12  ;;  %v7154_v26 = vld [vmem:[%s13384_s9 + $0x68] sm:$0xff]  ;;  %10101 = vmatprep.subr.bf16.mxu0 %v10100_v5  ;;  %v7563_v5 = vsel %vm4346_vm5, %v12234_v0, 0.0  ;;  %v10112_v9 = vpack.c.bf16 %v12321_v21, %v12318_v12  ;;  %v12335_v0 = vld [vmem:[%s13384_s9 + $0x100] sm:$0xff]  ;;  %s13288_s12 = smov 108  }
 0xac2   : > { %v7551_v29 = vsel %vm4346_vm5, %v7154_v26, 0.0  ;;  %v7550_v31 = vadd.f32 %v7549_v25, %v7548_v27  ;;  %v10110_v3 = vpack.c.bf16 %v7154_v26, %v7153_v20  ;;  %v12324_v25 = vld [vmem:[%s13384_s9 + $0x180] sm:$0xff]  ;;  %v6578_v20 = vrot.slane %v12210_v36, %v6545_v11  ;;  %v12338_v26 = vld [vmem:[%s13384_s9 + $0x108] sm:$0xff] }
 0xac3   : > { %v12341_v27 = vld [vmem:[%s13384_s9 + $0x188] sm:$0xff]  ;;  %v10118_v11 = vpack.c.bf16 %v12338_v26, %v12335_v0 }
 0xac4   : > { %10103 = vmatpush3.bf16.msra.mxu0 %v10102_v15  ;;  %v7552_v42 = vadd.f32 %v7551_v29, %v7550_v31  ;;  %v10116_v10 = vpack.c.bf16 %v12341_v27, %v12324_v25  ;;  %v10114_v29 = vpack.c.bf16 %v7156_v39, %v7155_v30  ;;  %v12350_v31 = vsub.s32 2, %v11397_v33  ;;  %v12360_v39 = vld [vmem:[%s13384_s9 + $0x190] sm:$0xff] }
 0xac5   : > { %10105 = vmatprep.subr.bf16.mxu0 %v10104_v28  ;;  %v7565_v28 = vsel %vm4346_vm5, %v12242_v6, 0.0  ;;  %v6566_v6 = vrot.slane %v12210_v36, %v6533_v8  ;;  %v7567_v30 = vsel %vm4346_vm5, %v12245_v7, 0.0  ;;  %v12371_v8 = vld [vmem:[%s13384_s9 + $0x118] sm:$0xff] }
 0xac6   : > { %v7554_v44 = vadd.f32 %v7553_v32, %v7552_v42  ;;  %v6554_v32 = vrot.slane %v12210_v36, %v11705_v43  ;;  %10117 = vmatprep.subr.bf16.mxu1 %v10116_v10 }
 0xac7   : > { %10119 = vmatpush3.bf16.msra.mxu1 %v10118_v11 }
 0xac8   : > { %10107 = vmatpush3.bf16.msra.mxu0 %v10106_v38  ;;  %v7556_v23 = vadd.f32 %v7555_v35, %v7554_v44  ;;  %v12363_v44 = vld [vmem:[%s13384_s9 + $0x198] sm:$0xff] }
 0xac9   : > { %10109 = vmatprep.subr.bf16.mxu0 %v10108_v55 }
 0xaca   : > { %v7558_v47 = vadd.f32 %v7557_v46, %v7556_v23  ;;  %v6558_v46 = vrot.slane %v12210_v36, %v12350_v31 }
 0xacc   : > { %v7560_v51 = vadd.f32 %v7559_v49, %v7558_v47  ;;  %10111 = vmatpush3.bf16.msra.mxu0 %v10110_v3 }
 0xacd   : > { %10113 = vmatprep.subr.bf16.mxu0 %v10112_v9  ;;  %v10120_v9 = vpack.c.bf16 %v12363_v44, %v12360_v39 }
 0xace   : > { %v7562_v15 = vadd.f32 %v7561_v50, %v7560_v51  ;;  %v12368_v50 = vld [vmem:[%s13384_s9 + $0x110] sm:$0xff] }
 0xacf   : > { %10121 = vmatprep.subr.bf16.mxu1 %v10120_v9  ;;  %v12427_v9 = vld [vmem:[%s13384_s9 + $0x1b8] sm:$0xff] }
 0xad0   : > { %v7564_v38 = vadd.f32 %v7563_v5, %v7562_v15  ;;  %10115 = vmatpush3.bf16.msra.mxu0 %v10114_v29  ;;  %v7569_v15 = vsel %vm4346_vm5, %v12258_v34, 0.0  ;;  %v7571_v34 = vsel %vm4346_vm5, %v12261_v37, 0.0 }
 0xad2   : > { %v7566_v55 = vadd.f32 %v7565_v28, %v7564_v38  ;;  %v6562_v28 = vrot.slane %v12210_v36, %v6529_v57  ;;  %v7573_v57 = vsel %vm4346_vm5, %v12271_v53, 0.0 }
 0xadc   : > { %v6890_v42 = vpop.f32.mrb[84].mxu0  ;;  %v6931_v35 = vpop.f32.mrb[100].mxu1 }
 0xadd   : > { %v6932_v23 = vadd.f32 %v6931_v35, %v6574_v52  ;;  %v6892_v49 = vpop.f32.mrb[85].mxu0  ;;  %v6933_v47 = vpop.f32.mrb[101].mxu1  ;;  %v6811_v52 = vadd.f32 %v12247_v13, %v6554_v32  ;;  %v10122_v35 = vpack.c.bf16 %v12371_v8, %v12368_v50  ;;  %v6852_v13 = vadd.f32 %v12249_v14, %v6562_v28  ;;  %v12393_v32 = vld [vmem:[%s13384_s9 + $0x280] sm:$0xff]  ;;  %v12406_v14 = vld [vmem:[%s13384_s9 + $0x1a8] sm:$0xff]  ;;  %v12431_v28 = vld [vmem:[%s13384_s9 + $0x130] sm:$0xff] }
 0xade   : > { %v6893_v3 = vadd.f32 %v6892_v49, %v6570_v59  ;;  %v12373_v7 = vadd.f32 %v6933_v47, %v6578_v20  ;;  %v6894_v51 = vpop.f32.mrb[86].mxu0  ;;  %v6935_v5 = vpop.f32.mrb[102].mxu1  ;;  %v7568_v59 = vadd.f32 %v7567_v30, %v7566_v55  ;;  %v6891_v20 = vadd.f32 %v6890_v42, %v6566_v6  ;;  %v12396_v6 = vld [vmem:[%s13384_s9 + $0x288] sm:$0xff]  ;;  %v12403_v49 = vld [vmem:[%s13384_s9 + $0x1a0] sm:$0xff] }
 0xadf   : > { %v7069_v10 = vrot.slane %v6932_v23, 6  ;;  %v6895_v29 = vpop.f32.mrb[87].mxu0  ;;  %v6936_v11 = vpop.f32.mrb[103].mxu1  ;;  %10123 = vmatpush3.bf16.msra.mxu1 %v10122_v35  ;;  %v7029_v36 = vrot.slane %v6811_v52, 7  ;;  %v6850_v42 = vadd.f32 %v12236_v4, %v6558_v46  ;;  %v7575_v23 = vsel %vm4346_vm5, %v12274_v54, 0.0  ;;  %v12414_v55 = vld [vmem:[%s13384_s9 + $0x120] sm:$0xff] }
 0xae0   : > { %v7068_v38 = vrot.slane %v6893_v3, 6  ;;  %v7570_v33 = vadd.f32 %v7569_v15, %v7568_v59  ;;  %v7067_v30 = vrot.slane %v6891_v20, 6  ;;  %v7577_v4 = vsel %vm4346_vm5, %v12283_v16, 0.0  ;;  %v12417_v3 = vld [vmem:[%s13384_s9 + $0x128] sm:$0xff]  ;;  %v12424_v16 = vld [vmem:[%s13384_s9 + $0x1b0] sm:$0xff] }
 0xae1   : > { %7078 = vrot.lane.b32.xlu1 %v7069_v10, %s13288_s12  ;;  %v10148_v46 = vpack.c.bf16 %v12396_v6, %v12393_v32  ;;  %v7031_v54 = vrot.slane %v6852_v13, 7  ;;  %v7030_v51 = vrot.slane %v6850_v42, 7  ;;  %v7579_v5 = vsel %vm4346_vm5, %v12286_v17, 0.0  ;;  %v12434_v10 = vld [vmem:[%s13384_s9 + $0x138] sm:$0xff]  ;;  %v12448_v35 = vld [vmem:[%s13384_s9 + $0x1c8] sm:$0xff] }
 0xae2   : > { %7076 = vrot.lane.b32.xlu0 %v7068_v38, %s13288_s12  ;;  %v7572_v37 = vadd.f32 %v7571_v34, %v7570_v33  ;;  %s13385_s12 = smov 118   ;;  %v10124_v15 = vpack.c.bf16 %v12406_v14, %v12403_v49  ;;  %v7581_v17 = vsel %vm4346_vm5, %v12303_v56, 0.0  ;;  %v10126_v29 = vpack.c.bf16 %v12417_v3, %v12414_v55  ;;  %v12445_v34 = vld [vmem:[%s13384_s9 + $0x1c0] sm:$0xff]  ;;  %v12459_v13 = vld [vmem:[%s13384_s9 + $0x148] sm:$0xff]  ;;  %v12470_v42 = vld [vmem:[%s13384_s9 + $0x1d8] sm:$0xff] }
 0xae3   : > { %10149 = vmatprep.subr.bf16.mxu0 %v10148_v46  ;;  %v7070_v11 = vrot.slane %v12373_v7, 6  ;;  %v10128_v38 = vpack.c.bf16 %v12427_v9, %v12424_v16  ;;  %v7032_v33 = vrot.slane %v6891_v20, 7  ;;  %v7583_v56 = vsel %vm4346_vm5, %v12306_v48, 0.0  ;;  %v12477_v46 = vld [vmem:[%s13384_s9 + $0x150] sm:$0xff] }
 0xae4   : > { %v7574_v53 = vadd.f32 %v7573_v57, %v7572_v37  ;;  %10125 = vmatprep.subr.bf16.mxu1 %v10124_v15  ;;  %v10130_v57 = vpack.c.bf16 %v12434_v10, %v12431_v28  ;;  %v7585_v48 = vsel %vm4346_vm5, %v12318_v12, 0.0  ;;  %v10132_v20 = vpack.c.bf16 %v12448_v35, %v12445_v34  ;;  %v12467_v37 = vld [vmem:[%s13384_s9 + $0x1d0] sm:$0xff]  ;;  %v12480_v12 = vld [vmem:[%s13384_s9 + $0x158] sm:$0xff] }
 0xae5   : > { %7039 = vrot.lane.b32.xlu1 %v7029_v36, %s13385_s12  ;;  %10127 = vmatpush3.bf16.msra.mxu1 %v10126_v29  ;;  %v12456_v36 = vld [vmem:[%s13384_s9 + $0x140] sm:$0xff]  ;;  %v7591_v15 = vsel %vm4346_vm5, %v12338_v26, 0.0  ;;  %v12500_v29 = vld [vmem:[%s13384_s9 + $0x168] sm:$0xff]  ;;  %v12508_v26 = vld [vmem:[%s13384_s9 + $0x1f0] sm:$0xff] }
 0xae6   : > { %7074 = vrot.lane.b32.xlu0 %v7067_v30, %s13386_s8  ;;  %v7576_v47 = vadd.f32 %v7575_v23, %v7574_v53  ;;  %10129 = vmatprep.subr.bf16.mxu1 %v10128_v38  ;;  %v7587_v23 = vsel %vm4346_vm5, %v12321_v21, 0.0  ;;  %v10134_v53 = vpack.c.bf16 %v12459_v13, %v12456_v36  ;;  %v7589_v21 = vsel %vm4346_vm5, %v12335_v0, 0.0 }
 0xae7   : > { %v7593_v38 = vsel %vm4346_vm5, %v12368_v50, 0.0 }
 0xae8   : > { %v7578_v52 = vadd.f32 %v7577_v4, %v7576_v47  ;;  %v12487_v47 = vld [vmem:[%s13384_s9 + $0x1e0] sm:$0xff] }
 0xae9   : > { %7043 = vrot.lane.b32.xlu1 %v7031_v54, %s13385_s12  ;;  %10131 = vmatpush3.bf16.msra.mxu1 %v10130_v57  ;;  %v10136_v54 = vpack.c.bf16 %v12470_v42, %v12467_v37  ;;  %v7595_v57 = vsel %vm4346_vm5, %v12371_v8, 0.0 }
 0xaea   : > { %7041 = vrot.lane.b32.xlu0 %v7030_v51, %s13385_s12  ;;  %v7580_v59 = vadd.f32 %v7579_v5, %v7578_v52  ;;  %10133 = vmatprep.subr.bf16.mxu1 %v10132_v20  ;;  %v12490_v51 = vld [vmem:[%s13384_s9 + $0x1e8] sm:$0xff]  ;;  %v10138_v52 = vpack.c.bf16 %v12480_v12, %v12477_v46  ;;  %v7187_v20 = vld [vmem:[%s13384_s9 + $0x170] sm:$0xff] }
 0xaeb   : > { %v10140_v0 = vpack.c.bf16 %v12490_v51, %v12487_v47 }
 0xaec   : > { %v7582_v7 = vadd.f32 %v7581_v17, %v7580_v59  ;;  %v12497_v17 = vld [vmem:[%s13384_s9 + $0x160] sm:$0xff]  ;;  %v5743_v59 = vld [vmem:[%s13383_s3 + $0x10] sm:$0x7] }
 0xaed   : > { %7080 = vrot.lane.b32.xlu1 %v7070_v11, %s13386_s8  ;;  %10135 = vmatpush3.bf16.msra.mxu1 %v10134_v53  ;;  %v6586_v53 = vrot.slane %v5743_v59, %v11705_v43  ;;  %v6590_v8 = vrot.slane %v5743_v59, %v12350_v31 }
 0xaee   : > { %7045 = vrot.lane.b32.xlu0 %v7032_v33, %s13385_s12  ;;  %v7584_v30 = vadd.f32 %v7583_v56, %v7582_v7  ;;  %10137 = vmatprep.subr.bf16.mxu1 %v10136_v54  ;;  %v12511_v33 = vld [vmem:[%s13384_s9 + $0x1f8] sm:$0xff]  ;;  %v10142_v7 = vpack.c.bf16 %v12500_v29, %v12497_v17  ;;  %s13387_s12 = sld [smem:[#allocation17_spill]] }
 0xaef   : > { %v10144_v50 = vpack.c.bf16 %v12511_v33, %v12508_v26 }
 0xaf0   : > { %v7586_v4 = vadd.f32 %v7585_v48, %v7584_v30  ;;  %v6582_v48 = vrot.slane %v5743_v59, %v11735_v1  ;;  %v7188_v30 = vld [vmem:[%s13384_s9 + $0x178] sm:$0xff]  ;;  %v7601_v59 = vsel %vm4346_vm5, %v12431_v28, 0.0 }
 0xaf1   : > { %10139 = vmatpush3.bf16.msra.mxu1 %v10138_v52  ;;  %v10146_v52 = vpack.c.bf16 %v7188_v30, %v7187_v20 }
 0xaf2   : > { %v7588_v5 = vadd.f32 %v7587_v23, %v7586_v4  ;;  %10141 = vmatprep.subr.bf16.mxu1 %v10140_v0  ;;  %v7597_v4 = vsel %vm4346_vm5, %v12414_v55, 0.0 }
 0xaf4   : > { %v7590_v11 = vadd.f32 %v7589_v21, %v7588_v5  ;;  %s1203_s17 = scalar_lea.vmem %s13387_s12, %s13300_s14  ;;  %s11105_s14 = smov 2  }
 0xaf5   : > { %10143 = vmatpush3.bf16.msra.mxu1 %v10142_v7  ;;  %v12540_v28 = vld [vmem:[%s1203_s17] sm:$0x7]  ;;  %s13389_s17 = sld [smem:[#allocation44_spill]] }
 0xaf6   : > { %v7592_v56 = vadd.f32 %v7591_v15, %v7590_v11  ;;  %v7599_v15 = vsel %vm4346_vm5, %v12417_v3, 0.0  ;;  %10145 = vmatprep.subr.bf16.mxu1 %v10144_v50 }
 0xaf8   : > { %v7594_v23 = vadd.f32 %v7593_v38, %v7592_v56 }
 0xaf9   : > { %10147 = vmatpush3.bf16.msra.mxu1 %v10146_v52 }
 0xafa   : > { %v7596_v54 = vadd.f32 %v7595_v57, %v7594_v23 }
 0xafc   : > { %v6972_v21 = vpop.f32.mrb[88].mxu0  ;;  %v7013_v5 = vpop.f32.mrb[104].mxu1  ;;  %v7598_v56 = vadd.f32 %v7597_v4, %v7596_v54  ;;  %v7607_v4 = vsel %vm4346_vm5, %v12459_v13, 0.0  ;;  %v7613_v13 = vsel %vm4346_vm5, %v12497_v17, 0.0  ;;  %v7623_v17 = vsel %vm4346_vm5, %v12341_v27, 0.0 }
 0xafd   : > { %v6973_v11 = vadd.f32 %v6972_v21, %v6582_v48  ;;  %v6974_v0 = vpop.f32.mrb[89].mxu0  ;;  %v10075_v38 = vpop.f32.mrb[105].mxu1  ;;  %v7014_v23 = vadd.f32 %v7013_v5, %v6590_v8  ;;  %v7603_v48 = vsel %vm4346_vm5, %v12434_v10, 0.0  ;;  %v7609_v8 = vsel %vm4346_vm5, %v12477_v46, 0.0 }
 0xafe   : > { %v6975_v63 = vadd.f32 %v6974_v0, %v6586_v53  ;;  %v6976_v55 = vpop.f32.mrb[90].mxu0  ;;  %v7016_v40 = vpop.f32.mrb[106].mxu1  ;;  %v7600_v7 = vadd.f32 %v7599_v15, %v7598_v56  ;;  %v11101_v53 = vmov 0.0|0.0   ;;  %v13388_v21 = vmov 0  }
 0xaff   : > { %v7071_v57 = vrot.slane %v6973_v11, 6  ;;  %v6977_v41 = vpop.f32.mrb[91].mxu0  ;;  %v10076_v3 = vpop.f32.mrb[107].mxu1  ;;  %10180 = vmatprep.subr.bf16.mxu1 %v11101_v53  ;;  %v7605_v40 = vsel %vm4346_vm5, %v12456_v36, 0.0  ;;  %v7615_v15 = vsel %vm4346_vm5, %v12500_v29, 0.0  ;;  %v7617_v46 = vsel %vm4346_vm5, %v7187_v20, 0.0 }
 0xb00   : > { %v7072_v45 = vrot.slane %v6975_v63, 6  ;;  %v7602_v50 = vadd.f32 %v7601_v59, %v7600_v7  ;;  %v7073_v41 = vrot.slane %v7014_v23, 6  ;;  %v7619_v11 = vsel %vm4346_vm5, %v7188_v30, 0.0 }
 0xb01   : > { %7082 = vrot.lane.b32.xlu0 %v7071_v57, %s13386_s8  ;;  %v7621_v38 = vsel %vm4346_vm5, %v12324_v25, 0.0  ;;  %v7625_v29 = vsel %vm4346_vm5, %v12360_v39, 0.0  ;;  %v7627_v57 = vsel %vm4346_vm5, %v12363_v44, 0.0  ;;  %v7629_v30 = vsel %vm4346_vm5, %v12403_v49, 0.0 }
 0xb02   : > { %7084 = vrot.lane.b32.xlu1 %v7072_v45, %s13386_s8  ;;  %v7604_v63 = vadd.f32 %v7603_v48, %v7602_v50  ;;  %v7611_v45 = vsel %vm4346_vm5, %v12480_v12, 0.0  ;;  %v7631_v25 = vsel %vm4346_vm5, %v12406_v14, 0.0  ;;  %v7633_v27 = vsel %vm4346_vm5, %v12424_v16, 0.0 }
 0xb03   : > { %v7635_v39 = vsel %vm4346_vm5, %v12427_v9, 0.0  ;;  %v7637_v44 = vsel %vm4346_vm5, %v12445_v34, 0.0  ;;  %v7639_v49 = vsel %vm4346_vm5, %v12448_v35, 0.0  ;;  %v7641_v14 = vsel %vm4346_vm5, %v12467_v37, 0.0 }
 0xb04   : > { %v7606_v10 = vadd.f32 %v7605_v40, %v7604_v63  ;;  %v7643_v16 = vsel %vm4346_vm5, %v12470_v42, 0.0  ;;  %v7647_v63 = vsel %vm4346_vm5, %v12490_v51, 0.0  ;;  %v12593_v42 = vld [vmem:[%s13384_s9 + $0x200] sm:$0xff] }
 0xb05   : > { %7086 = vrot.lane.b32.xlu0 %v7073_v41, %s13386_s8  ;;  %v7645_v41 = vsel %vm4346_vm5, %v12487_v47, 0.0  ;;  %v7653_v47 = vsel %vm4346_vm5, %v12593_v42, 0.0  ;;  %s13301_s8 = smul.u32 28, %s11381_s2 }
 0xb06   : > { %7731 = vperm.xlu1 %10310, %v12540_v28   ;;  %v7608_v54 = vadd.f32 %v7607_v4, %v7606_v10  ;;  %v7649_v4 = vsel %vm4346_vm5, %v12508_v26, 0.0  ;;  %v7651_v10 = vsel %vm4346_vm5, %v12511_v33, 0.0  ;;  %v12603_v26 = vld [vmem:[%s13384_s9 + $0x210] sm:$0xff] }
 0xb07   : > { %v7657_v33 = vsel %vm4346_vm5, %v12603_v26, 0.0  ;;  %s12707_s12 = scalar_lea.vmem %s13389_s17, %s13301_s8  ;;  %s11103_s17 = smov 127  }
 0xb08   : > { %v7610_v36 = vadd.f32 %v7609_v8, %v7608_v54  ;;  %v12598_v54 = vld [vmem:[%s13384_s9 + $0x208] sm:$0xff]  ;;  %s13306_s8 = sand.u32 1, %s11328_s0  }
 0xb09   : > { %7750 = vperm.xlu0 %10311, %v12540_v28   ;;  %s12859_s22 = scalar_lea.sflag [#allocation5], %s13306_s8 }
 0xb0a   : > { %10312 = vset.pattern.permute.xlu1 %v13388_v21  ;;  %v7612_v5 = vadd.f32 %v7611_v45, %v7610_v36  ;;  %v7655_v45 = vsel %vm4346_vm5, %v12598_v54, 0.0 }
 0xb0b   : > { %7741 = vperm.xlu1 %10312, %v12540_v28  }
 0xb0c   : > { %v7614_v52 = vadd.f32 %v7613_v13, %v7612_v5 }
 0xb0d   : > { %10313 = vset.pattern.permute.xlu0 %v13388_v21  ;;  %v12608_v21 = vld [vmem:[%s13384_s9 + $0x218] sm:$0xff] }
 0xb0e   : > { %v7616_v12 = vadd.f32 %v7615_v15, %v7614_v52  ;;  %v7659_v5 = vsel %vm4346_vm5, %v12608_v21, 0.0  ;;  %v12613_v15 = vld [vmem:[%s13384_s9 + $0x220] sm:$0xff] }
 0xb10   : > { %v7618_v0 = vadd.f32 %v7617_v46, %v7616_v12  ;;  %v7661_v46 = vsel %vm4346_vm5, %v12613_v15, 0.0  ;;  %v12618_v12 = vld [vmem:[%s13384_s9 + $0x228] sm:$0xff] }
 0xb12   : > { %v7620_v56 = vadd.f32 %v7619_v11, %v7618_v0  ;;  %v7663_v0 = vsel %vm4346_vm5, %v12618_v12, 0.0 }
 0xb14   : > { %v7622_v55 = vadd.f32 %v7621_v38, %v7620_v56  ;;  %v12623_v38 = vld [vmem:[%s13384_s9 + $0x230] sm:$0xff] }
 0xb16   : > { %v7624_v59 = vadd.f32 %v7623_v17, %v7622_v55  ;;  %v7665_v17 = vsel %vm4346_vm5, %v12623_v38, 0.0  ;;  %v12628_v55 = vld [vmem:[%s13384_s9 + $0x238] sm:$0xff] }
 0xb18   : > { %v7626_v20 = vadd.f32 %v7625_v29, %v7624_v59  ;;  %v7667_v59 = vsel %vm4346_vm5, %v12628_v55, 0.0 }
 0xb1a   : > { %v7628_v23 = vadd.f32 %v7627_v57, %v7626_v20  ;;  %v12633_v57 = vld [vmem:[%s13384_s9 + $0x240] sm:$0xff] }
 0xb1c   : > { %v7630_v3 = vadd.f32 %v7629_v30, %v7628_v23  ;;  %v7669_v30 = vsel %vm4346_vm5, %v12633_v57, 0.0  ;;  %v12638_v23 = vld [vmem:[%s13384_s9 + $0x248] sm:$0xff] }
 0xb1e   : > { %v7632_v7 = vadd.f32 %v7631_v25, %v7630_v3  ;;  %v7671_v3 = vsel %vm4346_vm5, %v12638_v23, 0.0 }
 0xb20   : > { %v7634_v48 = vadd.f32 %v7633_v27, %v7632_v7  ;;  %v12643_v27 = vld [vmem:[%s13384_s9 + $0x250] sm:$0xff] }
 0xb22   : > { %v7636_v50 = vadd.f32 %v7635_v39, %v7634_v48  ;;  %v7673_v39 = vsel %vm4346_vm5, %v12643_v27, 0.0  ;;  %v12648_v48 = vld [vmem:[%s13384_s9 + $0x258] sm:$0xff] }
 0xb24   : > { %v7638_v53 = vadd.f32 %v7637_v44, %v7636_v50  ;;  %v7675_v50 = vsel %vm4346_vm5, %v12648_v48, 0.0 }
 0xb26   : > { %v7640_v40 = vadd.f32 %v7639_v49, %v7638_v53  ;;  %v7034_v49 = vpop.permute.xlu1 %7033 }
 0xb28   : > { %v7642_v9 = vadd.f32 %v7641_v14, %v7640_v40  ;;  %v12653_v14 = vld [vmem:[%s13384_s9 + $0x260] sm:$0xff] }
 0xb29   : > { %v7677_v40 = vsel %vm4346_vm5, %v12653_v14, 0.0 }
 0xb2a   : > { %v7644_v34 = vadd.f32 %v7643_v16, %v7642_v9  ;;  %v12658_v9 = vld [vmem:[%s13384_s9 + $0x268] sm:$0xff] }
 0xb2c   : > { %v7646_v35 = vadd.f32 %v7645_v41, %v7644_v34  ;;  %v7679_v41 = vsel %vm4346_vm5, %v12658_v9, 0.0  ;;  %v12663_v34 = vld [vmem:[%s13384_s9 + $0x270] sm:$0xff] }
 0xb2e   : > { %v7648_v37 = vadd.f32 %v7647_v63, %v7646_v35  ;;  %v7681_v35 = vsel %vm4346_vm5, %v12663_v34, 0.0 }
 0xb30   : > { %v7650_v8 = vadd.f32 %v7649_v4, %v7648_v37  ;;  %v6522_v4 = vrot.slane %v12168_v58, %v11705_v43  ;;  %v7036_v37 = vpop.permute.xlu1 %7035  ;;  %v7685_v43 = vsel %vm4346_vm5, %v12393_v32, 0.0  ;;  %v7223_v32 = vld [vmem:[%s13384_s9 + $0x290] sm:$0xff] }
 0xb32   : > { %v7652_v51 = vadd.f32 %v7651_v10, %v7650_v8  ;;  %v12672_v8 = vld [vmem:[%s13384_s9 + $0x278] sm:$0xff] }
 0xb33   : > { %v12669_v10 = vpop.permute.xlu0 %7037 }
 0xb34   : > { %v7654_v36 = vadd.f32 %v7653_v47, %v7652_v51  ;;  %v7683_v51 = vsel %vm4346_vm5, %v12672_v8, 0.0 }
 0xb36   : > { %v7656_v13 = vadd.f32 %v7655_v45, %v7654_v36  ;;  %v7049_v36 = vsel %vm7047_vm10, %v7036_v37, %v12669_v10 }
 0xb38   : > { %v7658_v52 = vadd.f32 %v7657_v33, %v7656_v13  ;;  %v6518_v33 = vrot.slane %v12168_v58, %v11735_v1  ;;  %v6647_v13 = vadd.f32 %v12177_v62, %v6522_v4  ;;  %v7048_v1 = vsel %vm7047_vm10, %v7034_v49, %v7036_v37  ;;  %v7227_v4 = vld [vmem:[%s13384_s9 + $0x2b0] sm:$0xff] }
 0xb39   : > { %v7689_v62 = vsel %vm4346_vm5, %v7223_v32, 0.0 }
 0xb3a   : > { %v7660_v11 = vadd.f32 %v7659_v5, %v7658_v52 }
 0xb3c   : > { %v7662_v56 = vadd.f32 %v7661_v46, %v7660_v11  ;;  %v7687_v11 = vsel %vm4346_vm5, %v12396_v6, 0.0 }
 0xb3e   : > { %v7664_v29 = vadd.f32 %v7663_v0, %v7662_v56  ;;  %v7104_v0 = vsel %vm7102_vm12, %v6647_v13, %v7049_v36 }
 0xb40   : > { %v7666_v20 = vadd.f32 %v7665_v17, %v7664_v29  ;;  %v6645_v29 = vadd.f32 %v12173_v60, %v6518_v33 }
 0xb42   : > { %v7668_v25 = vadd.f32 %v7667_v59, %v7666_v20  ;;  %v7224_v59 = vld [vmem:[%s13384_s9 + $0x298] sm:$0xff] }
 0xb44   : > { %v7670_v7 = vadd.f32 %v7669_v30, %v7668_v25  ;;  %v7691_v25 = vsel %vm4346_vm5, %v7224_v59, 0.0 }
 0xb46   : > { %v7672_v44 = vadd.f32 %v7671_v3, %v7670_v7  ;;  %v7103_v3 = vsel %vm7102_vm12, %v6645_v29, %v7048_v1 }
 0xb48   : > { %v7674_v53 = vadd.f32 %v7673_v39, %v7672_v44  ;;  %v7225_v39 = vld [vmem:[%s13384_s9 + $0x2a0] sm:$0xff] }
 0xb49   : > { %v7693_v49 = vsel %vm4346_vm5, %v7225_v39, 0.0 }
 0xb4a   : > { %v7676_v16 = vadd.f32 %v7675_v50, %v7674_v53  ;;  %v10150_v50 = vpack.c.bf16 %v12598_v54, %v12593_v42  ;;  %v10154_v42 = vpack.c.bf16 %v12608_v21, %v12603_v26  ;;  %v7697_v54 = vsel %vm4346_vm5, %v7227_v4, 0.0  ;;  %v7230_v21 = vld [vmem:[%s13384_s9 + $0x2c8] sm:$0xff] }
 0xb4c   : > { %v7678_v63 = vadd.f32 %v7677_v40, %v7676_v16  ;;  %v10152_v16 = vpack.c.bf16 %v7224_v59, %v7223_v32 }
 0xb4e   : > { %v7680_v47 = vadd.f32 %v7679_v41, %v7678_v63  ;;  %v7226_v41 = vld [vmem:[%s13384_s9 + $0x2a8] sm:$0xff] }
 0xb50   : > { %v7682_v45 = vadd.f32 %v7681_v35, %v7680_v47  ;;  %v7695_v35 = vsel %vm4346_vm5, %v7226_v41, 0.0  ;;  %v10156_v47 = vpack.c.bf16 %v7226_v41, %v7225_v39 }
 0xb52   : > { %v7684_v52 = vadd.f32 %v7683_v51, %v7682_v45  ;;  %v7228_v51 = vld [vmem:[%s13384_s9 + $0x2b8] sm:$0xff] }
 0xb53   : > { %v12683_v5 = vpop.permute.xlu1 %7078  ;;  %v7699_v36 = vsel %vm4346_vm5, %v7228_v51, 0.0  ;;  %v10160_v26 = vpack.c.bf16 %v7228_v51, %v7227_v4 }
 0xb54   : > { %v7077_v46 = vpop.permute.xlu0 %7076  ;;  %v7686_v17 = vadd.f32 %v7685_v43, %v7684_v52  ;;  %v7229_v43 = vld [vmem:[%s13384_s9 + $0x2c0] sm:$0xff]  ;;  %v10158_v52 = vpack.c.bf16 %v12618_v12, %v12613_v15  ;;  %v7232_v12 = vld [vmem:[%s13384_s9 + $0x2d8] sm:$0xff] }
 0xb55   : > { %v7090_v56 = vsel %vm7088_vm8, %v7077_v46, %v12683_v5  ;;  %v10164_v15 = vpack.c.bf16 %v7230_v21, %v7229_v43  ;;  %v7707_v29 = vsel %vm4346_vm5, %v7232_v12, 0.0 }
 0xb56   : > { %v7111_v58 = vsel %vm3887_vm4, %v7104_v0, %v7090_v56  ;;  %v7688_v20 = vadd.f32 %v7687_v11, %v7686_v17  ;;  %v7703_v0 = vsel %vm4346_vm5, %v7230_v21, 0.0  ;;  %v7231_v56 = vld [vmem:[%s13384_s9 + $0x2d0] sm:$0xff]  ;;  %v10162_v17 = vpack.c.bf16 %v12628_v55, %v12623_v38 }
 0xb57   : > { %v12696_v6 = vmul.f32 0.2, %v7111_v58  ;;  %v7040_v13 = vpop.permute.xlu1 %7039  ;;  %v7705_v1 = vsel %vm4346_vm5, %v7231_v56, 0.0  ;;  %v10168_v55 = vpack.c.bf16 %v7232_v12, %v7231_v56 }
 0xb58   : > { %v7075_v30 = vpop.permute.xlu0 %7074  ;;  %v7690_v44 = vadd.f32 %v7689_v62, %v7688_v20  ;;  %v7233_v20 = vld [vmem:[%s13384_s9 + $0x2e0] sm:$0xff]  ;;  %v7050_v4 = vsel %vm7047_vm10, %v12669_v10, %v7040_v13 }
 0xb59   : > { %v7089_v7 = vsel %vm7088_vm8, %v7075_v30, %v7077_v46  ;;  %7310 = vmatprep.mubr.f32.mxu0 %v12696_v6  ;;  %v7701_v46 = vsel %vm4346_vm5, %v7229_v43, 0.0  ;;  %v7709_v38 = vsel %vm4346_vm5, %v7233_v20, 0.0  ;;  %v12763_v43 = vld [vmem:[%s13384_s9 + $0x308] sm:$0x3] }
 0xb5a   : > { %v7110_v60 = vsel %vm3887_vm4, %v7103_v3, %v7089_v7  ;;  %v7692_v63 = vadd.f32 %v7691_v25, %v7690_v44  ;;  %v10166_v25 = vpack.c.bf16 %v12638_v23, %v12633_v57  ;;  %v7234_v3 = vld [vmem:[%s13384_s9 + $0x2e8] sm:$0xff]  ;;  %v10836_v44 = vld [vmem:[%s13383_s3] sm:$0xff]  ;;  %v10170_v57 = vpack.c.bf16 %v12648_v48, %v12643_v27  ;;  %s12849_s3 = sshll.u32 %s11328_s0, 4 }
 0xb5b   : > { %v7123_v53 = vcombine.low %v7110_v60, %v7111_v58  ;;  %v12713_v40 = vmul.f32 0.2, %v7110_v60  ;;  %v7044_v62 = vpop.permute.xlu1 %7043  ;;  %v7711_v39 = vsel %vm4346_vm5, %v7234_v3, 0.0  ;;  %v6526_v60 = vrot.slane %v10836_v44, %v12350_v31  ;;  %v7237_v48 = vld [vmem:[%s13384_s9 + $0x300] sm:$0xff] }
 0xb5c   : > { %v7694_v37 = vadd.f32 %v7693_v49, %v7692_v63  ;;  %v7042_v59 = vpop.permute.xlu0 %7041  ;;  %v7235_v49 = vld [vmem:[%s13384_s9 + $0x2f0] sm:$0xff]  ;;  %v10172_v41 = vpack.c.bf16 %v7234_v3, %v7233_v20  ;;  %v7717_v51 = vsel %vm4346_vm5, %v7237_v48, 0.0  ;;  %v10181_v56 = vpack.c.bf16 %v12763_v43, %v7237_v48 }
 0xb5d   : > { %7129 = vst [vmem:[%s12707_s12] sm:$0x77] %v7123_v53  ;;  %7311 = vmatmul.mubr.f32.vlgmr.msra.gmra.mrb[92].mxu0 %v12713_v40  ;;  %v7713_v23 = vsel %vm4346_vm5, %v7235_v49, 0.0  ;;  %v7817_v20 = vrot.slane %v12540_v28, 1 }
 0xb5e   : > { %10151 = vmatpush3.bf16.msra.mxu0 %v10150_v50  ;;  %v7696_v45 = vadd.f32 %v7695_v35, %v7694_v37  ;;  %v7236_v35 = vld [vmem:[%s13384_s9 + $0x2f8] sm:$0xff]  ;;  %v6686_v37 = vadd.f32 %v12175_v61, %v6526_v60 }
 0xb5f   : > { %10153 = vmatprep.subr.bf16.mxu0 %v10152_v16  ;;  %v7081_v53 = vpop.permute.xlu1 %7080  ;;  %v7715_v31 = vsel %vm4346_vm5, %v7236_v35, 0.0  ;;  %7818 = vrot.lane.b32.xlu0 %v7817_v20, %s11103_s17  ;;  %s11104_s17 = smov 1  }
 0xb60   : > { %v7698_v33 = vadd.f32 %v7697_v54, %v7696_v45  ;;  %v7046_v16 = vpop.permute.xlu0 %7045  ;;  %v7091_v27 = vsel %vm7088_vm8, %v12683_v5, %v7081_v53  ;;  %v7105_v10 = vsel %vm7102_vm12, %v6686_v37, %v7050_v4 }
 0xb62   : > { %10155 = vmatpush3.bf16.msra.mxu0 %v10154_v42  ;;  %v7700_v11 = vadd.f32 %v7699_v36, %v7698_v33  ;;  %v7051_v42 = vsel %vm7047_vm10, %v7040_v13, %v7042_v59  ;;  %v10176_v36 = vpack.c.bf16 %v7236_v35, %v7235_v49  ;;  %v7052_v33 = vsel %vm7047_vm10, %v7042_v59, %v7044_v62 }
 0xb63   : > { %10157 = vmatprep.subr.bf16.mxu0 %v10156_v47  ;;  %v10174_v47 = vpack.c.bf16 %v12658_v9, %v12653_v14  ;;  %v7106_v5 = vsel %vm7102_vm12, %v12179_v2, %v7051_v42  ;;  %v7112_v13 = vsel %vm3887_vm4, %v7105_v10, %v7091_v27  ;;  %v10178_v2 = vpack.c.bf16 %v12672_v8, %v12663_v34 }
 0xb64   : > { %v7702_v32 = vadd.f32 %v7701_v46, %v7700_v11  ;;  %v13390_v59 = vmov 0.0  }
 0xb66   : > { %10159 = vmatpush3.bf16.msra.mxu0 %v10158_v52  ;;  %v7704_v58 = vadd.f32 %v7703_v0, %v7702_v32  ;;  %v7053_v52 = vsel %vm7047_vm10, %v7044_v62, %v7046_v16  ;;  %v7107_v32 = vsel %vm7102_vm12, %v12197_v18, %v7052_v33 }
 0xb67   : > { %10161 = vmatprep.subr.bf16.mxu0 %v10160_v26  ;;  %v7108_v12 = vsel %vm7102_vm12, %v12201_v22, %v7053_v52 }
 0xb68   : > { %v7706_v30 = vadd.f32 %v7705_v1, %v7704_v58  ;;  %v7109_v1 = vsel %vm7102_vm12, %v12199_v19, %v7046_v16 }
 0xb6a   : > { %10163 = vmatpush3.bf16.msra.mxu0 %v10162_v17  ;;  %v7708_v7 = vadd.f32 %v7707_v29, %v7706_v30  ;;  %v12782_v17 = vmul.f32 0.2, %v7112_v13 }
 0xb6b   : > { %10165 = vmatprep.subr.bf16.mxu0 %v10164_v15 }
 0xb6c   : > { %v7710_v50 = vadd.f32 %v7709_v38, %v7708_v7 }
 0xb6e   : > { %10167 = vmatpush3.bf16.msra.mxu0 %v10166_v25  ;;  %v7712_v63 = vadd.f32 %v7711_v39, %v7710_v50  ;;  %v7728_v39 = vmul.f32 64.0, %v11693_v24 }
 0xb6f   : > { %10169 = vmatprep.subr.bf16.mxu0 %v10168_v55 }
 0xb70   : > { %v7714_v54 = vadd.f32 %v7713_v23, %v7712_v63 }
 0xb72   : > { %10171 = vmatpush3.bf16.msra.mxu0 %v10170_v57  ;;  %v7716_v61 = vadd.f32 %v7715_v31, %v7714_v54 }
 0xb73   : > { %v7083_v45 = vpop.permute.xlu0 %7082  ;;  %10173 = vmatprep.subr.bf16.mxu0 %v10172_v41 }
 0xb74   : > { %v7092_v14 = vsel %vm7088_vm8, %v7081_v53, %v7083_v45  ;;  %v7085_v9 = vpop.permute.xlu1 %7084  ;;  %v12773_v21 = vadd.f32 %v7717_v51, %v7716_v61  ;;  %v13391_v53 = vld [vmem:[#allocation49_spill] sm:$0xff] }
 0xb75   : > { %v7113_v46 = vsel %vm3887_vm4, %v7106_v5, %v7092_v14  ;;  %v7093_v26 = vsel %vm7088_vm8, %v7083_v45, %v7085_v9 }
 0xb76   : > { %v7124_v11 = vcombine.low %v7112_v13, %v7113_v46  ;;  %10175 = vmatpush3.bf16.msra.mxu0 %v10174_v47  ;;  %v12775_v0 = vmul.f32 0.2, %v7113_v46  ;;  %v7114_v34 = vsel %vm3887_vm4, %v7107_v32, %v7093_v26 }
 0xb77   : > { %v7087_v15 = vpop.permute.xlu0 %7086  ;;  %10177 = vmatprep.subr.bf16.mxu0 %v10176_v36  ;;  %v12800_v62 = vmul.f32 0.2, %v7114_v34 }
 0xb78   : > { %7130 = vst [vmem:[%s12707_s12 + $0x8] sm:$0x77] %v7124_v11  ;;  %v7094_v8 = vsel %vm7088_vm8, %v7085_v9, %v7087_v15  ;;  %v7116_v18 = vsel %vm3887_vm4, %v7109_v1, %v7087_v15  ;;  %7380 = vmatprep.mubr.f32.mxu1 %v12775_v0 }
 0xb79   : > { %v7115_v19 = vsel %vm3887_vm4, %v7108_v12, %v7094_v8  ;;  %7133 = vst.msk [vmem:[%s12707_s12 + $0x18] sm:$0x7] %vm7132_vm15, %v7116_v18  ;;  %7381 = vmatmul.mubr.f32.vlgmr.msra.gmra.mrb[46].mxu1 %v12782_v17  ;;  %v12802_v29 = vmul.f32 0.2, %v7116_v18 }
 0xb7a   : > { %v7125_v58 = vcombine.low %v7114_v34, %v7115_v19  ;;  %10179 = vmatpush3.bf16.msra.mxu0 %v10178_v2  ;;  %10183 = vmatpush3.bf16.msk.msra.mxu1 %vm10182_vm6, %v10181_v56  ;;  %v12798_v22 = vmul.f32 0.2, %v7115_v19 }
 0xb7b   : > { %10081 = vmatprep.mubr.msk.f32.mxu1 %vm11092_vm0, %v13390_v59  ;;  %vm7810_vm0 = vcmask 1045504  }
 0xb7c   : > { %7131 = vst [vmem:[%s12707_s12 + $0x10] sm:$0x77] %v7125_v58  ;;  %7450 = vmatprep.mubr.f32.mxu0 %v12798_v22  ;;  %s13392_s12 = sld [smem:[#allocation45_spill]] }
 0xb7d   : > { %7451 = vmatmul.mubr.f32.vlgmr.msra.gmra.mrb[94].mxu0 %v12800_v62  ;;  %10082 = vmatmul.mubr.msk.f32.vlgmr.msra.gmra.mrb[108].mxu1 %vm7239_vm13, %v12802_v29 }
 0xb82   : > { %s12853_s9 = scalar_lea.hbm %s13392_s12, %s12849_s3 }
 0xb85   : > { %v12811_v55 = vpop.permute.xlu1 %7731 }
 0xb86   : > { %v7734_v49 = vsub.f32 %v12811_v55, %v7728_v39  ;;  %v7735_v36 = vsub.f32 %v7728_v39, %v12811_v55 }
 0xb88   : > { %v12813_v3 = vpop.permute.xlu0 %7750  ;;  %v7766_v42 = vmul.f32 %v7734_v49, %v7734_v49  ;;  %v7763_v45 = vrot.slane %v7734_v49, 1 }
 0xb89   : > { %v7758_v60 = vrot.slane %v12813_v3, 1 }
 0xb8a   : > { %v12815_v7 = vpop.permute.xlu1 %7741  ;;  %v7768_v54 = vrot.slane %v7766_v42, 1 }
 0xb8b   : > { %v7755_v57 = vmul.f32 %v13391_v53, %v12815_v7  ;;  %v7760_v35 = vmul.f32 %v13391_v53, %v7758_v60 }
 0xb8c   : > { %v7770_v14 = vadd.f32 %v7768_v54, %v7766_v42 }
 0xb8d   : > { %v7757_v37 = vmul.f32 %v7755_v57, %v7734_v49  ;;  %v7761_v48 = vmul.f32 %v7760_v35, %v7758_v60  ;;  %v7756_v10 = vmul.f32 %v7755_v57, %v12815_v7  ;;  %v7765_v13 = vmul.f32 %v7763_v45, %v7760_v35 }
 0xb8e   : > { %v7771_v1 = vmul.f32 %v13391_v53, %v7770_v14 }
 0xb8f   : > { %v7785_v47 = vrot.slane %v7757_v37, 7  ;;  %v7788_v5 = vrot.slane %v7761_v48, 6  ;;  %v7791_v15 = vrot.slane %v7765_v13, 5 }
 0xb91   : > { %v7805_v9 = vsel %vm7102_vm12, %v7756_v10, %v7785_v47 }
 0xb92   : > { %v7806_v32 = vsel %vm3887_vm4, %v7805_v9, %v7788_v5 }
 0xb93   : > { %v7807_v18 = vsel %vm4350_vm11, %v7806_v32, %v7791_v15 }
 0xc30   : > { %v9714_v30 = vpop.f32.mrb[92].mxu0 }
 0xc31   : > { %v9715_v25 = vpop.f32.mrb[93].mxu0 }
 0xc32   : > { %v9716_v38 = vadd.f32 %v9715_v25, %v9714_v30  ;;  %v7794_v30 = vrot.slane %v7771_v1, 4 }
 0xc34   : > { %v7808_v39 = vsel %vm4247_vm9, %v7807_v18, %v7794_v30 }
 0xc4c   : > { %v9749_v44 = vpop.f32.mrb[46].mxu1 }
 0xc4d   : > { %v9750_v50 = vpop.f32.mrb[47].mxu1 }
 0xc4e   : > { %v9751_v23 = vadd.f32 %v9750_v50, %v9749_v44 }
 0xc50   : > { %v7383_v16 = vadd.f32 %v9751_v23, %v9716_v38  ;;  %v9784_v41 = vpop.f32.mrb[94].mxu0  ;;  %v7522_v63 = vpop.f32.mrb[108].mxu1 }
 0xc51   : > { %v9785_v4 = vpop.f32.mrb[95].mxu0  ;;  %v10083_v31 = vpop.f32.mrb[109].mxu1 }
 0xc52   : > { %v9786_v24 = vadd.f32 %v9785_v4, %v9784_v41 }
 0xc54   : > { %v7453_v27 = vadd.f32 %v9786_v24, %v7383_v16 }
 0xc56   : > { %v12823_v51 = vadd.f32 %v7522_v63, %v7453_v27 }
 0xc58   : > { %v7737_v61 = vrot.slane %v12823_v51, 2  ;;  %v7746_v33 = vrot.slane %v12823_v51, 1  ;;  %v7744_v46 = vmul.f32 %v12815_v7, %v12823_v51  ;;  %v7753_v11 = vmul.f32 %v12813_v3, %v12823_v51 }
 0xc5a   : > { %v7739_v52 = vmul.f32 %v7737_v61, %v7735_v36  ;;  %v7748_v26 = vmul.f32 %v7746_v33, %v7735_v36 }
 0xc5c   : > { %v7745_v2 = vsub.f32 %v7739_v52, %v7744_v46  ;;  %v7754_v56 = vsub.f32 %v7748_v26, %v7753_v11 }
 0xc5e   : > { %v7772_v12 = vmul.f32 %v7755_v57, %v7745_v2  ;;  %v7774_v34 = vrot.slane %v7754_v56, 1  ;;  %v7778_v8 = vmul.f32 %v7754_v56, %v7734_v49  ;;  %v7777_v58 = vmul.f32 %v7745_v2, %v7734_v49  ;;  %v7819_v49 = vpop.permute.xlu0 %7818 }
 0xc5f   : > { %v7821_v41 = vmul.f32 %v7819_v49, %v12540_v28 }
 0xc60   : > { %v7776_v19 = vmul.f32 %v7774_v34, %v7760_v35  ;;  %v7780_v59 = vrot.slane %v7778_v8, 1  ;;  %v7797_v20 = vrot.slane %v7772_v12, 3 }
 0xc61   : > { %10816 = vrcp.f32 %v7821_v41 }
 0xc62   : > { %v7782_v25 = vadd.f32 %v7780_v59, %v7777_v58  ;;  %v7800_v38 = vrot.slane %v7776_v19, 2  ;;  %v7809_v60 = vsel %vm5535_vm3, %v7808_v39, %v7797_v20 }
 0xc64   : > { %v7783_v44 = vmul.f32 %v13391_v53, %v7782_v25  ;;  %v7811_v57 = vsel %vm7810_vm0, %v7809_v60, %v7800_v38 }
 0xc66   : > { %v7803_v50 = vrot.slane %v7783_v44, 1 }
 0xc68   : > { %v7813_v23 = vsel %vm7812_vm2, %v7811_v57, %v7803_v50 }
 0xc69   : > { %v7814_v16 = vsel %vm4346_vm5, %v7813_v23, 0.0 }
 0xc6a   : > { %7815 = vadd.xlane.f32.xlu1 %v7814_v16 }
 0xc6b   : > { %v10817_v63 = vpop.eup %10816 }
 0xc6c   : > { %v7827_v35 = vrot.slane %v10817_v63, 7  ;;  %v7833_v4 = vrot.slane %v10817_v63, 5  ;;  %v7830_v31 = vrot.slane %v10817_v63, 6  ;;  %v7836_v37 = vrot.slane %v10817_v63, 4 }
 0xc6d   : > { %v7842_v33 = vrot.slane %v10817_v63, 2  ;;  %v7839_v11 = vrot.slane %v10817_v63, 3  ;;  %v7845_v34 = vrot.slane %v10817_v63, 1 }
 0xcf7   : > { %v7816_v53 = vpop.xlane.xlu1 %7815 }
 0xcf8   : > { %v7824_v42 = vadd.f32 1e-06, %v7816_v53  ;;  %v7829_v24 = vmul.f32 %v7827_v35, %v7816_v53  ;;  %v7835_v27 = vmul.f32 %v7833_v4, %v7816_v53  ;;  %v7844_v2 = vmul.f32 %v7842_v33, %v7816_v53 }
 0xcf9   : > { %v7841_v59 = vmul.f32 %v7839_v11, %v7816_v53  ;;  %v7847_v39 = vmul.f32 %v7845_v34, %v7816_v53 }
 0xcfa   : > { %v7832_v48 = vmul.f32 %v7830_v31, %v7824_v42  ;;  %v7838_v54 = vmul.f32 %v7836_v37, %v7824_v42  ;;  %v7852_v47 = vmul.f32 %v7835_v27, %v7835_v27  ;;  %v7862_v36 = vrot.slane %v7829_v24, 7 }
 0xcfb   : > { %v7825_v5 = vmul.f32 %v10817_v63, %v7824_v42  ;;  %v7868_v28 = vmul.f32 %v7829_v24, %v7829_v24  ;;  %v7858_v56 = vrot.slane %v7829_v24, 6  ;;  %v7875_v18 = vrot.slane %v7835_v27, 3 }
 0xcfc   : > { %v7849_v10 = vrot.slane %v7838_v54, 2  ;;  %v7861_v45 = vsub.f32 0.0, %v7832_v48  ;;  %v7865_v61 = vrot.slane %v7838_v54, 4  ;;  %v7854_v14 = vrot.slane %v7852_v47, 1 }
 0xcfd   : > { %v7870_v32 = vrot.slane %v7868_v28, 1  ;;  %v7873_v1 = vsub.f32 0.0, %v7825_v5  ;;  %v7860_v20 = vmul.f32 %v7858_v56, %v7835_v27  ;;  %v7920_v30 = vrot.slane %v7844_v2, 6 }
 0xcfe   : > { %v7851_v13 = vmul.f32 %v7849_v10, %v7832_v48  ;;  %v7864_v9 = vmul.f32 %v7862_v36, %v7861_v45  ;;  %v7867_v52 = vmul.f32 %v7865_v61, %v7825_v5  ;;  %v7901_v44 = vrot.slane %v7844_v2, 3 }
 0xcff   : > { %v7877_v25 = vmul.f32 %v7875_v18, %v7873_v1  ;;  %v7879_v50 = vrot.slane %v7832_v48, 2  ;;  %v7897_v57 = vrot.slane %v7841_v59, 3  ;;  %v7917_v41 = vrot.slane %v7841_v59, 2 }
 0xd00   : > { %v7856_v46 = vsub.f32 %v7851_v13, %v7854_v14  ;;  %v7887_v26 = vrot.slane %v7864_v9, 1  ;;  %v7872_v8 = vsub.f32 %v7867_v52, %v7870_v32  ;;  %v7903_v23 = vmul.f32 %v7901_v44, %v7860_v20 }
 0xd01   : > { %v7938_v16 = vmul.f32 %v7920_v30, %v7877_v25  ;;  %v7927_v35 = vrot.slane %v7847_v39, 7  ;;  %v7881_v4 = vmul.f32 %v7879_v50, %v7825_v5  ;;  %v7919_v37 = vmul.f32 %v7917_v41, %v7860_v20 }
 0xd02   : > { %v7883_v15 = vrot.slane %v7856_v46, 2  ;;  %v7889_v12 = vmul.f32 %v7887_v26, %v7829_v24  ;;  %v7922_v60 = vmul.f32 %v7920_v30, %v7872_v8  ;;  %v7899_v49 = vmul.f32 %v7897_v57, %v7856_v46 }
 0xd03   : > { %v7905_v31 = vrot.slane %v7903_v23, 1  ;;  %v7929_v42 = vmul.f32 %v7927_v35, %v7877_v25  ;;  %v7940_v24 = vrot.slane %v7938_v16, 6  ;;  %v7909_v27 = vrot.slane %v7847_v39, 5 }
 0xd04   : > { %v7885_v19 = vmul.f32 %v7883_v15, %v7825_v5  ;;  %v7891_v58 = vrot.slane %v7889_v12, 1  ;;  %v7924_v63 = vrot.slane %v7922_v60, 5  ;;  %v7937_v53 = vmul.f32 %v7897_v57, %v7864_v9 }
 0xd05   : > { %v7907_v54 = vadd.f32 %v7905_v31, %v7899_v49  ;;  %v7943_v10 = vmul.f32 %v7927_v35, %v7881_v4  ;;  %v7911_v45 = vmul.f32 %v7909_v27, %v7864_v9  ;;  %v7931_v48 = vrot.slane %v7929_v42, 5 }
 0xd06   : > { %v7893_v38 = vadd.f32 %v7891_v58, %v7885_v19  ;;  %v7926_v47 = vadd.f32 %v7924_v63, %v7919_v37  ;;  %v7942_v61 = vadd.f32 %v7940_v24, %v7937_v53 }
 0xd07   : > { %v7912_v33 = vadd.f32 %v7911_v45, %v7907_v54  ;;  %v7945_v52 = vrot.slane %v7943_v10, 6 }
 0xd08   : > { %10818 = vrcp.f32 %v7893_v38  ;;  %v7933_v13 = vadd.f32 %v7931_v48, %v7926_v47 }
 0xd09   : > { %v7947_v26 = vadd.f32 %v7945_v52, %v7942_v61 }
 0xd12   : > { %v10819_v36 = vpop.eup %10818 }
 0xd13   : > { %v7914_v28 = vrot.slane %v10819_v36, 6  ;;  %v7934_v14 = vrot.slane %v10819_v36, 5 }
 0xd15   : > { %v12842_v5 = vmul.f32 %v7914_v28, %v7912_v33  ;;  %v7936_v46 = vmul.f32 %v7934_v14, %v7933_v13  ;;  %v7948_v2 = vmul.f32 %v7947_v26, %v7914_v28 }
 0xd17   : > { %v7965_v11 = vrot.slane %v12842_v5, 2  ;;  %v7967_v9 = vrot.slane %v7936_v46, 2  ;;  %v7950_v1 = vrot.slane %v7936_v46, 1 }
 0xd19   : > { %v7969_v56 = vsel %vm7102_vm12, %v7965_v11, %v7967_v9 }
 0xd1a   : > { %v7970_v32 = vsel %vm3887_vm4, %v7969_v56, %v7948_v2 }
 0xd1b   : > { %7973 = vperm.xlu0 %10313, %v7970_v32  }
 0xd1f   : > { %7951 = vrot.lane.b32.xlu0 %v7950_v1, %s11104_s17  ;;  %s11106_s17 = smov [#allocation4]  }
 0xd20   : > { %s10841_s24 = sshll.u32 %s11106_s17, 4  ;;  %s10842_s24 = int_to_ptr.vmem [resolvable:$false] %s10841_s24 }
 0xd21   : > { %p10844_p0 = scmp.lt.s32.totalorder %s8385_s21, %s10842_s24 }
 0xd23   : > { %7955 = vrot.lane.b32.xlu0 %v7948_v2, %s11105_s14  ;;  %s10843_s14 = scalar_lea.vmem %s10842_s24, 32 }
 0xd24   : > { %p10845_p1 = scmp.lt.s32.totalorder %s10843_s14, %s10837_s23 }
 0xd26   : > { %p10846_p2 = por %p10845_p1, %p10844_p0 }
 0xd28   : > { %p10847_p3 = pnand %p10846_p2, %p10840_p13 }
 0xd2a   : > { %10850 = shalt.err (!%p10847_p3)
}
 0xd2b   : > { %s10851_s19 = scalar_lea.hbm %s12853_s9, 16  ;;  %s10855_s17 = scalar_lea.hbm %s13392_s12, 32 }
 0xd2c   : > { %p10852_p4 = scmp.ne.s32.totalorder %s12853_s9, %s10851_s19  ;;  %p10856_p9 = scmp.lt.u32.totalorder %s12853_s9, %s13392_s12 }
 0xd2d   : > { %p10857_p10 = scmp.lt.u32.totalorder %s10855_s17, %s10851_s19  ;;  %p10859_p12 = scmp.lt.u32.totalorder %s10851_s19, %s12853_s9 }
 0xd2e   : > { %p10853_p7 = pnand %p10852_p4, %p11347_p5 }
 0xd2f   : > { %p10858_p11 = por %p10857_p10, %p10856_p9 }
 0xd30   : > { %p10854_p8 = pneg %p10853_p7 }
 0xd31   : > { %p10860_p0 = por %p10859_p12, %p10858_p11 }
 0xd33   : > { %p10861_p13 = pnand %p10860_p0, %p10854_p8 }
 0xd35   : > { %10864 = shalt.err (!%p10861_p13)
}
 0xd36   : > { %s13394_s24 = sld [smem:[#allocation43_spill]]  ;;  %s13310_s23 = sshll.u32 %s11328_s0, 5 }
 0xd37   : > { %10192 = dma.vmem_to_hbm [thread:$0]  (%p11347_p5), %s8385_s21, 16, %s12853_s9, %s12859_s22  }
 0xd38   : > { %s8368_s14 = sshll.u32 %s11699_s16, 4  ;;  %s8319_s19 = scalar_lea.sflag [#allocation3], %s11689_s5  ;;  %s8369_s14 = int_to_ptr.vmem [resolvable:$true] %s8368_s14 }
 0xd39   : > { %s10865_s8 = scalar_lea.vmem %s8369_s14, 32  ;;  %s11107_s12 = smov [#allocation2]  }
 0xd3a   : > { %p10866_p1 = scmp.ne.s32.totalorder %s8369_s14, %s10865_s8  ;;  %s10869_s25 = sshll.u32 %s11107_s12, 4  ;;  %s10870_s25 = int_to_ptr.vmem [resolvable:$false] %s10869_s25 }
 0xd3b   : > { %s10871_s27 = scalar_lea.vmem %s10870_s25, 64  ;;  %p10872_p4 = scmp.lt.s32.totalorder %s8369_s14, %s10870_s25 }
 0xd3c   : > { %s12880_s17 = scalar_lea.hbm %s13394_s24, %s13310_s23  ;;  %p10867_p2 = pnand %p10866_p1, %p11347_p5 }
 0xd3d   : > { %p10873_p7 = scmp.lt.s32.totalorder %s10871_s27, %s10865_s8 }
 0xd3e   : > { %p10868_p3 = pneg %p10867_p2 }
 0xd3f   : > { %p10874_p8 = por %p10873_p7, %p10872_p4 }
 0xd41   : > { %p10875_p9 = pnand %p10874_p8, %p10868_p3 }
 0xd43   : > { %10878 = shalt.err (!%p10875_p9)
}
 0xd44   : > { %s10879_s21 = scalar_lea.hbm %s12880_s17, 32  ;;  %s10883_s16 = scalar_lea.hbm %s13394_s24, 64 }
 0xd45   : > { %p10880_p10 = scmp.ne.s32.totalorder %s12880_s17, %s10879_s21  ;;  %p10884_p0 = scmp.lt.u32.totalorder %s12880_s17, %s13394_s24 }
 0xd46   : > { %p10885_p13 = scmp.lt.u32.totalorder %s10883_s16, %s10879_s21  ;;  %p10887_p2 = scmp.lt.u32.totalorder %s10879_s21, %s12880_s17 }
 0xd47   : > { %p10881_p11 = pnand %p10880_p10, %p11347_p5 }
 0xd48   : > { %p10886_p1 = por %p10885_p13, %p10884_p0 }
 0xd49   : > { %p10882_p12 = pneg %p10881_p11 }
 0xd4a   : > { %p10888_p4 = por %p10887_p2, %p10886_p1 }
 0xd4c   : > { %p10889_p3 = pnand %p10888_p4, %p10882_p12 }
 0xd4e   : > { %10892 = shalt.err (!%p10889_p3)
}
 0xd4f   : > { %s13395_s25 = sld [smem:[#allocation46_spill]]  ;;  %s13396_s9 = scalar_lea.vmem [#allocation6], %s11689_s5 }
 0xd50   : > { %10191 = dma.vmem_to_hbm [thread:$0]  (%p11347_p5), %s8369_s14, 32, %s12880_s17, %s8319_s19  }
 0xd51   : > { %s8397_s8 = sshll.u32 %s13396_s9, 4  ;;  %s11108_s21 = smov [#allocation6]   ;;  %s8398_s8 = int_to_ptr.vmem [resolvable:$true] %s8397_s8 }
 0xd52   : > { %s10893_s12 = scalar_lea.vmem %s8398_s8, 16  ;;  %s10897_s16 = sshll.u32 %s11108_s21, 4  ;;  %s10898_s16 = int_to_ptr.vmem [resolvable:$false] %s10897_s16 }
 0xd53   : > { %p10894_p7 = scmp.ne.s32.totalorder %s8398_s8, %s10893_s12  ;;  %s10899_s23 = scalar_lea.vmem %s10898_s16, 32 }
 0xd54   : > { %p10900_p10 = scmp.lt.s32.totalorder %s8398_s8, %s10898_s16  ;;  %p10901_p11 = scmp.lt.s32.totalorder %s10899_s23, %s10893_s12 }
 0xd55   : > { %s12898_s27 = scalar_lea.hbm %s13395_s25, %s12849_s3  ;;  %p10895_p8 = pnand %p10894_p7, %p11347_p5 }
 0xd56   : > { %p10902_p12 = por %p10901_p11, %p10900_p10 }
 0xd57   : > { %p10896_p9 = pneg %p10895_p8 }
 0xd59   : > { %p10903_p0 = pnand %p10902_p12, %p10896_p9 }
 0xd5b   : > { %10906 = shalt.err (!%p10903_p0)
}
 0xd5c   : > { %s10907_s14 = scalar_lea.hbm %s12898_s27, 16  ;;  %s10911_s17 = scalar_lea.hbm %s13395_s25, 32 }
 0xd5d   : > { %p10908_p13 = scmp.ne.s32.totalorder %s12898_s27, %s10907_s14  ;;  %p10912_p4 = scmp.lt.u32.totalorder %s12898_s27, %s13395_s25 }
 0xd5e   : > { %p10913_p3 = scmp.lt.u32.totalorder %s10911_s17, %s10907_s14  ;;  %p10915_p8 = scmp.lt.u32.totalorder %s10907_s14, %s12898_s27 }
 0xd5f   : > { %p10909_p1 = pnand %p10908_p13, %p11347_p5 }
 0xd60   : > { %p10914_p7 = por %p10913_p3, %p10912_p4 }
 0xd61   : > { %p10910_p2 = pneg %p10909_p1 }
 0xd62   : > { %p10916_p10 = por %p10915_p8, %p10914_p7 }
 0xd64   : > { %p10917_p9 = pnand %p10916_p10, %p10910_p2 }
 0xd66   : > { %10920 = shalt.err (!%p10917_p9)
}
 0xd67   : > { %10193 = dma.vmem_to_hbm [thread:$0]  (%p11347_p5), %s8398_s8, 16, %s12898_s27, %s12859_s22   ;;  %v7719_v15 = vsel %vm4118_vm7, %v12763_v43, 0.0  ;;  %vm8002_vm9 = vcmask 165888   ;;  %vm7958_vm11 = vcmask 7168   ;;  %vm7960_vm5 = vcmask 15360  }
 0xd68   : > { %v7720_v12 = vadd.f32 %v7719_v15, %v12773_v21  ;;  %s13397_s23 = smul.u32 28, %s11381_s2  ;;  %s13398_s22 = sshll.u32 %s11381_s2, 2  ;;  %vm7962_vm3 = vcmask 18434  }
 0xd69   : > { %s1217_s27 = scalar_lea.vmem %s11295_s13, %s13398_s22  ;;  %s13399_s9 = sld [smem:[#allocation47_spill]] }
 0xd6a   : > { %v7721_v34 = vrot.slane %v7720_v12, 4  ;;  %s1213_s19 = scalar_lea.vmem %s11290_s6, %s13397_s23  ;;  %s1167_s2 = scalar_lea.vmem [#allocation7], %s11689_s5 }
 0xd6b   : > { %s8410_s8 = sshll.u32 %s1167_s2, 4  ;;  %s11109_s14 = smov [#allocation7]   ;;  %s12964_s8 = int_to_ptr.vmem [resolvable:$true] %s8410_s8 }
 0xd6c   : > { %v7722_v8 = vadd.f32 %v7721_v34, %v7720_v12  ;;  %s10921_s16 = scalar_lea.vmem %s12964_s8, 16  ;;  %s10925_s17 = sshll.u32 %s11109_s14, 4  ;;  %s10926_s17 = int_to_ptr.vmem [resolvable:$false] %s10925_s17 }
 0xd6d   : > { %p10922_p11 = scmp.ne.s32.totalorder %s12964_s8, %s10921_s16  ;;  %s10927_s23 = scalar_lea.vmem %s10926_s17, 32 }
 0xd6e   : > { %v7723_v18 = vrot.slane %v7722_v8, 2  ;;  %p10928_p13 = scmp.lt.s32.totalorder %s12964_s8, %s10926_s17  ;;  %p10929_p1 = scmp.lt.s32.totalorder %s10927_s23, %s10921_s16 }
 0xd6f   : > { %s12962_s12 = scalar_lea.hbm %s13399_s9, %s12849_s3  ;;  %s13400_s3 = sand.u32 1, %s11328_s0  }
 0xd70   : > { %v7724_v19 = vadd.f32 %v7723_v18, %v7722_v8  ;;  %s12975_s21 = scalar_lea.sflag [#allocation8], %s13400_s3  ;;  %p10923_p12 = pnand %p10922_p11, %p11347_p5 }
 0xd71   : > { %p10930_p2 = por %p10929_p1, %p10928_p13 }
 0xd72   : > { %v7725_v58 = vrot.slane %v7724_v19, 1  ;;  %p10924_p0 = pneg %p10923_p12 }
 0xd74   : > { %v7726_v59 = vadd.f32 %v7725_v58, %v7724_v19  ;;  %p10931_p4 = pnand %p10930_p2, %p10924_p0 }
 0xd9a   : > { %v7974_v20 = vpop.permute.xlu0 %7973 }
 0xd9b   : > { %v12923_v30 = vadd.f32 %v7974_v20, %v12713_v40  ;;  %v12926_v25 = vadd.f32 %v7974_v20, %v12696_v6  ;;  %v12929_v43 = vadd.f32 %v7974_v20, %v12782_v17  ;;  %v12932_v21 = vadd.f32 %v7974_v20, %v12775_v0 }
 0xd9c   : > { %v12935_v38 = vadd.f32 %v7974_v20, %v12800_v62  ;;  %v12938_v39 = vadd.f32 %v7974_v20, %v12798_v22  ;;  %v12941_v44 = vadd.f32 %v7974_v20, %v12802_v29  ;;  %v7983_v40 = vmul.f32 %v7974_v20, %v7726_v59 }
 0xd9d   : > { %v7992_v6 = vcombine.low %v12923_v30, %v12926_v25  ;;  %v7993_v0 = vcombine.low %v12929_v43, %v12932_v21  ;;  %v8012_v57 = vrot.slane %v12926_v25, 1  ;;  %v8013_v23 = vrot.slane %v12929_v43, 1 }
 0xd9e   : > { %v7994_v17 = vcombine.low %v12935_v38, %v12938_v39  ;;  %8001 = vst.msk [vmem:[%s1213_s19 + $0x18] sm:$0x7] %vm7132_vm15, %v12941_v44  ;;  %v7952_v22 = vpop.permute.xlu0 %7951  ;;  %v12955_v62 = vadd.f32 %v7983_v40, %v12823_v51  ;;  %v8011_v51 = vrot.slane %v12923_v30, 1  ;;  %v8014_v16 = vrot.slane %v12932_v21, 1 }
 0xd9f   : > { %7998 = vst [vmem:[%s1213_s19] sm:$0x77] %v7992_v6  ;;  %7999 = vst [vmem:[%s1213_s19 + $0x8] sm:$0x77] %v7993_v0  ;;  %v7959_v29 = vsel %vm7958_vm11, %v12842_v5, %v7952_v22  ;;  %v8015_v49 = vrot.slane %v12935_v38, 1  ;;  %v8016_v41 = vrot.slane %v12938_v39, 1  ;;  %v8017_v63 = vrot.slane %v12941_v44, 1 }
 0xda0   : > { %8000 = vst [vmem:[%s1213_s19 + $0x10] sm:$0x77] %v7994_v17  ;;  %8003 = vst.msk [vmem:[%s1217_s27] sm:$0x7] %vm8002_vm9, %v12955_v62 }
 0xda2   : > { %v7956_v60 = vpop.permute.xlu0 %7955 }
 0xda3   : > { %v7961_v50 = vsel %vm7960_vm5, %v7959_v29, %v7956_v60 }
 0xda4   : > { %7963 = vst.msk [vmem:[%s1167_s2 - $0x2] sm:$0x4] %vm7962_vm3, %v7961_v50 }
 0xda5   : > { %10934 = shalt.err (!%p10931_p4)
}
 0xda6   : > { %s10935_s19 = scalar_lea.hbm %s12962_s12, 16  ;;  %s10939_s22 = scalar_lea.hbm %s13399_s9, 32 }
 0xda7   : > { %p10936_p3 = scmp.ne.s32.totalorder %s12962_s12, %s10935_s19  ;;  %p10940_p10 = scmp.lt.u32.totalorder %s12962_s12, %s13399_s9 }
 0xda8   : > { %p10941_p9 = scmp.lt.u32.totalorder %s10939_s22, %s10935_s19  ;;  %p10943_p12 = scmp.lt.u32.totalorder %s10935_s19, %s12962_s12 }
 0xda9   : > { %p10937_p7 = pnand %p10936_p3, %p11347_p5 }
 0xdaa   : > { %p10942_p11 = por %p10941_p9, %p10940_p10 }
 0xdab   : > { %p10938_p8 = pneg %p10937_p7 }
 0xdac   : > { %p10944_p13 = por %p10943_p12, %p10942_p11 }
 0xdae   : > { %p10945_p0 = pnand %p10944_p13, %p10938_p8 }
 0xdb0   : > { %10948 = shalt.err (!%p10945_p0)
}
 0xdb1   : > { %10194 = dma.vmem_to_hbm [thread:$0]  (%p11347_p5), %s12964_s8, 16, %s12962_s12, %s12975_s21   ;;  %v8004_v35 = vmul.f32 %v12923_v30, %v12815_v7  ;;  %v8005_v4 = vmul.f32 %v12926_v25, %v12815_v7  ;;  %v8006_v31 = vmul.f32 %v12929_v43, %v12815_v7  ;;  %v8025_v37 = vmul.f32 %v8011_v51, %v12813_v3 }
 0xdb2   : > { %v8007_v42 = vmul.f32 %v12932_v21, %v12815_v7  ;;  %v8008_v24 = vmul.f32 %v12935_v38, %v12815_v7  ;;  %v8026_v27 = vmul.f32 %v8012_v57, %v12813_v3  ;;  %v8027_v54 = vmul.f32 %v8013_v23, %v12813_v3  ;;  %s10185_s27 = smul.u32 14, %s11689_s5  ;;  %s13402_s3 = sshll.u32 %s11689_s5, 1 }
 0xdb3   : > { %v8028_v47 = vmul.f32 %v8014_v16, %v12813_v3  ;;  %v8029_v53 = vmul.f32 %v8015_v49, %v12813_v3  ;;  %v8030_v10 = vmul.f32 %v8016_v41, %v12813_v3  ;;  %v8031_v45 = vmul.f32 %v8017_v63, %v12813_v3  ;;  %s10190_s2 = smul.u32 224, %s11328_s0  ;;  %s1194_s16 = scalar_lea.vmem [#allocation10], %s13402_s3 }
 0xdb4   : > { %v8009_v48 = vmul.f32 %v12938_v39, %v12815_v7  ;;  %v8039_v36 = vrot.slane %v12923_v30, 2  ;;  %v8040_v61 = vrot.slane %v12926_v25, 2  ;;  %v8041_v33 = vrot.slane %v12929_v43, 2  ;;  %s1187_s8 = scalar_lea.vmem [#allocation9], %s10185_s27  ;;  %s8443_s14 = sshll.u32 %s1194_s16, 4  ;;  %s13204_s14 = int_to_ptr.vmem [resolvable:$true] %s8443_s14 }
 0xdb5   : > { %v8010_v28 = vmul.f32 %v12941_v44, %v12815_v7  ;;  %v8032_v13 = vadd.f32 %v8025_v37, %v8004_v35  ;;  %v8042_v14 = vrot.slane %v12932_v21, 2  ;;  %v8043_v52 = vrot.slane %v12935_v38, 2  ;;  %s8430_s12 = sshll.u32 %s1187_s8, 4  ;;  %s13194_s17 = scalar_lea.hbm %s11300_s20, %s10190_s2  ;;  %s13197_s12 = int_to_ptr.vmem [resolvable:$true] %s8430_s12 }
 0xdb6   : > { %v8033_v5 = vadd.f32 %v8026_v27, %v8005_v4  ;;  %v8034_v46 = vadd.f32 %v8027_v54, %v8006_v31  ;;  %v8044_v26 = vrot.slane %v12938_v39, 2  ;;  %v8045_v11 = vrot.slane %v12941_v44, 2  ;;  %s13403_s23 = sshll.u32 %s11328_s0, 5  ;;  %s10949_s22 = scalar_lea.vmem %s13197_s12, 224 }
 0xdb7   : > { %v8035_v9 = vadd.f32 %v8028_v47, %v8007_v42  ;;  %v8036_v2 = vadd.f32 %v8029_v53, %v8008_v24  ;;  %v8037_v56 = vadd.f32 %v8030_v10, %v8009_v48  ;;  %v8038_v32 = vadd.f32 %v8031_v45, %v8010_v28  ;;  %s13202_s19 = scalar_lea.hbm %s11305_s4, %s13403_s23  ;;  %p10950_p1 = scmp.ne.s32.totalorder %s13197_s12, %s10949_s22 }
 0xdb8   : > { %v8053_v1 = vmul.f32 %v8039_v36, %v12811_v55  ;;  %v8054_v15 = vmul.f32 %v8040_v61, %v12811_v55  ;;  %v8055_v12 = vmul.f32 %v8041_v33, %v12811_v55  ;;  %v8067_v34 = vrot.slane %v12923_v30, 7  ;;  %s11110_s27 = smov [#allocation9]  }
 0xdb9   : > { %v8056_v8 = vmul.f32 %v8042_v14, %v12811_v55  ;;  %v8057_v18 = vmul.f32 %v8043_v52, %v12811_v55  ;;  %v8068_v19 = vrot.slane %v12926_v25, 7  ;;  %v8069_v58 = vrot.slane %v12929_v43, 7  ;;  %p10951_p2 = pnand %p10950_p1, %p11347_p5  ;;  %s10953_s2 = sshll.u32 %s11110_s27, 4  ;;  %s10954_s2 = int_to_ptr.vmem [resolvable:$false] %s10953_s2 }
 0xdba   : > { %v8058_v59 = vmul.f32 %v8044_v26, %v12811_v55  ;;  %v8059_v20 = vmul.f32 %v8045_v11, %v12811_v55  ;;  %v8070_v40 = vrot.slane %v12932_v21, 7  ;;  %v8071_v6 = vrot.slane %v12935_v38, 7  ;;  %s10955_s3 = scalar_lea.vmem %s10954_s2, 448  ;;  %p10956_p3 = scmp.lt.s32.totalorder %s13197_s12, %s10954_s2 }
 0xdbb   : > { %v13049_v0 = vadd.f32 %v8053_v1, %v8032_v13  ;;  %v13051_v17 = vadd.f32 %v8054_v15, %v8033_v5  ;;  %v8072_v22 = vrot.slane %v12938_v39, 7  ;;  %v8073_v29 = vrot.slane %v12941_v44, 7  ;;  %p10952_p4 = pneg %p10951_p2  ;;  %p10957_p7 = scmp.lt.s32.totalorder %s10955_s3, %s10949_s22 }
 0xdbc   : > { %v13055_v60 = vadd.f32 %v8055_v12, %v8034_v46  ;;  %v13057_v50 = vadd.f32 %v8056_v8, %v8035_v9  ;;  %v13059_v35 = vadd.f32 %v8057_v18, %v8036_v2  ;;  %v13061_v4 = vadd.f32 %v8058_v59, %v8037_v56 }
 0xdbd   : > { %v13063_v31 = vadd.f32 %v8059_v20, %v8038_v32  ;;  %v8081_v37 = vmul.f32 %v8067_v34, %v12815_v7  ;;  %v8082_v42 = vmul.f32 %v8068_v19, %v12815_v7  ;;  %v8083_v24 = vmul.f32 %v8069_v58, %v12815_v7  ;;  %p10958_p8 = por %p10957_p7, %p10956_p3 }
 0xdbe   : > { %v8084_v27 = vmul.f32 %v8070_v40, %v12815_v7  ;;  %v13070_v54 = vmul.f32 %v8071_v6, %v12815_v7  ;;  %v8088_v47 = vmul.f32 %v12923_v30, %v12813_v3  ;;  %v8116_v53 = vrot.slane %v12923_v30, 6 }
 0xdbf   : > { %v13076_v10 = vmul.f32 %v8072_v22, %v12815_v7  ;;  %v13079_v45 = vmul.f32 %v8073_v29, %v12815_v7  ;;  %v8089_v48 = vmul.f32 %v12926_v25, %v12813_v3  ;;  %v8090_v36 = vmul.f32 %v12929_v43, %v12813_v3  ;;  %p10959_p10 = pnand %p10958_p8, %p10952_p4 }
 0xdc0   : > { %v8091_v61 = vmul.f32 %v12932_v21, %v12813_v3  ;;  %v8092_v33 = vmul.f32 %v12935_v38, %v12813_v3  ;;  %v8117_v28 = vrot.slane %v12926_v25, 6  ;;  %v8118_v13 = vrot.slane %v12929_v43, 6 }
 0xdc1   : > { %v8119_v14 = vrot.slane %v12932_v21, 6  ;;  %v8120_v52 = vrot.slane %v12935_v38, 6  ;;  %v8121_v5 = vrot.slane %v12938_v39, 6  ;;  %v8122_v46 = vrot.slane %v12941_v44, 6 }
 0xdc2   : > { %v8130_v26 = vmul.f32 %v8116_v53, %v12815_v7  ;;  %v8131_v11 = vmul.f32 %v8117_v28, %v12815_v7  ;;  %v8132_v9 = vmul.f32 %v8118_v13, %v12815_v7  ;;  %v8137_v2 = vmul.f32 %v8067_v34, %v12813_v3 }
 0xdc3   : > { %v8133_v56 = vmul.f32 %v8119_v14, %v12815_v7  ;;  %v8134_v32 = vmul.f32 %v8120_v52, %v12815_v7  ;;  %v8135_v1 = vmul.f32 %v8121_v5, %v12815_v7  ;;  %v8136_v15 = vmul.f32 %v8122_v46, %v12815_v7 }
 0xdc4   : > { %v8138_v12 = vmul.f32 %v8068_v19, %v12813_v3  ;;  %v8139_v8 = vmul.f32 %v8069_v58, %v12813_v3  ;;  %v8140_v18 = vmul.f32 %v8070_v40, %v12813_v3  ;;  %v8141_v59 = vmul.f32 %v8071_v6, %v12813_v3 }
 0xdc5   : > { %v8093_v20 = vmul.f32 %v12938_v39, %v12813_v3  ;;  %v8142_v34 = vmul.f32 %v8072_v22, %v12813_v3  ;;  %v8143_v53 = vmul.f32 %v8073_v29, %v12813_v3  ;;  %v8144_v28 = vadd.f32 %v8137_v2, %v8130_v26 }
 0xdc6   : > { %v8094_v13 = vmul.f32 %v12941_v44, %v12813_v3  ;;  %v8145_v14 = vadd.f32 %v8138_v12, %v8131_v11  ;;  %v8146_v52 = vadd.f32 %v8139_v8, %v8132_v9  ;;  %v8147_v19 = vadd.f32 %v8140_v18, %v8133_v56 }
 0xdc7   : > { %v8148_v5 = vadd.f32 %v8141_v59, %v8134_v32  ;;  %v8151_v58 = vmul.f32 %v12923_v30, %v12811_v55  ;;  %v8152_v40 = vmul.f32 %v12926_v25, %v12811_v55  ;;  %v8153_v6 = vmul.f32 %v12929_v43, %v12811_v55 }
 0xdc8   : > { %v8095_v22 = vadd.f32 %v8088_v47, %v8081_v37  ;;  %v8149_v46 = vadd.f32 %v8142_v34, %v8135_v1  ;;  %v8150_v29 = vadd.f32 %v8143_v53, %v8136_v15  ;;  %v8154_v26 = vmul.f32 %v12932_v21, %v12811_v55 }
 0xdc9   : > { %v8155_v11 = vmul.f32 %v12935_v38, %v12811_v55  ;;  %v8158_v9 = vadd.f32 %v8151_v58, %v8144_v28  ;;  %v8159_v2 = vadd.f32 %v8152_v40, %v8145_v14  ;;  %v8160_v56 = vadd.f32 %v8153_v6, %v8146_v52 }
 0xdca   : > { %v8096_v32 = vadd.f32 %v8089_v48, %v8082_v42  ;;  %v8156_v12 = vmul.f32 %v12938_v39, %v12811_v55  ;;  %v8157_v8 = vmul.f32 %v12941_v44, %v12811_v55  ;;  %v8161_v18 = vadd.f32 %v8154_v26, %v8147_v19 }
 0xdcb   : > { %v8162_v37 = vadd.f32 %v8155_v11, %v8148_v5  ;;  %10820 = vrcp.f32 %v8158_v9  ;;  %v8285_v47 = vrot.slane %v12955_v62, 1  ;;  %v8293_v1 = vrot.slane %v12955_v62, 7 }
 0xdcc   : > { %v8097_v15 = vadd.f32 %v8090_v36, %v8083_v24  ;;  %v8163_v59 = vadd.f32 %v8156_v12, %v8149_v46  ;;  %10822 = vrcp.f32 %v8159_v2  ;;  %v8300_v34 = vrot.slane %v12955_v62, 6 }
 0xdcd   : > { %v8098_v53 = vadd.f32 %v8091_v61, %v8084_v27  ;;  %v8102_v42 = vmul.f32 %v8011_v51, %v12811_v55  ;;  %v8164_v48 = vadd.f32 %v8157_v8, %v8150_v29  ;;  %10824 = vrcp.f32 %v8160_v56 }
 0xdce   : > { %v8099_v28 = vadd.f32 %v8092_v33, %v13070_v54  ;;  %10826 = vrcp.f32 %v8161_v18  ;;  %v8302_v14 = vmul.f32 %v8300_v34, %v12815_v7  ;;  %v8303_v52 = vmul.f32 %v8293_v1, %v12813_v3 }
 0xdcf   : > { %v8100_v24 = vadd.f32 %v8093_v20, %v13076_v10  ;;  %v8101_v36 = vadd.f32 %v8094_v13, %v13079_v45  ;;  %10828 = vrcp.f32 %v8162_v37  ;;  %v8287_v27 = vmul.f32 %v8285_v47, %v12813_v3 }
 0xdd0   : > { %v8103_v30 = vmul.f32 %v8012_v57, %v12811_v55  ;;  %10830 = vrcp.f32 %v8163_v59  ;;  %v8304_v51 = vadd.f32 %v8303_v52, %v8302_v14  ;;  %v8305_v54 = vmul.f32 %v12955_v62, %v12811_v55 }
 0xdd1   : > { %v8104_v61 = vmul.f32 %v8013_v23, %v12811_v55  ;;  %10832 = vrcp.f32 %v8164_v48  ;;  %v8283_v10 = vmul.f32 %v12955_v62, %v12815_v7  ;;  %v8289_v45 = vrot.slane %v12955_v62, 2 }
 0xdd2   : > { %v8105_v25 = vmul.f32 %v8014_v16, %v12811_v55  ;;  %v8106_v57 = vmul.f32 %v8015_v49, %v12811_v55  ;;  %v8107_v33 = vmul.f32 %v8016_v41, %v12811_v55  ;;  %v8306_v43 = vadd.f32 %v8305_v54, %v8304_v51 }
 0xdd3   : > { %v8108_v23 = vmul.f32 %v8017_v63, %v12811_v55  ;;  %v8109_v20 = vadd.f32 %v8102_v42, %v8095_v22  ;;  %v8288_v13 = vadd.f32 %v8287_v27, %v8283_v10  ;;  %v8295_v19 = vmul.f32 %v8293_v1, %v12815_v7 }
 0xdd4   : > { %v8110_v5 = vadd.f32 %v8103_v30, %v8096_v32  ;;  %v8111_v21 = vadd.f32 %v8104_v61, %v8097_v15  ;;  %v8112_v16 = vadd.f32 %v8105_v25, %v8098_v53  ;;  %10834 = vrcp.f32 %v8306_v43 }
 0xdd5   : > { %v10821_v58 = vpop.eup %10820  ;;  %v8113_v38 = vadd.f32 %v8106_v57, %v8099_v28  ;;  %v8114_v49 = vadd.f32 %v8107_v33, %v8100_v24  ;;  %v8291_v40 = vmul.f32 %v8289_v45, %v12811_v55  ;;  %v8296_v39 = vmul.f32 %v12955_v62, %v12813_v3 }
 0xdd6   : > { %v10823_v41 = vpop.eup %10822  ;;  %v8115_v6 = vadd.f32 %v8108_v23, %v8101_v36  ;;  %v8179_v44 = vrot.slane %v10821_v58, 2  ;;  %v8200_v63 = vrot.slane %v10821_v58, 1  ;;  %v8298_v22 = vmul.f32 %v8285_v47, %v12811_v55 }
 0xdd7   : > { %v10825_v46 = vpop.eup %10824  ;;  %v8180_v7 = vrot.slane %v10823_v41, 2  ;;  %v8201_v29 = vrot.slane %v10823_v41, 1  ;;  %v8292_v26 = vadd.f32 %v8291_v40, %v8288_v13  ;;  %v8297_v11 = vadd.f32 %v8296_v39, %v8295_v19 }
 0xdd8   : > { %v10827_v9 = vpop.eup %10826  ;;  %v8181_v2 = vrot.slane %v10825_v46, 2  ;;  %v8193_v56 = vmul.f32 %v8179_v44, %v13049_v0  ;;  %v8202_v32 = vrot.slane %v10825_v46, 1  ;;  %v8214_v12 = vmul.f32 %v8200_v63, %v8109_v20 }
 0xdd9   : > { %vm8278_vm14 = vcmask 1043458   ;;  %v10829_v8 = vpop.eup %10828  ;;  %v8182_v3 = vrot.slane %v10827_v9, 2  ;;  %v8194_v62 = vmul.f32 %v8180_v7, %v13051_v17  ;;  %v8203_v18 = vrot.slane %v10827_v9, 1 }
 0xdda   : > { %v8215_v37 = vmul.f32 %v8201_v29, %v8110_v5  ;;  %v10831_v55 = vpop.eup %10830  ;;  %v8183_v47 = vrot.slane %v10829_v8, 2  ;;  %v8195_v1 = vmul.f32 %v8181_v2, %v13055_v60  ;;  %v8204_v15 = vrot.slane %v10829_v8, 1  ;;  %vm8279_vm10 = vmor %vm8278_vm14, %vm3887_vm4 }
 0xddb   : > { %v8216_v59 = vmul.f32 %v8202_v32, %v8111_v21  ;;  %v10833_v34 = vpop.eup %10832  ;;  %v8184_v53 = vrot.slane %v10831_v55, 2  ;;  %v8196_v0 = vmul.f32 %v8182_v3, %v13057_v50  ;;  %v8205_v42 = vrot.slane %v10831_v55, 1 }
 0xddc   : > { %v8217_v48 = vmul.f32 %v8203_v18, %v8112_v16  ;;  %v8185_v28 = vrot.slane %v10833_v34, 2  ;;  %v8197_v14 = vmul.f32 %v8183_v47, %v13059_v35  ;;  %v8206_v52 = vrot.slane %v10833_v34, 1  ;;  %v13401_v16 = vld [vmem:[#allocation48_spill] sm:$0xff] }
 0xddd   : > { %v8218_v17 = vmul.f32 %v8204_v15, %v8113_v38  ;;  %v8198_v24 = vmul.f32 %v8184_v53, %v13061_v4  ;;  %v8219_v36 = vmul.f32 %v8205_v42, %v8114_v49  ;;  %v8221_v27 = vsel %vm7102_vm12, %v8193_v56, %v8214_v12 }
 0xdde   : > { %v8222_v60 = vsel %vm7102_vm12, %v8194_v62, %v8215_v37  ;;  %v10835_v30 = vpop.eup %10834  ;;  %v8199_v51 = vmul.f32 %v8185_v28, %v13063_v31  ;;  %v8220_v54 = vmul.f32 %v8206_v52, %v8115_v6  ;;  %v8223_v50 = vsel %vm7102_vm12, %v8195_v1, %v8216_v59 }
 0xddf   : > { %v8224_v61 = vsel %vm7102_vm12, %v8196_v0, %v8217_v48  ;;  %v8225_v35 = vsel %vm7102_vm12, %v8197_v14, %v8218_v17  ;;  %v8226_v10 = vsel %vm7102_vm12, %v8198_v24, %v8219_v36  ;;  %v8228_v45 = vmul.f32 0.015625, %v8221_v27 }
 0xde0   : > { %v8229_v4 = vmul.f32 0.015625, %v8222_v60  ;;  %v8227_v25 = vsel %vm7102_vm12, %v8199_v51, %v8220_v54  ;;  %v8230_v57 = vmul.f32 0.015625, %v8223_v50  ;;  %v8231_v33 = vmul.f32 0.015625, %v8224_v61 }
 0xde1   : > { %v8232_v43 = vmul.f32 0.015625, %v8225_v35  ;;  %v8233_v23 = vmul.f32 0.015625, %v8226_v10  ;;  %v8234_v31 = vmul.f32 0.015625, %v8227_v25  ;;  %v8309_v13 = vrot.slane %v10835_v30, 2 }
 0xde2   : > { %v8242_v20 = vcombine.low %v8228_v45, %v8229_v4  ;;  %v8243_v19 = vcombine.low %v8230_v57, %v8231_v33  ;;  %v8299_v5 = vadd.f32 %v8298_v22, %v8297_v11  ;;  %v8312_v21 = vrot.slane %v10835_v30, 1 }
 0xde3   : > { %v8259_v38 = vcombine.low %v8232_v43, %v8233_v23  ;;  %vm8280_vm8 = vcmask 78852   ;;  %v8311_v49 = vmul.f32 %v8309_v13, %v8292_v26  ;;  %v8273_v6 = vrot.slane %v8234_v31, %v13401_v16 }
 0xde4   : > { %v8250_v58 = vrot.slane %v8242_v20, %v13401_v16  ;;  %v8257_v40 = vrot.slane %v8243_v19, %v13401_v16  ;;  %v8314_v39 = vmul.f32 %v8312_v21, %v8299_v5  ;;  %vm8281_vm4 = vmor %vm8280_vm8, %vm8279_vm10 }
 0xde5   : > { %v8266_v41 = vrot.slane %v8259_v38, %v13401_v16 }
 0xde6   : > { %v8258_v44 = vcombine.low %v8250_v58, %v8257_v40  ;;  %v8315_v63 = vsel %vm7102_vm12, %v8311_v49, %v8314_v39 }
 0xde7   : > { %v8274_v22 = vcombine.low %v8266_v41, %v8273_v6  ;;  %v8316_v46 = vmul.f32 0.015625, %v8315_v63 }
 0xde8   : > { %8277 = vst [vmem:[%s1187_s8] sm:$0xff] %v8258_v44 }
 0xde9   : > { %8282 = vst.msk [vmem:[%s1187_s8 + $0x8] sm:$0x3f] %vm8281_vm4, %v8274_v22 }
 0xdea   : > { %8317 = vst.msk [vmem:[%s1194_s16] sm:$0x3] %vm4118_vm7, %v8316_v46 }
 0xdeb   : > { %10962 = shalt.err (!%p10959_p10)
}
 0xdec   : > { %s10963_s0 = scalar_lea.hbm %s13194_s17, 224  ;;  %s10967_s8 = scalar_lea.hbm %s11300_s20, 448 }
 0xded   : > { %p10964_p9 = scmp.ne.s32.totalorder %s13194_s17, %s10963_s0  ;;  %p10968_p13 = scmp.lt.u32.totalorder %s13194_s17, %s11300_s20 }
 0xdee   : > { %p10969_p0 = scmp.lt.u32.totalorder %s10967_s8, %s10963_s0  ;;  %p10971_p2 = scmp.lt.u32.totalorder %s10963_s0, %s13194_s17 }
 0xdef   : > { %p10965_p11 = pnand %p10964_p9, %p11347_p5 }
 0xdf0   : > { %p10970_p1 = por %p10969_p0, %p10968_p13 }
 0xdf1   : > { %p10966_p12 = pneg %p10965_p11 }
 0xdf2   : > { %p10972_p3 = por %p10971_p2, %p10970_p1 }
 0xdf4   : > { %p10973_p4 = pnand %p10972_p3, %p10966_p12 }
 0xdf6   : > { %10976 = shalt.err (!%p10973_p4)
}
 0xdf7   : > { %10195 = dma.vmem_to_hbm [thread:$0]  (%p11347_p5), %s13197_s12, 224, %s13194_s17, %s12975_s21  }
 0xdf8   : > { %s8355_s16 = scalar_lea.sflag [#allocation11], %s11689_s5  ;;  %s10977_s23 = scalar_lea.vmem %s13204_s14, 32 }
 0xdf9   : > { %p10978_p7 = scmp.ne.s32.totalorder %s13204_s14, %s10977_s23  ;;  %s11111_s22 = smov [#allocation10]  }
 0xdfa   : > { %s10981_s27 = sshll.u32 %s11111_s22, 4  ;;  %s10982_s27 = int_to_ptr.vmem [resolvable:$false] %s10981_s27 }
 0xdfb   : > { %p10979_p8 = pnand %p10978_p7, %p11347_p5  ;;  %s10983_s2 = scalar_lea.vmem %s10982_s27, 64 }
 0xdfc   : > { %p10984_p9 = scmp.lt.s32.totalorder %s13204_s14, %s10982_s27  ;;  %p10985_p11 = scmp.lt.s32.totalorder %s10983_s2, %s10977_s23 }
 0xdfd   : > { %p10980_p10 = pneg %p10979_p8 }
 0xdfe   : > { %p10986_p12 = por %p10985_p11, %p10984_p9 }
 0xe00   : > { %p10987_p13 = pnand %p10986_p12, %p10980_p10 }
 0xe02   : > { %10990 = shalt.err (!%p10987_p13)
}
 0xe03   : > { %s10991_s5 = scalar_lea.hbm %s13202_s19, 32  ;;  %s10995_s21 = scalar_lea.hbm %s11305_s4, 64 }
 0xe04   : > { %p10992_p0 = scmp.ne.s32.totalorder %s13202_s19, %s10991_s5  ;;  %p10996_p3 = scmp.lt.u32.totalorder %s13202_s19, %s11305_s4 }
 0xe05   : > { %p10997_p4 = scmp.lt.u32.totalorder %s10995_s21, %s10991_s5  ;;  %p10999_p8 = scmp.lt.u32.totalorder %s10991_s5, %s13202_s19 }
 0xe06   : > { %p10993_p1 = pnand %p10992_p0, %p11347_p5 }
 0xe07   : > { %p10998_p7 = por %p10997_p4, %p10996_p3 }
 0xe08   : > { %p10994_p2 = pneg %p10993_p1 }
 0xe09   : > { %p11000_p9 = por %p10999_p8, %p10998_p7 }
 0xe0b   : > { %p11001_p10 = pnand %p11000_p9, %p10994_p2 }
 0xe0d   : > { %11004 = shalt.err (!%p11001_p10)
}
 0xe0e   : > { %10196 = dma.vmem_to_hbm [thread:$0]  (%p11347_p5), %s13204_s14, 32, %s13202_s19, %s8355_s16  }
 0xe0f PF: > { %p10222_p11 = scmp.ge.s32.totalorder %s11051_s15, 2  ;;  %s8455_s12 = sand.u32 1, %s11039_s7  }
 0xe10   : > { %s8456_s17 = scalar_lea.sflag [#allocation3], %s8455_s12 }
 0xe11   : > { %p10204_p12 = pnand %p10222_p11, %p11351_p6 }
 0xe13   : > { %11022 = dma.done.wait (!%p10204_p12), %s8456_s17, 32  }
 0xe14   : > { %11024 = vsyncadd (!%p10204_p12), %s8456_s17, 4294967264  ;;  %s13404_s3 = sadd.s32 4294967294, %s11051_s15  }
 0xe15   : > { %s8472_s0 = sand.u32 1, %s13404_s3  }
 0xe16   : > { %s8473_s8 = scalar_lea.sflag [#allocation5], %s8472_s0 }
 0xe17   : > { %11026 = dma.done.wait (!%p10204_p12), %s8473_s8, 32  }
 0xe18   : > { %11028 = vsyncadd (!%p10204_p12), %s8473_s8, 4294967264  ;;  %s8489_s28 = scalar_lea.sflag [#allocation8], %s8472_s0 }
 0xe19   : > { %11030 = dma.done.wait (!%p10204_p12), %s8489_s28, 240  }
 0xe1a   : > { %11032 = vsyncadd (!%p10204_p12), %s8489_s28, 4294967056  ;;  %s8521_s14 = scalar_lea.sflag [#allocation11], %s8455_s12 }
 0xe1b   : > { %11034 = dma.done.wait (!%p10204_p12), %s8521_s14, 32  }
 0xe1c   : > { %11036 = vsyncadd (!%p10204_p12), %s8521_s14, 4294967264  ;;  %p95_p5 = scmp.ge.s32.totalorder %s11332_s18, 4   ;;  %s13405_s7 = smov %s11043_s10 }
 0xe1d   : > { %s13406_s10 = smov %s11047_s11  ;;  %s13407_s11 = smov %s11345_s26 }
 0xe1e   : > { %s13408_s15 = smov %s11332_s18  ;;  %97 = sbr.rel (!%p95_p5) target bundleno = 88 (0x58), region = 343 }
 0xe25   :  { %8526 = vsyncpa [#allocation3], 1 }
 0xe26   :  { %8528 = vsyncpa [#allocation3 + $0x1], 1 }
 0xe27   :  { %8529 = vsyncpa [#allocation5], 1 }
 0xe28   :  { %8531 = vsyncpa [#allocation5 + $0x1], 1 }
 0xe29   :  { %8532 = vsyncpa [#allocation8], 1 }
 0xe2a   :  { %8534 = vsyncpa [#allocation8 + $0x1], 1 }
 0xe2b   :  { %8535 = vsyncpa [#allocation11], 1 }
 0xe2c   :  { %8537 = vsyncpa [#allocation11 + $0x1], 1 }

</bundles_post_ra>
